<compile_context>
chip_gen: v6e
topology: v6e:2x2x1
jax: 0.10.0
libtpu: 0.0.40
codegen_flags: <defaults>
</compile_context>

<pallas_src>
import functools

import numpy as np
import jax
import jax.numpy as jnp
from jax import lax
from jax.experimental import pallas as pl
from jax.experimental.pallas import tpu as pltpu

_BN_EPS = 1e-5
_NEG = -1e30          # "-inf" stand-in for max-pool masking (avoids inf*0 NaNs)

_CANDIDATE_OPS = ("max_pool_3x3", "avg_pool_3x3", "skip_connect",
                  "sep_conv_3x3", "sep_conv_5x5", "dil_conv_3x3", "dil_conv_5x5")


# ----------------------------- fused cell kernel ----------------------------

def _cell_kernel(x0_ref, x1_ref, wpre0_ref, wpre1_ref, amat_ref, ho_ref, wo_ref,
                 convg_hbm, o_ref, convg_vmem, dma_sem, *,
                 plan, N, H, W, C, has_conv):
    NH, L = N * H, W * C

    # Kick off the bf16 folded-conv-weight DMA immediately; it overlaps with the
    # preprocs and the matmul-free pool / skip edges that run first.
    if has_conv:
        convg_copy = pltpu.make_async_copy(convg_hbm, convg_vmem, dma_sem.at[0])
        convg_copy.start()
    state = {"ready": not has_conv}

    def convg():
        if not state["ready"]:
            convg_copy.wait()          # waited exactly once, at first conv edge
            state["ready"] = True
        return convg_vmem

    ho = ho_ref[...]                   # (NH, L) i32: spatial row index per element
    wo = wo_ref[...]                   # (NH, L) i32: spatial col index per element
    memo = {}                          # trace-time CSE of masks / counts

    def row_valid(dh):
        key = ("r", dh)
        if key not in memo:
            memo[key] = (ho + dh >= 0) & (ho + dh < H)
        return memo[key]

    def col_valid(dw):
        key = ("c", dw)
        if key not in memo:
            memo[key] = (wo + dw >= 0) & (wo + dw < W)
        return memo[key]

    def shift_rows(x, dh, fill=0.0):
        # out[n, h, :] = x[n, h+dh, :]; out-of-range rows (per image) = fill.
        if dh == 0:
            return x
        rolled = pltpu.roll(x, (-dh) % NH, axis=0)       # XLU sublane rotate
        return jnp.where(row_valid(dh), rolled, fill)

    def shift_cols(x, dw, fill=0.0):
        # out[.., w*C+c] = x[.., (w+dw)*C+c]; out-of-range cols = fill.
        if dw == 0:
            return x
        rolled = pltpu.roll(x, (-dw * C) % L, axis=1)    # XLU lane rotate
        return jnp.where(col_valid(dw), rolled, fill)

    def chan_avg(row):
        # per-channel average over W of a (1,L) row (lane = w*C + c), broadcast
        # back to every lane of that channel; one 8-sublane-padded MXU matmul
        # with amat = kron(ones(W,W)/W, I_C).
        r8 = jnp.broadcast_to(row, (8, L))
        return jnp.dot(r8, amat_ref[...], preferred_element_type=jnp.float32)[0:1]

    def bn(y):
        # train-mode BatchNorm(affine=False): stats over (N,H,W), two-pass var.
        mean_c = chan_avg(jnp.mean(y, axis=0, keepdims=True))      # (1, L)
        d = y - mean_c
        var_c = chan_avg(jnp.mean(d * d, axis=0, keepdims=True))   # (1, L)
        return d * lax.rsqrt(var_c + _BN_EPS)

    def std_conv(x, wref):             # ReLU -> 1x1 conv (block-diag w) -> BN
        y = jnp.dot(jnp.maximum(x, 0.0).astype(jnp.bfloat16), wref[...],
                    preferred_element_type=jnp.float32)
        return bn(y)

    def dil_conv(x, g0, K, dil, pad):
        # ReLU -> depthwise KxK (dilated, zero pad) -> 1x1 conv -> BN.  The K
        # row taps are concatenated along the contraction axis so the whole
        # depthwise+pointwise stage is ONE (NH, K*L) x (K*L, L) bf16 matmul.
        xr = jnp.maximum(x, 0.0)
        taps = [shift_rows(xr, kh * dil - pad) for kh in range(K)]
        lhs = jnp.concatenate(taps, axis=1).astype(jnp.bfloat16)
        w = convg()[pl.ds(g0, K * L), :]                 # (K*L, L) bf16
        return bn(jnp.dot(lhs, w, preferred_element_type=jnp.float32))

    def sep_conv(x, g0, K, pad):
        return dil_conv(dil_conv(x, g0, K, 1, pad), g0 + K * L, K, 1, pad)

    def avg_pool(x):
        # 3x3 avg pool, stride 1, pad 1, count_include_pad=False, then BN.
        rs = x
        for dh in (-1, 1):
            rs = rs + shift_rows(x, dh)                  # zero fill
        cs = rs
        for dw in (-1, 1):
            cs = cs + shift_cols(rs, dw)                 # zero fill
        if "inv_cnt" not in memo:
            rcnt = sum(row_valid(d).astype(jnp.float32) for d in (-1, 0, 1))
            ccnt = sum(col_valid(d).astype(jnp.float32) for d in (-1, 0, 1))
            memo["inv_cnt"] = 1.0 / (rcnt * ccnt)        # #valid taps per pixel
        return bn(cs * memo["inv_cnt"])

    def max_pool(x):
        # 3x3 max pool, stride 1, pad 1 (padding never selected), then BN.
        rm = x
        for dh in (-1, 1):
            rm = jnp.maximum(rm, shift_rows(x, dh, fill=_NEG))
        out = rm
        for dw in (-1, 1):
            out = jnp.maximum(out, shift_cols(rm, dw, fill=_NEG))
        return bn(out)

    tensors = [std_conv(x0_ref[...], wpre0_ref),     # preproc0 = StdConv 1x1
               std_conv(x1_ref[...], wpre1_ref)]     # preproc1 = StdConv 1x1
    for node_idx, node_edges in enumerate(plan):
        node_out = None
        for (src, kind, g0, K, dil, pad) in node_edges:
            x = tensors[src]
            if kind == "skip":
                y = x
            elif kind == "max":
                y = max_pool(x)
            elif kind == "avg":
                y = avg_pool(x)
            elif kind == "sep":
                y = sep_conv(x, g0, K, pad)
            else:  # "dil"
                y = dil_conv(x, g0, K, dil, pad)
            node_out = y if node_out is None else node_out + y   # route = sum
        tensors.append(node_out)
        o_ref[node_idx] = node_out.astype(o_ref.dtype)           # lane-dense store


# ----------------------- wrapper-side weight packing -------------------------

def _perm(W, d):
    """P[wi, wo] = 1 iff wi == wo + d and 0 <= wi < W (0/1 column-shift)."""
    P = np.zeros((W, W), np.float32)
    for wout in range(W):
        win = wout + d
        if 0 <= win < W:
            P[win, wout] = 1.0
    return P


def _dw_pw_rows(dw, pw, K, dil, pad, W, C):
    """Fold one depthwise kernel's column taps + the following 1x1 pointwise
    conv into a single (K*W*C, W*C) matrix; the K kernel-row blocks are stacked
    along the contraction axis (f32 here; cast to bf16 once at the end)."""
    L = W * C
    blocks = []
    for kh in range(K):
        G = jnp.zeros((L, L), jnp.float32)
        for kw in range(K):
            P = _perm(W, kw * dil - pad)
            if not P.any():
                continue
            G = G + jnp.kron(jnp.asarray(P), dw[kh * K + kw][:, None] * pw)
        blocks.append(G)
    return jnp.concatenate(blocks, axis=0)   # (K*L, L)


def _build_plan(params, edge_ops, n_nodes, W, C):
    """Static per-edge execution plan + packed, row-stacked conv weights."""
    L = W * C
    blocks, plan, e, rows = [], [], 0, 0
    for depth in range(2, n_nodes + 2):
        node_plan = []
        for src in range(depth):
            op, p = edge_ops[e], params["edges"][e]
            if op == "skip_connect":
                node_plan.append((src, "skip", 0, 0, 0, 0))
            elif op == "max_pool_3x3":
                node_plan.append((src, "max", 0, 0, 0, 0))
            elif op == "avg_pool_3x3":
                node_plan.append((src, "avg", 0, 0, 0, 0))
            elif op.startswith("sep_conv"):
                K = 3 if op.endswith("3x3") else 5
                pad = (K - 1) // 2
                g0 = rows
                blocks.append(_dw_pw_rows(p["dw1"], p["pw1"], K, 1, pad, W, C))
                blocks.append(_dw_pw_rows(p["dw2"], p["pw2"], K, 1, pad, W, C))
                rows += 2 * K * L
                node_plan.append((src, "sep", g0, K, 1, pad))
            elif op.startswith("dil_conv"):
                K = 3 if op.endswith("3x3") else 5
                pad = K - 1                       # dilation 2: pad 2 / 4
                g0 = rows
                blocks.append(_dw_pw_rows(p["dw"], p["pw"], K, 2, pad, W, C))
                rows += K * L
                node_plan.append((src, "dil", g0, K, 2, pad))
            else:
                raise ValueError(op)
            e += 1
        plan.append(tuple(node_plan))
    if blocks:
        conv_g = jnp.concatenate(blocks, axis=0).astype(jnp.bfloat16)
    else:
        conv_g = jnp.zeros((8, L), jnp.bfloat16)
    return conv_g, tuple(plan)


def pack_darts_cell(params, edge_ops, n_nodes, N, H, W):
    """One-time packing (per weight update, NOT per forward): folded conv
    weights (bf16), block-diag 1x1 preproc weights (bf16), BN channel-average
    matrix (f32) and the spatial index planes used for roll masking."""
    C = params["preproc0"].shape[1]
    L = W * C
    eye_w = jnp.eye(W, dtype=jnp.float32)
    wpre0 = jnp.kron(eye_w, params["preproc0"].astype(jnp.float32)).astype(jnp.bfloat16)
    wpre1 = jnp.kron(eye_w, params["preproc1"].astype(jnp.float32)).astype(jnp.bfloat16)
    conv_g, plan = _build_plan(params, edge_ops, n_nodes, W, C)
    amat = jnp.asarray(np.kron(np.ones((W, W), np.float32) / W,
                               np.eye(C, dtype=np.float32)))        # (L, L) f32
    ho = np.broadcast_to(np.tile(np.arange(H, dtype=np.int32), N)[:, None],
                         (N * H, L)).copy()
    wo = np.broadcast_to(np.repeat(np.arange(W, dtype=np.int32), C)[None, :],
                         (N * H, L)).copy()
    packed = {"wpre0": wpre0, "wpre1": wpre1, "conv_g": conv_g, "amat": amat,
              "ho": jnp.asarray(ho), "wo": jnp.asarray(wo)}
    return packed, plan


# --------------------------- parameters & forward ----------------------------

def make_darts_cell_params(key, n_nodes, c_pp, c_p, c):
    """Deterministic synthetic weights; torch layouts are re-packed:
    1x1 conv (Cout,Cin,1,1) -> (Cin,Cout);  depthwise (C,1,K,K) -> (K*K,C)."""
    keys = iter(jax.random.split(key, 256))

    def pw(ci, co):
        return 0.1 * jax.random.normal(next(keys), (ci, co), jnp.float32)

    def dw(k, ch):
        return 0.1 * jax.random.normal(next(keys), (k * k, ch), jnp.float32)

    params = {"preproc0": pw(c_pp, c), "preproc1": pw(c_p, c), "edges": []}
    edge_ops = []
    e = 0
    for depth in range(2, n_nodes + 2):
        for _ in range(depth):
            op = _CANDIDATE_OPS[e % len(_CANDIDATE_OPS)]
            p = {}
            if op.startswith("sep_conv"):
                k = 3 if op.endswith("3x3") else 5
                p = {"dw1": dw(k, c), "pw1": pw(c, c),
                     "dw2": dw(k, c), "pw2": pw(c, c)}
            elif op.startswith("dil_conv"):
                k = 3 if op.endswith("3x3") else 5
                p = {"dw": dw(k, c), "pw": pw(c, c)}
            params["edges"].append(p)
            edge_ops.append(op)
            e += 1
    return params, tuple(edge_ops)


@functools.partial(jax.jit, static_argnames=("plan", "n_nodes"))
def darts_cell_forward(pprev_nchw, prev_nchw, packed, plan, n_nodes):
    """Normal DartsCell forward (reduction_p=False, reduction=False)."""
    N, c_pp, H, W = pprev_nchw.shape
    c_p = prev_nchw.shape[1]
    L = packed["amat"].shape[0]          # = W*C
    C = L // W
    NH = N * H

    # NCHW -> lane-dense (N*H, W*Cin) layout (lane index = w*C + c)
    x0 = jnp.transpose(pprev_nchw, (0, 2, 3, 1)).reshape(NH, W * c_pp)
    x1 = jnp.transpose(prev_nchw, (0, 2, 3, 1)).reshape(NH, W * c_p)

    conv_g = packed["conv_g"]
    has_conv = any(kind in ("sep", "dil")
                   for node in plan for (_, kind, *_rest) in node)

    kernel = functools.partial(_cell_kernel, plan=plan, N=N, H=H, W=W, C=C,
                               has_conv=has_conv)
    operands = (x0, x1, packed["wpre0"], packed["wpre1"], packed["amat"],
                packed["ho"], packed["wo"], conv_g)
    in_specs = ([pl.BlockSpec(a.shape, lambda i: (0, 0)) for a in operands[:-1]]
                + [pl.BlockSpec(memory_space=pl.ANY)])       # conv_g stays in HBM

    o = pl.pallas_call(
        kernel,
        out_shape=jax.ShapeDtypeStruct((n_nodes, NH, L), jnp.float32),
        grid=(1,),
        in_specs=in_specs,
        out_specs=pl.BlockSpec((n_nodes, NH, L), lambda i: (0, 0, 0)),
        scratch_shapes=[pltpu.VMEM(conv_g.shape, jnp.bfloat16),
                        pltpu.SemaphoreType.DMA((1,))],
        compiler_params=pltpu.CompilerParams(
            dimension_semantics=("arbitrary",),
            vmem_limit_bytes=32 * 1024 * 1024),
    )(*operands)

    # (node, N*H, W*C) -> NCHW with channel = node*C + c   (== torch.cat(dim=1))
    out = o.reshape(n_nodes, N, H, W, C)
    return jnp.transpose(out, (1, 0, 4, 2, 3)).reshape(N, n_nodes * C, H, W)


# --------------------------------- main ---------------------------------------

if __name__ == "__main__":
    N, H, W = 2, 16, 16
    c_pp, c_p, c, n_nodes = 8, 8, 8, 4
    kp, kx0, kx1 = jax.random.split(jax.random.PRNGKey(0), 3)
    params, edge_ops = make_darts_cell_params(kp, n_nodes, c_pp, c_p, c)
    packed, plan = pack_darts_cell(params, edge_ops, n_nodes, N, H, W)  # once
    pprev = jax.random.normal(kx0, (N, c_pp, H, W), jnp.float32)  # NCHW input
    prev = jax.random.normal(kx1, (N, c_p, H, W), jnp.float32)    # NCHW input
    out = darts_cell_forward(pprev, prev, packed, plan=plan, n_nodes=n_nodes)
    out = jax.block_until_ready(out)
    assert out.shape == (N, n_nodes * c, H, W), out.shape
    assert bool(jnp.all(jnp.isfinite(out)))
    print("KERNEL_OK")
</pallas_src>

<mosaic_0001>
module attributes {stable_mosaic.version = 11 : i64} {
  func.func @_cell_kernel(%arg0: i32, %arg1: memref<32x128xf32, #tpu.memory_space<vmem>>, %arg2: memref<32x128xf32, #tpu.memory_space<vmem>>, %arg3: memref<128x128xbf16, #tpu.memory_space<vmem>>, %arg4: memref<128x128xbf16, #tpu.memory_space<vmem>>, %arg5: memref<128x128xf32, #tpu.memory_space<vmem>>, %arg6: memref<32x128xi32, #tpu.memory_space<vmem>>, %arg7: memref<32x128xi32, #tpu.memory_space<vmem>>, %arg8: memref<6144x128xbf16, #tpu.memory_space<any>>, %arg9: memref<4x32x128xf32, #tpu.memory_space<vmem>>, %arg10: memref<6144x128xbf16, #tpu.memory_space<vmem>>, %arg11: memref<1x!tpu.dma_semaphore, #tpu.memory_space<semaphore_mem>>) attributes {dimension_semantics = [#tpu.dimension_semantics<arbitrary>], iteration_bounds = array<i64: 1>, scalar_prefetch = 0 : i64, scratch_operands = 2 : i64, tpu.core_type = #tpu.core_type<tc>, window_params = [{pipeline_mode = #tpu.pipeline_mode<synchronous>, transform_indices = @transform_0, window_bounds = array<i64: 32, 128>}, {pipeline_mode = #tpu.pipeline_mode<synchronous>, transform_indices = @transform_1, window_bounds = array<i64: 32, 128>}, {pipeline_mode = #tpu.pipeline_mode<synchronous>, transform_indices = @transform_2, window_bounds = array<i64: 128, 128>}, {pipeline_mode = #tpu.pipeline_mode<synchronous>, transform_indices = @transform_3, window_bounds = array<i64: 128, 128>}, {pipeline_mode = #tpu.pipeline_mode<synchronous>, transform_indices = @transform_4, window_bounds = array<i64: 128, 128>}, {pipeline_mode = #tpu.pipeline_mode<synchronous>, transform_indices = @transform_5, window_bounds = array<i64: 32, 128>}, {pipeline_mode = #tpu.pipeline_mode<synchronous>, transform_indices = @transform_6, window_bounds = array<i64: 32, 128>}, {}, {pipeline_mode = #tpu.pipeline_mode<synchronous>, transform_indices = @transform_8, window_bounds = array<i64: 4, 32, 128>}]} {
    %c0_i32 = arith.constant 0 : i32
    %0 = tpu.memref_slice %arg11[%c0_i32] : memref<1x!tpu.dma_semaphore, #tpu.memory_space<semaphore_mem>> -> memref<1x!tpu.dma_semaphore, #tpu.memory_space<semaphore_mem>>
    %1 = tpu.memref_squeeze %0 : memref<1x!tpu.dma_semaphore, #tpu.memory_space<semaphore_mem>> -> memref<!tpu.dma_semaphore, #tpu.memory_space<semaphore_mem>>
    tpu.enqueue_dma source(%arg8 : memref<6144x128xbf16, #tpu.memory_space<any>>) target(%arg10 : memref<6144x128xbf16, #tpu.memory_space<vmem>>) target_semaphore(%1 : memref<!tpu.dma_semaphore, #tpu.memory_space<semaphore_mem>>)
    %c0 = arith.constant 0 : index
    %c0_0 = arith.constant 0 : index
    %2 = vector.load %arg6[%c0, %c0_0] : memref<32x128xi32, #tpu.memory_space<vmem>>, vector<32x128xi32>
    %c0_1 = arith.constant 0 : index
    %c0_2 = arith.constant 0 : index
    %3 = vector.load %arg7[%c0_1, %c0_2] : memref<32x128xi32, #tpu.memory_space<vmem>>, vector<32x128xi32>
    %c0_3 = arith.constant 0 : index
    %c0_4 = arith.constant 0 : index
    %4 = vector.load %arg1[%c0_3, %c0_4] : memref<32x128xf32, #tpu.memory_space<vmem>>, vector<32x128xf32>
    %cst = arith.constant 0.000000e+00 : f32
    %5 = vector.broadcast %cst : f32 to vector<32x128xf32>
    %6 = arith.maximumf %4, %5 : vector<32x128xf32>
    %7 = arith.truncf %6 : vector<32x128xf32> to vector<32x128xbf16>
    %c0_5 = arith.constant 0 : index
    %c0_6 = arith.constant 0 : index
    %8 = vector.load %arg3[%c0_5, %c0_6] : memref<128x128xbf16, #tpu.memory_space<vmem>>, vector<128x128xbf16>
    %cst_7 = arith.constant dense<0.000000e+00> : vector<32x128xf32>
    %9 = tpu.matmul %7, %8, %cst_7 {dimension_numbers = #tpu.dot_dimension_numbers<[1], [0], [0], [1], [0, 0, 1, 1], [], []>} : vector<32x128xbf16>, vector<128x128xbf16>, vector<32x128xf32> -> vector<32x128xf32>
    %cst_8 = arith.constant dense<0.000000e+00> : vector<128xf32>
    %10 = vector.multi_reduction <add>, %9, %cst_8 [0] : vector<32x128xf32> to vector<128xf32>
    %11 = vector.shape_cast %10 : vector<128xf32> to vector<1x128xf32>
    %cst_9 = arith.constant 3.200000e+01 : f32
    %12 = vector.broadcast %cst_9 : f32 to vector<1x128xf32>
    %13 = arith.divf %11, %12 : vector<1x128xf32>
    %14 = vector.shape_cast %13 : vector<1x128xf32> to vector<1x128xf32>
    %15 = vector.broadcast %14 : vector<1x128xf32> to vector<8x128xf32>
    %c0_10 = arith.constant 0 : index
    %c0_11 = arith.constant 0 : index
    %16 = vector.load %arg5[%c0_10, %c0_11] : memref<128x128xf32, #tpu.memory_space<vmem>>, vector<128x128xf32>
    %cst_12 = arith.constant dense<0.000000e+00> : vector<8x128xf32>
    %17 = tpu.matmul %15, %16, %cst_12 {dimension_numbers = #tpu.dot_dimension_numbers<[1], [0], [0], [1], [0, 0, 1, 1], [], []>} : vector<8x128xf32>, vector<128x128xf32>, vector<8x128xf32> -> vector<8x128xf32>
    %18 = vector.extract_strided_slice %17 {offsets = [0, 0], sizes = [1, 128], strides = [1, 1]} : vector<8x128xf32> to vector<1x128xf32>
    %19 = vector.broadcast %18 : vector<1x128xf32> to vector<32x128xf32>
    %20 = arith.subf %9, %19 : vector<32x128xf32>
    %21 = arith.mulf %20, %20 : vector<32x128xf32>
    %cst_13 = arith.constant dense<0.000000e+00> : vector<128xf32>
    %22 = vector.multi_reduction <add>, %21, %cst_13 [0] : vector<32x128xf32> to vector<128xf32>
    %23 = vector.shape_cast %22 : vector<128xf32> to vector<1x128xf32>
    %cst_14 = arith.constant 3.200000e+01 : f32
    %24 = vector.broadcast %cst_14 : f32 to vector<1x128xf32>
    %25 = arith.divf %23, %24 : vector<1x128xf32>
    %26 = vector.shape_cast %25 : vector<1x128xf32> to vector<1x128xf32>
    %27 = vector.broadcast %26 : vector<1x128xf32> to vector<8x128xf32>
    %c0_15 = arith.constant 0 : index
    %c0_16 = arith.constant 0 : index
    %28 = vector.load %arg5[%c0_15, %c0_16] : memref<128x128xf32, #tpu.memory_space<vmem>>, vector<128x128xf32>
    %cst_17 = arith.constant dense<0.000000e+00> : vector<8x128xf32>
    %29 = tpu.matmul %27, %28, %cst_17 {dimension_numbers = #tpu.dot_dimension_numbers<[1], [0], [0], [1], [0, 0, 1, 1], [], []>} : vector<8x128xf32>, vector<128x128xf32>, vector<8x128xf32> -> vector<8x128xf32>
    %30 = vector.extract_strided_slice %29 {offsets = [0, 0], sizes = [1, 128], strides = [1, 1]} : vector<8x128xf32> to vector<1x128xf32>
    %cst_18 = arith.constant 9.99999974E-6 : f32
    %31 = vector.broadcast %cst_18 : f32 to vector<1x128xf32>
    %32 = arith.addf %30, %31 : vector<1x128xf32>
    %33 = math.rsqrt %32 : vector<1x128xf32>
    %34 = vector.broadcast %33 : vector<1x128xf32> to vector<32x128xf32>
    %35 = arith.mulf %20, %34 : vector<32x128xf32>
    %c0_19 = arith.constant 0 : index
    %c0_20 = arith.constant 0 : index
    %36 = vector.load %arg2[%c0_19, %c0_20] : memref<32x128xf32, #tpu.memory_space<vmem>>, vector<32x128xf32>
    %cst_21 = arith.constant 0.000000e+00 : f32
    %37 = vector.broadcast %cst_21 : f32 to vector<32x128xf32>
    %38 = arith.maximumf %36, %37 : vector<32x128xf32>
    %39 = arith.truncf %38 : vector<32x128xf32> to vector<32x128xbf16>
    %c0_22 = arith.constant 0 : index
    %c0_23 = arith.constant 0 : index
    %40 = vector.load %arg4[%c0_22, %c0_23] : memref<128x128xbf16, #tpu.memory_space<vmem>>, vector<128x128xbf16>
    %cst_24 = arith.constant dense<0.000000e+00> : vector<32x128xf32>
    %41 = tpu.matmul %39, %40, %cst_24 {dimension_numbers = #tpu.dot_dimension_numbers<[1], [0], [0], [1], [0, 0, 1, 1], [], []>} : vector<32x128xbf16>, vector<128x128xbf16>, vector<32x128xf32> -> vector<32x128xf32>
    %cst_25 = arith.constant dense<0.000000e+00> : vector<128xf32>
    %42 = vector.multi_reduction <add>, %41, %cst_25 [0] : vector<32x128xf32> to vector<128xf32>
    %43 = vector.shape_cast %42 : vector<128xf32> to vector<1x128xf32>
    %cst_26 = arith.constant 3.200000e+01 : f32
    %44 = vector.broadcast %cst_26 : f32 to vector<1x128xf32>
    %45 = arith.divf %43, %44 : vector<1x128xf32>
    %46 = vector.shape_cast %45 : vector<1x128xf32> to vector<1x128xf32>
    %47 = vector.broadcast %46 : vector<1x128xf32> to vector<8x128xf32>
    %c0_27 = arith.constant 0 : index
    %c0_28 = arith.constant 0 : index
    %48 = vector.load %arg5[%c0_27, %c0_28] : memref<128x128xf32, #tpu.memory_space<vmem>>, vector<128x128xf32>
    %cst_29 = arith.constant dense<0.000000e+00> : vector<8x128xf32>
    %49 = tpu.matmul %47, %48, %cst_29 {dimension_numbers = #tpu.dot_dimension_numbers<[1], [0], [0], [1], [0, 0, 1, 1], [], []>} : vector<8x128xf32>, vector<128x128xf32>, vector<8x128xf32> -> vector<8x128xf32>
    %50 = vector.extract_strided_slice %49 {offsets = [0, 0], sizes = [1, 128], strides = [1, 1]} : vector<8x128xf32> to vector<1x128xf32>
    %51 = vector.broadcast %50 : vector<1x128xf32> to vector<32x128xf32>
    %52 = arith.subf %41, %51 : vector<32x128xf32>
    %53 = arith.mulf %52, %52 : vector<32x128xf32>
    %cst_30 = arith.constant dense<0.000000e+00> : vector<128xf32>
    %54 = vector.multi_reduction <add>, %53, %cst_30 [0] : vector<32x128xf32> to vector<128xf32>
    %55 = vector.shape_cast %54 : vector<128xf32> to vector<1x128xf32>
    %cst_31 = arith.constant 3.200000e+01 : f32
    %56 = vector.broadcast %cst_31 : f32 to vector<1x128xf32>
    %57 = arith.divf %55, %56 : vector<1x128xf32>
    %58 = vector.shape_cast %57 : vector<1x128xf32> to vector<1x128xf32>
    %59 = vector.broadcast %58 : vector<1x128xf32> to vector<8x128xf32>
    %c0_32 = arith.constant 0 : index
    %c0_33 = arith.constant 0 : index
    %60 = vector.load %arg5[%c0_32, %c0_33] : memref<128x128xf32, #tpu.memory_space<vmem>>, vector<128x128xf32>
    %cst_34 = arith.constant dense<0.000000e+00> : vector<8x128xf32>
    %61 = tpu.matmul %59, %60, %cst_34 {dimension_numbers = #tpu.dot_dimension_numbers<[1], [0], [0], [1], [0, 0, 1, 1], [], []>} : vector<8x128xf32>, vector<128x128xf32>, vector<8x128xf32> -> vector<8x128xf32>
    %62 = vector.extract_strided_slice %61 {offsets = [0, 0], sizes = [1, 128], strides = [1, 1]} : vector<8x128xf32> to vector<1x128xf32>
    %cst_35 = arith.constant 9.99999974E-6 : f32
    %63 = vector.broadcast %cst_35 : f32 to vector<1x128xf32>
    %64 = arith.addf %62, %63 : vector<1x128xf32>
    %65 = math.rsqrt %64 : vector<1x128xf32>
    %66 = vector.broadcast %65 : vector<1x128xf32> to vector<32x128xf32>
    %67 = arith.mulf %52, %66 : vector<32x128xf32>
    %c1_i32 = arith.constant 1 : i32
    %68 = tpu.dynamic_rotate %35 by %c1_i32 dim 0 : vector<32x128xf32>, i32 -> vector<32x128xf32>
    %c-1_i32 = arith.constant -1 : i32
    %69 = vector.broadcast %c-1_i32 : i32 to vector<32x128xi32>
    %70 = arith.addi %2, %69 : vector<32x128xi32>
    %c0_i32_36 = arith.constant 0 : i32
    %71 = vector.broadcast %c0_i32_36 : i32 to vector<32x128xi32>
    %72 = arith.cmpi sge, %70, %71 : vector<32x128xi32>
    %c-1_i32_37 = arith.constant -1 : i32
    %73 = vector.broadcast %c-1_i32_37 : i32 to vector<32x128xi32>
    %74 = arith.addi %2, %73 : vector<32x128xi32>
    %c16_i32 = arith.constant 16 : i32
    %75 = vector.broadcast %c16_i32 : i32 to vector<32x128xi32>
    %76 = arith.cmpi slt, %74, %75 : vector<32x128xi32>
    %77 = arith.andi %72, %76 : vector<32x128xi1>
    %cst_38 = arith.constant -1.000000e+30 : f32
    %78 = vector.broadcast %cst_38 : f32 to vector<32x128xf32>
    %79 = arith.select %77, %68, %78 : vector<32x128xi1>, vector<32x128xf32>
    %80 = arith.maximumf %35, %79 : vector<32x128xf32>
    %c31_i32 = arith.constant 31 : i32
    %81 = tpu.dynamic_rotate %35 by %c31_i32 dim 0 : vector<32x128xf32>, i32 -> vector<32x128xf32>
    %c1_i32_39 = arith.constant 1 : i32
    %82 = vector.broadcast %c1_i32_39 : i32 to vector<32x128xi32>
    %83 = arith.addi %2, %82 : vector<32x128xi32>
    %c0_i32_40 = arith.constant 0 : i32
    %84 = vector.broadcast %c0_i32_40 : i32 to vector<32x128xi32>
    %85 = arith.cmpi sge, %83, %84 : vector<32x128xi32>
    %c1_i32_41 = arith.constant 1 : i32
    %86 = vector.broadcast %c1_i32_41 : i32 to vector<32x128xi32>
    %87 = arith.addi %2, %86 : vector<32x128xi32>
    %c16_i32_42 = arith.constant 16 : i32
    %88 = vector.broadcast %c16_i32_42 : i32 to vector<32x128xi32>
    %89 = arith.cmpi slt, %87, %88 : vector<32x128xi32>
    %90 = arith.andi %85, %89 : vector<32x128xi1>
    %cst_43 = arith.constant -1.000000e+30 : f32
    %91 = vector.broadcast %cst_43 : f32 to vector<32x128xf32>
    %92 = arith.select %90, %81, %91 : vector<32x128xi1>, vector<32x128xf32>
    %93 = arith.maximumf %80, %92 : vector<32x128xf32>
    %c8_i32 = arith.constant 8 : i32
    %94 = tpu.dynamic_rotate %93 by %c8_i32 dim 1 : vector<32x128xf32>, i32 -> vector<32x128xf32>
    %c-1_i32_44 = arith.constant -1 : i32
    %95 = vector.broadcast %c-1_i32_44 : i32 to vector<32x128xi32>
    %96 = arith.addi %3, %95 : vector<32x128xi32>
    %c0_i32_45 = arith.constant 0 : i32
    %97 = vector.broadcast %c0_i32_45 : i32 to vector<32x128xi32>
    %98 = arith.cmpi sge, %96, %97 : vector<32x128xi32>
    %c-1_i32_46 = arith.constant -1 : i32
    %99 = vector.broadcast %c-1_i32_46 : i32 to vector<32x128xi32>
    %100 = arith.addi %3, %99 : vector<32x128xi32>
    %c16_i32_47 = arith.constant 16 : i32
    %101 = vector.broadcast %c16_i32_47 : i32 to vector<32x128xi32>
    %102 = arith.cmpi slt, %100, %101 : vector<32x128xi32>
    %103 = arith.andi %98, %102 : vector<32x128xi1>
    %cst_48 = arith.constant -1.000000e+30 : f32
    %104 = vector.broadcast %cst_48 : f32 to vector<32x128xf32>
    %105 = arith.select %103, %94, %104 : vector<32x128xi1>, vector<32x128xf32>
    %106 = arith.maximumf %93, %105 : vector<32x128xf32>
    %c120_i32 = arith.constant 120 : i32
    %107 = tpu.dynamic_rotate %93 by %c120_i32 dim 1 : vector<32x128xf32>, i32 -> vector<32x128xf32>
    %c1_i32_49 = arith.constant 1 : i32
    %108 = vector.broadcast %c1_i32_49 : i32 to vector<32x128xi32>
    %109 = arith.addi %3, %108 : vector<32x128xi32>
    %c0_i32_50 = arith.constant 0 : i32
    %110 = vector.broadcast %c0_i32_50 : i32 to vector<32x128xi32>
    %111 = arith.cmpi sge, %109, %110 : vector<32x128xi32>
    %c1_i32_51 = arith.constant 1 : i32
    %112 = vector.broadcast %c1_i32_51 : i32 to vector<32x128xi32>
    %113 = arith.addi %3, %112 : vector<32x128xi32>
    %c16_i32_52 = arith.constant 16 : i32
    %114 = vector.broadcast %c16_i32_52 : i32 to vector<32x128xi32>
    %115 = arith.cmpi slt, %113, %114 : vector<32x128xi32>
    %116 = arith.andi %111, %115 : vector<32x128xi1>
    %cst_53 = arith.constant -1.000000e+30 : f32
    %117 = vector.broadcast %cst_53 : f32 to vector<32x128xf32>
    %118 = arith.select %116, %107, %117 : vector<32x128xi1>, vector<32x128xf32>
    %119 = arith.maximumf %106, %118 : vector<32x128xf32>
    %cst_54 = arith.constant dense<0.000000e+00> : vector<128xf32>
    %120 = vector.multi_reduction <add>, %119, %cst_54 [0] : vector<32x128xf32> to vector<128xf32>
    %121 = vector.shape_cast %120 : vector<128xf32> to vector<1x128xf32>
    %cst_55 = arith.constant 3.200000e+01 : f32
    %122 = vector.broadcast %cst_55 : f32 to vector<1x128xf32>
    %123 = arith.divf %121, %122 : vector<1x128xf32>
    %124 = vector.shape_cast %123 : vector<1x128xf32> to vector<1x128xf32>
    %125 = vector.broadcast %124 : vector<1x128xf32> to vector<8x128xf32>
    %c0_56 = arith.constant 0 : index
    %c0_57 = arith.constant 0 : index
    %126 = vector.load %arg5[%c0_56, %c0_57] : memref<128x128xf32, #tpu.memory_space<vmem>>, vector<128x128xf32>
    %cst_58 = arith.constant dense<0.000000e+00> : vector<8x128xf32>
    %127 = tpu.matmul %125, %126, %cst_58 {dimension_numbers = #tpu.dot_dimension_numbers<[1], [0], [0], [1], [0, 0, 1, 1], [], []>} : vector<8x128xf32>, vector<128x128xf32>, vector<8x128xf32> -> vector<8x128xf32>
    %128 = vector.extract_strided_slice %127 {offsets = [0, 0], sizes = [1, 128], strides = [1, 1]} : vector<8x128xf32> to vector<1x128xf32>
    %129 = vector.broadcast %128 : vector<1x128xf32> to vector<32x128xf32>
    %130 = arith.subf %119, %129 : vector<32x128xf32>
    %131 = arith.mulf %130, %130 : vector<32x128xf32>
    %cst_59 = arith.constant dense<0.000000e+00> : vector<128xf32>
    %132 = vector.multi_reduction <add>, %131, %cst_59 [0] : vector<32x128xf32> to vector<128xf32>
    %133 = vector.shape_cast %132 : vector<128xf32> to vector<1x128xf32>
    %cst_60 = arith.constant 3.200000e+01 : f32
    %134 = vector.broadcast %cst_60 : f32 to vector<1x128xf32>
    %135 = arith.divf %133, %134 : vector<1x128xf32>
    %136 = vector.shape_cast %135 : vector<1x128xf32> to vector<1x128xf32>
    %137 = vector.broadcast %136 : vector<1x128xf32> to vector<8x128xf32>
    %c0_61 = arith.constant 0 : index
    %c0_62 = arith.constant 0 : index
    %138 = vector.load %arg5[%c0_61, %c0_62] : memref<128x128xf32, #tpu.memory_space<vmem>>, vector<128x128xf32>
    %cst_63 = arith.constant dense<0.000000e+00> : vector<8x128xf32>
    %139 = tpu.matmul %137, %138, %cst_63 {dimension_numbers = #tpu.dot_dimension_numbers<[1], [0], [0], [1], [0, 0, 1, 1], [], []>} : vector<8x128xf32>, vector<128x128xf32>, vector<8x128xf32> -> vector<8x128xf32>
    %140 = vector.extract_strided_slice %139 {offsets = [0, 0], sizes = [1, 128], strides = [1, 1]} : vector<8x128xf32> to vector<1x128xf32>
    %cst_64 = arith.constant 9.99999974E-6 : f32
    %141 = vector.broadcast %cst_64 : f32 to vector<1x128xf32>
    %142 = arith.addf %140, %141 : vector<1x128xf32>
    %143 = math.rsqrt %142 : vector<1x128xf32>
    %144 = vector.broadcast %143 : vector<1x128xf32> to vector<32x128xf32>
    %145 = arith.mulf %130, %144 : vector<32x128xf32>
    %c1_i32_65 = arith.constant 1 : i32
    %146 = tpu.dynamic_rotate %67 by %c1_i32_65 dim 0 : vector<32x128xf32>, i32 -> vector<32x128xf32>
    %cst_66 = arith.constant 0.000000e+00 : f32
    %147 = vector.broadcast %cst_66 : f32 to vector<32x128xf32>
    %148 = arith.select %77, %146, %147 : vector<32x128xi1>, vector<32x128xf32>
    %149 = arith.addf %67, %148 : vector<32x128xf32>
    %c31_i32_67 = arith.constant 31 : i32
    %150 = tpu.dynamic_rotate %67 by %c31_i32_67 dim 0 : vector<32x128xf32>, i32 -> vector<32x128xf32>
    %cst_68 = arith.constant 0.000000e+00 : f32
    %151 = vector.broadcast %cst_68 : f32 to vector<32x128xf32>
    %152 = arith.select %90, %150, %151 : vector<32x128xi1>, vector<32x128xf32>
    %153 = arith.addf %149, %152 : vector<32x128xf32>
    %c8_i32_69 = arith.constant 8 : i32
    %154 = tpu.dynamic_rotate %153 by %c8_i32_69 dim 1 : vector<32x128xf32>, i32 -> vector<32x128xf32>
    %cst_70 = arith.constant 0.000000e+00 : f32
    %155 = vector.broadcast %cst_70 : f32 to vector<32x128xf32>
    %156 = arith.select %103, %154, %155 : vector<32x128xi1>, vector<32x128xf32>
    %157 = arith.addf %153, %156 : vector<32x128xf32>
    %c120_i32_71 = arith.constant 120 : i32
    %158 = tpu.dynamic_rotate %153 by %c120_i32_71 dim 1 : vector<32x128xf32>, i32 -> vector<32x128xf32>
    %cst_72 = arith.constant 0.000000e+00 : f32
    %159 = vector.broadcast %cst_72 : f32 to vector<32x128xf32>
    %160 = arith.select %116, %158, %159 : vector<32x128xi1>, vector<32x128xf32>
    %161 = arith.addf %157, %160 : vector<32x128xf32>
    %162 = arith.extui %77 : vector<32x128xi1> to vector<32x128xi32>
    %163 = arith.sitofp %162 : vector<32x128xi32> to vector<32x128xf32>
    %cst_73 = arith.constant 0.000000e+00 : f32
    %164 = vector.broadcast %cst_73 : f32 to vector<32x128xf32>
    %165 = arith.addf %164, %163 : vector<32x128xf32>
    %c0_i32_74 = arith.constant 0 : i32
    %166 = vector.broadcast %c0_i32_74 : i32 to vector<32x128xi32>
    %167 = arith.addi %2, %166 : vector<32x128xi32>
    %c0_i32_75 = arith.constant 0 : i32
    %168 = vector.broadcast %c0_i32_75 : i32 to vector<32x128xi32>
    %169 = arith.cmpi sge, %167, %168 : vector<32x128xi32>
    %c0_i32_76 = arith.constant 0 : i32
    %170 = vector.broadcast %c0_i32_76 : i32 to vector<32x128xi32>
    %171 = arith.addi %2, %170 : vector<32x128xi32>
    %c16_i32_77 = arith.constant 16 : i32
    %172 = vector.broadcast %c16_i32_77 : i32 to vector<32x128xi32>
    %173 = arith.cmpi slt, %171, %172 : vector<32x128xi32>
    %174 = arith.andi %169, %173 : vector<32x128xi1>
    %175 = arith.extui %174 : vector<32x128xi1> to vector<32x128xi32>
    %176 = arith.sitofp %175 : vector<32x128xi32> to vector<32x128xf32>
    %177 = arith.addf %165, %176 : vector<32x128xf32>
    %178 = arith.extui %90 : vector<32x128xi1> to vector<32x128xi32>
    %179 = arith.sitofp %178 : vector<32x128xi32> to vector<32x128xf32>
    %180 = arith.addf %177, %179 : vector<32x128xf32>
    %181 = arith.extui %103 : vector<32x128xi1> to vector<32x128xi32>
    %182 = arith.sitofp %181 : vector<32x128xi32> to vector<32x128xf32>
    %cst_78 = arith.constant 0.000000e+00 : f32
    %183 = vector.broadcast %cst_78 : f32 to vector<32x128xf32>
    %184 = arith.addf %183, %182 : vector<32x128xf32>
    %c0_i32_79 = arith.constant 0 : i32
    %185 = vector.broadcast %c0_i32_79 : i32 to vector<32x128xi32>
    %186 = arith.addi %3, %185 : vector<32x128xi32>
    %c0_i32_80 = arith.constant 0 : i32
    %187 = vector.broadcast %c0_i32_80 : i32 to vector<32x128xi32>
    %188 = arith.cmpi sge, %186, %187 : vector<32x128xi32>
    %c0_i32_81 = arith.constant 0 : i32
    %189 = vector.broadcast %c0_i32_81 : i32 to vector<32x128xi32>
    %190 = arith.addi %3, %189 : vector<32x128xi32>
    %c16_i32_82 = arith.constant 16 : i32
    %191 = vector.broadcast %c16_i32_82 : i32 to vector<32x128xi32>
    %192 = arith.cmpi slt, %190, %191 : vector<32x128xi32>
    %193 = arith.andi %188, %192 : vector<32x128xi1>
    %194 = arith.extui %193 : vector<32x128xi1> to vector<32x128xi32>
    %195 = arith.sitofp %194 : vector<32x128xi32> to vector<32x128xf32>
    %196 = arith.addf %184, %195 : vector<32x128xf32>
    %197 = arith.extui %116 : vector<32x128xi1> to vector<32x128xi32>
    %198 = arith.sitofp %197 : vector<32x128xi32> to vector<32x128xf32>
    %199 = arith.addf %196, %198 : vector<32x128xf32>
    %200 = arith.mulf %180, %199 : vector<32x128xf32>
    %cst_83 = arith.constant 1.000000e+00 : f32
    %201 = vector.broadcast %cst_83 : f32 to vector<32x128xf32>
    %202 = arith.divf %201, %200 : vector<32x128xf32>
    %203 = arith.mulf %161, %202 : vector<32x128xf32>
    %cst_84 = arith.constant dense<0.000000e+00> : vector<128xf32>
    %204 = vector.multi_reduction <add>, %203, %cst_84 [0] : vector<32x128xf32> to vector<128xf32>
    %205 = vector.shape_cast %204 : vector<128xf32> to vector<1x128xf32>
    %cst_85 = arith.constant 3.200000e+01 : f32
    %206 = vector.broadcast %cst_85 : f32 to vector<1x128xf32>
    %207 = arith.divf %205, %206 : vector<1x128xf32>
    %208 = vector.shape_cast %207 : vector<1x128xf32> to vector<1x128xf32>
    %209 = vector.broadcast %208 : vector<1x128xf32> to vector<8x128xf32>
    %c0_86 = arith.constant 0 : index
    %c0_87 = arith.constant 0 : index
    %210 = vector.load %arg5[%c0_86, %c0_87] : memref<128x128xf32, #tpu.memory_space<vmem>>, vector<128x128xf32>
    %cst_88 = arith.constant dense<0.000000e+00> : vector<8x128xf32>
    %211 = tpu.matmul %209, %210, %cst_88 {dimension_numbers = #tpu.dot_dimension_numbers<[1], [0], [0], [1], [0, 0, 1, 1], [], []>} : vector<8x128xf32>, vector<128x128xf32>, vector<8x128xf32> -> vector<8x128xf32>
    %212 = vector.extract_strided_slice %211 {offsets = [0, 0], sizes = [1, 128], strides = [1, 1]} : vector<8x128xf32> to vector<1x128xf32>
    %213 = vector.broadcast %212 : vector<1x128xf32> to vector<32x128xf32>
    %214 = arith.subf %203, %213 : vector<32x128xf32>
    %215 = arith.mulf %214, %214 : vector<32x128xf32>
    %cst_89 = arith.constant dense<0.000000e+00> : vector<128xf32>
    %216 = vector.multi_reduction <add>, %215, %cst_89 [0] : vector<32x128xf32> to vector<128xf32>
    %217 = vector.shape_cast %216 : vector<128xf32> to vector<1x128xf32>
    %cst_90 = arith.constant 3.200000e+01 : f32
    %218 = vector.broadcast %cst_90 : f32 to vector<1x128xf32>
    %219 = arith.divf %217, %218 : vector<1x128xf32>
    %220 = vector.shape_cast %219 : vector<1x128xf32> to vector<1x128xf32>
    %221 = vector.broadcast %220 : vector<1x128xf32> to vector<8x128xf32>
    %c0_91 = arith.constant 0 : index
    %c0_92 = arith.constant 0 : index
    %222 = vector.load %arg5[%c0_91, %c0_92] : memref<128x128xf32, #tpu.memory_space<vmem>>, vector<128x128xf32>
    %cst_93 = arith.constant dense<0.000000e+00> : vector<8x128xf32>
    %223 = tpu.matmul %221, %222, %cst_93 {dimension_numbers = #tpu.dot_dimension_numbers<[1], [0], [0], [1], [0, 0, 1, 1], [], []>} : vector<8x128xf32>, vector<128x128xf32>, vector<8x128xf32> -> vector<8x128xf32>
    %224 = vector.extract_strided_slice %223 {offsets = [0, 0], sizes = [1, 128], strides = [1, 1]} : vector<8x128xf32> to vector<1x128xf32>
    %cst_94 = arith.constant 9.99999974E-6 : f32
    %225 = vector.broadcast %cst_94 : f32 to vector<1x128xf32>
    %226 = arith.addf %224, %225 : vector<1x128xf32>
    %227 = math.rsqrt %226 : vector<1x128xf32>
    %228 = vector.broadcast %227 : vector<1x128xf32> to vector<32x128xf32>
    %229 = arith.mulf %214, %228 : vector<32x128xf32>
    %230 = arith.addf %145, %229 : vector<32x128xf32>
    %c0_95 = arith.constant 0 : index
    %c0_96 = arith.constant 0 : index
    %c0_97 = arith.constant 0 : index
    %231 = vector.load %arg9[%c0_95, %c0_96, %c0_97] : memref<4x32x128xf32, #tpu.memory_space<vmem>>, vector<1x32x128xf32>
    %232 = vector.shape_cast %231 : vector<1x32x128xf32> to vector<32x128xf32>
    %233 = vector.shape_cast %230 : vector<32x128xf32> to vector<1x32x128xf32>
    tpu.vector_store %arg9[%c0_95, %c0_96, %c0_97], %233 {strides = array<i32>} : memref<4x32x128xf32, #tpu.memory_space<vmem>>, vector<1x32x128xf32>,
    %cst_98 = arith.constant 0.000000e+00 : f32
    %234 = vector.broadcast %cst_98 : f32 to vector<32x128xf32>
    %235 = arith.maximumf %67, %234 : vector<32x128xf32>
    %c1_i32_99 = arith.constant 1 : i32
    %236 = tpu.dynamic_rotate %235 by %c1_i32_99 dim 0 : vector<32x128xf32>, i32 -> vector<32x128xf32>
    %cst_100 = arith.constant 0.000000e+00 : f32
    %237 = vector.broadcast %cst_100 : f32 to vector<32x128xf32>
    %238 = arith.select %77, %236, %237 : vector<32x128xi1>, vector<32x128xf32>
    %c31_i32_101 = arith.constant 31 : i32
    %239 = tpu.dynamic_rotate %235 by %c31_i32_101 dim 0 : vector<32x128xf32>, i32 -> vector<32x128xf32>
    %cst_102 = arith.constant 0.000000e+00 : f32
    %240 = vector.broadcast %cst_102 : f32 to vector<32x128xf32>
    %241 = arith.select %90, %239, %240 : vector<32x128xi1>, vector<32x128xf32>
    %242 = tpu.concatenate %238, %235, %241 in 1 : vector<32x128xf32>, vector<32x128xf32>, vector<32x128xf32> -> vector<32x384xf32>
    %243 = arith.truncf %242 : vector<32x384xf32> to vector<32x384xbf16>
    %c0_i32_103 = arith.constant 0 : i32
    %244 = tpu.memref_slice %arg11[%c0_i32_103] : memref<1x!tpu.dma_semaphore, #tpu.memory_space<semaphore_mem>> -> memref<1x!tpu.dma_semaphore, #tpu.memory_space<semaphore_mem>>
    %245 = tpu.memref_squeeze %244 : memref<1x!tpu.dma_semaphore, #tpu.memory_space<semaphore_mem>> -> memref<!tpu.dma_semaphore, #tpu.memory_space<semaphore_mem>>
    tpu.wait_dma2 semaphore(%245 : memref<!tpu.dma_semaphore, #tpu.memory_space<semaphore_mem>>) src(%arg8 : memref<6144x128xbf16, #tpu.memory_space<any>>) dst(%arg10 : memref<6144x128xbf16, #tpu.memory_space<vmem>>)
    %c0_104 = arith.constant 0 : index
    %c0_105 = arith.constant 0 : index
    %246 = vector.load %arg10[%c0_104, %c0_105] : memref<6144x128xbf16, #tpu.memory_space<vmem>>, vector<384x128xbf16>
    %cst_106 = arith.constant dense<0.000000e+00> : vector<32x128xf32>
    %247 = tpu.matmul %243, %246, %cst_106 {dimension_numbers = #tpu.dot_dimension_numbers<[1], [0], [0], [1], [0, 0, 1, 1], [], []>} : vector<32x384xbf16>, vector<384x128xbf16>, vector<32x128xf32> -> vector<32x128xf32>
    %cst_107 = arith.constant dense<0.000000e+00> : vector<128xf32>
    %248 = vector.multi_reduction <add>, %247, %cst_107 [0] : vector<32x128xf32> to vector<128xf32>
    %249 = vector.shape_cast %248 : vector<128xf32> to vector<1x128xf32>
    %cst_108 = arith.constant 3.200000e+01 : f32
    %250 = vector.broadcast %cst_108 : f32 to vector<1x128xf32>
    %251 = arith.divf %249, %250 : vector<1x128xf32>
    %252 = vector.shape_cast %251 : vector<1x128xf32> to vector<1x128xf32>
    %253 = vector.broadcast %252 : vector<1x128xf32> to vector<8x128xf32>
    %c0_109 = arith.constant 0 : index
    %c0_110 = arith.constant 0 : index
    %254 = vector.load %arg5[%c0_109, %c0_110] : memref<128x128xf32, #tpu.memory_space<vmem>>, vector<128x128xf32>
    %cst_111 = arith.constant dense<0.000000e+00> : vector<8x128xf32>
    %255 = tpu.matmul %253, %254, %cst_111 {dimension_numbers = #tpu.dot_dimension_numbers<[1], [0], [0], [1], [0, 0, 1, 1], [], []>} : vector<8x128xf32>, vector<128x128xf32>, vector<8x128xf32> -> vector<8x128xf32>
    %256 = vector.extract_strided_slice %255 {offsets = [0, 0], sizes = [1, 128], strides = [1, 1]} : vector<8x128xf32> to vector<1x128xf32>
    %257 = vector.broadcast %256 : vector<1x128xf32> to vector<32x128xf32>
    %258 = arith.subf %247, %257 : vector<32x128xf32>
    %259 = arith.mulf %258, %258 : vector<32x128xf32>
    %cst_112 = arith.constant dense<0.000000e+00> : vector<128xf32>
    %260 = vector.multi_reduction <add>, %259, %cst_112 [0] : vector<32x128xf32> to vector<128xf32>
    %261 = vector.shape_cast %260 : vector<128xf32> to vector<1x128xf32>
    %cst_113 = arith.constant 3.200000e+01 : f32
    %262 = vector.broadcast %cst_113 : f32 to vector<1x128xf32>
    %263 = arith.divf %261, %262 : vector<1x128xf32>
    %264 = vector.shape_cast %263 : vector<1x128xf32> to vector<1x128xf32>
    %265 = vector.broadcast %264 : vector<1x128xf32> to vector<8x128xf32>
    %c0_114 = arith.constant 0 : index
    %c0_115 = arith.constant 0 : index
    %266 = vector.load %arg5[%c0_114, %c0_115] : memref<128x128xf32, #tpu.memory_space<vmem>>, vector<128x128xf32>
    %cst_116 = arith.constant dense<0.000000e+00> : vector<8x128xf32>
    %267 = tpu.matmul %265, %266, %cst_116 {dimension_numbers = #tpu.dot_dimension_numbers<[1], [0], [0], [1], [0, 0, 1, 1], [], []>} : vector<8x128xf32>, vector<128x128xf32>, vector<8x128xf32> -> vector<8x128xf32>
    %268 = vector.extract_strided_slice %267 {offsets = [0, 0], sizes = [1, 128], strides = [1, 1]} : vector<8x128xf32> to vector<1x128xf32>
    %cst_117 = arith.constant 9.99999974E-6 : f32
    %269 = vector.broadcast %cst_117 : f32 to vector<1x128xf32>
    %270 = arith.addf %268, %269 : vector<1x128xf32>
    %271 = math.rsqrt %270 : vector<1x128xf32>
    %272 = vector.broadcast %271 : vector<1x128xf32> to vector<32x128xf32>
    %273 = arith.mulf %258, %272 : vector<32x128xf32>
    %cst_118 = arith.constant 0.000000e+00 : f32
    %274 = vector.broadcast %cst_118 : f32 to vector<32x128xf32>
    %275 = arith.maximumf %273, %274 : vector<32x128xf32>
    %c1_i32_119 = arith.constant 1 : i32
    %276 = tpu.dynamic_rotate %275 by %c1_i32_119 dim 0 : vector<32x128xf32>, i32 -> vector<32x128xf32>
    %cst_120 = arith.constant 0.000000e+00 : f32
    %277 = vector.broadcast %cst_120 : f32 to vector<32x128xf32>
    %278 = arith.select %77, %276, %277 : vector<32x128xi1>, vector<32x128xf32>
    %c31_i32_121 = arith.constant 31 : i32
    %279 = tpu.dynamic_rotate %275 by %c31_i32_121 dim 0 : vector<32x128xf32>, i32 -> vector<32x128xf32>
    %cst_122 = arith.constant 0.000000e+00 : f32
    %280 = vector.broadcast %cst_122 : f32 to vector<32x128xf32>
    %281 = arith.select %90, %279, %280 : vector<32x128xi1>, vector<32x128xf32>
    %282 = tpu.concatenate %278, %275, %281 in 1 : vector<32x128xf32>, vector<32x128xf32>, vector<32x128xf32> -> vector<32x384xf32>
    %283 = arith.truncf %282 : vector<32x384xf32> to vector<32x384xbf16>
    %c384 = arith.constant 384 : index
    %c0_123 = arith.constant 0 : index
    %284 = vector.load %arg10[%c384, %c0_123] : memref<6144x128xbf16, #tpu.memory_space<vmem>>, vector<384x128xbf16>
    %cst_124 = arith.constant dense<0.000000e+00> : vector<32x128xf32>
    %285 = tpu.matmul %283, %284, %cst_124 {dimension_numbers = #tpu.dot_dimension_numbers<[1], [0], [0], [1], [0, 0, 1, 1], [], []>} : vector<32x384xbf16>, vector<384x128xbf16>, vector<32x128xf32> -> vector<32x128xf32>
    %cst_125 = arith.constant dense<0.000000e+00> : vector<128xf32>
    %286 = vector.multi_reduction <add>, %285, %cst_125 [0] : vector<32x128xf32> to vector<128xf32>
    %287 = vector.shape_cast %286 : vector<128xf32> to vector<1x128xf32>
    %cst_126 = arith.constant 3.200000e+01 : f32
    %288 = vector.broadcast %cst_126 : f32 to vector<1x128xf32>
    %289 = arith.divf %287, %288 : vector<1x128xf32>
    %290 = vector.shape_cast %289 : vector<1x128xf32> to vector<1x128xf32>
    %291 = vector.broadcast %290 : vector<1x128xf32> to vector<8x128xf32>
    %c0_127 = arith.constant 0 : index
    %c0_128 = arith.constant 0 : index
    %292 = vector.load %arg5[%c0_127, %c0_128] : memref<128x128xf32, #tpu.memory_space<vmem>>, vector<128x128xf32>
    %cst_129 = arith.constant dense<0.000000e+00> : vector<8x128xf32>
    %293 = tpu.matmul %291, %292, %cst_129 {dimension_numbers = #tpu.dot_dimension_numbers<[1], [0], [0], [1], [0, 0, 1, 1], [], []>} : vector<8x128xf32>, vector<128x128xf32>, vector<8x128xf32> -> vector<8x128xf32>
    %294 = vector.extract_strided_slice %293 {offsets = [0, 0], sizes = [1, 128], strides = [1, 1]} : vector<8x128xf32> to vector<1x128xf32>
    %295 = vector.broadcast %294 : vector<1x128xf32> to vector<32x128xf32>
    %296 = arith.subf %285, %295 : vector<32x128xf32>
    %297 = arith.mulf %296, %296 : vector<32x128xf32>
    %cst_130 = arith.constant dense<0.000000e+00> : vector<128xf32>
    %298 = vector.multi_reduction <add>, %297, %cst_130 [0] : vector<32x128xf32> to vector<128xf32>
    %299 = vector.shape_cast %298 : vector<128xf32> to vector<1x128xf32>
    %cst_131 = arith.constant 3.200000e+01 : f32
    %300 = vector.broadcast %cst_131 : f32 to vector<1x128xf32>
    %301 = arith.divf %299, %300 : vector<1x128xf32>
    %302 = vector.shape_cast %301 : vector<1x128xf32> to vector<1x128xf32>
    %303 = vector.broadcast %302 : vector<1x128xf32> to vector<8x128xf32>
    %c0_132 = arith.constant 0 : index
    %c0_133 = arith.constant 0 : index
    %304 = vector.load %arg5[%c0_132, %c0_133] : memref<128x128xf32, #tpu.memory_space<vmem>>, vector<128x128xf32>
    %cst_134 = arith.constant dense<0.000000e+00> : vector<8x128xf32>
    %305 = tpu.matmul %303, %304, %cst_134 {dimension_numbers = #tpu.dot_dimension_numbers<[1], [0], [0], [1], [0, 0, 1, 1], [], []>} : vector<8x128xf32>, vector<128x128xf32>, vector<8x128xf32> -> vector<8x128xf32>
    %306 = vector.extract_strided_slice %305 {offsets = [0, 0], sizes = [1, 128], strides = [1, 1]} : vector<8x128xf32> to vector<1x128xf32>
    %cst_135 = arith.constant 9.99999974E-6 : f32
    %307 = vector.broadcast %cst_135 : f32 to vector<1x128xf32>
    %308 = arith.addf %306, %307 : vector<1x128xf32>
    %309 = math.rsqrt %308 : vector<1x128xf32>
    %310 = vector.broadcast %309 : vector<1x128xf32> to vector<32x128xf32>
    %311 = arith.mulf %296, %310 : vector<32x128xf32>
    %312 = arith.addf %35, %311 : vector<32x128xf32>
    %cst_136 = arith.constant 0.000000e+00 : f32
    %313 = vector.broadcast %cst_136 : f32 to vector<32x128xf32>
    %314 = arith.maximumf %230, %313 : vector<32x128xf32>
    %c2_i32 = arith.constant 2 : i32
    %315 = tpu.dynamic_rotate %314 by %c2_i32 dim 0 : vector<32x128xf32>, i32 -> vector<32x128xf32>
    %c-2_i32 = arith.constant -2 : i32
    %316 = vector.broadcast %c-2_i32 : i32 to vector<32x128xi32>
    %317 = arith.addi %2, %316 : vector<32x128xi32>
    %c0_i32_137 = arith.constant 0 : i32
    %318 = vector.broadcast %c0_i32_137 : i32 to vector<32x128xi32>
    %319 = arith.cmpi sge, %317, %318 : vector<32x128xi32>
    %c-2_i32_138 = arith.constant -2 : i32
    %320 = vector.broadcast %c-2_i32_138 : i32 to vector<32x128xi32>
    %321 = arith.addi %2, %320 : vector<32x128xi32>
    %c16_i32_139 = arith.constant 16 : i32
    %322 = vector.broadcast %c16_i32_139 : i32 to vector<32x128xi32>
    %323 = arith.cmpi slt, %321, %322 : vector<32x128xi32>
    %324 = arith.andi %319, %323 : vector<32x128xi1>
    %cst_140 = arith.constant 0.000000e+00 : f32
    %325 = vector.broadcast %cst_140 : f32 to vector<32x128xf32>
    %326 = arith.select %324, %315, %325 : vector<32x128xi1>, vector<32x128xf32>
    %c1_i32_141 = arith.constant 1 : i32
    %327 = tpu.dynamic_rotate %314 by %c1_i32_141 dim 0 : vector<32x128xf32>, i32 -> vector<32x128xf32>
    %cst_142 = arith.constant 0.000000e+00 : f32
    %328 = vector.broadcast %cst_142 : f32 to vector<32x128xf32>
    %329 = arith.select %77, %327, %328 : vector<32x128xi1>, vector<32x128xf32>
    %c31_i32_143 = arith.constant 31 : i32
    %330 = tpu.dynamic_rotate %314 by %c31_i32_143 dim 0 : vector<32x128xf32>, i32 -> vector<32x128xf32>
    %cst_144 = arith.constant 0.000000e+00 : f32
    %331 = vector.broadcast %cst_144 : f32 to vector<32x128xf32>
    %332 = arith.select %90, %330, %331 : vector<32x128xi1>, vector<32x128xf32>
    %c30_i32 = arith.constant 30 : i32
    %333 = tpu.dynamic_rotate %314 by %c30_i32 dim 0 : vector<32x128xf32>, i32 -> vector<32x128xf32>
    %c2_i32_145 = arith.constant 2 : i32
    %334 = vector.broadcast %c2_i32_145 : i32 to vector<32x128xi32>
    %335 = arith.addi %2, %334 : vector<32x128xi32>
    %c0_i32_146 = arith.constant 0 : i32
    %336 = vector.broadcast %c0_i32_146 : i32 to vector<32x128xi32>
    %337 = arith.cmpi sge, %335, %336 : vector<32x128xi32>
    %c2_i32_147 = arith.constant 2 : i32
    %338 = vector.broadcast %c2_i32_147 : i32 to vector<32x128xi32>
    %339 = arith.addi %2, %338 : vector<32x128xi32>
    %c16_i32_148 = arith.constant 16 : i32
    %340 = vector.broadcast %c16_i32_148 : i32 to vector<32x128xi32>
    %341 = arith.cmpi slt, %339, %340 : vector<32x128xi32>
    %342 = arith.andi %337, %341 : vector<32x128xi1>
    %cst_149 = arith.constant 0.000000e+00 : f32
    %343 = vector.broadcast %cst_149 : f32 to vector<32x128xf32>
    %344 = arith.select %342, %333, %343 : vector<32x128xi1>, vector<32x128xf32>
    %345 = tpu.concatenate %326, %329, %314, %332, %344 in 1 : vector<32x128xf32>, vector<32x128xf32>, vector<32x128xf32>, vector<32x128xf32>, vector<32x128xf32> -> vector<32x640xf32>
    %346 = arith.truncf %345 : vector<32x640xf32> to vector<32x640xbf16>
    %c768 = arith.constant 768 : index
    %c0_150 = arith.constant 0 : index
    %347 = vector.load %arg10[%c768, %c0_150] : memref<6144x128xbf16, #tpu.memory_space<vmem>>, vector<640x128xbf16>
    %cst_151 = arith.constant dense<0.000000e+00> : vector<32x128xf32>
    %348 = tpu.matmul %346, %347, %cst_151 {dimension_numbers = #tpu.dot_dimension_numbers<[1], [0], [0], [1], [0, 0, 1, 1], [], []>} : vector<32x640xbf16>, vector<640x128xbf16>, vector<32x128xf32> -> vector<32x128xf32>
    %cst_152 = arith.constant dense<0.000000e+00> : vector<128xf32>
    %349 = vector.multi_reduction <add>, %348, %cst_152 [0] : vector<32x128xf32> to vector<128xf32>
    %350 = vector.shape_cast %349 : vector<128xf32> to vector<1x128xf32>
    %cst_153 = arith.constant 3.200000e+01 : f32
    %351 = vector.broadcast %cst_153 : f32 to vector<1x128xf32>
    %352 = arith.divf %350, %351 : vector<1x128xf32>
    %353 = vector.shape_cast %352 : vector<1x128xf32> to vector<1x128xf32>
    %354 = vector.broadcast %353 : vector<1x128xf32> to vector<8x128xf32>
    %c0_154 = arith.constant 0 : index
    %c0_155 = arith.constant 0 : index
    %355 = vector.load %arg5[%c0_154, %c0_155] : memref<128x128xf32, #tpu.memory_space<vmem>>, vector<128x128xf32>
    %cst_156 = arith.constant dense<0.000000e+00> : vector<8x128xf32>
    %356 = tpu.matmul %354, %355, %cst_156 {dimension_numbers = #tpu.dot_dimension_numbers<[1], [0], [0], [1], [0, 0, 1, 1], [], []>} : vector<8x128xf32>, vector<128x128xf32>, vector<8x128xf32> -> vector<8x128xf32>
    %357 = vector.extract_strided_slice %356 {offsets = [0, 0], sizes = [1, 128], strides = [1, 1]} : vector<8x128xf32> to vector<1x128xf32>
    %358 = vector.broadcast %357 : vector<1x128xf32> to vector<32x128xf32>
    %359 = arith.subf %348, %358 : vector<32x128xf32>
    %360 = arith.mulf %359, %359 : vector<32x128xf32>
    %cst_157 = arith.constant dense<0.000000e+00> : vector<128xf32>
    %361 = vector.multi_reduction <add>, %360, %cst_157 [0] : vector<32x128xf32> to vector<128xf32>
    %362 = vector.shape_cast %361 : vector<128xf32> to vector<1x128xf32>
    %cst_158 = arith.constant 3.200000e+01 : f32
    %363 = vector.broadcast %cst_158 : f32 to vector<1x128xf32>
    %364 = arith.divf %362, %363 : vector<1x128xf32>
    %365 = vector.shape_cast %364 : vector<1x128xf32> to vector<1x128xf32>
    %366 = vector.broadcast %365 : vector<1x128xf32> to vector<8x128xf32>
    %c0_159 = arith.constant 0 : index
    %c0_160 = arith.constant 0 : index
    %367 = vector.load %arg5[%c0_159, %c0_160] : memref<128x128xf32, #tpu.memory_space<vmem>>, vector<128x128xf32>
    %cst_161 = arith.constant dense<0.000000e+00> : vector<8x128xf32>
    %368 = tpu.matmul %366, %367, %cst_161 {dimension_numbers = #tpu.dot_dimension_numbers<[1], [0], [0], [1], [0, 0, 1, 1], [], []>} : vector<8x128xf32>, vector<128x128xf32>, vector<8x128xf32> -> vector<8x128xf32>
    %369 = vector.extract_strided_slice %368 {offsets = [0, 0], sizes = [1, 128], strides = [1, 1]} : vector<8x128xf32> to vector<1x128xf32>
    %cst_162 = arith.constant 9.99999974E-6 : f32
    %370 = vector.broadcast %cst_162 : f32 to vector<1x128xf32>
    %371 = arith.addf %369, %370 : vector<1x128xf32>
    %372 = math.rsqrt %371 : vector<1x128xf32>
    %373 = vector.broadcast %372 : vector<1x128xf32> to vector<32x128xf32>
    %374 = arith.mulf %359, %373 : vector<32x128xf32>
    %cst_163 = arith.constant 0.000000e+00 : f32
    %375 = vector.broadcast %cst_163 : f32 to vector<32x128xf32>
    %376 = arith.maximumf %374, %375 : vector<32x128xf32>
    %c2_i32_164 = arith.constant 2 : i32
    %377 = tpu.dynamic_rotate %376 by %c2_i32_164 dim 0 : vector<32x128xf32>, i32 -> vector<32x128xf32>
    %cst_165 = arith.constant 0.000000e+00 : f32
    %378 = vector.broadcast %cst_165 : f32 to vector<32x128xf32>
    %379 = arith.select %324, %377, %378 : vector<32x128xi1>, vector<32x128xf32>
    %c1_i32_166 = arith.constant 1 : i32
    %380 = tpu.dynamic_rotate %376 by %c1_i32_166 dim 0 : vector<32x128xf32>, i32 -> vector<32x128xf32>
    %cst_167 = arith.constant 0.000000e+00 : f32
    %381 = vector.broadcast %cst_167 : f32 to vector<32x128xf32>
    %382 = arith.select %77, %380, %381 : vector<32x128xi1>, vector<32x128xf32>
    %c31_i32_168 = arith.constant 31 : i32
    %383 = tpu.dynamic_rotate %376 by %c31_i32_168 dim 0 : vector<32x128xf32>, i32 -> vector<32x128xf32>
    %cst_169 = arith.constant 0.000000e+00 : f32
    %384 = vector.broadcast %cst_169 : f32 to vector<32x128xf32>
    %385 = arith.select %90, %383, %384 : vector<32x128xi1>, vector<32x128xf32>
    %c30_i32_170 = arith.constant 30 : i32
    %386 = tpu.dynamic_rotate %376 by %c30_i32_170 dim 0 : vector<32x128xf32>, i32 -> vector<32x128xf32>
    %cst_171 = arith.constant 0.000000e+00 : f32
    %387 = vector.broadcast %cst_171 : f32 to vector<32x128xf32>
    %388 = arith.select %342, %386, %387 : vector<32x128xi1>, vector<32x128xf32>
    %389 = tpu.concatenate %379, %382, %376, %385, %388 in 1 : vector<32x128xf32>, vector<32x128xf32>, vector<32x128xf32>, vector<32x128xf32>, vector<32x128xf32> -> vector<32x640xf32>
    %390 = arith.truncf %389 : vector<32x640xf32> to vector<32x640xbf16>
    %c1408 = arith.constant 1408 : index
    %c0_172 = arith.constant 0 : index
    %391 = vector.load %arg10[%c1408, %c0_172] : memref<6144x128xbf16, #tpu.memory_space<vmem>>, vector<640x128xbf16>
    %cst_173 = arith.constant dense<0.000000e+00> : vector<32x128xf32>
    %392 = tpu.matmul %390, %391, %cst_173 {dimension_numbers = #tpu.dot_dimension_numbers<[1], [0], [0], [1], [0, 0, 1, 1], [], []>} : vector<32x640xbf16>, vector<640x128xbf16>, vector<32x128xf32> -> vector<32x128xf32>
    %cst_174 = arith.constant dense<0.000000e+00> : vector<128xf32>
    %393 = vector.multi_reduction <add>, %392, %cst_174 [0] : vector<32x128xf32> to vector<128xf32>
    %394 = vector.shape_cast %393 : vector<128xf32> to vector<1x128xf32>
    %cst_175 = arith.constant 3.200000e+01 : f32
    %395 = vector.broadcast %cst_175 : f32 to vector<1x128xf32>
    %396 = arith.divf %394, %395 : vector<1x128xf32>
    %397 = vector.shape_cast %396 : vector<1x128xf32> to vector<1x128xf32>
    %398 = vector.broadcast %397 : vector<1x128xf32> to vector<8x128xf32>
    %c0_176 = arith.constant 0 : index
    %c0_177 = arith.constant 0 : index
    %399 = vector.load %arg5[%c0_176, %c0_177] : memref<128x128xf32, #tpu.memory_space<vmem>>, vector<128x128xf32>
    %cst_178 = arith.constant dense<0.000000e+00> : vector<8x128xf32>
    %400 = tpu.matmul %398, %399, %cst_178 {dimension_numbers = #tpu.dot_dimension_numbers<[1], [0], [0], [1], [0, 0, 1, 1], [], []>} : vector<8x128xf32>, vector<128x128xf32>, vector<8x128xf32> -> vector<8x128xf32>
    %401 = vector.extract_strided_slice %400 {offsets = [0, 0], sizes = [1, 128], strides = [1, 1]} : vector<8x128xf32> to vector<1x128xf32>
    %402 = vector.broadcast %401 : vector<1x128xf32> to vector<32x128xf32>
    %403 = arith.subf %392, %402 : vector<32x128xf32>
    %404 = arith.mulf %403, %403 : vector<32x128xf32>
    %cst_179 = arith.constant dense<0.000000e+00> : vector<128xf32>
    %405 = vector.multi_reduction <add>, %404, %cst_179 [0] : vector<32x128xf32> to vector<128xf32>
    %406 = vector.shape_cast %405 : vector<128xf32> to vector<1x128xf32>
    %cst_180 = arith.constant 3.200000e+01 : f32
    %407 = vector.broadcast %cst_180 : f32 to vector<1x128xf32>
    %408 = arith.divf %406, %407 : vector<1x128xf32>
    %409 = vector.shape_cast %408 : vector<1x128xf32> to vector<1x128xf32>
    %410 = vector.broadcast %409 : vector<1x128xf32> to vector<8x128xf32>
    %c0_181 = arith.constant 0 : index
    %c0_182 = arith.constant 0 : index
    %411 = vector.load %arg5[%c0_181, %c0_182] : memref<128x128xf32, #tpu.memory_space<vmem>>, vector<128x128xf32>
    %cst_183 = arith.constant dense<0.000000e+00> : vector<8x128xf32>
    %412 = tpu.matmul %410, %411, %cst_183 {dimension_numbers = #tpu.dot_dimension_numbers<[1], [0], [0], [1], [0, 0, 1, 1], [], []>} : vector<8x128xf32>, vector<128x128xf32>, vector<8x128xf32> -> vector<8x128xf32>
    %413 = vector.extract_strided_slice %412 {offsets = [0, 0], sizes = [1, 128], strides = [1, 1]} : vector<8x128xf32> to vector<1x128xf32>
    %cst_184 = arith.constant 9.99999974E-6 : f32
    %414 = vector.broadcast %cst_184 : f32 to vector<1x128xf32>
    %415 = arith.addf %413, %414 : vector<1x128xf32>
    %416 = math.rsqrt %415 : vector<1x128xf32>
    %417 = vector.broadcast %416 : vector<1x128xf32> to vector<32x128xf32>
    %418 = arith.mulf %403, %417 : vector<32x128xf32>
    %419 = arith.addf %312, %418 : vector<32x128xf32>
    %c1 = arith.constant 1 : index
    %c0_185 = arith.constant 0 : index
    %c0_186 = arith.constant 0 : index
    %420 = vector.load %arg9[%c1, %c0_185, %c0_186] : memref<4x32x128xf32, #tpu.memory_space<vmem>>, vector<1x32x128xf32>
    %421 = vector.shape_cast %420 : vector<1x32x128xf32> to vector<32x128xf32>
    %422 = vector.shape_cast %419 : vector<32x128xf32> to vector<1x32x128xf32>
    tpu.vector_store %arg9[%c1, %c0_185, %c0_186], %422 {strides = array<i32>} : memref<4x32x128xf32, #tpu.memory_space<vmem>>, vector<1x32x128xf32>,
    %cst_187 = arith.constant 0.000000e+00 : f32
    %423 = vector.broadcast %cst_187 : f32 to vector<32x128xf32>
    %424 = arith.maximumf %35, %423 : vector<32x128xf32>
    %c2_i32_188 = arith.constant 2 : i32
    %425 = tpu.dynamic_rotate %424 by %c2_i32_188 dim 0 : vector<32x128xf32>, i32 -> vector<32x128xf32>
    %cst_189 = arith.constant 0.000000e+00 : f32
    %426 = vector.broadcast %cst_189 : f32 to vector<32x128xf32>
    %427 = arith.select %324, %425, %426 : vector<32x128xi1>, vector<32x128xf32>
    %c30_i32_190 = arith.constant 30 : i32
    %428 = tpu.dynamic_rotate %424 by %c30_i32_190 dim 0 : vector<32x128xf32>, i32 -> vector<32x128xf32>
    %cst_191 = arith.constant 0.000000e+00 : f32
    %429 = vector.broadcast %cst_191 : f32 to vector<32x128xf32>
    %430 = arith.select %342, %428, %429 : vector<32x128xi1>, vector<32x128xf32>
    %431 = tpu.concatenate %427, %424, %430 in 1 : vector<32x128xf32>, vector<32x128xf32>, vector<32x128xf32> -> vector<32x384xf32>
    %432 = arith.truncf %431 : vector<32x384xf32> to vector<32x384xbf16>
    %c2048 = arith.constant 2048 : index
    %c0_192 = arith.constant 0 : index
    %433 = vector.load %arg10[%c2048, %c0_192] : memref<6144x128xbf16, #tpu.memory_space<vmem>>, vector<384x128xbf16>
    %cst_193 = arith.constant dense<0.000000e+00> : vector<32x128xf32>
    %434 = tpu.matmul %432, %433, %cst_193 {dimension_numbers = #tpu.dot_dimension_numbers<[1], [0], [0], [1], [0, 0, 1, 1], [], []>} : vector<32x384xbf16>, vector<384x128xbf16>, vector<32x128xf32> -> vector<32x128xf32>
    %cst_194 = arith.constant dense<0.000000e+00> : vector<128xf32>
    %435 = vector.multi_reduction <add>, %434, %cst_194 [0] : vector<32x128xf32> to vector<128xf32>
    %436 = vector.shape_cast %435 : vector<128xf32> to vector<1x128xf32>
    %cst_195 = arith.constant 3.200000e+01 : f32
    %437 = vector.broadcast %cst_195 : f32 to vector<1x128xf32>
    %438 = arith.divf %436, %437 : vector<1x128xf32>
    %439 = vector.shape_cast %438 : vector<1x128xf32> to vector<1x128xf32>
    %440 = vector.broadcast %439 : vector<1x128xf32> to vector<8x128xf32>
    %c0_196 = arith.constant 0 : index
    %c0_197 = arith.constant 0 : index
    %441 = vector.load %arg5[%c0_196, %c0_197] : memref<128x128xf32, #tpu.memory_space<vmem>>, vector<128x128xf32>
    %cst_198 = arith.constant dense<0.000000e+00> : vector<8x128xf32>
    %442 = tpu.matmul %440, %441, %cst_198 {dimension_numbers = #tpu.dot_dimension_numbers<[1], [0], [0], [1], [0, 0, 1, 1], [], []>} : vector<8x128xf32>, vector<128x128xf32>, vector<8x128xf32> -> vector<8x128xf32>
    %443 = vector.extract_strided_slice %442 {offsets = [0, 0], sizes = [1, 128], strides = [1, 1]} : vector<8x128xf32> to vector<1x128xf32>
    %444 = vector.broadcast %443 : vector<1x128xf32> to vector<32x128xf32>
    %445 = arith.subf %434, %444 : vector<32x128xf32>
    %446 = arith.mulf %445, %445 : vector<32x128xf32>
    %cst_199 = arith.constant dense<0.000000e+00> : vector<128xf32>
    %447 = vector.multi_reduction <add>, %446, %cst_199 [0] : vector<32x128xf32> to vector<128xf32>
    %448 = vector.shape_cast %447 : vector<128xf32> to vector<1x128xf32>
    %cst_200 = arith.constant 3.200000e+01 : f32
    %449 = vector.broadcast %cst_200 : f32 to vector<1x128xf32>
    %450 = arith.divf %448, %449 : vector<1x128xf32>
    %451 = vector.shape_cast %450 : vector<1x128xf32> to vector<1x128xf32>
    %452 = vector.broadcast %451 : vector<1x128xf32> to vector<8x128xf32>
    %c0_201 = arith.constant 0 : index
    %c0_202 = arith.constant 0 : index
    %453 = vector.load %arg5[%c0_201, %c0_202] : memref<128x128xf32, #tpu.memory_space<vmem>>, vector<128x128xf32>
    %cst_203 = arith.constant dense<0.000000e+00> : vector<8x128xf32>
    %454 = tpu.matmul %452, %453, %cst_203 {dimension_numbers = #tpu.dot_dimension_numbers<[1], [0], [0], [1], [0, 0, 1, 1], [], []>} : vector<8x128xf32>, vector<128x128xf32>, vector<8x128xf32> -> vector<8x128xf32>
    %455 = vector.extract_strided_slice %454 {offsets = [0, 0], sizes = [1, 128], strides = [1, 1]} : vector<8x128xf32> to vector<1x128xf32>
    %cst_204 = arith.constant 9.99999974E-6 : f32
    %456 = vector.broadcast %cst_204 : f32 to vector<1x128xf32>
    %457 = arith.addf %455, %456 : vector<1x128xf32>
    %458 = math.rsqrt %457 : vector<1x128xf32>
    %459 = vector.broadcast %458 : vector<1x128xf32> to vector<32x128xf32>
    %460 = arith.mulf %445, %459 : vector<32x128xf32>
    %cst_205 = arith.constant 0.000000e+00 : f32
    %461 = vector.broadcast %cst_205 : f32 to vector<32x128xf32>
    %462 = arith.maximumf %67, %461 : vector<32x128xf32>
    %c4_i32 = arith.constant 4 : i32
    %463 = tpu.dynamic_rotate %462 by %c4_i32 dim 0 : vector<32x128xf32>, i32 -> vector<32x128xf32>
    %c-4_i32 = arith.constant -4 : i32
    %464 = vector.broadcast %c-4_i32 : i32 to vector<32x128xi32>
    %465 = arith.addi %2, %464 : vector<32x128xi32>
    %c0_i32_206 = arith.constant 0 : i32
    %466 = vector.broadcast %c0_i32_206 : i32 to vector<32x128xi32>
    %467 = arith.cmpi sge, %465, %466 : vector<32x128xi32>
    %c-4_i32_207 = arith.constant -4 : i32
    %468 = vector.broadcast %c-4_i32_207 : i32 to vector<32x128xi32>
    %469 = arith.addi %2, %468 : vector<32x128xi32>
    %c16_i32_208 = arith.constant 16 : i32
    %470 = vector.broadcast %c16_i32_208 : i32 to vector<32x128xi32>
    %471 = arith.cmpi slt, %469, %470 : vector<32x128xi32>
    %472 = arith.andi %467, %471 : vector<32x128xi1>
    %cst_209 = arith.constant 0.000000e+00 : f32
    %473 = vector.broadcast %cst_209 : f32 to vector<32x128xf32>
    %474 = arith.select %472, %463, %473 : vector<32x128xi1>, vector<32x128xf32>
    %c2_i32_210 = arith.constant 2 : i32
    %475 = tpu.dynamic_rotate %462 by %c2_i32_210 dim 0 : vector<32x128xf32>, i32 -> vector<32x128xf32>
    %cst_211 = arith.constant 0.000000e+00 : f32
    %476 = vector.broadcast %cst_211 : f32 to vector<32x128xf32>
    %477 = arith.select %324, %475, %476 : vector<32x128xi1>, vector<32x128xf32>
    %c30_i32_212 = arith.constant 30 : i32
    %478 = tpu.dynamic_rotate %462 by %c30_i32_212 dim 0 : vector<32x128xf32>, i32 -> vector<32x128xf32>
    %cst_213 = arith.constant 0.000000e+00 : f32
    %479 = vector.broadcast %cst_213 : f32 to vector<32x128xf32>
    %480 = arith.select %342, %478, %479 : vector<32x128xi1>, vector<32x128xf32>
    %c28_i32 = arith.constant 28 : i32
    %481 = tpu.dynamic_rotate %462 by %c28_i32 dim 0 : vector<32x128xf32>, i32 -> vector<32x128xf32>
    %c4_i32_214 = arith.constant 4 : i32
    %482 = vector.broadcast %c4_i32_214 : i32 to vector<32x128xi32>
    %483 = arith.addi %2, %482 : vector<32x128xi32>
    %c0_i32_215 = arith.constant 0 : i32
    %484 = vector.broadcast %c0_i32_215 : i32 to vector<32x128xi32>
    %485 = arith.cmpi sge, %483, %484 : vector<32x128xi32>
    %c4_i32_216 = arith.constant 4 : i32
    %486 = vector.broadcast %c4_i32_216 : i32 to vector<32x128xi32>
    %487 = arith.addi %2, %486 : vector<32x128xi32>
    %c16_i32_217 = arith.constant 16 : i32
    %488 = vector.broadcast %c16_i32_217 : i32 to vector<32x128xi32>
    %489 = arith.cmpi slt, %487, %488 : vector<32x128xi32>
    %490 = arith.andi %485, %489 : vector<32x128xi1>
    %cst_218 = arith.constant 0.000000e+00 : f32
    %491 = vector.broadcast %cst_218 : f32 to vector<32x128xf32>
    %492 = arith.select %490, %481, %491 : vector<32x128xi1>, vector<32x128xf32>
    %493 = tpu.concatenate %474, %477, %462, %480, %492 in 1 : vector<32x128xf32>, vector<32x128xf32>, vector<32x128xf32>, vector<32x128xf32>, vector<32x128xf32> -> vector<32x640xf32>
    %494 = arith.truncf %493 : vector<32x640xf32> to vector<32x640xbf16>
    %c2432 = arith.constant 2432 : index
    %c0_219 = arith.constant 0 : index
    %495 = vector.load %arg10[%c2432, %c0_219] : memref<6144x128xbf16, #tpu.memory_space<vmem>>, vector<640x128xbf16>
    %cst_220 = arith.constant dense<0.000000e+00> : vector<32x128xf32>
    %496 = tpu.matmul %494, %495, %cst_220 {dimension_numbers = #tpu.dot_dimension_numbers<[1], [0], [0], [1], [0, 0, 1, 1], [], []>} : vector<32x640xbf16>, vector<640x128xbf16>, vector<32x128xf32> -> vector<32x128xf32>
    %cst_221 = arith.constant dense<0.000000e+00> : vector<128xf32>
    %497 = vector.multi_reduction <add>, %496, %cst_221 [0] : vector<32x128xf32> to vector<128xf32>
    %498 = vector.shape_cast %497 : vector<128xf32> to vector<1x128xf32>
    %cst_222 = arith.constant 3.200000e+01 : f32
    %499 = vector.broadcast %cst_222 : f32 to vector<1x128xf32>
    %500 = arith.divf %498, %499 : vector<1x128xf32>
    %501 = vector.shape_cast %500 : vector<1x128xf32> to vector<1x128xf32>
    %502 = vector.broadcast %501 : vector<1x128xf32> to vector<8x128xf32>
    %c0_223 = arith.constant 0 : index
    %c0_224 = arith.constant 0 : index
    %503 = vector.load %arg5[%c0_223, %c0_224] : memref<128x128xf32, #tpu.memory_space<vmem>>, vector<128x128xf32>
    %cst_225 = arith.constant dense<0.000000e+00> : vector<8x128xf32>
    %504 = tpu.matmul %502, %503, %cst_225 {dimension_numbers = #tpu.dot_dimension_numbers<[1], [0], [0], [1], [0, 0, 1, 1], [], []>} : vector<8x128xf32>, vector<128x128xf32>, vector<8x128xf32> -> vector<8x128xf32>
    %505 = vector.extract_strided_slice %504 {offsets = [0, 0], sizes = [1, 128], strides = [1, 1]} : vector<8x128xf32> to vector<1x128xf32>
    %506 = vector.broadcast %505 : vector<1x128xf32> to vector<32x128xf32>
    %507 = arith.subf %496, %506 : vector<32x128xf32>
    %508 = arith.mulf %507, %507 : vector<32x128xf32>
    %cst_226 = arith.constant dense<0.000000e+00> : vector<128xf32>
    %509 = vector.multi_reduction <add>, %508, %cst_226 [0] : vector<32x128xf32> to vector<128xf32>
    %510 = vector.shape_cast %509 : vector<128xf32> to vector<1x128xf32>
    %cst_227 = arith.constant 3.200000e+01 : f32
    %511 = vector.broadcast %cst_227 : f32 to vector<1x128xf32>
    %512 = arith.divf %510, %511 : vector<1x128xf32>
    %513 = vector.shape_cast %512 : vector<1x128xf32> to vector<1x128xf32>
    %514 = vector.broadcast %513 : vector<1x128xf32> to vector<8x128xf32>
    %c0_228 = arith.constant 0 : index
    %c0_229 = arith.constant 0 : index
    %515 = vector.load %arg5[%c0_228, %c0_229] : memref<128x128xf32, #tpu.memory_space<vmem>>, vector<128x128xf32>
    %cst_230 = arith.constant dense<0.000000e+00> : vector<8x128xf32>
    %516 = tpu.matmul %514, %515, %cst_230 {dimension_numbers = #tpu.dot_dimension_numbers<[1], [0], [0], [1], [0, 0, 1, 1], [], []>} : vector<8x128xf32>, vector<128x128xf32>, vector<8x128xf32> -> vector<8x128xf32>
    %517 = vector.extract_strided_slice %516 {offsets = [0, 0], sizes = [1, 128], strides = [1, 1]} : vector<8x128xf32> to vector<1x128xf32>
    %cst_231 = arith.constant 9.99999974E-6 : f32
    %518 = vector.broadcast %cst_231 : f32 to vector<1x128xf32>
    %519 = arith.addf %517, %518 : vector<1x128xf32>
    %520 = math.rsqrt %519 : vector<1x128xf32>
    %521 = vector.broadcast %520 : vector<1x128xf32> to vector<32x128xf32>
    %522 = arith.mulf %507, %521 : vector<32x128xf32>
    %523 = arith.addf %460, %522 : vector<32x128xf32>
    %c1_i32_232 = arith.constant 1 : i32
    %524 = tpu.dynamic_rotate %230 by %c1_i32_232 dim 0 : vector<32x128xf32>, i32 -> vector<32x128xf32>
    %cst_233 = arith.constant -1.000000e+30 : f32
    %525 = vector.broadcast %cst_233 : f32 to vector<32x128xf32>
    %526 = arith.select %77, %524, %525 : vector<32x128xi1>, vector<32x128xf32>
    %527 = arith.maximumf %230, %526 : vector<32x128xf32>
    %c31_i32_234 = arith.constant 31 : i32
    %528 = tpu.dynamic_rotate %230 by %c31_i32_234 dim 0 : vector<32x128xf32>, i32 -> vector<32x128xf32>
    %cst_235 = arith.constant -1.000000e+30 : f32
    %529 = vector.broadcast %cst_235 : f32 to vector<32x128xf32>
    %530 = arith.select %90, %528, %529 : vector<32x128xi1>, vector<32x128xf32>
    %531 = arith.maximumf %527, %530 : vector<32x128xf32>
    %c8_i32_236 = arith.constant 8 : i32
    %532 = tpu.dynamic_rotate %531 by %c8_i32_236 dim 1 : vector<32x128xf32>, i32 -> vector<32x128xf32>
    %cst_237 = arith.constant -1.000000e+30 : f32
    %533 = vector.broadcast %cst_237 : f32 to vector<32x128xf32>
    %534 = arith.select %103, %532, %533 : vector<32x128xi1>, vector<32x128xf32>
    %535 = arith.maximumf %531, %534 : vector<32x128xf32>
    %c120_i32_238 = arith.constant 120 : i32
    %536 = tpu.dynamic_rotate %531 by %c120_i32_238 dim 1 : vector<32x128xf32>, i32 -> vector<32x128xf32>
    %cst_239 = arith.constant -1.000000e+30 : f32
    %537 = vector.broadcast %cst_239 : f32 to vector<32x128xf32>
    %538 = arith.select %116, %536, %537 : vector<32x128xi1>, vector<32x128xf32>
    %539 = arith.maximumf %535, %538 : vector<32x128xf32>
    %cst_240 = arith.constant dense<0.000000e+00> : vector<128xf32>
    %540 = vector.multi_reduction <add>, %539, %cst_240 [0] : vector<32x128xf32> to vector<128xf32>
    %541 = vector.shape_cast %540 : vector<128xf32> to vector<1x128xf32>
    %cst_241 = arith.constant 3.200000e+01 : f32
    %542 = vector.broadcast %cst_241 : f32 to vector<1x128xf32>
    %543 = arith.divf %541, %542 : vector<1x128xf32>
    %544 = vector.shape_cast %543 : vector<1x128xf32> to vector<1x128xf32>
    %545 = vector.broadcast %544 : vector<1x128xf32> to vector<8x128xf32>
    %c0_242 = arith.constant 0 : index
    %c0_243 = arith.constant 0 : index
    %546 = vector.load %arg5[%c0_242, %c0_243] : memref<128x128xf32, #tpu.memory_space<vmem>>, vector<128x128xf32>
    %cst_244 = arith.constant dense<0.000000e+00> : vector<8x128xf32>
    %547 = tpu.matmul %545, %546, %cst_244 {dimension_numbers = #tpu.dot_dimension_numbers<[1], [0], [0], [1], [0, 0, 1, 1], [], []>} : vector<8x128xf32>, vector<128x128xf32>, vector<8x128xf32> -> vector<8x128xf32>
    %548 = vector.extract_strided_slice %547 {offsets = [0, 0], sizes = [1, 128], strides = [1, 1]} : vector<8x128xf32> to vector<1x128xf32>
    %549 = vector.broadcast %548 : vector<1x128xf32> to vector<32x128xf32>
    %550 = arith.subf %539, %549 : vector<32x128xf32>
    %551 = arith.mulf %550, %550 : vector<32x128xf32>
    %cst_245 = arith.constant dense<0.000000e+00> : vector<128xf32>
    %552 = vector.multi_reduction <add>, %551, %cst_245 [0] : vector<32x128xf32> to vector<128xf32>
    %553 = vector.shape_cast %552 : vector<128xf32> to vector<1x128xf32>
    %cst_246 = arith.constant 3.200000e+01 : f32
    %554 = vector.broadcast %cst_246 : f32 to vector<1x128xf32>
    %555 = arith.divf %553, %554 : vector<1x128xf32>
    %556 = vector.shape_cast %555 : vector<1x128xf32> to vector<1x128xf32>
    %557 = vector.broadcast %556 : vector<1x128xf32> to vector<8x128xf32>
    %c0_247 = arith.constant 0 : index
    %c0_248 = arith.constant 0 : index
    %558 = vector.load %arg5[%c0_247, %c0_248] : memref<128x128xf32, #tpu.memory_space<vmem>>, vector<128x128xf32>
    %cst_249 = arith.constant dense<0.000000e+00> : vector<8x128xf32>
    %559 = tpu.matmul %557, %558, %cst_249 {dimension_numbers = #tpu.dot_dimension_numbers<[1], [0], [0], [1], [0, 0, 1, 1], [], []>} : vector<8x128xf32>, vector<128x128xf32>, vector<8x128xf32> -> vector<8x128xf32>
    %560 = vector.extract_strided_slice %559 {offsets = [0, 0], sizes = [1, 128], strides = [1, 1]} : vector<8x128xf32> to vector<1x128xf32>
    %cst_250 = arith.constant 9.99999974E-6 : f32
    %561 = vector.broadcast %cst_250 : f32 to vector<1x128xf32>
    %562 = arith.addf %560, %561 : vector<1x128xf32>
    %563 = math.rsqrt %562 : vector<1x128xf32>
    %564 = vector.broadcast %563 : vector<1x128xf32> to vector<32x128xf32>
    %565 = arith.mulf %550, %564 : vector<32x128xf32>
    %566 = arith.addf %523, %565 : vector<32x128xf32>
    %c1_i32_251 = arith.constant 1 : i32
    %567 = tpu.dynamic_rotate %419 by %c1_i32_251 dim 0 : vector<32x128xf32>, i32 -> vector<32x128xf32>
    %cst_252 = arith.constant 0.000000e+00 : f32
    %568 = vector.broadcast %cst_252 : f32 to vector<32x128xf32>
    %569 = arith.select %77, %567, %568 : vector<32x128xi1>, vector<32x128xf32>
    %570 = arith.addf %419, %569 : vector<32x128xf32>
    %c31_i32_253 = arith.constant 31 : i32
    %571 = tpu.dynamic_rotate %419 by %c31_i32_253 dim 0 : vector<32x128xf32>, i32 -> vector<32x128xf32>
    %cst_254 = arith.constant 0.000000e+00 : f32
    %572 = vector.broadcast %cst_254 : f32 to vector<32x128xf32>
    %573 = arith.select %90, %571, %572 : vector<32x128xi1>, vector<32x128xf32>
    %574 = arith.addf %570, %573 : vector<32x128xf32>
    %c8_i32_255 = arith.constant 8 : i32
    %575 = tpu.dynamic_rotate %574 by %c8_i32_255 dim 1 : vector<32x128xf32>, i32 -> vector<32x128xf32>
    %cst_256 = arith.constant 0.000000e+00 : f32
    %576 = vector.broadcast %cst_256 : f32 to vector<32x128xf32>
    %577 = arith.select %103, %575, %576 : vector<32x128xi1>, vector<32x128xf32>
    %578 = arith.addf %574, %577 : vector<32x128xf32>
    %c120_i32_257 = arith.constant 120 : i32
    %579 = tpu.dynamic_rotate %574 by %c120_i32_257 dim 1 : vector<32x128xf32>, i32 -> vector<32x128xf32>
    %cst_258 = arith.constant 0.000000e+00 : f32
    %580 = vector.broadcast %cst_258 : f32 to vector<32x128xf32>
    %581 = arith.select %116, %579, %580 : vector<32x128xi1>, vector<32x128xf32>
    %582 = arith.addf %578, %581 : vector<32x128xf32>
    %583 = arith.mulf %582, %202 : vector<32x128xf32>
    %cst_259 = arith.constant dense<0.000000e+00> : vector<128xf32>
    %584 = vector.multi_reduction <add>, %583, %cst_259 [0] : vector<32x128xf32> to vector<128xf32>
    %585 = vector.shape_cast %584 : vector<128xf32> to vector<1x128xf32>
    %cst_260 = arith.constant 3.200000e+01 : f32
    %586 = vector.broadcast %cst_260 : f32 to vector<1x128xf32>
    %587 = arith.divf %585, %586 : vector<1x128xf32>
    %588 = vector.shape_cast %587 : vector<1x128xf32> to vector<1x128xf32>
    %589 = vector.broadcast %588 : vector<1x128xf32> to vector<8x128xf32>
    %c0_261 = arith.constant 0 : index
    %c0_262 = arith.constant 0 : index
    %590 = vector.load %arg5[%c0_261, %c0_262] : memref<128x128xf32, #tpu.memory_space<vmem>>, vector<128x128xf32>
    %cst_263 = arith.constant dense<0.000000e+00> : vector<8x128xf32>
    %591 = tpu.matmul %589, %590, %cst_263 {dimension_numbers = #tpu.dot_dimension_numbers<[1], [0], [0], [1], [0, 0, 1, 1], [], []>} : vector<8x128xf32>, vector<128x128xf32>, vector<8x128xf32> -> vector<8x128xf32>
    %592 = vector.extract_strided_slice %591 {offsets = [0, 0], sizes = [1, 128], strides = [1, 1]} : vector<8x128xf32> to vector<1x128xf32>
    %593 = vector.broadcast %592 : vector<1x128xf32> to vector<32x128xf32>
    %594 = arith.subf %583, %593 : vector<32x128xf32>
    %595 = arith.mulf %594, %594 : vector<32x128xf32>
    %cst_264 = arith.constant dense<0.000000e+00> : vector<128xf32>
    %596 = vector.multi_reduction <add>, %595, %cst_264 [0] : vector<32x128xf32> to vector<128xf32>
    %597 = vector.shape_cast %596 : vector<128xf32> to vector<1x128xf32>
    %cst_265 = arith.constant 3.200000e+01 : f32
    %598 = vector.broadcast %cst_265 : f32 to vector<1x128xf32>
    %599 = arith.divf %597, %598 : vector<1x128xf32>
    %600 = vector.shape_cast %599 : vector<1x128xf32> to vector<1x128xf32>
    %601 = vector.broadcast %600 : vector<1x128xf32> to vector<8x128xf32>
    %c0_266 = arith.constant 0 : index
    %c0_267 = arith.constant 0 : index
    %602 = vector.load %arg5[%c0_266, %c0_267] : memref<128x128xf32, #tpu.memory_space<vmem>>, vector<128x128xf32>
    %cst_268 = arith.constant dense<0.000000e+00> : vector<8x128xf32>
    %603 = tpu.matmul %601, %602, %cst_268 {dimension_numbers = #tpu.dot_dimension_numbers<[1], [0], [0], [1], [0, 0, 1, 1], [], []>} : vector<8x128xf32>, vector<128x128xf32>, vector<8x128xf32> -> vector<8x128xf32>
    %604 = vector.extract_strided_slice %603 {offsets = [0, 0], sizes = [1, 128], strides = [1, 1]} : vector<8x128xf32> to vector<1x128xf32>
    %cst_269 = arith.constant 9.99999974E-6 : f32
    %605 = vector.broadcast %cst_269 : f32 to vector<1x128xf32>
    %606 = arith.addf %604, %605 : vector<1x128xf32>
    %607 = math.rsqrt %606 : vector<1x128xf32>
    %608 = vector.broadcast %607 : vector<1x128xf32> to vector<32x128xf32>
    %609 = arith.mulf %594, %608 : vector<32x128xf32>
    %610 = arith.addf %566, %609 : vector<32x128xf32>
    %c2 = arith.constant 2 : index
    %c0_270 = arith.constant 0 : index
    %c0_271 = arith.constant 0 : index
    %611 = vector.load %arg9[%c2, %c0_270, %c0_271] : memref<4x32x128xf32, #tpu.memory_space<vmem>>, vector<1x32x128xf32>
    %612 = vector.shape_cast %611 : vector<1x32x128xf32> to vector<32x128xf32>
    %613 = vector.shape_cast %610 : vector<32x128xf32> to vector<1x32x128xf32>
    tpu.vector_store %arg9[%c2, %c0_270, %c0_271], %613 {strides = array<i32>} : memref<4x32x128xf32, #tpu.memory_space<vmem>>, vector<1x32x128xf32>,
    %cst_272 = arith.constant 0.000000e+00 : f32
    %614 = vector.broadcast %cst_272 : f32 to vector<32x128xf32>
    %615 = arith.maximumf %67, %614 : vector<32x128xf32>
    %c1_i32_273 = arith.constant 1 : i32
    %616 = tpu.dynamic_rotate %615 by %c1_i32_273 dim 0 : vector<32x128xf32>, i32 -> vector<32x128xf32>
    %cst_274 = arith.constant 0.000000e+00 : f32
    %617 = vector.broadcast %cst_274 : f32 to vector<32x128xf32>
    %618 = arith.select %77, %616, %617 : vector<32x128xi1>, vector<32x128xf32>
    %c31_i32_275 = arith.constant 31 : i32
    %619 = tpu.dynamic_rotate %615 by %c31_i32_275 dim 0 : vector<32x128xf32>, i32 -> vector<32x128xf32>
    %cst_276 = arith.constant 0.000000e+00 : f32
    %620 = vector.broadcast %cst_276 : f32 to vector<32x128xf32>
    %621 = arith.select %90, %619, %620 : vector<32x128xi1>, vector<32x128xf32>
    %622 = tpu.concatenate %618, %615, %621 in 1 : vector<32x128xf32>, vector<32x128xf32>, vector<32x128xf32> -> vector<32x384xf32>
    %623 = arith.truncf %622 : vector<32x384xf32> to vector<32x384xbf16>
    %c3072 = arith.constant 3072 : index
    %c0_277 = arith.constant 0 : index
    %624 = vector.load %arg10[%c3072, %c0_277] : memref<6144x128xbf16, #tpu.memory_space<vmem>>, vector<384x128xbf16>
    %cst_278 = arith.constant dense<0.000000e+00> : vector<32x128xf32>
    %625 = tpu.matmul %623, %624, %cst_278 {dimension_numbers = #tpu.dot_dimension_numbers<[1], [0], [0], [1], [0, 0, 1, 1], [], []>} : vector<32x384xbf16>, vector<384x128xbf16>, vector<32x128xf32> -> vector<32x128xf32>
    %cst_279 = arith.constant dense<0.000000e+00> : vector<128xf32>
    %626 = vector.multi_reduction <add>, %625, %cst_279 [0] : vector<32x128xf32> to vector<128xf32>
    %627 = vector.shape_cast %626 : vector<128xf32> to vector<1x128xf32>
    %cst_280 = arith.constant 3.200000e+01 : f32
    %628 = vector.broadcast %cst_280 : f32 to vector<1x128xf32>
    %629 = arith.divf %627, %628 : vector<1x128xf32>
    %630 = vector.shape_cast %629 : vector<1x128xf32> to vector<1x128xf32>
    %631 = vector.broadcast %630 : vector<1x128xf32> to vector<8x128xf32>
    %c0_281 = arith.constant 0 : index
    %c0_282 = arith.constant 0 : index
    %632 = vector.load %arg5[%c0_281, %c0_282] : memref<128x128xf32, #tpu.memory_space<vmem>>, vector<128x128xf32>
    %cst_283 = arith.constant dense<0.000000e+00> : vector<8x128xf32>
    %633 = tpu.matmul %631, %632, %cst_283 {dimension_numbers = #tpu.dot_dimension_numbers<[1], [0], [0], [1], [0, 0, 1, 1], [], []>} : vector<8x128xf32>, vector<128x128xf32>, vector<8x128xf32> -> vector<8x128xf32>
    %634 = vector.extract_strided_slice %633 {offsets = [0, 0], sizes = [1, 128], strides = [1, 1]} : vector<8x128xf32> to vector<1x128xf32>
    %635 = vector.broadcast %634 : vector<1x128xf32> to vector<32x128xf32>
    %636 = arith.subf %625, %635 : vector<32x128xf32>
    %637 = arith.mulf %636, %636 : vector<32x128xf32>
    %cst_284 = arith.constant dense<0.000000e+00> : vector<128xf32>
    %638 = vector.multi_reduction <add>, %637, %cst_284 [0] : vector<32x128xf32> to vector<128xf32>
    %639 = vector.shape_cast %638 : vector<128xf32> to vector<1x128xf32>
    %cst_285 = arith.constant 3.200000e+01 : f32
    %640 = vector.broadcast %cst_285 : f32 to vector<1x128xf32>
    %641 = arith.divf %639, %640 : vector<1x128xf32>
    %642 = vector.shape_cast %641 : vector<1x128xf32> to vector<1x128xf32>
    %643 = vector.broadcast %642 : vector<1x128xf32> to vector<8x128xf32>
    %c0_286 = arith.constant 0 : index
    %c0_287 = arith.constant 0 : index
    %644 = vector.load %arg5[%c0_286, %c0_287] : memref<128x128xf32, #tpu.memory_space<vmem>>, vector<128x128xf32>
    %cst_288 = arith.constant dense<0.000000e+00> : vector<8x128xf32>
    %645 = tpu.matmul %643, %644, %cst_288 {dimension_numbers = #tpu.dot_dimension_numbers<[1], [0], [0], [1], [0, 0, 1, 1], [], []>} : vector<8x128xf32>, vector<128x128xf32>, vector<8x128xf32> -> vector<8x128xf32>
    %646 = vector.extract_strided_slice %645 {offsets = [0, 0], sizes = [1, 128], strides = [1, 1]} : vector<8x128xf32> to vector<1x128xf32>
    %cst_289 = arith.constant 9.99999974E-6 : f32
    %647 = vector.broadcast %cst_289 : f32 to vector<1x128xf32>
    %648 = arith.addf %646, %647 : vector<1x128xf32>
    %649 = math.rsqrt %648 : vector<1x128xf32>
    %650 = vector.broadcast %649 : vector<1x128xf32> to vector<32x128xf32>
    %651 = arith.mulf %636, %650 : vector<32x128xf32>
    %cst_290 = arith.constant 0.000000e+00 : f32
    %652 = vector.broadcast %cst_290 : f32 to vector<32x128xf32>
    %653 = arith.maximumf %651, %652 : vector<32x128xf32>
    %c1_i32_291 = arith.constant 1 : i32
    %654 = tpu.dynamic_rotate %653 by %c1_i32_291 dim 0 : vector<32x128xf32>, i32 -> vector<32x128xf32>
    %cst_292 = arith.constant 0.000000e+00 : f32
    %655 = vector.broadcast %cst_292 : f32 to vector<32x128xf32>
    %656 = arith.select %77, %654, %655 : vector<32x128xi1>, vector<32x128xf32>
    %c31_i32_293 = arith.constant 31 : i32
    %657 = tpu.dynamic_rotate %653 by %c31_i32_293 dim 0 : vector<32x128xf32>, i32 -> vector<32x128xf32>
    %cst_294 = arith.constant 0.000000e+00 : f32
    %658 = vector.broadcast %cst_294 : f32 to vector<32x128xf32>
    %659 = arith.select %90, %657, %658 : vector<32x128xi1>, vector<32x128xf32>
    %660 = tpu.concatenate %656, %653, %659 in 1 : vector<32x128xf32>, vector<32x128xf32>, vector<32x128xf32> -> vector<32x384xf32>
    %661 = arith.truncf %660 : vector<32x384xf32> to vector<32x384xbf16>
    %c3456 = arith.constant 3456 : index
    %c0_295 = arith.constant 0 : index
    %662 = vector.load %arg10[%c3456, %c0_295] : memref<6144x128xbf16, #tpu.memory_space<vmem>>, vector<384x128xbf16>
    %cst_296 = arith.constant dense<0.000000e+00> : vector<32x128xf32>
    %663 = tpu.matmul %661, %662, %cst_296 {dimension_numbers = #tpu.dot_dimension_numbers<[1], [0], [0], [1], [0, 0, 1, 1], [], []>} : vector<32x384xbf16>, vector<384x128xbf16>, vector<32x128xf32> -> vector<32x128xf32>
    %cst_297 = arith.constant dense<0.000000e+00> : vector<128xf32>
    %664 = vector.multi_reduction <add>, %663, %cst_297 [0] : vector<32x128xf32> to vector<128xf32>
    %665 = vector.shape_cast %664 : vector<128xf32> to vector<1x128xf32>
    %cst_298 = arith.constant 3.200000e+01 : f32
    %666 = vector.broadcast %cst_298 : f32 to vector<1x128xf32>
    %667 = arith.divf %665, %666 : vector<1x128xf32>
    %668 = vector.shape_cast %667 : vector<1x128xf32> to vector<1x128xf32>
    %669 = vector.broadcast %668 : vector<1x128xf32> to vector<8x128xf32>
    %c0_299 = arith.constant 0 : index
    %c0_300 = arith.constant 0 : index
    %670 = vector.load %arg5[%c0_299, %c0_300] : memref<128x128xf32, #tpu.memory_space<vmem>>, vector<128x128xf32>
    %cst_301 = arith.constant dense<0.000000e+00> : vector<8x128xf32>
    %671 = tpu.matmul %669, %670, %cst_301 {dimension_numbers = #tpu.dot_dimension_numbers<[1], [0], [0], [1], [0, 0, 1, 1], [], []>} : vector<8x128xf32>, vector<128x128xf32>, vector<8x128xf32> -> vector<8x128xf32>
    %672 = vector.extract_strided_slice %671 {offsets = [0, 0], sizes = [1, 128], strides = [1, 1]} : vector<8x128xf32> to vector<1x128xf32>
    %673 = vector.broadcast %672 : vector<1x128xf32> to vector<32x128xf32>
    %674 = arith.subf %663, %673 : vector<32x128xf32>
    %675 = arith.mulf %674, %674 : vector<32x128xf32>
    %cst_302 = arith.constant dense<0.000000e+00> : vector<128xf32>
    %676 = vector.multi_reduction <add>, %675, %cst_302 [0] : vector<32x128xf32> to vector<128xf32>
    %677 = vector.shape_cast %676 : vector<128xf32> to vector<1x128xf32>
    %cst_303 = arith.constant 3.200000e+01 : f32
    %678 = vector.broadcast %cst_303 : f32 to vector<1x128xf32>
    %679 = arith.divf %677, %678 : vector<1x128xf32>
    %680 = vector.shape_cast %679 : vector<1x128xf32> to vector<1x128xf32>
    %681 = vector.broadcast %680 : vector<1x128xf32> to vector<8x128xf32>
    %c0_304 = arith.constant 0 : index
    %c0_305 = arith.constant 0 : index
    %682 = vector.load %arg5[%c0_304, %c0_305] : memref<128x128xf32, #tpu.memory_space<vmem>>, vector<128x128xf32>
    %cst_306 = arith.constant dense<0.000000e+00> : vector<8x128xf32>
    %683 = tpu.matmul %681, %682, %cst_306 {dimension_numbers = #tpu.dot_dimension_numbers<[1], [0], [0], [1], [0, 0, 1, 1], [], []>} : vector<8x128xf32>, vector<128x128xf32>, vector<8x128xf32> -> vector<8x128xf32>
    %684 = vector.extract_strided_slice %683 {offsets = [0, 0], sizes = [1, 128], strides = [1, 1]} : vector<8x128xf32> to vector<1x128xf32>
    %cst_307 = arith.constant 9.99999974E-6 : f32
    %685 = vector.broadcast %cst_307 : f32 to vector<1x128xf32>
    %686 = arith.addf %684, %685 : vector<1x128xf32>
    %687 = math.rsqrt %686 : vector<1x128xf32>
    %688 = vector.broadcast %687 : vector<1x128xf32> to vector<32x128xf32>
    %689 = arith.mulf %674, %688 : vector<32x128xf32>
    %690 = arith.addf %35, %689 : vector<32x128xf32>
    %cst_308 = arith.constant 0.000000e+00 : f32
    %691 = vector.broadcast %cst_308 : f32 to vector<32x128xf32>
    %692 = arith.maximumf %230, %691 : vector<32x128xf32>
    %c2_i32_309 = arith.constant 2 : i32
    %693 = tpu.dynamic_rotate %692 by %c2_i32_309 dim 0 : vector<32x128xf32>, i32 -> vector<32x128xf32>
    %cst_310 = arith.constant 0.000000e+00 : f32
    %694 = vector.broadcast %cst_310 : f32 to vector<32x128xf32>
    %695 = arith.select %324, %693, %694 : vector<32x128xi1>, vector<32x128xf32>
    %c1_i32_311 = arith.constant 1 : i32
    %696 = tpu.dynamic_rotate %692 by %c1_i32_311 dim 0 : vector<32x128xf32>, i32 -> vector<32x128xf32>
    %cst_312 = arith.constant 0.000000e+00 : f32
    %697 = vector.broadcast %cst_312 : f32 to vector<32x128xf32>
    %698 = arith.select %77, %696, %697 : vector<32x128xi1>, vector<32x128xf32>
    %c31_i32_313 = arith.constant 31 : i32
    %699 = tpu.dynamic_rotate %692 by %c31_i32_313 dim 0 : vector<32x128xf32>, i32 -> vector<32x128xf32>
    %cst_314 = arith.constant 0.000000e+00 : f32
    %700 = vector.broadcast %cst_314 : f32 to vector<32x128xf32>
    %701 = arith.select %90, %699, %700 : vector<32x128xi1>, vector<32x128xf32>
    %c30_i32_315 = arith.constant 30 : i32
    %702 = tpu.dynamic_rotate %692 by %c30_i32_315 dim 0 : vector<32x128xf32>, i32 -> vector<32x128xf32>
    %cst_316 = arith.constant 0.000000e+00 : f32
    %703 = vector.broadcast %cst_316 : f32 to vector<32x128xf32>
    %704 = arith.select %342, %702, %703 : vector<32x128xi1>, vector<32x128xf32>
    %705 = tpu.concatenate %695, %698, %692, %701, %704 in 1 : vector<32x128xf32>, vector<32x128xf32>, vector<32x128xf32>, vector<32x128xf32>, vector<32x128xf32> -> vector<32x640xf32>
    %706 = arith.truncf %705 : vector<32x640xf32> to vector<32x640xbf16>
    %c3840 = arith.constant 3840 : index
    %c0_317 = arith.constant 0 : index
    %707 = vector.load %arg10[%c3840, %c0_317] : memref<6144x128xbf16, #tpu.memory_space<vmem>>, vector<640x128xbf16>
    %cst_318 = arith.constant dense<0.000000e+00> : vector<32x128xf32>
    %708 = tpu.matmul %706, %707, %cst_318 {dimension_numbers = #tpu.dot_dimension_numbers<[1], [0], [0], [1], [0, 0, 1, 1], [], []>} : vector<32x640xbf16>, vector<640x128xbf16>, vector<32x128xf32> -> vector<32x128xf32>
    %cst_319 = arith.constant dense<0.000000e+00> : vector<128xf32>
    %709 = vector.multi_reduction <add>, %708, %cst_319 [0] : vector<32x128xf32> to vector<128xf32>
    %710 = vector.shape_cast %709 : vector<128xf32> to vector<1x128xf32>
    %cst_320 = arith.constant 3.200000e+01 : f32
    %711 = vector.broadcast %cst_320 : f32 to vector<1x128xf32>
    %712 = arith.divf %710, %711 : vector<1x128xf32>
    %713 = vector.shape_cast %712 : vector<1x128xf32> to vector<1x128xf32>
    %714 = vector.broadcast %713 : vector<1x128xf32> to vector<8x128xf32>
    %c0_321 = arith.constant 0 : index
    %c0_322 = arith.constant 0 : index
    %715 = vector.load %arg5[%c0_321, %c0_322] : memref<128x128xf32, #tpu.memory_space<vmem>>, vector<128x128xf32>
    %cst_323 = arith.constant dense<0.000000e+00> : vector<8x128xf32>
    %716 = tpu.matmul %714, %715, %cst_323 {dimension_numbers = #tpu.dot_dimension_numbers<[1], [0], [0], [1], [0, 0, 1, 1], [], []>} : vector<8x128xf32>, vector<128x128xf32>, vector<8x128xf32> -> vector<8x128xf32>
    %717 = vector.extract_strided_slice %716 {offsets = [0, 0], sizes = [1, 128], strides = [1, 1]} : vector<8x128xf32> to vector<1x128xf32>
    %718 = vector.broadcast %717 : vector<1x128xf32> to vector<32x128xf32>
    %719 = arith.subf %708, %718 : vector<32x128xf32>
    %720 = arith.mulf %719, %719 : vector<32x128xf32>
    %cst_324 = arith.constant dense<0.000000e+00> : vector<128xf32>
    %721 = vector.multi_reduction <add>, %720, %cst_324 [0] : vector<32x128xf32> to vector<128xf32>
    %722 = vector.shape_cast %721 : vector<128xf32> to vector<1x128xf32>
    %cst_325 = arith.constant 3.200000e+01 : f32
    %723 = vector.broadcast %cst_325 : f32 to vector<1x128xf32>
    %724 = arith.divf %722, %723 : vector<1x128xf32>
    %725 = vector.shape_cast %724 : vector<1x128xf32> to vector<1x128xf32>
    %726 = vector.broadcast %725 : vector<1x128xf32> to vector<8x128xf32>
    %c0_326 = arith.constant 0 : index
    %c0_327 = arith.constant 0 : index
    %727 = vector.load %arg5[%c0_326, %c0_327] : memref<128x128xf32, #tpu.memory_space<vmem>>, vector<128x128xf32>
    %cst_328 = arith.constant dense<0.000000e+00> : vector<8x128xf32>
    %728 = tpu.matmul %726, %727, %cst_328 {dimension_numbers = #tpu.dot_dimension_numbers<[1], [0], [0], [1], [0, 0, 1, 1], [], []>} : vector<8x128xf32>, vector<128x128xf32>, vector<8x128xf32> -> vector<8x128xf32>
    %729 = vector.extract_strided_slice %728 {offsets = [0, 0], sizes = [1, 128], strides = [1, 1]} : vector<8x128xf32> to vector<1x128xf32>
    %cst_329 = arith.constant 9.99999974E-6 : f32
    %730 = vector.broadcast %cst_329 : f32 to vector<1x128xf32>
    %731 = arith.addf %729, %730 : vector<1x128xf32>
    %732 = math.rsqrt %731 : vector<1x128xf32>
    %733 = vector.broadcast %732 : vector<1x128xf32> to vector<32x128xf32>
    %734 = arith.mulf %719, %733 : vector<32x128xf32>
    %cst_330 = arith.constant 0.000000e+00 : f32
    %735 = vector.broadcast %cst_330 : f32 to vector<32x128xf32>
    %736 = arith.maximumf %734, %735 : vector<32x128xf32>
    %c2_i32_331 = arith.constant 2 : i32
    %737 = tpu.dynamic_rotate %736 by %c2_i32_331 dim 0 : vector<32x128xf32>, i32 -> vector<32x128xf32>
    %cst_332 = arith.constant 0.000000e+00 : f32
    %738 = vector.broadcast %cst_332 : f32 to vector<32x128xf32>
    %739 = arith.select %324, %737, %738 : vector<32x128xi1>, vector<32x128xf32>
    %c1_i32_333 = arith.constant 1 : i32
    %740 = tpu.dynamic_rotate %736 by %c1_i32_333 dim 0 : vector<32x128xf32>, i32 -> vector<32x128xf32>
    %cst_334 = arith.constant 0.000000e+00 : f32
    %741 = vector.broadcast %cst_334 : f32 to vector<32x128xf32>
    %742 = arith.select %77, %740, %741 : vector<32x128xi1>, vector<32x128xf32>
    %c31_i32_335 = arith.constant 31 : i32
    %743 = tpu.dynamic_rotate %736 by %c31_i32_335 dim 0 : vector<32x128xf32>, i32 -> vector<32x128xf32>
    %cst_336 = arith.constant 0.000000e+00 : f32
    %744 = vector.broadcast %cst_336 : f32 to vector<32x128xf32>
    %745 = arith.select %90, %743, %744 : vector<32x128xi1>, vector<32x128xf32>
    %c30_i32_337 = arith.constant 30 : i32
    %746 = tpu.dynamic_rotate %736 by %c30_i32_337 dim 0 : vector<32x128xf32>, i32 -> vector<32x128xf32>
    %cst_338 = arith.constant 0.000000e+00 : f32
    %747 = vector.broadcast %cst_338 : f32 to vector<32x128xf32>
    %748 = arith.select %342, %746, %747 : vector<32x128xi1>, vector<32x128xf32>
    %749 = tpu.concatenate %739, %742, %736, %745, %748 in 1 : vector<32x128xf32>, vector<32x128xf32>, vector<32x128xf32>, vector<32x128xf32>, vector<32x128xf32> -> vector<32x640xf32>
    %750 = arith.truncf %749 : vector<32x640xf32> to vector<32x640xbf16>
    %c4480 = arith.constant 4480 : index
    %c0_339 = arith.constant 0 : index
    %751 = vector.load %arg10[%c4480, %c0_339] : memref<6144x128xbf16, #tpu.memory_space<vmem>>, vector<640x128xbf16>
    %cst_340 = arith.constant dense<0.000000e+00> : vector<32x128xf32>
    %752 = tpu.matmul %750, %751, %cst_340 {dimension_numbers = #tpu.dot_dimension_numbers<[1], [0], [0], [1], [0, 0, 1, 1], [], []>} : vector<32x640xbf16>, vector<640x128xbf16>, vector<32x128xf32> -> vector<32x128xf32>
    %cst_341 = arith.constant dense<0.000000e+00> : vector<128xf32>
    %753 = vector.multi_reduction <add>, %752, %cst_341 [0] : vector<32x128xf32> to vector<128xf32>
    %754 = vector.shape_cast %753 : vector<128xf32> to vector<1x128xf32>
    %cst_342 = arith.constant 3.200000e+01 : f32
    %755 = vector.broadcast %cst_342 : f32 to vector<1x128xf32>
    %756 = arith.divf %754, %755 : vector<1x128xf32>
    %757 = vector.shape_cast %756 : vector<1x128xf32> to vector<1x128xf32>
    %758 = vector.broadcast %757 : vector<1x128xf32> to vector<8x128xf32>
    %c0_343 = arith.constant 0 : index
    %c0_344 = arith.constant 0 : index
    %759 = vector.load %arg5[%c0_343, %c0_344] : memref<128x128xf32, #tpu.memory_space<vmem>>, vector<128x128xf32>
    %cst_345 = arith.constant dense<0.000000e+00> : vector<8x128xf32>
    %760 = tpu.matmul %758, %759, %cst_345 {dimension_numbers = #tpu.dot_dimension_numbers<[1], [0], [0], [1], [0, 0, 1, 1], [], []>} : vector<8x128xf32>, vector<128x128xf32>, vector<8x128xf32> -> vector<8x128xf32>
    %761 = vector.extract_strided_slice %760 {offsets = [0, 0], sizes = [1, 128], strides = [1, 1]} : vector<8x128xf32> to vector<1x128xf32>
    %762 = vector.broadcast %761 : vector<1x128xf32> to vector<32x128xf32>
    %763 = arith.subf %752, %762 : vector<32x128xf32>
    %764 = arith.mulf %763, %763 : vector<32x128xf32>
    %cst_346 = arith.constant dense<0.000000e+00> : vector<128xf32>
    %765 = vector.multi_reduction <add>, %764, %cst_346 [0] : vector<32x128xf32> to vector<128xf32>
    %766 = vector.shape_cast %765 : vector<128xf32> to vector<1x128xf32>
    %cst_347 = arith.constant 3.200000e+01 : f32
    %767 = vector.broadcast %cst_347 : f32 to vector<1x128xf32>
    %768 = arith.divf %766, %767 : vector<1x128xf32>
    %769 = vector.shape_cast %768 : vector<1x128xf32> to vector<1x128xf32>
    %770 = vector.broadcast %769 : vector<1x128xf32> to vector<8x128xf32>
    %c0_348 = arith.constant 0 : index
    %c0_349 = arith.constant 0 : index
    %771 = vector.load %arg5[%c0_348, %c0_349] : memref<128x128xf32, #tpu.memory_space<vmem>>, vector<128x128xf32>
    %cst_350 = arith.constant dense<0.000000e+00> : vector<8x128xf32>
    %772 = tpu.matmul %770, %771, %cst_350 {dimension_numbers = #tpu.dot_dimension_numbers<[1], [0], [0], [1], [0, 0, 1, 1], [], []>} : vector<8x128xf32>, vector<128x128xf32>, vector<8x128xf32> -> vector<8x128xf32>
    %773 = vector.extract_strided_slice %772 {offsets = [0, 0], sizes = [1, 128], strides = [1, 1]} : vector<8x128xf32> to vector<1x128xf32>
    %cst_351 = arith.constant 9.99999974E-6 : f32
    %774 = vector.broadcast %cst_351 : f32 to vector<1x128xf32>
    %775 = arith.addf %773, %774 : vector<1x128xf32>
    %776 = math.rsqrt %775 : vector<1x128xf32>
    %777 = vector.broadcast %776 : vector<1x128xf32> to vector<32x128xf32>
    %778 = arith.mulf %763, %777 : vector<32x128xf32>
    %779 = arith.addf %690, %778 : vector<32x128xf32>
    %cst_352 = arith.constant 0.000000e+00 : f32
    %780 = vector.broadcast %cst_352 : f32 to vector<32x128xf32>
    %781 = arith.maximumf %419, %780 : vector<32x128xf32>
    %c2_i32_353 = arith.constant 2 : i32
    %782 = tpu.dynamic_rotate %781 by %c2_i32_353 dim 0 : vector<32x128xf32>, i32 -> vector<32x128xf32>
    %cst_354 = arith.constant 0.000000e+00 : f32
    %783 = vector.broadcast %cst_354 : f32 to vector<32x128xf32>
    %784 = arith.select %324, %782, %783 : vector<32x128xi1>, vector<32x128xf32>
    %c30_i32_355 = arith.constant 30 : i32
    %785 = tpu.dynamic_rotate %781 by %c30_i32_355 dim 0 : vector<32x128xf32>, i32 -> vector<32x128xf32>
    %cst_356 = arith.constant 0.000000e+00 : f32
    %786 = vector.broadcast %cst_356 : f32 to vector<32x128xf32>
    %787 = arith.select %342, %785, %786 : vector<32x128xi1>, vector<32x128xf32>
    %788 = tpu.concatenate %784, %781, %787 in 1 : vector<32x128xf32>, vector<32x128xf32>, vector<32x128xf32> -> vector<32x384xf32>
    %789 = arith.truncf %788 : vector<32x384xf32> to vector<32x384xbf16>
    %c5120 = arith.constant 5120 : index
    %c0_357 = arith.constant 0 : index
    %790 = vector.load %arg10[%c5120, %c0_357] : memref<6144x128xbf16, #tpu.memory_space<vmem>>, vector<384x128xbf16>
    %cst_358 = arith.constant dense<0.000000e+00> : vector<32x128xf32>
    %791 = tpu.matmul %789, %790, %cst_358 {dimension_numbers = #tpu.dot_dimension_numbers<[1], [0], [0], [1], [0, 0, 1, 1], [], []>} : vector<32x384xbf16>, vector<384x128xbf16>, vector<32x128xf32> -> vector<32x128xf32>
    %cst_359 = arith.constant dense<0.000000e+00> : vector<128xf32>
    %792 = vector.multi_reduction <add>, %791, %cst_359 [0] : vector<32x128xf32> to vector<128xf32>
    %793 = vector.shape_cast %792 : vector<128xf32> to vector<1x128xf32>
    %cst_360 = arith.constant 3.200000e+01 : f32
    %794 = vector.broadcast %cst_360 : f32 to vector<1x128xf32>
    %795 = arith.divf %793, %794 : vector<1x128xf32>
    %796 = vector.shape_cast %795 : vector<1x128xf32> to vector<1x128xf32>
    %797 = vector.broadcast %796 : vector<1x128xf32> to vector<8x128xf32>
    %c0_361 = arith.constant 0 : index
    %c0_362 = arith.constant 0 : index
    %798 = vector.load %arg5[%c0_361, %c0_362] : memref<128x128xf32, #tpu.memory_space<vmem>>, vector<128x128xf32>
    %cst_363 = arith.constant dense<0.000000e+00> : vector<8x128xf32>
    %799 = tpu.matmul %797, %798, %cst_363 {dimension_numbers = #tpu.dot_dimension_numbers<[1], [0], [0], [1], [0, 0, 1, 1], [], []>} : vector<8x128xf32>, vector<128x128xf32>, vector<8x128xf32> -> vector<8x128xf32>
    %800 = vector.extract_strided_slice %799 {offsets = [0, 0], sizes = [1, 128], strides = [1, 1]} : vector<8x128xf32> to vector<1x128xf32>
    %801 = vector.broadcast %800 : vector<1x128xf32> to vector<32x128xf32>
    %802 = arith.subf %791, %801 : vector<32x128xf32>
    %803 = arith.mulf %802, %802 : vector<32x128xf32>
    %cst_364 = arith.constant dense<0.000000e+00> : vector<128xf32>
    %804 = vector.multi_reduction <add>, %803, %cst_364 [0] : vector<32x128xf32> to vector<128xf32>
    %805 = vector.shape_cast %804 : vector<128xf32> to vector<1x128xf32>
    %cst_365 = arith.constant 3.200000e+01 : f32
    %806 = vector.broadcast %cst_365 : f32 to vector<1x128xf32>
    %807 = arith.divf %805, %806 : vector<1x128xf32>
    %808 = vector.shape_cast %807 : vector<1x128xf32> to vector<1x128xf32>
    %809 = vector.broadcast %808 : vector<1x128xf32> to vector<8x128xf32>
    %c0_366 = arith.constant 0 : index
    %c0_367 = arith.constant 0 : index
    %810 = vector.load %arg5[%c0_366, %c0_367] : memref<128x128xf32, #tpu.memory_space<vmem>>, vector<128x128xf32>
    %cst_368 = arith.constant dense<0.000000e+00> : vector<8x128xf32>
    %811 = tpu.matmul %809, %810, %cst_368 {dimension_numbers = #tpu.dot_dimension_numbers<[1], [0], [0], [1], [0, 0, 1, 1], [], []>} : vector<8x128xf32>, vector<128x128xf32>, vector<8x128xf32> -> vector<8x128xf32>
    %812 = vector.extract_strided_slice %811 {offsets = [0, 0], sizes = [1, 128], strides = [1, 1]} : vector<8x128xf32> to vector<1x128xf32>
    %cst_369 = arith.constant 9.99999974E-6 : f32
    %813 = vector.broadcast %cst_369 : f32 to vector<1x128xf32>
    %814 = arith.addf %812, %813 : vector<1x128xf32>
    %815 = math.rsqrt %814 : vector<1x128xf32>
    %816 = vector.broadcast %815 : vector<1x128xf32> to vector<32x128xf32>
    %817 = arith.mulf %802, %816 : vector<32x128xf32>
    %818 = arith.addf %779, %817 : vector<32x128xf32>
    %cst_370 = arith.constant 0.000000e+00 : f32
    %819 = vector.broadcast %cst_370 : f32 to vector<32x128xf32>
    %820 = arith.maximumf %610, %819 : vector<32x128xf32>
    %c4_i32_371 = arith.constant 4 : i32
    %821 = tpu.dynamic_rotate %820 by %c4_i32_371 dim 0 : vector<32x128xf32>, i32 -> vector<32x128xf32>
    %cst_372 = arith.constant 0.000000e+00 : f32
    %822 = vector.broadcast %cst_372 : f32 to vector<32x128xf32>
    %823 = arith.select %472, %821, %822 : vector<32x128xi1>, vector<32x128xf32>
    %c2_i32_373 = arith.constant 2 : i32
    %824 = tpu.dynamic_rotate %820 by %c2_i32_373 dim 0 : vector<32x128xf32>, i32 -> vector<32x128xf32>
    %cst_374 = arith.constant 0.000000e+00 : f32
    %825 = vector.broadcast %cst_374 : f32 to vector<32x128xf32>
    %826 = arith.select %324, %824, %825 : vector<32x128xi1>, vector<32x128xf32>
    %c30_i32_375 = arith.constant 30 : i32
    %827 = tpu.dynamic_rotate %820 by %c30_i32_375 dim 0 : vector<32x128xf32>, i32 -> vector<32x128xf32>
    %cst_376 = arith.constant 0.000000e+00 : f32
    %828 = vector.broadcast %cst_376 : f32 to vector<32x128xf32>
    %829 = arith.select %342, %827, %828 : vector<32x128xi1>, vector<32x128xf32>
    %c28_i32_377 = arith.constant 28 : i32
    %830 = tpu.dynamic_rotate %820 by %c28_i32_377 dim 0 : vector<32x128xf32>, i32 -> vector<32x128xf32>
    %cst_378 = arith.constant 0.000000e+00 : f32
    %831 = vector.broadcast %cst_378 : f32 to vector<32x128xf32>
    %832 = arith.select %490, %830, %831 : vector<32x128xi1>, vector<32x128xf32>
    %833 = tpu.concatenate %823, %826, %820, %829, %832 in 1 : vector<32x128xf32>, vector<32x128xf32>, vector<32x128xf32>, vector<32x128xf32>, vector<32x128xf32> -> vector<32x640xf32>
    %834 = arith.truncf %833 : vector<32x640xf32> to vector<32x640xbf16>
    %c5504 = arith.constant 5504 : index
    %c0_379 = arith.constant 0 : index
    %835 = vector.load %arg10[%c5504, %c0_379] : memref<6144x128xbf16, #tpu.memory_space<vmem>>, vector<640x128xbf16>
    %cst_380 = arith.constant dense<0.000000e+00> : vector<32x128xf32>
    %836 = tpu.matmul %834, %835, %cst_380 {dimension_numbers = #tpu.dot_dimension_numbers<[1], [0], [0], [1], [0, 0, 1, 1], [], []>} : vector<32x640xbf16>, vector<640x128xbf16>, vector<32x128xf32> -> vector<32x128xf32>
    %cst_381 = arith.constant dense<0.000000e+00> : vector<128xf32>
    %837 = vector.multi_reduction <add>, %836, %cst_381 [0] : vector<32x128xf32> to vector<128xf32>
    %838 = vector.shape_cast %837 : vector<128xf32> to vector<1x128xf32>
    %cst_382 = arith.constant 3.200000e+01 : f32
    %839 = vector.broadcast %cst_382 : f32 to vector<1x128xf32>
    %840 = arith.divf %838, %839 : vector<1x128xf32>
    %841 = vector.shape_cast %840 : vector<1x128xf32> to vector<1x128xf32>
    %842 = vector.broadcast %841 : vector<1x128xf32> to vector<8x128xf32>
    %c0_383 = arith.constant 0 : index
    %c0_384 = arith.constant 0 : index
    %843 = vector.load %arg5[%c0_383, %c0_384] : memref<128x128xf32, #tpu.memory_space<vmem>>, vector<128x128xf32>
    %cst_385 = arith.constant dense<0.000000e+00> : vector<8x128xf32>
    %844 = tpu.matmul %842, %843, %cst_385 {dimension_numbers = #tpu.dot_dimension_numbers<[1], [0], [0], [1], [0, 0, 1, 1], [], []>} : vector<8x128xf32>, vector<128x128xf32>, vector<8x128xf32> -> vector<8x128xf32>
    %845 = vector.extract_strided_slice %844 {offsets = [0, 0], sizes = [1, 128], strides = [1, 1]} : vector<8x128xf32> to vector<1x128xf32>
    %846 = vector.broadcast %845 : vector<1x128xf32> to vector<32x128xf32>
    %847 = arith.subf %836, %846 : vector<32x128xf32>
    %848 = arith.mulf %847, %847 : vector<32x128xf32>
    %cst_386 = arith.constant dense<0.000000e+00> : vector<128xf32>
    %849 = vector.multi_reduction <add>, %848, %cst_386 [0] : vector<32x128xf32> to vector<128xf32>
    %850 = vector.shape_cast %849 : vector<128xf32> to vector<1x128xf32>
    %cst_387 = arith.constant 3.200000e+01 : f32
    %851 = vector.broadcast %cst_387 : f32 to vector<1x128xf32>
    %852 = arith.divf %850, %851 : vector<1x128xf32>
    %853 = vector.shape_cast %852 : vector<1x128xf32> to vector<1x128xf32>
    %854 = vector.broadcast %853 : vector<1x128xf32> to vector<8x128xf32>
    %c0_388 = arith.constant 0 : index
    %c0_389 = arith.constant 0 : index
    %855 = vector.load %arg5[%c0_388, %c0_389] : memref<128x128xf32, #tpu.memory_space<vmem>>, vector<128x128xf32>
    %cst_390 = arith.constant dense<0.000000e+00> : vector<8x128xf32>
    %856 = tpu.matmul %854, %855, %cst_390 {dimension_numbers = #tpu.dot_dimension_numbers<[1], [0], [0], [1], [0, 0, 1, 1], [], []>} : vector<8x128xf32>, vector<128x128xf32>, vector<8x128xf32> -> vector<8x128xf32>
    %857 = vector.extract_strided_slice %856 {offsets = [0, 0], sizes = [1, 128], strides = [1, 1]} : vector<8x128xf32> to vector<1x128xf32>
    %cst_391 = arith.constant 9.99999974E-6 : f32
    %858 = vector.broadcast %cst_391 : f32 to vector<1x128xf32>
    %859 = arith.addf %857, %858 : vector<1x128xf32>
    %860 = math.rsqrt %859 : vector<1x128xf32>
    %861 = vector.broadcast %860 : vector<1x128xf32> to vector<32x128xf32>
    %862 = arith.mulf %847, %861 : vector<32x128xf32>
    %863 = arith.addf %818, %862 : vector<32x128xf32>
    %c3 = arith.constant 3 : index
    %c0_392 = arith.constant 0 : index
    %c0_393 = arith.constant 0 : index
    %864 = vector.load %arg9[%c3, %c0_392, %c0_393] : memref<4x32x128xf32, #tpu.memory_space<vmem>>, vector<1x32x128xf32>
    %865 = vector.shape_cast %864 : vector<1x32x128xf32> to vector<32x128xf32>
    %866 = vector.shape_cast %863 : vector<32x128xf32> to vector<1x32x128xf32>
    tpu.vector_store %arg9[%c3, %c0_392, %c0_393], %866 {strides = array<i32>} : memref<4x32x128xf32, #tpu.memory_space<vmem>>, vector<1x32x128xf32>,
    return
  }
  func.func @transform_0(%arg0: i32) -> (i32, i32) {
    %c0_i32 = arith.constant 0 : i32
    %c0_i32_0 = arith.constant 0 : i32
    %c0_i32_1 = arith.constant 0 : i32
    return %c0_i32, %c0_i32_0 : i32, i32
  }
  func.func @transform_1(%arg0: i32) -> (i32, i32) {
    %c0_i32 = arith.constant 0 : i32
    %c0_i32_0 = arith.constant 0 : i32
    %c0_i32_1 = arith.constant 0 : i32
    return %c0_i32, %c0_i32_0 : i32, i32
  }
  func.func @transform_2(%arg0: i32) -> (i32, i32) {
    %c0_i32 = arith.constant 0 : i32
    %c0_i32_0 = arith.constant 0 : i32
    %c0_i32_1 = arith.constant 0 : i32
    return %c0_i32, %c0_i32_0 : i32, i32
  }
  func.func @transform_3(%arg0: i32) -> (i32, i32) {
    %c0_i32 = arith.constant 0 : i32
    %c0_i32_0 = arith.constant 0 : i32
    %c0_i32_1 = arith.constant 0 : i32
    return %c0_i32, %c0_i32_0 : i32, i32
  }
  func.func @transform_4(%arg0: i32) -> (i32, i32) {
    %c0_i32 = arith.constant 0 : i32
    %c0_i32_0 = arith.constant 0 : i32
    %c0_i32_1 = arith.constant 0 : i32
    return %c0_i32, %c0_i32_0 : i32, i32
  }
  func.func @transform_5(%arg0: i32) -> (i32, i32) {
    %c0_i32 = arith.constant 0 : i32
    %c0_i32_0 = arith.constant 0 : i32
    %c0_i32_1 = arith.constant 0 : i32
    return %c0_i32, %c0_i32_0 : i32, i32
  }
  func.func @transform_6(%arg0: i32) -> (i32, i32) {
    %c0_i32 = arith.constant 0 : i32
    %c0_i32_0 = arith.constant 0 : i32
    %c0_i32_1 = arith.constant 0 : i32
    return %c0_i32, %c0_i32_0 : i32, i32
  }
  func.func @transform_8(%arg0: i32) -> (i32, i32, i32) {
    %c0_i32 = arith.constant 0 : i32
    %c0_i32_0 = arith.constant 0 : i32
    %c0_i32_1 = arith.constant 0 : i32
    %c0_i32_2 = arith.constant 0 : i32
    return %c0_i32, %c0_i32_0, %c0_i32_1 : i32, i32, i32
  }
}

</mosaic_0001>

<bundles_post_ra>
// kernel: darts_cell_forward.1
= control target key start
LH: loop header
LB: loop body
LE: loop exit
PB: predicated region body
PF: predicated region fallthrough
CT: control target
= control target key end

     0   :  { %13 = vsyncpa [#allocation5], 0  ;;  %s17042_s0 = inlined_call_operand.vmem [shape: f32[32,128], index: 0, kind: input, shape index: {}]   ;;  %s17043_s1 = inlined_call_operand.vmem [shape: f32[32,128], index: 1, kind: input, shape index: {}]   ;;  %s17044_s2 = inlined_call_operand.hbm [shape: bf16[128,128], index: 2, kind: input, shape index: {}]   ;;  %s17045_s3 = inlined_call_operand.hbm [shape: bf16[128,128], index: 3, kind: input, shape index: {}]   ;;  %s17046_s4 = inlined_call_operand.hbm [shape: f32[128,128], index: 4, kind: input, shape index: {}]   ;;  %s17047_s5 = inlined_call_operand.hbm [shape: s32[32,128], index: 5, kind: input, shape index: {}]   ;;  %s17048_s6 = inlined_call_operand.hbm [shape: s32[32,128], index: 6, kind: input, shape index: {}]   ;;  %s17049_s7 = inlined_call_operand.hbm [shape: bf16[6144,128], index: 7, kind: input, shape index: {}]   ;;  %s17050_s8 = inlined_call_operand.vmem [shape: f32[4,32,128], index: 8, kind: output, shape index: {}]  }
   0x1   :  { %14 = vsyncpa [#allocation7], 0 }
   0x2   :  { %15 = vsyncpa [#allocation10], 0  ;;  %s13415_s27 = smov [#allocation6]  }
   0x3   :  { %s37_s28 = sshll.u32 %s13415_s27, 4  ;;  %s38_s28 = int_to_ptr.vmem [resolvable:$true] %s37_s28 }
   0x4   :  { %s13295_s29 = scalar_lea.vmem %s38_s28, 1024  ;;  %p13300_p1 = scmp.lt.s32.totalorder %s38_s28, %s38_s28 }
   0x5   :  { %p13296_p0 = scmp.ne.s32.totalorder %s38_s28, %s13295_s29  ;;  %p13301_p2 = scmp.lt.s32.totalorder %s13295_s29, %s13295_s29 }
   0x7   :  { %p13302_p3 = por %p13301_p2, %p13300_p1 }
   0x9   :  { %p13303_p4 = pnand %p13302_p3, %p13296_p0 }
   0xb   :  { %13306 = shalt.err (!%p13303_p4)
}
   0xc   :  { %s13416_s30 = smov 64   ;;  %s13417_s9 = smov 4  }
   0xd   :  { %43 = dma.hbm_to_vmem [thread:$0]  %s17045_s3, 1024, %s38_s28, [#allocation7], %s13416_s30, %s13416_s30, %s13417_s9  }
   0xe   :  { %s13418_s12 = smov [#allocation9]   ;;  %s13419_s14 = smov [#allocation4]  }
   0xf   :  { %s61_s13 = sshll.u32 %s13418_s12, 4  ;;  %s25_s15 = sshll.u32 %s13419_s14, 4  ;;  %s62_s13 = int_to_ptr.vmem [resolvable:$true] %s61_s13  ;;  %s26_s15 = int_to_ptr.vmem [resolvable:$true] %s25_s15 }
  0x10   :  { %s13315_s16 = scalar_lea.vmem %s62_s13, 512  ;;  %p13320_p6 = scmp.lt.s32.totalorder %s62_s13, %s62_s13 }
  0x11   :  { %p13316_p5 = scmp.ne.s32.totalorder %s62_s13, %s13315_s16  ;;  %p13321_p7 = scmp.lt.s32.totalorder %s13315_s16, %s13315_s16 }
  0x13   :  { %p13322_p8 = por %p13321_p7, %p13320_p6 }
  0x15   :  { %p13323_p9 = pnand %p13322_p8, %p13316_p5 }
  0x17   :  { %13326 = shalt.err (!%p13323_p9)
}
  0x18   :  { %s13420_s17 = smov 128   ;;  %s13421_s18 = smov 8  }
  0x19   :  { %67 = dma.hbm_to_vmem [thread:$0]  %s17047_s5, 512, %s62_s13, [#allocation10], %s13420_s17, %s13420_s17, %s13421_s18  }
  0x1a   :  { %s13335_s3 = scalar_lea.vmem %s26_s15, 1024  ;;  %p13340_p11 = scmp.lt.s32.totalorder %s26_s15, %s26_s15 }
  0x1b   :  { %p13336_p10 = scmp.ne.s32.totalorder %s26_s15, %s13335_s3  ;;  %p13341_p12 = scmp.lt.s32.totalorder %s13335_s3, %s13335_s3 }
  0x1d   :  { %p13342_p13 = por %p13341_p12, %p13340_p11 }
  0x1f   :  { %p13343_p0 = pnand %p13342_p13, %p13336_p10 }
  0x21   :  { %13346 = shalt.err (!%p13343_p0)
}
  0x22   :  { %31 = dma.hbm_to_vmem [thread:$0]  %s17044_s2, 1024, %s26_s15, [#allocation5], %s13416_s30, %s13416_s30, %s13417_s9  }
  0x23   :  { %s13422_s23 = smov [#allocation8]   ;;  %s13423_s25 = smov [#allocation11]  }
  0x24   :  { %s49_s24 = sshll.u32 %s13422_s23, 4  ;;  %s73_s26 = sshll.u32 %s13423_s25, 4  ;;  %s50_s24 = int_to_ptr.vmem [resolvable:$true] %s49_s24  ;;  %s74_s26 = int_to_ptr.vmem [resolvable:$true] %s73_s26 }
  0x25   :  { %s13355_s27 = scalar_lea.vmem %s50_s24, 2048  ;;  %p13360_p2 = scmp.lt.s32.totalorder %s50_s24, %s50_s24 }
  0x26   :  { %p13356_p1 = scmp.ne.s32.totalorder %s50_s24, %s13355_s27  ;;  %p13361_p3 = scmp.lt.s32.totalorder %s13355_s27, %s13355_s27 }
  0x28   :  { %p13362_p4 = por %p13361_p3, %p13360_p2 }
  0x2a   :  { %p13363_p5 = pnand %p13362_p4, %p13356_p1 }
  0x2c   :  { %13366 = shalt.err (!%p13363_p5)
}
  0x2d   :  { %55 = dma.hbm_to_vmem [thread:$0]  %s17046_s4, 2048, %s50_s24, [#allocation7], %s13420_s17, %s13420_s17, %s13421_s18  }
  0x2e   :  { %s13375_s2 = scalar_lea.vmem %s74_s26, 512  ;;  %p13380_p7 = scmp.lt.s32.totalorder %s74_s26, %s74_s26 }
  0x2f   :  { %p13376_p6 = scmp.ne.s32.totalorder %s74_s26, %s13375_s2  ;;  %p13381_p8 = scmp.lt.s32.totalorder %s13375_s2, %s13375_s2 }
  0x31   :  { %p13382_p9 = por %p13381_p8, %p13380_p7 }
  0x33   :  { %p13383_p10 = pnand %p13382_p9, %p13376_p6 }
  0x35   :  { %13386 = shalt.err (!%p13383_p10)
}
  0x36   :  { %79 = dma.hbm_to_vmem [thread:$0]  %s17048_s6, 512, %s74_s26, [#allocation10], %s13420_s17, %s13420_s17, %s13421_s18  }
  0x37   :  { %13407 = dma.done.wait [#allocation5], 1024  }
  0x38   :  { %13408 = vsyncadd [#allocation5], 4294966272 }
  0x39   :  { %13409 = dma.done.wait [#allocation7], 3072  }
  0x3a   :  { %13410 = vsyncadd [#allocation7], 4294964224 }
  0x3b   :  { %13411 = dma.done.wait [#allocation10], 1024  }
  0x3c   :  { %13412 = vsyncadd [#allocation10], 4294966272  ;;  %v17071_v0 = vmov 0.0   ;;  %v12747_v1 = vld [vmem:[#allocation4 + $0x38] sm:$0xff]   ;;  %v12748_v2 = vld [vmem:[#allocation4 + $0x30] sm:$0xff]   ;;  %vm17051_vm0 = vmmov 0  }
  0x3d   :  { %11214 = vmatprep.subr.mxu1 %v17071_v0  ;;  %11194 = vmatprep.subr.bf16.mxu0 %v12747_v1  ;;  %v12749_v3 = vld [vmem:[#allocation4 + $0x28] sm:$0xff]   ;;  %v12750_v4 = vld [vmem:[#allocation4 + $0x20] sm:$0xff]   ;;  %v13504_v9 = vld [vmem:[#allocation8 + $0x78] sm:$0xff]  ;;  %s13427_s22 = smov [#allocation2]  }
  0x3e   :  { %11195 = vmatpush3.bf16.msra.mxu0 %v12747_v1  ;;  %v115_v5 = vld [vmem:[%s17042_s0] sm:$0xff]  ;;  %v116_v6 = vld [vmem:[%s17042_s0 + $0x8] sm:$0xff]  ;;  %v13506_v10 = vld [vmem:[#allocation8 + $0x70] sm:$0xff]  ;;  %11215 = vmatpush3.msra.mxu1 %v13504_v9  ;;  %s103_s23 = sshll.u32 %s13427_s22, 4  ;;  %s104_s23 = int_to_ptr.vmem [resolvable:$true] %s103_s23 }
  0x3f   :  { %11196 = vmatprep.subr.bf16.mxu0 %v12748_v2  ;;  %v119_v7 = vmax.f32 %v115_v5, 0.0  ;;  %v120_v8 = vmax.f32 %v116_v6, 0.0  ;;  %v12751_v11 = vld [vmem:[#allocation4 + $0x18] sm:$0xff]   ;;  %v13509_v12 = vld [vmem:[#allocation8 + $0x68] sm:$0xff]  ;;  %11216 = vmatprep.subr.mxu1 %v17071_v0  ;;  %v12752_v14 = vld [vmem:[#allocation4 + $0x10] sm:$0xff]   ;;  %s13395_s24 = scalar_lea.vmem %s104_s23, 49152  ;;  %p13400_p12 = scmp.lt.s32.totalorder %s104_s23, %s104_s23 }
  0x40   :  { %11217 = vmatpush3.msra.mxu1 %v13506_v10  ;;  %v12753_v15 = vld [vmem:[#allocation4 + $0x8] sm:$0xff]   ;;  %v117_v16 = vld [vmem:[%s17042_s0 + $0x10] sm:$0xff]  ;;  %v118_v17 = vld [vmem:[%s17042_s0 + $0x18] sm:$0xff]  ;;  %11246 = vmatprep.mubr.msk.f32.mxu1 %vm17051_vm0, %v17071_v0  ;;  %p13396_p11 = scmp.ne.s32.totalorder %s104_s23, %s13395_s24  ;;  %p13401_p13 = scmp.lt.s32.totalorder %s13395_s24, %s13395_s24 }
  0x41   :  { %v123_v13 = vpack.c.bf16 %v120_v8, %v119_v7  ;;  %11218 = vmatprep.subr.mxu1 %v17071_v0  ;;  %v12754_v18 = vld [vmem:[#allocation4] sm:$0xff]   ;;  %v121_v19 = vmax.f32 %v117_v16, 0.0  ;;  %v122_v20 = vmax.f32 %v118_v17, 0.0  ;;  %v13534_v23 = vld [vmem:[#allocation8 + $0x58] sm:$0xff]  ;;  %v13540_v24 = vld [vmem:[#allocation8 + $0x50] sm:$0xff] }
  0x42   :  { %11197 = vmatpush3.bf16.msra.mxu0 %v12748_v2  ;;  %11219 = vmatpush3.msra.mxu1 %v13509_v12  ;;  %v13529_v22 = vld [vmem:[#allocation8 + $0x60] sm:$0xff]  ;;  %v13546_v25 = vld [vmem:[#allocation8 + $0x48] sm:$0xff]  ;;  %v13558_v27 = vld [vmem:[#allocation8 + $0x38] sm:$0xff]  ;;  %p13402_p0 = por %p13401_p13, %p13400_p12 }
  0x43   :  { %11198 = vmatprep.subr.bf16.mxu0 %v12749_v3  ;;  %11210 = vmatprep.mubr.bf16.mxu0 %v123_v13  ;;  %v124_v21 = vpack.c.bf16 %v122_v20, %v121_v19  ;;  %v13552_v26 = vld [vmem:[#allocation8 + $0x40] sm:$0xff]  ;;  %v13564_v28 = vld [vmem:[#allocation8 + $0x30] sm:$0xff]  ;;  %v13570_v29 = vld [vmem:[#allocation8 + $0x28] sm:$0xff] }
  0x44   :  { %11220 = vmatprep.subr.mxu1 %v17071_v0  ;;  %v13574_v30 = vld [vmem:[#allocation8 + $0x20] sm:$0xff]  ;;  %v13578_v31 = vld [vmem:[#allocation8 + $0x18] sm:$0xff]  ;;  %v13585_v32 = vld [vmem:[#allocation8 + $0x10] sm:$0xff]  ;;  %p13403_p1 = pnand %p13402_p0, %p13396_p11 }
  0x45   :  { %11221 = vmatpush3.msra.mxu1 %v13529_v22  ;;  %v13591_v33 = vld [vmem:[#allocation8 + $0x8] sm:$0xff]  ;;  %v13597_v34 = vld [vmem:[#allocation8] sm:$0xff]  ;;  %v12755_v35 = vld [vmem:[#allocation6 + $0x38] sm:$0xff]  }
  0x46   :  { %11199 = vmatpush3.bf16.msra.mxu0 %v12749_v3  ;;  %11222 = vmatprep.subr.mxu1 %v17071_v0  ;;  %v437_v46 = vld [vmem:[%s17043_s1] sm:$0xff]  ;;  %v438_v47 = vld [vmem:[%s17043_s1 + $0x8] sm:$0xff]  ;;  %v12756_v55 = vld [vmem:[#allocation6 + $0x30] sm:$0xff]  }
  0x47   :  { %11200 = vmatprep.subr.bf16.mxu0 %v12750_v4  ;;  %11223 = vmatpush3.msra.mxu1 %v13534_v23  ;;  %v441_v49 = vmax.f32 %v437_v46, 0.0  ;;  %v442_v50 = vmax.f32 %v438_v47, 0.0  ;;  %v12757_v56 = vld [vmem:[#allocation6 + $0x28] sm:$0xff]   ;;  %v12758_v57 = vld [vmem:[#allocation6 + $0x20] sm:$0xff]   ;;  %v12759_v58 = vld [vmem:[#allocation6 + $0x18] sm:$0xff]  }
  0x48   :  { %11224 = vmatprep.subr.mxu1 %v17071_v0  ;;  %v12760_v59 = vld [vmem:[#allocation6 + $0x10] sm:$0xff]   ;;  %v12761_v60 = vld [vmem:[#allocation6 + $0x8] sm:$0xff]   ;;  %v440_v62 = vld [vmem:[%s17043_s1 + $0x18] sm:$0xff] }
  0x49   :  { %11225 = vmatpush3.msra.mxu1 %v13540_v24  ;;  %v445_v53 = vpack.c.bf16 %v442_v50, %v441_v49  ;;  %v439_v61 = vld [vmem:[%s17043_s1 + $0x10] sm:$0xff]  ;;  %v12762_v63 = vld [vmem:[#allocation6] sm:$0xff]   ;;  %v444_v2 = vmax.f32 %v440_v62, 0.0  ;;  %s13426_s1 = smov 120  }
  0x4a   :  { %11201 = vmatpush3.bf16.msra.mxu0 %v12750_v4  ;;  %11226 = vmatprep.subr.mxu1 %v17071_v0  ;;  %v443_v1 = vmax.f32 %v439_v61, 0.0  ;;  %v335_v4 = vlaneseq  ;;  %v13775_v61 = vld [vmem:[#allocation9 + $0x10] sm:$0xff]  ;;  %v13777_v62 = vld [vmem:[#allocation9] sm:$0xff] }
  0x4b   :  { %11202 = vmatprep.subr.bf16.mxu0 %v12751_v11  ;;  %11227 = vmatpush3.msra.mxu1 %v13546_v25  ;;  %17256 = vst [vmem:[#allocation21_spill] sm:$0xff] %v13775_v61  ;;  %17257 = vst [vmem:[#allocation22_spill] sm:$0xff] %v13777_v62 }
  0x4c   :  { %11228 = vmatprep.subr.mxu1 %v17071_v0  ;;  %v446_v3 = vpack.c.bf16 %v444_v2, %v443_v1  ;;  %v13669_v5 = vshrl.u32 %v335_v4, 7  ;;  %v755_v1 = vadd.s32 4294967295, %v13775_v61  ;;  %v788_v2 = vadd.s32 1, %v13775_v61  ;;  %v13784_v4 = vld [vmem:[#allocation9 + $0x18] sm:$0xff] }
  0x4d   :  { %11229 = vmatpush3.msra.mxu1 %v13552_v26  ;;  %17259 = vst [vmem:[#allocation24_spill] sm:$0xff] %v13784_v4 }
  0x4e   :  { %11203 = vmatpush3.bf16.msra.mxu0 %v12751_v11  ;;  %11230 = vmatprep.subr.mxu1 %v17071_v0  ;;  %17255 = vst [vmem:[#allocation20_spill] sm:$0xff] %v13669_v5  ;;  %v13672_v6 = vsub.s32 0, %v13669_v5  ;;  %vm17054_vm1 = vcmp.lt.s32.totalorder %v13669_v5, 1  ;;  %vm17053_vm2 = vcmp.lt.s32.totalorder %v13669_v5, 7  ;;  %vm759_vm3 = vcmp.ge.s32.totalorder %v755_v1, 0 }
  0x4f   :  { %11204 = vmatprep.subr.bf16.mxu0 %v12752_v14  ;;  %11231 = vmatpush3.msra.mxu1 %v13558_v27  ;;  %vm763_vm4 = vcmp.lt.s32.totalorder %v755_v1, 16  ;;  %vm792_vm5 = vcmp.ge.s32.totalorder %v788_v2, 0  ;;  %vm796_vm6 = vcmp.lt.s32.totalorder %v788_v2, 16 }
  0x50   :  { %11232 = vmatprep.subr.mxu1 %v17071_v0  ;;  %vm13805_vm12 = vmand %vm759_vm3, %vm763_vm4 }
  0x51   :  { %11233 = vmatpush3.msra.mxu1 %v13564_v28 }
  0x52   :  { %11205 = vmatpush3.bf16.msra.mxu0 %v12752_v14  ;;  %11234 = vmatprep.subr.mxu1 %v17071_v0 }
  0x53   :  { %11206 = vmatprep.subr.bf16.mxu0 %v12753_v15  ;;  %11235 = vmatpush3.msra.mxu1 %v13570_v29 }
  0x54   :  { %11236 = vmatprep.subr.mxu1 %v17071_v0 }
  0x55   :  { %11237 = vmatpush3.msra.mxu1 %v13574_v30 }
  0x56   :  { %11207 = vmatpush3.bf16.msra.mxu0 %v12753_v15  ;;  %11238 = vmatprep.subr.mxu1 %v17071_v0 }
  0x57   :  { %11208 = vmatprep.subr.bf16.mxu0 %v12754_v18  ;;  %11239 = vmatpush3.msra.mxu1 %v13578_v31 }
  0x58   :  { %11240 = vmatprep.subr.mxu1 %v17071_v0 }
  0x59   :  { %11241 = vmatpush3.msra.mxu1 %v13585_v32 }
  0x5a   :  { %11209 = vmatpush3.bf16.msra.mxu0 %v12754_v18  ;;  %11242 = vmatprep.subr.mxu1 %v17071_v0 }
  0x5b   :  { %11249 = vmatprep.subr.mxu0 %v17071_v0  ;;  %11243 = vmatpush3.msra.mxu1 %v13591_v33 }
  0x5c   :  { %11244 = vmatprep.subr.mxu1 %v17071_v0 }
  0x5d   :  { %11211 = vmatmul.mubr.bf16.vlgmr.msra.gmra.mxu0 %v124_v21  ;;  %11245 = vmatpush3.msra.mxu1 %v13597_v34 }
  0x5e   :  { %11250 = vmatpush3.msra.mxu0 %v13504_v9  ;;  %11284 = vmatprep.subr.bf16.mxu1 %v12755_v35 }
  0x5f   :  { %11251 = vmatprep.subr.mxu0 %v17071_v0  ;;  %11281 = vmatprep.mubr.msk.f32.mxu0 %vm17051_vm0, %v17071_v0 }
  0x60   :  { %11252 = vmatpush3.msra.mxu0 %v13506_v10 }
  0x61   :  { %11253 = vmatprep.subr.mxu0 %v17071_v0 }
  0x62   :  { %11254 = vmatpush3.msra.mxu0 %v13509_v12 }
  0x63   :  { %11255 = vmatprep.subr.mxu0 %v17071_v0 }
  0x64   :  { %11256 = vmatpush3.msra.mxu0 %v13529_v22 }
  0x65   :  { %11257 = vmatprep.subr.mxu0 %v17071_v0 }
  0x66   :  { %11258 = vmatpush3.msra.mxu0 %v13534_v23 }
  0x67   :  { %11259 = vmatprep.subr.mxu0 %v17071_v0 }
  0x68   :  { %11260 = vmatpush3.msra.mxu0 %v13540_v24 }
  0x69   :  { %11261 = vmatprep.subr.mxu0 %v17071_v0 }
  0x6a   :  { %11262 = vmatpush3.msra.mxu0 %v13546_v25 }
  0x6b   :  { %11263 = vmatprep.subr.mxu0 %v17071_v0 }
  0x6c   :  { %11264 = vmatpush3.msra.mxu0 %v13552_v26 }
  0x6d   :  { %11265 = vmatprep.subr.mxu0 %v17071_v0 }
  0x6e   :  { %11266 = vmatpush3.msra.mxu0 %v13558_v27 }
  0x6f   :  { %11267 = vmatprep.subr.mxu0 %v17071_v0 }
  0x70   :  { %11268 = vmatpush3.msra.mxu0 %v13564_v28 }
  0x71   :  { %11269 = vmatprep.subr.mxu0 %v17071_v0 }
  0x72   :  { %11270 = vmatpush3.msra.mxu0 %v13570_v29 }
  0x73   :  { %11271 = vmatprep.subr.mxu0 %v17071_v0 }
  0x74   :  { %11272 = vmatpush3.msra.mxu0 %v13574_v30 }
  0x75   :  { %11273 = vmatprep.subr.mxu0 %v17071_v0 }
  0x76   :  { %11274 = vmatpush3.msra.mxu0 %v13578_v31 }
  0x77   :  { %11275 = vmatprep.subr.mxu0 %v17071_v0 }
  0x78   :  { %11276 = vmatpush3.msra.mxu0 %v13585_v32 }
  0x79   :  { %11277 = vmatprep.subr.mxu0 %v17071_v0 }
  0x7a   :  { %11278 = vmatpush3.msra.mxu0 %v13591_v33 }
  0x7b   :  { %11279 = vmatprep.subr.mxu0 %v17071_v0 }
  0x7c   :  { %11280 = vmatpush3.msra.mxu0 %v13597_v34 }
  0x7d   :  { %11304 = vmatprep.subr.mxu0 %v17071_v0 }
 0x11d   :  { %v13610_v36 = vpop.f32.mrf.mxu0 }
 0x11f   :  { %v13612_v37 = vpop.f32.mrf.mxu0 }
 0x121   :  { %v13614_v38 = vpop.f32.mrf.mxu0 }
 0x123   :  { %v13616_v39 = vpop.f32.mrf.mxu0 }
 0x124   :  { %v238_v40 = vadd.f32 %v13616_v39, %v13612_v37 }
 0x126   :  { %v239_v41 = vadd.f32 %v13610_v36, %v238_v40 }
 0x128   :  { %v240_v42 = vadd.f32 %v13614_v38, %v239_v41 }
 0x12a   :  { %v241_v43 = vrot.slane %v240_v42, 4 }
 0x12c   :  { %v242_v44 = vadd.f32 %v241_v43, %v240_v42 }
 0x12e   :  { %v243_v45 = vrot.slane %v242_v44, 2 }
 0x130   :  { %v244_v48 = vadd.f32 %v243_v45, %v242_v44 }
 0x132   :  { %v245_v51 = vrot.slane %v244_v48, 1 }
 0x134   :  { %v246_v52 = vadd.f32 %v245_v51, %v244_v48 }
 0x136   :  { %v248_v54 = vmul.f32 0.03125, %v246_v52 }
 0x138   :  { %11247 = vmatmul.mubr.f32.vlgmr.msra.gmra.mxu1 %v248_v54 }
 0x139   :  { %11285 = vmatpush3.bf16.msra.mxu1 %v12755_v35  ;;  %11300 = vmatprep.mubr.bf16.mxu1 %v445_v53 }
 0x13a   :  { %11286 = vmatprep.subr.bf16.mxu1 %v12756_v55 }
 0x13d   :  { %11287 = vmatpush3.bf16.msra.mxu1 %v12756_v55 }
 0x13e   :  { %11288 = vmatprep.subr.bf16.mxu1 %v12757_v56 }
 0x141   :  { %11289 = vmatpush3.bf16.msra.mxu1 %v12757_v56 }
 0x142   :  { %11290 = vmatprep.subr.bf16.mxu1 %v12758_v57 }
 0x145   :  { %11291 = vmatpush3.bf16.msra.mxu1 %v12758_v57 }
 0x146   :  { %11292 = vmatprep.subr.bf16.mxu1 %v12759_v58 }
 0x149   :  { %11293 = vmatpush3.bf16.msra.mxu1 %v12759_v58 }
 0x14a   :  { %11294 = vmatprep.subr.bf16.mxu1 %v12760_v59 }
 0x14d   :  { %11295 = vmatpush3.bf16.msra.mxu1 %v12760_v59 }
 0x14e   :  { %11296 = vmatprep.subr.bf16.mxu1 %v12761_v60 }
 0x151   :  { %11297 = vmatpush3.bf16.msra.mxu1 %v12761_v60 }
 0x152   :  { %11298 = vmatprep.subr.bf16.mxu1 %v12762_v63 }
 0x155   :  { %11299 = vmatpush3.bf16.msra.mxu1 %v12762_v63  ;;  %v13779_v63 = vld [vmem:[#allocation9 + $0x8] sm:$0xff] }
 0x156   :  { %11339 = vmatprep.subr.mxu1 %v17071_v0  ;;  %17258 = vst [vmem:[#allocation23_spill] sm:$0xff] %v13779_v63 }
 0x158   :  { %11301 = vmatmul.mubr.bf16.vlgmr.msra.gmra.mxu1 %v446_v3  ;;  %v753_v3 = vadd.s32 4294967295, %v13777_v62 }
 0x159   :  { %11340 = vmatpush3.msra.mxu1 %v13504_v9  ;;  %11371 = vmatprep.mubr.msk.f32.mxu1 %vm17051_vm0, %v17071_v0 }
 0x15a   :  { %11341 = vmatprep.subr.mxu1 %v17071_v0  ;;  %vm757_vm7 = vcmp.ge.s32.totalorder %v753_v3, 0  ;;  %vm761_vm8 = vcmp.lt.s32.totalorder %v753_v3, 16 }
 0x15b   :  { %11342 = vmatpush3.msra.mxu1 %v13506_v10  ;;  %vm13824_vm3 = vmand %vm757_vm7, %vm761_vm8 }
 0x15c   :  { %11343 = vmatprep.subr.mxu1 %v17071_v0 }
 0x15d   :  { %11344 = vmatpush3.msra.mxu1 %v13509_v12 }
 0x15e   :  { %11345 = vmatprep.subr.mxu1 %v17071_v0 }
 0x15f   :  { %11346 = vmatpush3.msra.mxu1 %v13529_v22 }
 0x160   :  { %11347 = vmatprep.subr.mxu1 %v17071_v0 }
 0x161   :  { %11348 = vmatpush3.msra.mxu1 %v13534_v23 }
 0x162   :  { %11349 = vmatprep.subr.mxu1 %v17071_v0 }
 0x163   :  { %11350 = vmatpush3.msra.mxu1 %v13540_v24 }
 0x164   :  { %11351 = vmatprep.subr.mxu1 %v17071_v0 }
 0x165   :  { %11352 = vmatpush3.msra.mxu1 %v13546_v25 }
 0x166   :  { %11353 = vmatprep.subr.mxu1 %v17071_v0 }
 0x167   :  { %11354 = vmatpush3.msra.mxu1 %v13552_v26 }
 0x168   :  { %11355 = vmatprep.subr.mxu1 %v17071_v0 }
 0x169   :  { %11356 = vmatpush3.msra.mxu1 %v13558_v27 }
 0x16a   :  { %11357 = vmatprep.subr.mxu1 %v17071_v0 }
 0x16b   :  { %11358 = vmatpush3.msra.mxu1 %v13564_v28 }
 0x16c   :  { %11359 = vmatprep.subr.mxu1 %v17071_v0 }
 0x16d   :  { %11360 = vmatpush3.msra.mxu1 %v13570_v29 }
 0x16e   :  { %11361 = vmatprep.subr.mxu1 %v17071_v0 }
 0x16f   :  { %11362 = vmatpush3.msra.mxu1 %v13574_v30 }
 0x170   :  { %11363 = vmatprep.subr.mxu1 %v17071_v0 }
 0x171   :  { %11364 = vmatpush3.msra.mxu1 %v13578_v31 }
 0x172   :  { %11365 = vmatprep.subr.mxu1 %v17071_v0 }
 0x173   :  { %11366 = vmatpush3.msra.mxu1 %v13585_v32 }
 0x174   :  { %11367 = vmatprep.subr.mxu1 %v17071_v0 }
 0x175   :  { %11368 = vmatpush3.msra.mxu1 %v13591_v33 }
 0x176   :  { %11369 = vmatprep.subr.mxu1 %v17071_v0 }
 0x177   :  { %11370 = vmatpush3.msra.mxu1 %v13597_v34 }
 0x178   :  { %11409 = vmatprep.subr.mxu1 %v17071_v0 }
 0x1f8   :  { %v331_v7 = vpop.f32.mrf.mxu1 }
 0x1f9   :  { %v338_v8 = vrot.slane %v331_v7, %v13672_v6  ;;  %v786_v7 = vadd.s32 1, %v13777_v62 }
 0x1fa   :  { %v11248_v11 = vpop.f32.mrf.mxu1 }
 0x1fb   :  { %v13676_v13 = vsub.f32 %v13612_v37, %v338_v8  ;;  %v13679_v14 = vsub.f32 %v13616_v39, %v338_v8  ;;  %v13682_v15 = vsub.f32 %v13610_v36, %v338_v8  ;;  %v13685_v16 = vsub.f32 %v13614_v38, %v338_v8 }
 0x1fc   :  { %v754_v8 = vadd.s32 4294967295, %v13779_v63  ;;  %vm790_vm9 = vcmp.ge.s32.totalorder %v786_v7, 0  ;;  %vm794_vm10 = vcmp.lt.s32.totalorder %v786_v7, 16 }
 0x1fd   :  { %v343_v17 = vmul.f32 %v13676_v13, %v13676_v13  ;;  %v344_v18 = vmul.f32 %v13679_v14, %v13679_v14  ;;  %v345_v19 = vmul.f32 %v13682_v15, %v13682_v15  ;;  %v346_v21 = vmul.f32 %v13685_v16, %v13685_v16 }
 0x1fe   :  { %vm758_vm11 = vcmp.ge.s32.totalorder %v754_v8, 0  ;;  %vm762_vm13 = vcmp.lt.s32.totalorder %v754_v8, 16 }
 0x1ff   :  { %v347_v20 = vadd.f32 %v344_v18, %v343_v17  ;;  %v756_v17 = vadd.s32 4294967295, %v13784_v4  ;;  %vm13836_vm4 = vmand %vm758_vm11, %vm762_vm13 }
 0x201   :  { %v348_v35 = vadd.f32 %v347_v20, %v345_v19  ;;  %vm760_vm14 = vcmp.ge.s32.totalorder %v756_v17, 0  ;;  %vm764_vm15 = vcmp.lt.s32.totalorder %v756_v17, 16 }
 0x202   :  { %vm13860_vm8 = vmand %vm760_vm14, %vm764_vm15  ;;  %vm17282_vm14 = vmmov 0  }
 0x203   :  { %v349_v37 = vadd.f32 %v348_v35, %v346_v21 }
 0x205   :  { %v350_v36 = vrot.slane %v349_v37, 4 }
 0x207   :  { %v351_v39 = vadd.f32 %v350_v36, %v349_v37  ;;  %v17264_v37 = vmov 0  ;;  %v787_v36 = vadd.s32 1, %v13779_v63 }
 0x208   :  { %v17265_v37 = vsel %vm13805_vm12, 4294967295, %v17264_v37 }
 0x209   :  { %v352_v40 = vrot.slane %v351_v39, 2  ;;  %17266 = vst [vmem:[#allocation29_spill] sm:$0xff] %v17265_v37  ;;  %vm795_vm7 = vcmp.lt.s32.totalorder %v787_v36, 16 }
 0x20b   :  { %v353_v38 = vadd.f32 %v352_v40, %v351_v39 }
 0x20d   :  { %v354_v41 = vrot.slane %v353_v38, 1 }
 0x20f   :  { %v355_v42 = vadd.f32 %v354_v41, %v353_v38  ;;  %v17269_v41 = vmov 0 }
 0x210   :  { %v17270_v41 = vsel %vm13824_vm3, 4294967295, %v17269_v41 }
 0x211   :  { %v356_v43 = vmul.f32 0.03125, %v355_v42 }
 0x213   :  { %11282 = vmatmul.mubr.f32.vlgmr.msra.gmra.mxu0 %v356_v43 }
 0x214   :  { %11305 = vmatpush3.msra.mxu0 %v13504_v9  ;;  %11336 = vmatprep.mubr.msk.f32.mxu0 %vm17051_vm0, %v17071_v0 }
 0x215   :  { %11306 = vmatprep.subr.mxu0 %v17071_v0 }
 0x216   :  { %11307 = vmatpush3.msra.mxu0 %v13506_v10 }
 0x217   :  { %11308 = vmatprep.subr.mxu0 %v17071_v0 }
 0x218   :  { %v13701_v44 = vpop.f32.mrf.mxu1  ;;  %11309 = vmatpush3.msra.mxu0 %v13509_v12 }
 0x219   :  { %11310 = vmatprep.subr.mxu0 %v17071_v0 }
 0x21a   :  { %v13705_v45 = vpop.f32.mrf.mxu1  ;;  %11311 = vmatpush3.msra.mxu0 %v13529_v22 }
 0x21b   :  { %11312 = vmatprep.subr.mxu0 %v17071_v0 }
 0x21c   :  { %v13709_v46 = vpop.f32.mrf.mxu1  ;;  %11313 = vmatpush3.msra.mxu0 %v13534_v23 }
 0x21d   :  { %11314 = vmatprep.subr.mxu0 %v17071_v0 }
 0x21e   :  { %v13713_v47 = vpop.f32.mrf.mxu1  ;;  %11315 = vmatpush3.msra.mxu0 %v13540_v24 }
 0x21f   :  { %v560_v48 = vadd.f32 %v13713_v47, %v13705_v45  ;;  %11316 = vmatprep.subr.mxu0 %v17071_v0 }
 0x220   :  { %11317 = vmatpush3.msra.mxu0 %v13546_v25 }
 0x221   :  { %v561_v49 = vadd.f32 %v13701_v44, %v560_v48  ;;  %11318 = vmatprep.subr.mxu0 %v17071_v0 }
 0x222   :  { %11319 = vmatpush3.msra.mxu0 %v13552_v26 }
 0x223   :  { %v562_v50 = vadd.f32 %v13709_v46, %v561_v49  ;;  %11320 = vmatprep.subr.mxu0 %v17071_v0 }
 0x224   :  { %11321 = vmatpush3.msra.mxu0 %v13558_v27 }
 0x225   :  { %v563_v51 = vrot.slane %v562_v50, 4  ;;  %11322 = vmatprep.subr.mxu0 %v17071_v0 }
 0x226   :  { %11323 = vmatpush3.msra.mxu0 %v13564_v28 }
 0x227   :  { %v564_v52 = vadd.f32 %v563_v51, %v562_v50  ;;  %11324 = vmatprep.subr.mxu0 %v17071_v0  ;;  %v17271_v50 = vmov 0  ;;  %v789_v51 = vadd.s32 1, %v13784_v4 }
 0x228   :  { %11325 = vmatpush3.msra.mxu0 %v13570_v29  ;;  %v17272_v50 = vsel %vm13836_vm4, 4294967295, %v17271_v50 }
 0x229   :  { %v565_v53 = vrot.slane %v564_v52, 2  ;;  %11326 = vmatprep.subr.mxu0 %v17071_v0 }
 0x22a   :  { %11327 = vmatpush3.msra.mxu0 %v13574_v30 }
 0x22b   :  { %v566_v54 = vadd.f32 %v565_v53, %v564_v52  ;;  %11328 = vmatprep.subr.mxu0 %v17071_v0 }
 0x22c   :  { %11329 = vmatpush3.msra.mxu0 %v13578_v31 }
 0x22d   :  { %11330 = vmatprep.subr.mxu0 %v17071_v0  ;;  %v567_v55 = vrot.slane %v566_v54, 1 }
 0x22e   :  { %11331 = vmatpush3.msra.mxu0 %v13585_v32 }
 0x22f   :  { %11332 = vmatprep.subr.mxu0 %v17071_v0  ;;  %v568_v56 = vadd.f32 %v567_v55, %v566_v54  ;;  %v17273_v55 = vmov 0 }
 0x230   :  { %11333 = vmatpush3.msra.mxu0 %v13591_v33 }
 0x231   :  { %11334 = vmatprep.subr.mxu0 %v17071_v0  ;;  %v569_v57 = vmul.f32 0.03125, %v568_v56 }
 0x232   :  { %11335 = vmatpush3.msra.mxu0 %v13597_v34 }
 0x233   :  { %11337 = vmatmul.mubr.f32.vlgmr.msra.gmra.mxu0 %v569_v57  ;;  %11374 = vmatprep.subr.mxu0 %v17071_v0 }
 0x234   :  { %11375 = vmatpush3.msra.mxu0 %v13504_v9  ;;  %11406 = vmatprep.mubr.msk.f32.mxu0 %vm17051_vm0, %v17071_v0  ;;  %vm13816_vm0 = vmand %vm792_vm5, %vm796_vm6  ;;  %vm791_vm6 = vcmp.ge.s32.totalorder %v787_v36, 0 }
 0x235   :  { %11376 = vmatprep.subr.mxu0 %v17071_v0  ;;  %vm13849_vm5 = vmand %vm790_vm9, %vm794_vm10  ;;  %vm793_vm9 = vcmp.ge.s32.totalorder %v789_v51, 0  ;;  %vm797_vm10 = vcmp.lt.s32.totalorder %v789_v51, 16 }
 0x236   :  { %11377 = vmatpush3.msra.mxu0 %v13506_v10  ;;  %v17274_v55 = vsel %vm13849_vm5, 4294967295, %v17273_v55  ;;  %vm13881_vm11 = vmand %vm791_vm6, %vm795_vm7 }
 0x237   :  { %11378 = vmatprep.subr.mxu0 %v17071_v0  ;;  %vm13896_vm13 = vmand %vm793_vm9, %vm797_vm10 }
 0x238   :  { %11379 = vmatpush3.msra.mxu0 %v13509_v12 }
 0x239   :  { %11380 = vmatprep.subr.mxu0 %v17071_v0 }
 0x23a   :  { %11381 = vmatpush3.msra.mxu0 %v13529_v22 }
 0x23b   :  { %11382 = vmatprep.subr.mxu0 %v17071_v0 }
 0x23c   :  { %11383 = vmatpush3.msra.mxu0 %v13534_v23 }
 0x23d   :  { %11384 = vmatprep.subr.mxu0 %v17071_v0 }
 0x23e   :  { %11385 = vmatpush3.msra.mxu0 %v13540_v24 }
 0x23f   :  { %11386 = vmatprep.subr.mxu0 %v17071_v0 }
 0x240   :  { %11387 = vmatpush3.msra.mxu0 %v13546_v25 }
 0x241   :  { %11388 = vmatprep.subr.mxu0 %v17071_v0 }
 0x242   :  { %11389 = vmatpush3.msra.mxu0 %v13552_v26 }
 0x243   :  { %11390 = vmatprep.subr.mxu0 %v17071_v0 }
 0x244   :  { %11391 = vmatpush3.msra.mxu0 %v13558_v27 }
 0x245   :  { %11392 = vmatprep.subr.mxu0 %v17071_v0 }
 0x246   :  { %11393 = vmatpush3.msra.mxu0 %v13564_v28 }
 0x247   :  { %11394 = vmatprep.subr.mxu0 %v17071_v0 }
 0x248   :  { %11395 = vmatpush3.msra.mxu0 %v13570_v29 }
 0x249   :  { %11396 = vmatprep.subr.mxu0 %v17071_v0 }
 0x24a   :  { %11397 = vmatpush3.msra.mxu0 %v13574_v30 }
 0x24b   :  { %11398 = vmatprep.subr.mxu0 %v17071_v0 }
 0x24c   :  { %11399 = vmatpush3.msra.mxu0 %v13578_v31 }
 0x24d   :  { %11400 = vmatprep.subr.mxu0 %v17071_v0 }
 0x24e   :  { %11401 = vmatpush3.msra.mxu0 %v13585_v32 }
 0x24f   :  { %11402 = vmatprep.subr.mxu0 %v17071_v0 }
 0x250   :  { %11403 = vmatpush3.msra.mxu0 %v13591_v33 }
 0x251   :  { %11404 = vmatprep.subr.mxu0 %v17071_v0 }
 0x252   :  { %11405 = vmatpush3.msra.mxu0 %v13597_v34 }
 0x253   :  { %11444 = vmatprep.subr.mxu0 %v17071_v0 }
 0x2d3   :  { %v423_v58 = vpop.f32.mrf.mxu0 }
 0x2d4   :  { %v427_v59 = vadd.f32 1e-05, %v423_v58 }
 0x2d5   :  { %v11283_v60 = vpop.f32.mrf.mxu0 }
 0x2d6   :  { %12763 = vrsqrt.f32 %v427_v59  ;;  %v17275_v59 = vmov 0 }
 0x2d7   :  { %v17276_v59 = vsel %vm13860_vm8, 4294967295, %v17275_v59 }
 0x2d8   :  { %17277 = vst [vmem:[#allocation30_spill] sm:$0xff] %v17276_v59 }
 0x2e3   :  { %v12764_v11 = vpop.eup %12763 }
 0x2e4   :  { %v432_v18 = vrot.slane %v12764_v11, %v13672_v6 }
 0x2e6   :  { %v13793_v19 = vmul.f32 %v432_v18, %v13679_v14  ;;  %v13796_v20 = vmul.f32 %v432_v18, %v13682_v15  ;;  %v13799_v21 = vmul.f32 %v432_v18, %v13685_v16  ;;  %v13802_v35 = vmul.f32 %v432_v18, %v13676_v13 }
 0x2e7   :  { %v17267_v13 = vmov 0 }
 0x2e8   :  { %17260 = vst [vmem:[#allocation25_spill] sm:$0xff] %v13793_v19  ;;  %17261 = vst [vmem:[#allocation26_spill] sm:$0xff] %v13796_v20  ;;  %v743_v14 = vrot.slane %v13793_v19, 7  ;;  %v744_v15 = vrot.slane %v13796_v20, 7  ;;  %v779_v16 = vrot.slane %v13796_v20, 1  ;;  %v780_v39 = vrot.slane %v13799_v21, 1 }
 0x2e9   :  { %17262 = vst [vmem:[#allocation27_spill] sm:$0xff] %v13799_v21  ;;  %17263 = vst [vmem:[#allocation28_spill] sm:$0xff] %v13802_v35  ;;  %v17268_v13 = vsel %vm13816_vm0, 4294967295, %v17267_v13  ;;  %v742_v40 = vrot.slane %v13802_v35, 7  ;;  %v745_v38 = vrot.slane %v13799_v21, 7  ;;  %v777_v42 = vrot.slane %v13802_v35, 1 }
 0x2ea   :  { %v778_v43 = vrot.slane %v13793_v19, 1  ;;  %v750_v48 = vsel %vm17054_vm1, %v743_v14, %v744_v15  ;;  %v782_v49 = vsel %vm17053_vm2, %v779_v16, %v780_v39 }
 0x2eb   :  { %v771_v52 = vsel %vm13805_vm12, %v750_v48, -1e+30  ;;  %v752_v53 = vsel %vm17054_vm1, %v745_v38, %v742_v40  ;;  %v751_v58 = vsel %vm17054_vm1, %v742_v40, %v743_v14  ;;  %v804_v60 = vsel %vm13816_vm0, %v782_v49, -1e+30 }
 0x2ec   :  { %v784_v54 = vsel %vm17053_vm2, %v777_v42, %v778_v43  ;;  %v775_v56 = vmax.f32 %v13796_v20, %v771_v52  ;;  %v769_v57 = vsel %vm13824_vm3, %v752_v53, -1e+30  ;;  %v770_v2 = vsel %vm13836_vm4, %v751_v58, -1e+30 }
 0x2ed   :  { %v773_v1 = vmax.f32 %v13802_v35, %v769_v57  ;;  %v749_v3 = vsel %vm17054_vm1, %v744_v15, %v745_v38  ;;  %v802_v8 = vsel %vm13849_vm5, %v784_v54, -1e+30  ;;  %v774_v17 = vmax.f32 %v13793_v19, %v770_v2 }
 0x2ee   :  { %v13871_v7 = vmax.f32 %v775_v56, %v804_v60  ;;  %v783_v18 = vsel %vm17053_vm2, %v778_v43, %v779_v16  ;;  %v17278_v14 = vmov 0  ;;  %v772_v15 = vsel %vm13860_vm8, %v749_v3, -1e+30 }
 0x2ef   :  { %v13875_v11 = vmax.f32 %v773_v1, %v802_v8  ;;  %v17279_v14 = vsel %vm13881_vm11, 4294967295, %v17278_v14  ;;  %v803_v40 = vsel %vm13881_vm11, %v783_v18, -1e+30  ;;  %v776_v38 = vmax.f32 %v13799_v21, %v772_v15 }
 0x2f0   :  { %814 = vrot.lane.b32.xlu1 %v13871_v7, %s13421_s18  ;;  %v785_v36 = vsel %vm17053_vm2, %v780_v39, %v777_v42  ;;  %v17280_v16 = vmov 0  ;;  %v13900_v48 = vmax.f32 %v774_v17, %v803_v40 }
 0x2f1   :  { %810 = vrot.lane.b32.xlu0 %v13875_v11, %s13421_s18  ;;  %v17281_v16 = vsel %vm13896_vm13, 4294967295, %v17280_v16  ;;  %v805_v39 = vsel %vm13896_vm13, %v785_v36, -1e+30 }
 0x2f2   :  { %v13918_v54 = vmax.f32 %v776_v38, %v805_v39 }
 0x2f3   :  { %v636_v43 = vpop.f32.mrf.mxu0 }
 0x2f4   :  { %v643_v49 = vrot.slane %v636_v43, %v13672_v6  ;;  %842 = vrot.lane.b32.xlu1 %v13875_v11, %s13426_s1 }
 0x2f5   :  { %v11338_v51 = vpop.f32.mrf.mxu0  ;;  %812 = vrot.lane.b32.xlu0 %v13900_v48, %s13421_s18 }
 0x2f6   :  { %v13910_v42 = vsub.f32 %v13705_v45, %v643_v49  ;;  %v13913_v52 = vsub.f32 %v13713_v47, %v643_v49  ;;  %v13916_v53 = vsub.f32 %v13701_v44, %v643_v49  ;;  %v13921_v56 = vsub.f32 %v13709_v46, %v643_v49  ;;  %v13983_v49 = vld [vmem:[#allocation11 + $0x18] sm:$0xff] }
 0x2f8   :  { %v648_v57 = vmul.f32 %v13910_v42, %v13910_v42  ;;  %v649_v58 = vmul.f32 %v13913_v52, %v13913_v52  ;;  %816 = vrot.lane.b32.xlu1 %v13918_v54, %s13421_s18  ;;  %v650_v44 = vmul.f32 %v13916_v53, %v13916_v53  ;;  %v651_v46 = vmul.f32 %v13921_v56, %v13921_v56 }
 0x2f9   :  { %844 = vrot.lane.b32.xlu0 %v13900_v48, %s13426_s1 }
 0x2fa   :  { %v652_v45 = vadd.f32 %v649_v58, %v648_v57  ;;  %v821_v58 = vadd.s32 4294967295, %v13983_v49 }
 0x2fc   :  { %v653_v47 = vadd.f32 %v652_v45, %v650_v44  ;;  %848 = vrot.lane.b32.xlu1 %v13918_v54, %s13426_s1  ;;  %v17283_v44 = vmov 0  ;;  %v853_v45 = vadd.s32 1, %v13983_v49 }
 0x2fd   :  { %846 = vrot.lane.b32.xlu0 %v13871_v7, %s13426_s1 }
 0x2fe   :  { %v654_v60 = vadd.f32 %v653_v47, %v651_v46  ;;  %v17286_v46 = vmov 0  ;;  %vm857_vm11 = vcmp.ge.s32.totalorder %v853_v45, 0  ;;  %vm861_vm4 = vcmp.lt.s32.totalorder %v853_v45, 16 }
 0x300   :  { %v655_v1 = vrot.slane %v654_v60, 4 }
 0x302   :  { %v656_v2 = vadd.f32 %v655_v1, %v654_v60  ;;  %v17289_v1 = vmov 0 }
 0x304   :  { %v657_v3 = vrot.slane %v656_v2, 2 }
 0x306   :  { %v658_v8 = vadd.f32 %v657_v3, %v656_v2  ;;  %v17292_v3 = vmov 0 }
 0x308   :  { %v659_v17 = vrot.slane %v658_v8, 1 }
 0x30a   :  { %v660_v18 = vadd.f32 %v659_v17, %v658_v8  ;;  %v17295_v17 = vmov 0 }
 0x30c   :  { %v661_v15 = vmul.f32 0.03125, %v660_v18 }
 0x30e   :  { %11372 = vmatmul.mubr.f32.vlgmr.msra.gmra.mxu1 %v661_v15 }
 0x30f   :  { %11410 = vmatpush3.msra.mxu1 %v13504_v9  ;;  %11441 = vmatprep.mubr.msk.f32.mxu1 %vm17282_vm14, %v17071_v0  ;;  %v13973_v9 = vld [vmem:[#allocation11 + $0x8] sm:$0xff] }
 0x310   :  { %11411 = vmatprep.subr.mxu1 %v17071_v0  ;;  %v819_v40 = vadd.s32 4294967295, %v13973_v9  ;;  %v851_v39 = vadd.s32 1, %v13973_v9 }
 0x311   :  { %11412 = vmatpush3.msra.mxu1 %v13506_v10  ;;  %v13975_v10 = vld [vmem:[#allocation11 + $0x10] sm:$0xff] }
 0x312   :  { %11413 = vmatprep.subr.mxu1 %v17071_v0  ;;  %v820_v38 = vadd.s32 4294967295, %v13975_v10  ;;  %vm823_vm15 = vcmp.ge.s32.totalorder %v819_v40, 0  ;;  %vm827_vm6 = vcmp.lt.s32.totalorder %v819_v40, 16  ;;  %vm855_vm12 = vcmp.ge.s32.totalorder %v851_v39, 0 }
 0x313   :  { %11414 = vmatpush3.msra.mxu1 %v13509_v12  ;;  %v13977_v12 = vld [vmem:[#allocation11] sm:$0xff]  ;;  %vm13987_vm0 = vmand %vm823_vm15, %vm827_vm6  ;;  %vm859_vm5 = vcmp.lt.s32.totalorder %v851_v39, 16  ;;  %v852_v60 = vadd.s32 1, %v13975_v10  ;;  %vm825_vm6 = vcmp.ge.s32.totalorder %v821_v58, 0 }
 0x314   :  { %11415 = vmatprep.subr.mxu1 %v17071_v0  ;;  %v818_v36 = vadd.s32 4294967295, %v13977_v12  ;;  %v850_v43 = vadd.s32 1, %v13977_v12  ;;  %vm824_vm7 = vcmp.ge.s32.totalorder %v820_v38, 0  ;;  %vm828_vm9 = vcmp.lt.s32.totalorder %v820_v38, 16 }
 0x315   :  { %11416 = vmatpush3.msra.mxu1 %v13529_v22  ;;  %v17284_v44 = vsel %vm13987_vm0, 4294967295, %v17283_v44  ;;  %vm13992_vm8 = vmand %vm824_vm7, %vm828_vm9  ;;  %vm829_vm7 = vcmp.lt.s32.totalorder %v821_v58, 16  ;;  %v17298_v38 = vmov 0 }
 0x316   :  { %11417 = vmatprep.subr.mxu1 %v17071_v0  ;;  %vm822_vm10 = vcmp.ge.s32.totalorder %v818_v36, 0  ;;  %vm826_vm2 = vcmp.lt.s32.totalorder %v818_v36, 16  ;;  %vm854_vm1 = vcmp.ge.s32.totalorder %v850_v43, 0  ;;  %vm858_vm13 = vcmp.lt.s32.totalorder %v850_v43, 16  ;;  %17285 = vst [vmem:[#allocation31_spill] sm:$0xff] %v17284_v44  ;;  %vm14007_vm9 = vmand %vm855_vm12, %vm859_vm5 }
 0x317   :  { %11418 = vmatpush3.msra.mxu1 %v13534_v23  ;;  %v17287_v46 = vsel %vm13992_vm8, 4294967295, %v17286_v46  ;;  %vm13997_vm3 = vmand %vm822_vm10, %vm826_vm2  ;;  %v17296_v17 = vsel %vm14007_vm9, 4294967295, %v17295_v17  ;;  %vm856_vm2 = vcmp.ge.s32.totalorder %v852_v60, 0  ;;  %vm17314_vm10 = vnez %v17272_v50 }
 0x318   :  { %11419 = vmatprep.subr.mxu1 %v17071_v0  ;;  %17288 = vst [vmem:[#allocation32_spill] sm:$0xff] %v17287_v46  ;;  %v17290_v1 = vsel %vm13997_vm3, 4294967295, %v17289_v1  ;;  %vm14001_vm15 = vmand %vm854_vm1, %vm858_vm13  ;;  %vm860_vm1 = vcmp.lt.s32.totalorder %v852_v60, 16  ;;  %v17304_v60 = vmov 0 }
 0x319   :  { %11420 = vmatpush3.msra.mxu1 %v13540_v24  ;;  %17291 = vst [vmem:[#allocation33_spill] sm:$0xff] %v17290_v1  ;;  %v17293_v3 = vsel %vm14001_vm15, 4294967295, %v17292_v3  ;;  %17297 = vst [vmem:[#allocation35_spill] sm:$0xff] %v17296_v17 }
 0x31a   :  { %11421 = vmatprep.subr.mxu1 %v17071_v0  ;;  %17294 = vst [vmem:[#allocation34_spill] sm:$0xff] %v17293_v3  ;;  %vm14014_vm13 = vmand %vm825_vm6, %vm829_vm7  ;;  %vm17315_vm6 = vnez %v17279_v14 }
 0x31b   :  { %11422 = vmatpush3.msra.mxu1 %v13546_v25  ;;  %v17299_v38 = vsel %vm14014_vm13, 4294967295, %v17298_v38  ;;  %vm14024_vm12 = vmand %vm857_vm11, %vm861_vm4  ;;  %vm17311_vm4 = vcmp.lt.s32.totalorder %v13669_v5, 1  ;;  %vm17312_vm11 = vcmp.lt.s32.totalorder %v13669_v5, 7 }
 0x31c   :  { %11423 = vmatprep.subr.mxu1 %v17071_v0  ;;  %17300 = vst [vmem:[#allocation36_spill] sm:$0xff] %v17299_v38  ;;  %vm14031_vm5 = vmand %vm856_vm2, %vm860_vm1 }
 0x31d   :  { %11424 = vmatpush3.msra.mxu1 %v13552_v26  ;;  %v17305_v60 = vsel %vm14031_vm5, 4294967295, %v17304_v60  ;;  %vm17316_vm7 = vmmov %vm17311_vm4 }
 0x31e   :  { %11425 = vmatprep.subr.mxu1 %v17071_v0  ;;  %17306 = vst [vmem:[#allocation38_spill] sm:$0xff] %v17305_v60  ;;  %vm17318_vm2 = vmmov %vm17311_vm4 }
 0x31f   :  { %11426 = vmatpush3.msra.mxu1 %v13558_v27  ;;  %vm17319_vm1 = vmmov %vm17318_vm2 }
 0x320   :  { %11427 = vmatprep.subr.mxu1 %v17071_v0 }
 0x321   :  { %11428 = vmatpush3.msra.mxu1 %v13564_v28 }
 0x322   :  { %11429 = vmatprep.subr.mxu1 %v17071_v0 }
 0x323   :  { %11430 = vmatpush3.msra.mxu1 %v13570_v29 }
 0x324   :  { %11431 = vmatprep.subr.mxu1 %v17071_v0 }
 0x325   :  { %11432 = vmatpush3.msra.mxu1 %v13574_v30 }
 0x326   :  { %11433 = vmatprep.subr.mxu1 %v17071_v0 }
 0x327   :  { %11434 = vmatpush3.msra.mxu1 %v13578_v31 }
 0x328   :  { %11435 = vmatprep.subr.mxu1 %v17071_v0 }
 0x329   :  { %11436 = vmatpush3.msra.mxu1 %v13585_v32 }
 0x32a   :  { %11437 = vmatprep.subr.mxu1 %v17071_v0 }
 0x32b   :  { %11438 = vmatpush3.msra.mxu1 %v13591_v33 }
 0x32c   :  { %11439 = vmatprep.subr.mxu1 %v17071_v0 }
 0x32d   :  { %11440 = vmatpush3.msra.mxu1 %v13597_v34 }
 0x32e   :  { %11479 = vmatprep.subr.mxu1 %v17071_v0 }
 0x362   :  { %v815_v51 = vpop.permute.xlu1 %814 }
 0x363   :  { %v811_v57 = vpop.permute.xlu0 %810  ;;  %v836_v43 = vsel %vm13992_vm8, %v815_v51, -1e+30 }
 0x364   :  { %v834_v18 = vsel %vm13997_vm3, %v811_v57, -1e+30  ;;  %v17301_v57 = vmov 0  ;;  %vm1134_vm3 = vcmp.ge.s32.totalorder %v13775_v61, 0 }
 0x365   :  { %v17302_v57 = vsel %vm14024_vm12, 4294967295, %v17301_v57 }
 0x366   :  { %v843_v47 = vpop.permute.xlu1 %842  ;;  %17303 = vst [vmem:[#allocation37_spill] sm:$0xff] %v17302_v57 }
 0x367   :  { %v813_v2 = vpop.permute.xlu0 %812  ;;  %v866_v39 = vsel %vm14001_vm15, %v843_v47, -1e+30  ;;  %v840_v47 = vmax.f32 %v13871_v7, %v836_v43  ;;  %vm1184_vm15 = vcmp.lt.s32.totalorder %v13977_v12, 16 }
 0x368   :  { %v835_v8 = vsel %vm13987_vm0, %v813_v2, -1e+30 }
 0x369   :  { %v839_v40 = vmax.f32 %v13900_v48, %v835_v8  ;;  %v838_v48 = vmax.f32 %v13875_v11, %v834_v18 }
 0x36a   :  { %v817_v15 = vpop.permute.xlu1 %816 }
 0x36b   :  { %v845_v36 = vpop.permute.xlu0 %844  ;;  %v837_v51 = vsel %vm14014_vm13, %v817_v15, -1e+30  ;;  %v14038_v8 = vmax.f32 %v838_v48, %v866_v39  ;;  %vm1180_vm13 = vcmp.ge.s32.totalorder %v13977_v12, 0 }
 0x36c   :  { %v867_v58 = vsel %vm14007_vm9, %v845_v36, -1e+30  ;;  %v841_v18 = vmax.f32 %v13918_v54, %v837_v51  ;;  %v14053_v54 = vld [vmem:[#allocation8 + $0x78] sm:$0xff]  ;;  %v17307_v51 = vmov 0.0  }
 0x36d   :  { %v14029_v45 = vmax.f32 %v839_v40, %v867_v58  ;;  %v9302_v12 = vsel %vm17314_vm10, 1.0, %v17307_v51 }
 0x36e   :  { %v849_v2 = vpop.permute.xlu1 %848 }
 0x36f   :  { %v847_v36 = vpop.permute.xlu0 %846  ;;  %v869_v0 = vsel %vm14024_vm12, %v849_v2, -1e+30  ;;  %v874_v40 = vadd.f32 %v14029_v45, %v14038_v8 }
 0x370   :  { %v868_v11 = vsel %vm14031_vm5, %v847_v36, -1e+30  ;;  %v14049_v15 = vmax.f32 %v841_v18, %v869_v0  ;;  %v14059_v0 = vld [vmem:[#allocation8 + $0x70] sm:$0xff] }
 0x371   :  { %v14047_v58 = vmax.f32 %v840_v47, %v868_v11 }
 0x373   :  { %v875_v7 = vadd.f32 %v874_v40, %v14047_v58 }
 0x375   :  { %v876_v43 = vadd.f32 %v875_v7, %v14049_v15 }
 0x377   :  { %v877_v39 = vrot.slane %v876_v43, 4 }
 0x379   :  { %v878_v48 = vadd.f32 %v877_v39, %v876_v43 }
 0x37b   :  { %v879_v20 = vrot.slane %v878_v48, 2 }
 0x37d   :  { %v880_v2 = vadd.f32 %v879_v20, %v878_v48  ;;  %v14063_v20 = vld [vmem:[#allocation8 + $0x68] sm:$0xff] }
 0x37f   :  { %v881_v21 = vrot.slane %v880_v2, 1 }
 0x381   :  { %v882_v19 = vadd.f32 %v881_v21, %v880_v2 }
 0x383   :  { %v883_v36 = vmul.f32 0.03125, %v882_v19 }
 0x385   :  { %11407 = vmatmul.mubr.f32.vlgmr.msra.gmra.mxu0 %v883_v36 }
 0x386   :  { %11445 = vmatpush3.msra.mxu0 %v14053_v54  ;;  %11476 = vmatprep.mubr.msk.f32.mxu0 %vm17282_vm14, %v17307_v51 }
 0x387   :  { %11446 = vmatprep.subr.mxu0 %v17307_v51 }
 0x388   :  { %11447 = vmatpush3.msra.mxu0 %v14059_v0 }
 0x389   :  { %11448 = vmatprep.subr.mxu0 %v17307_v51 }
 0x38a   :  { %11449 = vmatpush3.msra.mxu0 %v14063_v20 }
 0x38b   :  { %11450 = vmatprep.subr.mxu0 %v17307_v51 }
 0x38c   :  { %11451 = vmatpush3.msra.mxu0 %v13529_v22 }
 0x38d   :  { %11452 = vmatprep.subr.mxu0 %v17307_v51 }
 0x38e   :  { %11453 = vmatpush3.msra.mxu0 %v13534_v23 }
 0x38f   :  { %11454 = vmatprep.subr.mxu0 %v17307_v51 }
 0x390   :  { %11455 = vmatpush3.msra.mxu0 %v13540_v24 }
 0x391   :  { %11456 = vmatprep.subr.mxu0 %v17307_v51 }
 0x392   :  { %11457 = vmatpush3.msra.mxu0 %v13546_v25 }
 0x393   :  { %11458 = vmatprep.subr.mxu0 %v17307_v51 }
 0x394   :  { %11459 = vmatpush3.msra.mxu0 %v13552_v26 }
 0x395   :  { %11460 = vmatprep.subr.mxu0 %v17307_v51 }
 0x396   :  { %11461 = vmatpush3.msra.mxu0 %v13558_v27 }
 0x397   :  { %11462 = vmatprep.subr.mxu0 %v17307_v51 }
 0x398   :  { %11463 = vmatpush3.msra.mxu0 %v13564_v28 }
 0x399   :  { %11464 = vmatprep.subr.mxu0 %v17307_v51 }
 0x39a   :  { %11465 = vmatpush3.msra.mxu0 %v13570_v29 }
 0x39b   :  { %11466 = vmatprep.subr.mxu0 %v17307_v51 }
 0x39c   :  { %11467 = vmatpush3.msra.mxu0 %v13574_v30 }
 0x39d   :  { %11468 = vmatprep.subr.mxu0 %v17307_v51 }
 0x39e   :  { %11469 = vmatpush3.msra.mxu0 %v13578_v31 }
 0x39f   :  { %11470 = vmatprep.subr.mxu0 %v17307_v51 }
 0x3a0   :  { %11471 = vmatpush3.msra.mxu0 %v13585_v32 }
 0x3a1   :  { %11472 = vmatprep.subr.mxu0 %v17307_v51 }
 0x3a2   :  { %11473 = vmatpush3.msra.mxu0 %v13591_v33 }
 0x3a3   :  { %11474 = vmatprep.subr.mxu0 %v17307_v51 }
 0x3a4   :  { %11475 = vmatpush3.msra.mxu0 %v13597_v34 }
 0x3ce   :  { %v728_v22 = vpop.f32.mrf.mxu1 }
 0x3cf   :  { %v732_v23 = vadd.f32 1e-05, %v728_v22 }
 0x3d0   :  { %v11373_v24 = vpop.f32.mrf.mxu1 }
 0x3d1   :  { %12765 = vrsqrt.f32 %v732_v23 }
 0x3de   :  { %v12766_v25 = vpop.eup %12765 }
 0x3df   :  { %v737_v26 = vrot.slane %v12766_v25, %v13672_v6 }
 0x3e1   :  { %v738_v27 = vmul.f32 %v737_v26, %v13910_v42  ;;  %v739_v28 = vmul.f32 %v737_v26, %v13913_v52  ;;  %v740_v29 = vmul.f32 %v737_v26, %v13916_v53  ;;  %v741_v30 = vmul.f32 %v737_v26, %v13921_v56 }
 0x3e3   :  { %v1056_v31 = vrot.slane %v738_v27, 7  ;;  %v1057_v32 = vrot.slane %v739_v28, 7  ;;  %v1073_v33 = vrot.slane %v739_v28, 1  ;;  %v1074_v19 = vrot.slane %v740_v29, 1 }
 0x3e4   :  { %v14097_v34 = vmax.f32 %v738_v27, 0.0  ;;  %v14099_v21 = vmax.f32 %v739_v28, 0.0  ;;  %v14101_v47 = vmax.f32 %v740_v29, 0.0  ;;  %v1059_v11 = vrot.slane %v741_v30, 7 }
 0x3e5   :  { %v1062_v42 = vsel %vm17311_vm4, %v1056_v31, %v1057_v32  ;;  %v1077_v52 = vsel %vm17312_vm11, %v1073_v33, %v1074_v19  ;;  %v1072_v53 = vrot.slane %v738_v27, 1  ;;  %v14107_v18 = vmax.f32 %v741_v30, 0.0  ;;  %vm17321_vm4 = vmmov %vm17312_vm11 }
 0x3e6   :  { %17308 = vst [vmem:[#allocation39_spill] sm:$0xff] %v14097_v34  ;;  %17309 = vst [vmem:[#allocation40_spill] sm:$0xff] %v14099_v21  ;;  %v1065_v56 = vsel %vm17314_vm10, %v1062_v42, 0.0  ;;  %v1081_v40 = vsel %vm17315_vm6, %v1077_v52, 0.0  ;;  %v1426_v7 = vrot.slane %v14097_v34, 7  ;;  %v1427_v43 = vrot.slane %v14099_v21, 7 }
 0x3e7   :  { %17310 = vst [vmem:[#allocation41_spill] sm:$0xff] %v14101_v47  ;;  %17313 = vst [vmem:[#allocation42_spill] sm:$0xff] %v14107_v18  ;;  %v1069_v39 = vadd.f32 %v1065_v56, %v739_v28  ;;  %v1428_v48 = vrot.slane %v14101_v47, 7  ;;  %v1438_v2 = vrot.slane %v14097_v34, 1  ;;  %v1439_v36 = vrot.slane %v14099_v21, 1 }
 0x3e8   :  { %v14120_v22 = vsel %vm17316_vm7, %v1426_v7, %v1427_v43  ;;  %v1440_v23 = vrot.slane %v14101_v47, 1  ;;  %v14125_v24 = vpack.c.bf16 %v14099_v21, %v14097_v34  ;;  %v1063_v25 = vsel %vm17318_vm2, %v1059_v11, %v1056_v31  ;;  %vm17323_vm7 = vmmov %vm17321_vm4 }
 0x3e9   :  { %v14129_v26 = vadd.f32 %v1081_v40, %v1069_v39  ;;  %v14133_v28 = vsel %vm17319_vm1, %v1427_v43, %v1428_v48  ;;  %v14137_v42 = vsel %vm17321_vm4, %v1438_v2, %v1439_v36  ;;  %vm17322_vm11 = vnez %v17270_v41  ;;  %vm17324_vm2 = vmmov %vm17321_vm4 }
 0x3ea   :  { %17317 = vst [vmem:[#allocation43_spill] sm:$0xff] %v14125_v24  ;;  %17320 = vst [vmem:[#allocation44_spill] sm:$0xff] %v14133_v28  ;;  %v1064_v52 = vsel %vm17322_vm11, %v1063_v25, 0.0  ;;  %v14143_v56 = vsel %vm17323_vm7, %v1439_v36, %v1440_v23  ;;  %v1078_v31 = vsel %vm17324_vm2, %v1072_v53, %v1073_v33  ;;  %v1429_v40 = vrot.slane %v14107_v18, 7 }
 0x3eb   :  { %v1068_v21 = vadd.f32 %v1064_v52, %v738_v27  ;;  %1090 = vrot.lane.b32.xlu1 %v14129_v26, %s13421_s18  ;;  %vm17325_vm1 = vnez %v17274_v55  ;;  %v1441_v39 = vrot.slane %v14107_v18, 1  ;;  %v14155_v25 = vpack.c.bf16 %v14107_v18, %v14101_v47  ;;  %vm17330_vm14 = vmmov %vm17324_vm2 }
 0x3ec   :  { %v1080_v43 = vsel %vm17325_vm1, %v1078_v31, 0.0  ;;  %v1058_v36 = vrot.slane %v740_v29, 7  ;;  %vm17327_vm4 = vcmp.lt.s32.totalorder %v13669_v5, 1  ;;  %v1075_v52 = vrot.slane %v741_v30, 1  ;;  %vm14248_vm6 = vmand %vm1180_vm13, %vm1184_vm15 }
 0x3ed   :  { %17326 = vst [vmem:[#allocation45_spill] sm:$0xff] %v14155_v25  ;;  %v14157_v34 = vadd.f32 %v1080_v43, %v1068_v21  ;;  %v14161_v27 = vsel %vm17327_vm4, %v1428_v48, %v1429_v40  ;;  %vm17329_vm7 = vmmov %vm17327_vm4  ;;  %v14169_v31 = vsel %vm17324_vm2, %v1440_v23, %v1441_v39  ;;  %v14173_v47 = vsel %vm17330_vm14, %v1441_v39, %v1438_v2 }
 0x3ee   :  { %17328 = vst [vmem:[#allocation46_spill] sm:$0xff] %v14161_v27  ;;  %v14165_v33 = vsel %vm17329_vm7, %v1429_v40, %v1426_v7  ;;  %vm17331_vm12 = vmmov %vm17327_vm4  ;;  %vm1138_vm1 = vcmp.lt.s32.totalorder %v13775_v61, 16  ;;  %vm17344_vm10 = vcmp.lt.s32.totalorder %v13777_v62, 16  ;;  %vm1187_vm15 = vcmp.lt.s32.totalorder %v13983_v49, 16 }
 0x3ef   :  { %v1061_v21 = vsel %vm17331_vm12, %v1057_v32, %v1058_v36  ;;  %vm17332_vm5 = vmmov %vm17327_vm4  ;;  %1088 = vrot.lane.b32.xlu0 %v14157_v34, %s13421_s18  ;;  %vm17333_vm4 = vnez %v17265_v37  ;;  %1104 = vrot.lane.b32.xlu1 %v14157_v34, %s13426_s1  ;;  %vm17337_vm12 = vnez %v17268_v13  ;;  %vm1135_vm13 = vcmp.ge.s32.totalorder %v13784_v4, 0 }
 0x3f0   :  { %v1060_v48 = vsel %vm17332_vm5, %v1058_v36, %v1059_v11  ;;  %v1066_v7 = vsel %vm17333_vm4, %v1061_v21, 0.0  ;;  %vm17334_vm7 = vmmov %vm17324_vm2  ;;  %vm17335_vm2 = vnez %v17276_v59  ;;  %vm17338_vm5 = vnez %v17281_v16 }
 0x3f1   :  { %v1076_v23 = vsel %vm17334_vm7, %v1074_v19, %v1075_v52  ;;  %v1067_v40 = vsel %vm17335_vm2, %v1060_v48, 0.0  ;;  %vm17336_vm14 = vmmov %vm17334_vm7  ;;  %v1070_v32 = vadd.f32 %v1066_v7, %v740_v29  ;;  %vm1181_vm7 = vcmp.ge.s32.totalorder %v13973_v9, 0 }
 0x3f2   :  { %v1079_v2 = vsel %vm17336_vm14, %v1075_v52, %v1072_v53  ;;  %v1071_v11 = vadd.f32 %v1067_v40, %v741_v30  ;;  %v1082_v43 = vsel %vm17337_vm12, %v1076_v23, 0.0  ;;  %vm1185_vm14 = vcmp.lt.s32.totalorder %v13973_v9, 16 }
 0x3f3   :  { %v1083_v39 = vsel %vm17338_vm5, %v1079_v2, 0.0  ;;  %v14195_v36 = vadd.f32 %v1082_v43, %v1070_v32  ;;  %vm1137_vm12 = vcmp.lt.s32.totalorder %v13779_v63, 16  ;;  %vm14227_vm9 = vmand %vm1181_vm7, %vm1185_vm14  ;;  %vm1182_vm2 = vcmp.ge.s32.totalorder %v13975_v10, 0 }
 0x3f4   :  { %v14197_v19 = vadd.f32 %v1083_v39, %v1071_v11  ;;  %vm1186_vm7 = vcmp.lt.s32.totalorder %v13975_v10, 16  ;;  %vm17341_vm5 = vcmp.ge.s32.totalorder %v13779_v63, 0  ;;  %vm17345_vm14 = vcmp.ge.s32.totalorder %v13777_v62, 0 }
 0x3f5   :  { %1092 = vrot.lane.b32.xlu0 %v14195_v36, %s13421_s18  ;;  %vm1141_vm8 = vmand %vm17341_vm5, %vm1137_vm12  ;;  %v9314_v40 = vsel %vm13987_vm0, 1.0, %v17307_v51  ;;  %v9318_v2 = vsel %vm14227_vm9, 1.0, %v17307_v51  ;;  %v9303_v39 = vsel %vm17333_vm4, 1.0, %v17307_v51  ;;  %vm17348_vm9 = vnez %v17270_v41 }
 0x3f6   :  { %1094 = vrot.lane.b32.xlu1 %v14197_v19, %s13421_s18  ;;  %vm14260_vm11 = vmand %vm17345_vm14, %vm17344_vm10  ;;  %v9306_v32 = vsel %vm1141_vm8, 1.0, %v17307_v51  ;;  %vm1139_vm10 = vcmp.lt.s32.totalorder %v13784_v4, 16  ;;  %vm17349_vm5 = vnez %v17274_v55  ;;  %v9317_v9 = vsel %vm14248_vm6, 1.0, %v17307_v51 }
 0x3f7   :  { %vm1190_vm12 = vmand %vm1182_vm2, %vm1186_vm7  ;;  %vm17350_vm2 = vnez %v17290_v1  ;;  %vm17351_vm7 = vcmp.ge.s32.totalorder %v13983_v49, 0  ;;  %v1201_v35 = vadd.f32 %v9318_v2, %v9314_v40 }
 0x3f8   :  { %vm1142_vm8 = vmand %vm1134_vm3, %vm1138_vm1  ;;  %vm17354_vm3 = vnez %v17279_v14  ;;  %v9319_v18 = vsel %vm1190_vm12, 1.0, %v17307_v51  ;;  %vm17356_vm1 = vnez %v17296_v17  ;;  %vm17359_vm12 = vnez %v17299_v38 }
 0x3f9   :  { %1106 = vrot.lane.b32.xlu0 %v14129_v26, %s13426_s1  ;;  %vm14300_vm14 = vmand %vm17351_vm7, %vm1187_vm15  ;;  %v9322_v10 = vsel %vm17356_vm1, 1.0, %v17307_v51  ;;  %vm17357_vm15 = vnez %v17276_v59  ;;  %v9316_v4 = vsel %vm17359_vm12, 1.0, %v17307_v51  ;;  %vm17362_vm7 = vnez %v17281_v16 }
 0x3fa   :  { %1110 = vrot.lane.b32.xlu1 %v14197_v19, %s13426_s1  ;;  %vm1143_vm6 = vmand %vm1135_vm13, %vm1139_vm10  ;;  %vm17358_vm13 = vnez %v17293_v3  ;;  %v9320_v61 = vsel %vm14300_vm14, 1.0, %v17307_v51  ;;  %v1213_v28 = vadd.f32 %v9322_v10, %v1201_v35  ;;  %vm17360_vm10 = vnez %v17268_v13 }
 0x3fb   :  { %v9308_v63 = vsel %vm1143_vm6, 1.0, %v17307_v51  ;;  %vm17363_vm14 = vnez %v17302_v57  ;;  %vm17364_vm6 = vmmov 0  }
 0x3fc   :  { %v9324_v35 = vsel %vm17363_vm14, 1.0, %v17307_v51 }
 0x3fd   :  { %1108 = vrot.lane.b32.xlu0 %v14195_v36, %s13426_s1 }
 0x445   :  { %v950_v29 = vpop.f32.mrf.mxu0 }
 0x446   :  { %v957_v30 = vrot.slane %v950_v29, %v13672_v6  ;;  %v9301_v29 = vsel %vm17348_vm9, 1.0, %v17307_v51 }
 0x447   :  { %v11408_v53 = vpop.f32.mrf.mxu0 }
 0x448   :  { %v14215_v52 = vsub.f32 %v14038_v8, %v957_v30  ;;  %v14218_v21 = vsub.f32 %v14029_v45, %v957_v30  ;;  %v14221_v48 = vsub.f32 %v14047_v58, %v957_v30  ;;  %v14232_v8 = vsub.f32 %v14049_v15, %v957_v30 }
 0x449   :  { %v9309_v30 = vsel %vm17349_vm5, 1.0, %v17307_v51  ;;  %v9313_v53 = vsel %vm17350_vm2, 1.0, %v17307_v51  ;;  %v1153_v15 = vadd.f32 %v9306_v32, %v9302_v12  ;;  %v9304_v12 = vsel %vm17357_vm15, 1.0, %v17307_v51 }
 0x44a   :  { %v962_v45 = vmul.f32 %v14215_v52, %v14215_v52  ;;  %v963_v58 = vmul.f32 %v14218_v21, %v14218_v21  ;;  %v964_v7 = vmul.f32 %v14221_v48, %v14221_v48  ;;  %v965_v11 = vmul.f32 %v14232_v8, %v14232_v8 }
 0x44b   :  { %v1200_v40 = vadd.f32 %v9317_v9, %v9313_v53  ;;  %v9321_v32 = vsel %vm17358_vm13, 1.0, %v17307_v51  ;;  %v1155_v37 = vadd.f32 %v9308_v63, %v9304_v12 }
 0x44c   :  { %v966_v23 = vadd.f32 %v963_v58, %v962_v45  ;;  %v9305_v45 = vsel %vm14260_vm11, 1.0, %v17307_v51  ;;  %vm17355_vm11 = vnez %v17287_v46  ;;  %v1203_v58 = vadd.f32 %v9320_v61, %v9316_v4 }
 0x44d   :  { %v9315_v49 = vsel %vm17355_vm11, 1.0, %v17307_v51  ;;  %v1152_v2 = vadd.f32 %v9305_v45, %v9301_v29  ;;  %v9311_v29 = vsel %vm17360_vm10, 1.0, %v17307_v51  ;;  %v1212_v59 = vadd.f32 %v9321_v32, %v1200_v40  ;;  %v12783_v32 = vld [vmem:[#allocation8 + $0x58] sm:$0xff] }
 0x44e   :  { %v967_v43 = vadd.f32 %v966_v23, %v964_v7  ;;  %v9310_v23 = vsel %vm17354_vm3, 1.0, %v17307_v51  ;;  %v1202_v5 = vadd.f32 %v9319_v18, %v9315_v49  ;;  %v9312_v18 = vsel %vm17362_vm7, 1.0, %v17307_v51 }
 0x44f   :  { %v1165_v27 = vadd.f32 %v9310_v23, %v1153_v15  ;;  %v1164_v25 = vadd.f32 %v9309_v30, %v1152_v2 }
 0x450   :  { %v968_v7 = vadd.f32 %v967_v43, %v965_v11  ;;  %v9307_v11 = vsel %vm1142_vm8, 1.0, %v17307_v51  ;;  %vm17361_vm8 = vnez %v17305_v60 }
 0x451   :  { %v1154_v53 = vadd.f32 %v9307_v11, %v9303_v39  ;;  %v9323_v9 = vsel %vm17361_vm8, 1.0, %v17307_v51  ;;  %v1216_v10 = vmul.f32 %v1212_v59, %v1164_v25  ;;  %v1167_v11 = vadd.f32 %v9312_v18, %v1155_v37 }
 0x452   :  { %v969_v43 = vrot.slane %v968_v7, 4  ;;  %v1214_v15 = vadd.f32 %v9323_v9, %v1202_v5 }
 0x453   :  { %v1166_v23 = vadd.f32 %v9311_v29, %v1154_v53 }
 0x454   :  { %v970_v62 = vadd.f32 %v969_v43, %v968_v7  ;;  %v1217_v7 = vmul.f32 %v1213_v28, %v1165_v27  ;;  %v1215_v43 = vadd.f32 %v9324_v35, %v1203_v58 }
 0x455   :  { %v1218_v61 = vmul.f32 %v1214_v15, %v1166_v23 }
 0x456   :  { %v971_v45 = vrot.slane %v970_v62, 2  ;;  %12767 = vrcp.f32 %v1217_v7  ;;  %v1219_v12 = vmul.f32 %v1215_v43, %v1167_v11 }
 0x457   :  { %12769 = vrcp.f32 %v1216_v10 }
 0x458   :  { %v972_v39 = vadd.f32 %v971_v45, %v970_v62  ;;  %12771 = vrcp.f32 %v1218_v61 }
 0x459   :  { %12773 = vrcp.f32 %v1219_v12  ;;  %v12787_v12 = vld [vmem:[#allocation8 + $0x38] sm:$0xff] }
 0x45a   :  { %v973_v49 = vrot.slane %v972_v39, 1 }
 0x45c   :  { %v974_v30 = vadd.f32 %v973_v49, %v972_v39  ;;  %v12785_v49 = vld [vmem:[#allocation8 + $0x48] sm:$0xff] }
 0x45d   :  { %v1091_v63 = vpop.permute.xlu1 %1090 }
 0x45e   :  { %v975_v4 = vmul.f32 0.03125, %v974_v30  ;;  %v1097_v37 = vsel %vm13987_vm0, %v1091_v63, 0.0  ;;  %v12786_v63 = vld [vmem:[#allocation8 + $0x40] sm:$0xff] }
 0x460   :  { %11442 = vmatmul.mubr.f32.vlgmr.msra.gmra.mxu1 %v975_v4 }
 0x461   :  { %v1089_v40 = vpop.permute.xlu0 %1088  ;;  %v1105_v2 = vpop.permute.xlu1 %1104  ;;  %11480 = vmatpush3.msra.mxu1 %v14053_v54  ;;  %11511 = vmatprep.mubr.msk.f32.mxu1 %vm17364_vm6, %v17307_v51  ;;  %v12782_v54 = vld [vmem:[#allocation8 + $0x60] sm:$0xff] }
 0x462   :  { %11481 = vmatprep.subr.mxu1 %v17307_v51  ;;  %v1096_v59 = vsel %vm17350_vm2, %v1089_v40, 0.0  ;;  %v1112_v28 = vsel %vm17358_vm13, %v1105_v2, 0.0 }
 0x463   :  { %11482 = vmatpush3.msra.mxu1 %v14059_v0  ;;  %v1101_v0 = vadd.f32 %v1097_v37, %v14129_v26  ;;  %v1100_v25 = vadd.f32 %v1096_v59, %v14157_v34  ;;  %v14361_v53 = vpop.eup %12767  ;;  %v12784_v34 = vld [vmem:[#allocation8 + $0x50] sm:$0xff]  ;;  %v12789_v37 = vld [vmem:[#allocation8 + $0x28] sm:$0xff] }
 0x464   :  { %11483 = vmatprep.subr.mxu1 %v17307_v51  ;;  %17365 = vst [vmem:[#allocation47_spill] sm:$0xff] %v14361_v53  ;;  %v14370_v18 = vpop.eup %12769 }
 0x465   :  { %11484 = vmatpush3.msra.mxu1 %v14063_v20  ;;  %v1116_v26 = vadd.f32 %v1112_v28, %v1100_v25  ;;  %17366 = vst [vmem:[#allocation48_spill] sm:$0xff] %v14370_v18  ;;  %v14378_v10 = vpop.eup %12771 }
 0x466   :  { %11485 = vmatprep.subr.mxu1 %v17307_v51  ;;  %17367 = vst [vmem:[#allocation49_spill] sm:$0xff] %v14378_v10 }
 0x467   :  { %v1093_v5 = vpop.permute.xlu0 %1092  ;;  %11486 = vmatpush3.msra.mxu1 %v12782_v54  ;;  %v1228_v43 = vmul.f32 %v14370_v18, %v1116_v26  ;;  %v12790_v54 = vld [vmem:[#allocation8 + $0x20] sm:$0xff] }
 0x468   :  { %v1095_v62 = vpop.permute.xlu1 %1094  ;;  %11487 = vmatprep.subr.mxu1 %v17307_v51  ;;  %v1098_v29 = vsel %vm17355_vm11, %v1093_v5, 0.0  ;;  %v12788_v5 = vld [vmem:[#allocation8 + $0x30] sm:$0xff] }
 0x469   :  { %11488 = vmatpush3.msra.mxu1 %v12783_v32  ;;  %v1099_v9 = vsel %vm17359_vm12, %v1095_v62, 0.0  ;;  %v1102_v39 = vadd.f32 %v1098_v29, %v14195_v36  ;;  %v14384_v36 = vpop.eup %12773  ;;  %v12793_v32 = vld [vmem:[#allocation8 + $0x8] sm:$0xff] }
 0x46a   :  { %11489 = vmatprep.subr.mxu1 %v17307_v51  ;;  %v1103_v7 = vadd.f32 %v1099_v9, %v14197_v19  ;;  %17368 = vst [vmem:[#allocation50_spill] sm:$0xff] %v14384_v36  ;;  %v12794_v9 = vld [vmem:[#allocation8] sm:$0xff] }
 0x46b   :  { %v1107_v20 = vpop.permute.xlu0 %1106  ;;  %11490 = vmatpush3.msra.mxu1 %v12784_v34 }
 0x46c   :  { %v1111_v27 = vpop.permute.xlu1 %1110  ;;  %v1113_v45 = vsel %vm17356_vm1, %v1107_v20, 0.0  ;;  %11491 = vmatprep.subr.mxu1 %v17307_v51  ;;  %v12792_v20 = vld [vmem:[#allocation8 + $0x10] sm:$0xff] }
 0x46d   :  { %v1117_v58 = vadd.f32 %v1113_v45, %v1101_v0  ;;  %v1115_v35 = vsel %vm17363_vm14, %v1111_v27, 0.0  ;;  %11492 = vmatpush3.msra.mxu1 %v12785_v49  ;;  %v12791_v0 = vld [vmem:[#allocation8 + $0x18] sm:$0xff] }
 0x46e   :  { %11493 = vmatprep.subr.mxu1 %v17307_v51  ;;  %v1119_v30 = vadd.f32 %v1115_v35, %v1103_v7 }
 0x46f   :  { %v1229_v23 = vmul.f32 %v14361_v53, %v1117_v58  ;;  %v1109_v15 = vpop.permute.xlu0 %1108  ;;  %11494 = vmatpush3.msra.mxu1 %v12786_v63 }
 0x470   :  { %v1114_v11 = vsel %vm17361_vm8, %v1109_v15, 0.0  ;;  %11495 = vmatprep.subr.mxu1 %v17307_v51  ;;  %v1231_v40 = vmul.f32 %v14384_v36, %v1119_v30 }
 0x471   :  { %v1118_v61 = vadd.f32 %v1114_v11, %v1102_v39  ;;  %v1232_v19 = vadd.f32 %v1229_v23, %v1228_v43  ;;  %11496 = vmatpush3.msra.mxu1 %v12787_v12 }
 0x472   :  { %11497 = vmatprep.subr.mxu1 %v17307_v51 }
 0x473   :  { %v1230_v4 = vmul.f32 %v14378_v10, %v1118_v61  ;;  %11498 = vmatpush3.msra.mxu1 %v12788_v5 }
 0x474   :  { %11499 = vmatprep.subr.mxu1 %v17307_v51 }
 0x475   :  { %v1233_v2 = vadd.f32 %v1232_v19, %v1230_v4  ;;  %11500 = vmatpush3.msra.mxu1 %v12789_v37 }
 0x476   :  { %11501 = vmatprep.subr.mxu1 %v17307_v51 }
 0x477   :  { %v1234_v62 = vadd.f32 %v1233_v2, %v1231_v40  ;;  %11502 = vmatpush3.msra.mxu1 %v12790_v54 }
 0x478   :  { %11503 = vmatprep.subr.mxu1 %v17307_v51 }
 0x479   :  { %v1235_v59 = vrot.slane %v1234_v62, 4  ;;  %11504 = vmatpush3.msra.mxu1 %v12791_v0 }
 0x47a   :  { %11505 = vmatprep.subr.mxu1 %v17307_v51 }
 0x47b   :  { %v1236_v28 = vadd.f32 %v1235_v59, %v1234_v62  ;;  %11506 = vmatpush3.msra.mxu1 %v12792_v20 }
 0x47c   :  { %11507 = vmatprep.subr.mxu1 %v17307_v51 }
 0x47d   :  { %v1237_v25 = vrot.slane %v1236_v28, 2  ;;  %11508 = vmatpush3.msra.mxu1 %v12793_v32 }
 0x47e   :  { %11509 = vmatprep.subr.mxu1 %v17307_v51 }
 0x47f   :  { %v1238_v27 = vadd.f32 %v1237_v25, %v1236_v28  ;;  %11510 = vmatpush3.msra.mxu1 %v12794_v9 }
 0x481   :  { %v1239_v29 = vrot.slane %v1238_v27, 1 }
 0x483   :  { %v1240_v45 = vadd.f32 %v1239_v29, %v1238_v27 }
 0x485   :  { %v1241_v26 = vmul.f32 0.03125, %v1240_v45 }
 0x487   :  { %11477 = vmatmul.mubr.f32.vlgmr.msra.gmra.mxu0 %v1241_v26 }
 0x520   :  { %v1042_v58 = vpop.f32.mrf.mxu1 }
 0x522   :  { %v11443_v34 = vpop.f32.mrf.mxu1 }
 0x547   :  { %v1308_v35 = vpop.f32.mrf.mxu0 }
 0x548   :  { %v1315_v39 = vrot.slane %v1308_v35, %v13672_v6 }
 0x549   :  { %v11478_v7 = vpop.f32.mrf.mxu0 }
 0x54a   :  { %v1316_v15 = vsub.f32 %v1228_v43, %v1315_v39  ;;  %v1317_v49 = vsub.f32 %v1229_v23, %v1315_v39  ;;  %v1318_v11 = vsub.f32 %v1230_v4, %v1315_v39  ;;  %v1319_v30 = vsub.f32 %v1231_v40, %v1315_v39 }
 0x54c   :  { %v1320_v61 = vmul.f32 %v1316_v15, %v1316_v15  ;;  %v1321_v63 = vmul.f32 %v1317_v49, %v1317_v49  ;;  %v1322_v19 = vmul.f32 %v1318_v11, %v1318_v11  ;;  %v1323_v2 = vmul.f32 %v1319_v30, %v1319_v30 }
 0x54e   :  { %v1324_v12 = vadd.f32 %v1321_v63, %v1320_v61 }
 0x550   :  { %v1325_v5 = vadd.f32 %v1324_v12, %v1322_v19 }
 0x552   :  { %v1326_v62 = vadd.f32 %v1325_v5, %v1323_v2 }
 0x554   :  { %v1327_v37 = vrot.slane %v1326_v62, 4 }
 0x556   :  { %v1328_v59 = vadd.f32 %v1327_v37, %v1326_v62 }
 0x558   :  { %v1329_v54 = vrot.slane %v1328_v59, 2 }
 0x55a   :  { %v1330_v28 = vadd.f32 %v1329_v54, %v1328_v59 }
 0x55c   :  { %v1331_v0 = vrot.slane %v1330_v28, 1 }
 0x55e   :  { %v1332_v25 = vadd.f32 %v1331_v0, %v1330_v28 }
 0x560   :  { %v1333_v20 = vmul.f32 0.03125, %v1332_v25 }
 0x562   :  { %11512 = vmatmul.mubr.f32.vlgmr.msra.gmra.mxu1 %v1333_v20 }
 0x563   :  { %13406 = shalt.err (!%p13403_p1)  }
 0x564   :  { %106 = dma.hbm_to_vmem [thread:$0]  %s17049_s7, 49152, %s104_s23, [#allocation3]  ;;  %v1046_v23 = vadd.f32 1e-05, %v1042_v58 }
 0x566   :  { %12775 = vrsqrt.f32 %v1046_v23 }
 0x573   :  { %v12776_v27 = vpop.eup %12775 }
 0x574   :  { %v1051_v32 = vrot.slane %v12776_v27, %v13672_v6 }
 0x576   :  { %v1052_v45 = vmul.f32 %v1051_v32, %v14215_v52  ;;  %v1053_v26 = vmul.f32 %v1051_v32, %v14218_v21  ;;  %v1054_v34 = vmul.f32 %v1051_v32, %v14221_v48  ;;  %v1055_v35 = vmul.f32 %v1051_v32, %v14232_v8 }
 0x622   :  { %v1400_v43 = vpop.f32.mrf.mxu1 }
 0x623   :  { %v1404_v4 = vadd.f32 1e-05, %v1400_v43 }
 0x624   :  { %v11513_v40 = vpop.f32.mrf.mxu1 }
 0x625   :  { %12777 = vrsqrt.f32 %v1404_v4 }
 0x632   :  { %v12778_v29 = vpop.eup %12777 }
 0x633   :  { %v1409_v9 = vrot.slane %v12778_v29, %v13672_v6 }
 0x635   :  { %v1410_v58 = vmul.f32 %v1409_v9, %v1316_v15  ;;  %v1411_v39 = vmul.f32 %v1409_v9, %v1317_v49  ;;  %v1412_v7 = vmul.f32 %v1409_v9, %v1318_v11  ;;  %v1413_v61 = vmul.f32 %v1409_v9, %v1319_v30 }
 0x637   :  { %v14406_v63 = vadd.f32 %v1410_v58, %v1052_v45  ;;  %v14408_v19 = vadd.f32 %v1411_v39, %v1053_v26  ;;  %v14410_v12 = vadd.f32 %v1412_v7, %v1054_v34  ;;  %v14412_v2 = vadd.f32 %v1413_v61, %v1055_v35 }
 0x639   :  { %1418 = vst [vmem:[%s17050_s8] sm:$0xff] %v14406_v63  ;;  %1419 = vst [vmem:[%s17050_s8 + $0x8] sm:$0xff] %v14408_v19 }
 0x63a   :  { %1420 = vst [vmem:[%s17050_s8 + $0x10] sm:$0xff] %v14410_v12  ;;  %1421 = vst [vmem:[%s17050_s8 + $0x18] sm:$0xff] %v14412_v2 }
 0x63b   :  { %13413 = dma.done.wait [#allocation3], 49152 }
 0x63c   :  { %13414 = vsyncadd [#allocation3], 4294918144  ;;  %1684 = vmatprep.mubr.bf16.mxu0 %v14125_v24  ;;  %v14433_v52 = vpack.c.bf16 %v14143_v56, %v14137_v42  ;;  %v17370_v21 = vmov 0  ;;  %v12795_v48 = vld [vmem:[#allocation2 + $0x78] sm:$0xff]   ;;  %v12798_v49 = vld [vmem:[#allocation2 + $0x70] sm:$0xff]   ;;  %vm17373_vm8 = vnez %v17272_v50  ;;  %v17374_v29 = vmov 0 }
 0x63d   :  { %vm14439_vm14 = vmpackc.low %vm17354_vm3, %vm17349_vm5  ;;  %v12796_v8 = vld [vmem:[#allocation2 + $0xb8] sm:$0xff]   ;;  %10094 = vmatprep.subr.bf16.mxu0 %v12795_v48  ;;  %v12799_v42 = vld [vmem:[#allocation2 + $0xb0] sm:$0xff]   ;;  %v17377_v9 = vmov 0  ;;  %v14464_v26 = vpack.c.bf16 %v14120_v22, %v14165_v33  ;;  %v14468_v34 = vpack.c.bf16 %v14173_v47, %v14169_v31  ;;  %v17384_v39 = vmov 0 }
 0x63e   :  { %17369 = vst [vmem:[#allocation51_spill] sm:$0xff] %v14433_v52  ;;  %v17371_v21 = vsel %vm14439_vm14, 4294967295, %v17370_v21  ;;  %11530 = vmatprep.mubr.msk.bf16.mxu1 %vm14439_vm14, %v14433_v52  ;;  %v12797_v15 = vld [vmem:[#allocation2 + $0x38] sm:$0xff]   ;;  %11514 = vmatprep.subr.bf16.mxu1 %v12796_v8  ;;  %v12800_v56 = vld [vmem:[#allocation2 + $0x30] sm:$0xff]   ;;  %v12801_v11 = vld [vmem:[#allocation2 + $0x68] sm:$0xff]  }
 0x63f   :  { %17372 = vst [vmem:[#allocation52_spill] sm:$0xff] %v17371_v21  ;;  %10095 = vmatpush3.bf16.msra.mxu0 %v12797_v15  ;;  %11515 = vmatpush3.bf16.msra.mxu1 %v12796_v8  ;;  %v12802_v30 = vld [vmem:[#allocation2 + $0xa8] sm:$0xff]   ;;  %v12804_v62 = vld [vmem:[#allocation2 + $0x60] sm:$0xff]   ;;  %v12807_v54 = vld [vmem:[#allocation2 + $0x58] sm:$0xff]  }
 0x640   :  { %10096 = vmatprep.subr.bf16.mxu0 %v12798_v49  ;;  %11516 = vmatprep.subr.bf16.mxu1 %v12799_v42  ;;  %v12803_v5 = vld [vmem:[#allocation2 + $0x28] sm:$0xff]   ;;  %v12805_v37 = vld [vmem:[#allocation2 + $0xa0] sm:$0xff]   ;;  %v12808_v28 = vld [vmem:[#allocation2 + $0x98] sm:$0xff]   ;;  %17380 = vst [vmem:[#allocation55_spill] sm:$0xff] %v14464_v26 }
 0x641   :  { %v12806_v59 = vld [vmem:[#allocation2 + $0x20] sm:$0xff]   ;;  %v12809_v0 = vld [vmem:[#allocation2 + $0x18] sm:$0xff]   ;;  %v12810_v25 = vld [vmem:[#allocation2 + $0x50] sm:$0xff]   ;;  %17381 = vst [vmem:[#allocation56_spill] sm:$0xff] %v14468_v34 }
 0x642   :  { %v12811_v20 = vld [vmem:[#allocation2 + $0x90] sm:$0xff]   ;;  %v12813_v43 = vld [vmem:[#allocation2 + $0x48] sm:$0xff]   ;;  %v12816_v27 = vld [vmem:[#allocation2 + $0x40] sm:$0xff]  }
 0x643   :  { %10097 = vmatpush3.bf16.msra.mxu0 %v12800_v56  ;;  %11517 = vmatpush3.bf16.msra.mxu1 %v12799_v42  ;;  %v12812_v23 = vld [vmem:[#allocation2 + $0x10] sm:$0xff]   ;;  %v12814_v4 = vld [vmem:[#allocation2 + $0x88] sm:$0xff]   ;;  %v12817_v32 = vld [vmem:[#allocation2 + $0x80] sm:$0xff]  }
 0x644   :  { %10098 = vmatprep.subr.bf16.mxu0 %v12801_v11  ;;  %11518 = vmatprep.subr.bf16.mxu1 %v12802_v30  ;;  %v12815_v40 = vld [vmem:[#allocation2 + $0x8] sm:$0xff]   ;;  %vm14450_vm12 = vmpackc.low %vm17373_vm8, %vm17348_vm9  ;;  %v12818_v45 = vld [vmem:[#allocation2] sm:$0xff]  }
 0x645   :  { %v17375_v29 = vsel %vm14450_vm12, 4294967295, %v17374_v29  ;;  %vm14458_vm1 = vmpackc.low %vm17362_vm7, %vm17360_vm10  ;;  %v17382_v35 = vld [vmem:[#allocation29_spill] sm:$0xff]  ;;  %v17383_v58 = vld [vmem:[#allocation30_spill] sm:$0xff] }
 0x646   :  { %17376 = vst [vmem:[#allocation53_spill] sm:$0xff] %v17375_v29  ;;  %v17378_v9 = vsel %vm14458_vm1, 4294967295, %v17377_v9  ;;  %vm14474_vm13 = vmpackc.low %vm17357_vm15, %vm17333_vm4  ;;  %v17387_v47 = vld [vmem:[#allocation45_spill] sm:$0xff]  ;;  %v17388_v22 = vld [vmem:[#allocation44_spill] sm:$0xff] }
 0x647   :  { %10099 = vmatpush3.bf16.msra.mxu0 %v12803_v5  ;;  %11519 = vmatpush3.bf16.msra.mxu1 %v12802_v30  ;;  %17379 = vst [vmem:[#allocation54_spill] sm:$0xff] %v17378_v9  ;;  %v17385_v39 = vsel %vm14474_vm13, 4294967295, %v17384_v39  ;;  %v17389_v33 = vld [vmem:[#allocation46_spill] sm:$0xff]  ;;  %v1775_v7 = vld [vmem:[#allocation8 + $0x78] sm:$0xff]  ;;  %v1773_v48 = vld [vmem:[#allocation8 + $0x68] sm:$0xff] }
 0x648   :  { %10100 = vmatprep.subr.bf16.mxu0 %v12804_v62  ;;  %11520 = vmatprep.subr.bf16.mxu1 %v12805_v37  ;;  %17386 = vst [vmem:[#allocation29_spill] sm:$0xff] %v17385_v39  ;;  %v14491_v31 = vpack.c.bf16 %v17389_v33, %v17388_v22  ;;  %v1774_v61 = vld [vmem:[#allocation8 + $0x70] sm:$0xff]  ;;  %v1772_v8 = vld [vmem:[#allocation8 + $0x60] sm:$0xff]  ;;  %v1771_v15 = vld [vmem:[#allocation8 + $0x58] sm:$0xff] }
 0x649   :  { %v1770_v49 = vld [vmem:[#allocation8 + $0x50] sm:$0xff]  ;;  %v1769_v42 = vld [vmem:[#allocation8 + $0x48] sm:$0xff]  ;;  %v1768_v56 = vld [vmem:[#allocation8 + $0x40] sm:$0xff] }
 0x64a   :  { %17390 = vst [vmem:[#allocation30_spill] sm:$0xff] %v14491_v31  ;;  %v1767_v11 = vld [vmem:[#allocation8 + $0x38] sm:$0xff]  ;;  %v1766_v30 = vld [vmem:[#allocation8 + $0x30] sm:$0xff]  ;;  %v1765_v5 = vld [vmem:[#allocation8 + $0x28] sm:$0xff] }
 0x64b   :  { %10101 = vmatpush3.bf16.msra.mxu0 %v12806_v59  ;;  %11521 = vmatpush3.bf16.msra.mxu1 %v12805_v37  ;;  %v1764_v62 = vld [vmem:[#allocation8 + $0x20] sm:$0xff]  ;;  %v1763_v37 = vld [vmem:[#allocation8 + $0x18] sm:$0xff]  ;;  %v1762_v59 = vld [vmem:[#allocation8 + $0x10] sm:$0xff] }
 0x64c   :  { %10102 = vmatprep.subr.bf16.mxu0 %v12807_v54  ;;  %11522 = vmatprep.subr.bf16.mxu1 %v12808_v28  ;;  %v1761_v54 = vld [vmem:[#allocation8 + $0x8] sm:$0xff]  ;;  %v12861_v38 = vld [vmem:[#allocation2 + $0x2b8] sm:$0xff]   ;;  %v17408_v46 = vld [vmem:[#allocation24_spill] sm:$0xff] }
 0x64d   :  { %v2474_v44 = vadd.s32 4294967294, %v17408_v46  ;;  %v12879_v24 = vld [vmem:[#allocation2 + $0x288] sm:$0xff]  }
 0x64f   :  { %10103 = vmatpush3.bf16.msra.mxu0 %v12809_v0  ;;  %11523 = vmatpush3.bf16.msra.mxu1 %v12808_v28  ;;  %v1760_v28 = vld [vmem:[#allocation8] sm:$0xff] }
 0x650   :  { %10104 = vmatprep.subr.bf16.mxu0 %v12810_v25  ;;  %11524 = vmatprep.subr.bf16.mxu1 %v12811_v20 }
 0x653   :  { %10105 = vmatpush3.bf16.msra.mxu0 %v12812_v23  ;;  %11525 = vmatpush3.bf16.msra.mxu1 %v12811_v20 }
 0x654   :  { %10106 = vmatprep.subr.bf16.mxu0 %v12813_v43  ;;  %11526 = vmatprep.subr.bf16.mxu1 %v12814_v4 }
 0x657   :  { %10107 = vmatpush3.bf16.msra.mxu0 %v12815_v40  ;;  %11527 = vmatpush3.bf16.msra.mxu1 %v12814_v4 }
 0x658   :  { %10108 = vmatprep.subr.bf16.mxu0 %v12816_v27  ;;  %11528 = vmatprep.subr.bf16.mxu1 %v12817_v32 }
 0x65b   :  { %10109 = vmatpush3.bf16.msra.mxu0 %v12818_v45  ;;  %11529 = vmatpush3.bf16.msra.mxu1 %v12817_v32 }
 0x65c   :  { %11534 = vmatprep.subr.mxu0 %v17307_v51  ;;  %11569 = vmatprep.subr.mxu1 %v17307_v51 }
 0x65e   :  { %9351 = vmatmul.mubr.msk.bf16.vlgmr.msra.gmra.mxu0 %vm14450_vm12, %v14464_v26  ;;  %11531 = vmatmul.mubr.msk.bf16.vlgmr.msra.gmra.mxu1 %vm14458_vm1, %v14468_v34 }
 0x65f   :  { %1692 = vmatprep.mubr.bf16.mxu0 %v17387_v47  ;;  %11601 = vmatprep.mubr.msk.f32.mxu1 %vm17364_vm6, %v17307_v51 }
 0x660   :  { %11535 = vmatpush3.msra.mxu0 %v1775_v7  ;;  %11570 = vmatpush3.msra.mxu1 %v1775_v7 }
 0x661   :  { %11536 = vmatprep.subr.mxu0 %v17307_v51  ;;  %11571 = vmatprep.subr.mxu1 %v17307_v51 }
 0x662   :  { %11537 = vmatpush3.msra.mxu0 %v1774_v61  ;;  %11572 = vmatpush3.msra.mxu1 %v1774_v61 }
 0x663   :  { %11538 = vmatprep.subr.mxu0 %v17307_v51  ;;  %11573 = vmatprep.subr.mxu1 %v17307_v51 }
 0x664   :  { %11539 = vmatpush3.msra.mxu0 %v1773_v48  ;;  %11574 = vmatpush3.msra.mxu1 %v1773_v48 }
 0x665   :  { %11540 = vmatprep.subr.mxu0 %v17307_v51  ;;  %11575 = vmatprep.subr.mxu1 %v17307_v51 }
 0x666   :  { %9354 = vmatmul.mubr.msk.bf16.gmra.mxu0 %vm14474_vm13, %v14491_v31  ;;  %11576 = vmatpush3.msra.mxu1 %v1772_v8 }
 0x667   :  { %11566 = vmatprep.mubr.msk.f32.mxu0 %vm17364_vm6, %v17307_v51  ;;  %11541 = vmatpush3.msra.mxu0 %v1772_v8 }
 0x668   :  { %11542 = vmatprep.subr.mxu0 %v17307_v51  ;;  %11577 = vmatprep.subr.mxu1 %v17307_v51 }
 0x669   :  { %11543 = vmatpush3.msra.mxu0 %v1771_v15  ;;  %11578 = vmatpush3.msra.mxu1 %v1771_v15 }
 0x66a   :  { %11544 = vmatprep.subr.mxu0 %v17307_v51  ;;  %11579 = vmatprep.subr.mxu1 %v17307_v51 }
 0x66b   :  { %11545 = vmatpush3.msra.mxu0 %v1770_v49  ;;  %11580 = vmatpush3.msra.mxu1 %v1770_v49 }
 0x66c   :  { %11546 = vmatprep.subr.mxu0 %v17307_v51  ;;  %11581 = vmatprep.subr.mxu1 %v17307_v51 }
 0x66d   :  { %11547 = vmatpush3.msra.mxu0 %v1769_v42  ;;  %11582 = vmatpush3.msra.mxu1 %v1769_v42 }
 0x66e   :  { %11548 = vmatprep.subr.mxu0 %v17307_v51  ;;  %11583 = vmatprep.subr.mxu1 %v17307_v51 }
 0x66f   :  { %11549 = vmatpush3.msra.mxu0 %v1768_v56  ;;  %11584 = vmatpush3.msra.mxu1 %v1768_v56 }
 0x670   :  { %11550 = vmatprep.subr.mxu0 %v17307_v51  ;;  %11585 = vmatprep.subr.mxu1 %v17307_v51 }
 0x671   :  { %11551 = vmatpush3.msra.mxu0 %v1767_v11  ;;  %11586 = vmatpush3.msra.mxu1 %v1767_v11 }
 0x672   :  { %11552 = vmatprep.subr.mxu0 %v17307_v51  ;;  %11587 = vmatprep.subr.mxu1 %v17307_v51 }
 0x673   :  { %11553 = vmatpush3.msra.mxu0 %v1766_v30  ;;  %11588 = vmatpush3.msra.mxu1 %v1766_v30 }
 0x674   :  { %11554 = vmatprep.subr.mxu0 %v17307_v51  ;;  %11589 = vmatprep.subr.mxu1 %v17307_v51 }
 0x675   :  { %11555 = vmatpush3.msra.mxu0 %v1765_v5  ;;  %11590 = vmatpush3.msra.mxu1 %v1765_v5 }
 0x676   :  { %11556 = vmatprep.subr.mxu0 %v17307_v51  ;;  %11591 = vmatprep.subr.mxu1 %v17307_v51 }
 0x677   :  { %11557 = vmatpush3.msra.mxu0 %v1764_v62  ;;  %11592 = vmatpush3.msra.mxu1 %v1764_v62 }
 0x678   :  { %11558 = vmatprep.subr.mxu0 %v17307_v51  ;;  %11593 = vmatprep.subr.mxu1 %v17307_v51 }
 0x679   :  { %11559 = vmatpush3.msra.mxu0 %v1763_v37  ;;  %11594 = vmatpush3.msra.mxu1 %v1763_v37 }
 0x67a   :  { %11560 = vmatprep.subr.mxu0 %v17307_v51  ;;  %11595 = vmatprep.subr.mxu1 %v17307_v51 }
 0x67b   :  { %11561 = vmatpush3.msra.mxu0 %v1762_v59  ;;  %11596 = vmatpush3.msra.mxu1 %v1762_v59 }
 0x67c   :  { %11562 = vmatprep.subr.mxu0 %v17307_v51  ;;  %11597 = vmatprep.subr.mxu1 %v17307_v51 }
 0x67d   :  { %11563 = vmatpush3.msra.mxu0 %v1761_v54  ;;  %11598 = vmatpush3.msra.mxu1 %v1761_v54 }
 0x67e   :  { %11564 = vmatprep.subr.mxu0 %v17307_v51  ;;  %11599 = vmatprep.subr.mxu1 %v17307_v51 }
 0x67f   :  { %11565 = vmatpush3.msra.mxu0 %v1760_v28  ;;  %11600 = vmatpush3.msra.mxu1 %v1760_v28 }
 0x71e   :  { %v10110_v0 = vpop.f32.mrf.mxu0  ;;  %v11532_v25 = vpop.f32.mrf.mxu1 }
 0x720   :  { %v10111_v20 = vpop.f32.mrf.mxu0  ;;  %v1735_v23 = vpop.f32.mrf.mxu1 }
 0x721   :  { %v10112_v45 = vadd.f32 %v10111_v20, %v10110_v0  ;;  %v12819_v20 = vld [vmem:[#allocation2 + $0x138] sm:$0xff]  }
 0x722   :  { %v10113_v43 = vpop.f32.mrf.mxu0  ;;  %v11533_v4 = vpop.f32.mrf.mxu1  ;;  %10166 = vmatprep.subr.bf16.mxu0 %v12819_v20  ;;  %v12826_v20 = vld [vmem:[#allocation2 + $0xe8] sm:$0xff]  }
 0x723   :  { %v1736_v8 = vadd.f32 %v10112_v45, %v1735_v23 }
 0x724   :  { %v10114_v40 = vpop.f32.mrf.mxu0  ;;  %v1738_v22 = vpop.f32.mrf.mxu1 }
 0x725   :  { %v10115_v27 = vadd.f32 %v10114_v40, %v10113_v43  ;;  %v12820_v40 = vld [vmem:[#allocation2 + $0xf8] sm:$0xff]  }
 0x726   :  { %v10116_v32 = vpop.f32.mrf.mxu0 }
 0x727   :  { %v1739_v7 = vadd.f32 %v10115_v27, %v1738_v22  ;;  %v12821_v27 = vld [vmem:[#allocation2 + $0x178] sm:$0xff]  }
 0x728   :  { %v10117_v33 = vpop.f32.mrf.mxu0  ;;  %11604 = vmatprep.subr.bf16.mxu1 %v12821_v27 }
 0x729   :  { %v10118_v61 = vadd.f32 %v10117_v33, %v10116_v32  ;;  %v1750_v42 = vadd.f32 %v1739_v7, %v1736_v8 }
 0x72a   :  { %v10119_v48 = vpop.f32.mrf.mxu0 }
 0x72b   :  { %v1744_v15 = vadd.f32 %v11532_v25, %v10118_v61 }
 0x72c   :  { %v10120_v49 = vpop.f32.mrf.mxu0 }
 0x72d   :  { %v10121_v56 = vadd.f32 %v10120_v49, %v10119_v48  ;;  %v1751_v11 = vadd.f32 %v1750_v42, %v1744_v15 }
 0x72f   :  { %v1747_v30 = vadd.f32 %v11533_v4, %v10121_v56 }
 0x731   :  { %v1752_v5 = vadd.f32 %v1751_v11, %v1747_v30 }
 0x733   :  { %v1753_v62 = vrot.slane %v1752_v5, 4 }
 0x735   :  { %v1754_v37 = vadd.f32 %v1753_v62, %v1752_v5 }
 0x737   :  { %v1755_v59 = vrot.slane %v1754_v37, 2 }
 0x739   :  { %v1756_v54 = vadd.f32 %v1755_v59, %v1754_v37 }
 0x73b   :  { %v1757_v28 = vrot.slane %v1756_v54, 1 }
 0x73d   :  { %v1758_v43 = vadd.f32 %v1757_v28, %v1756_v54  ;;  %v12822_v54 = vld [vmem:[#allocation2 + $0x130] sm:$0xff]  }
 0x73e   :  { %v12823_v28 = vld [vmem:[#allocation2 + $0xf0] sm:$0xff]  }
 0x73f   :  { %v1759_v0 = vmul.f32 0.03125, %v1758_v43  ;;  %v12824_v43 = vld [vmem:[#allocation2 + $0x170] sm:$0xff]  }
 0x741   :  { %11567 = vmatmul.mubr.f32.vlgmr.msra.gmra.mxu0 %v1759_v0  ;;  %v12825_v0 = vld [vmem:[#allocation2 + $0x128] sm:$0xff]  }
 0x742   :  { %10167 = vmatpush3.bf16.msra.mxu0 %v12820_v40  ;;  %v12827_v40 = vld [vmem:[#allocation2 + $0x168] sm:$0xff]  }
 0x743   :  { %10168 = vmatprep.subr.bf16.mxu0 %v12822_v54 }
 0x746   :  { %10169 = vmatpush3.bf16.msra.mxu0 %v12823_v28 }
 0x747   :  { %10170 = vmatprep.subr.bf16.mxu0 %v12825_v0 }
 0x74a   :  { %10171 = vmatpush3.bf16.msra.mxu0 %v12826_v20 }
 0x801   :  { %v1842_v25 = vpop.f32.mrf.mxu0 }
 0x802   :  { %v1849_v23 = vrot.slane %v1842_v25, %v13672_v6  ;;  %v12828_v25 = vld [vmem:[#allocation2 + $0x120] sm:$0xff]  }
 0x803   :  { %v11568_v32 = vpop.f32.mrf.mxu0  ;;  %10172 = vmatprep.subr.bf16.mxu0 %v12828_v25 }
 0x804   :  { %v14529_v4 = vsub.f32 %v1736_v8, %v1849_v23  ;;  %v14531_v45 = vsub.f32 %v1739_v7, %v1849_v23  ;;  %v14533_v22 = vsub.f32 %v1744_v15, %v1849_v23  ;;  %v14535_v33 = vsub.f32 %v1747_v30, %v1849_v23  ;;  %v12829_v23 = vld [vmem:[#allocation2 + $0xe0] sm:$0xff]  }
 0x805   :  { %v12830_v32 = vld [vmem:[#allocation2 + $0x160] sm:$0xff]   ;;  %10173 = vmatpush3.bf16.msra.mxu0 %v12829_v23 }
 0x806   :  { %v1854_v61 = vmul.f32 %v14529_v4, %v14529_v4  ;;  %v1855_v48 = vmul.f32 %v14531_v45, %v14531_v45  ;;  %v1856_v49 = vmul.f32 %v14533_v22, %v14533_v22  ;;  %v1857_v8 = vmul.f32 %v14535_v33, %v14535_v33 }
 0x808   :  { %v1858_v42 = vadd.f32 %v1855_v48, %v1854_v61  ;;  %v12832_v61 = vld [vmem:[#allocation2 + $0xd8] sm:$0xff]  }
 0x809   :  { %v12833_v48 = vld [vmem:[#allocation2 + $0x158] sm:$0xff]  }
 0x80a   :  { %v1859_v56 = vadd.f32 %v1858_v42, %v1856_v49  ;;  %v12834_v49 = vld [vmem:[#allocation2 + $0x110] sm:$0xff]  }
 0x80b   :  { %v12835_v42 = vld [vmem:[#allocation2 + $0xd0] sm:$0xff]  }
 0x80c   :  { %v1860_v7 = vadd.f32 %v1859_v56, %v1857_v8  ;;  %v12836_v8 = vld [vmem:[#allocation2 + $0x150] sm:$0xff]   ;;  %v12837_v56 = vld [vmem:[#allocation2 + $0x108] sm:$0xff]  }
 0x80e   :  { %v1861_v11 = vrot.slane %v1860_v7, 4 }
 0x810   :  { %v1862_v15 = vadd.f32 %v1861_v11, %v1860_v7  ;;  %v12838_v7 = vld [vmem:[#allocation2 + $0xc8] sm:$0xff]  }
 0x811   :  { %v12839_v11 = vld [vmem:[#allocation2 + $0x148] sm:$0xff]  }
 0x812   :  { %v1863_v5 = vrot.slane %v1862_v15, 2 }
 0x814   :  { %v1864_v30 = vadd.f32 %v1863_v5, %v1862_v15  ;;  %v12840_v15 = vld [vmem:[#allocation2 + $0x100] sm:$0xff]  }
 0x815   :  { %v12841_v5 = vld [vmem:[#allocation2 + $0xc0] sm:$0xff]  }
 0x816   :  { %v1865_v62 = vrot.slane %v1864_v30, 1 }
 0x818   :  { %v1866_v37 = vadd.f32 %v1865_v62, %v1864_v30  ;;  %v12842_v30 = vld [vmem:[#allocation2 + $0x140] sm:$0xff]  }
 0x81a   :  { %v1867_v59 = vmul.f32 0.03125, %v1866_v37 }
 0x81c   :  { %11602 = vmatmul.mubr.f32.vlgmr.msra.gmra.mxu1 %v1867_v59 }
 0x81d   :  { %11605 = vmatpush3.bf16.msra.mxu1 %v12821_v27  ;;  %v12831_v27 = vld [vmem:[#allocation2 + $0x118] sm:$0xff]  }
 0x81e   :  { %11606 = vmatprep.subr.bf16.mxu1 %v12824_v43  ;;  %10174 = vmatprep.subr.bf16.mxu0 %v12831_v27 }
 0x81f   :  { %10175 = vmatpush3.bf16.msra.mxu0 %v12832_v61 }
 0x820   :  { %10176 = vmatprep.subr.bf16.mxu0 %v12834_v49 }
 0x821   :  { %11607 = vmatpush3.bf16.msra.mxu1 %v12824_v43 }
 0x822   :  { %11608 = vmatprep.subr.bf16.mxu1 %v12827_v40 }
 0x823   :  { %10177 = vmatpush3.bf16.msra.mxu0 %v12835_v42 }
 0x824   :  { %10178 = vmatprep.subr.bf16.mxu0 %v12837_v56 }
 0x825   :  { %11609 = vmatpush3.bf16.msra.mxu1 %v12827_v40 }
 0x826   :  { %11610 = vmatprep.subr.bf16.mxu1 %v12830_v32 }
 0x827   :  { %10179 = vmatpush3.bf16.msra.mxu0 %v12838_v7 }
 0x828   :  { %10180 = vmatprep.subr.bf16.mxu0 %v12840_v15 }
 0x829   :  { %11611 = vmatpush3.bf16.msra.mxu1 %v12830_v32 }
 0x82a   :  { %11612 = vmatprep.subr.bf16.mxu1 %v12833_v48 }
 0x82b   :  { %10181 = vmatpush3.bf16.msra.mxu0 %v12841_v5 }
 0x82c   :  { %11624 = vmatprep.subr.mxu0 %v17307_v51 }
 0x82d   :  { %11613 = vmatpush3.bf16.msra.mxu1 %v12833_v48 }
 0x82e   :  { %11614 = vmatprep.subr.bf16.mxu1 %v12836_v8 }
 0x831   :  { %11615 = vmatpush3.bf16.msra.mxu1 %v12836_v8 }
 0x832   :  { %11616 = vmatprep.subr.bf16.mxu1 %v12839_v11 }
 0x835   :  { %11617 = vmatpush3.bf16.msra.mxu1 %v12839_v11 }
 0x836   :  { %11618 = vmatprep.subr.bf16.mxu1 %v12842_v30 }
 0x839   :  { %11619 = vmatpush3.bf16.msra.mxu1 %v12842_v30 }
 0x83a   :  { %11659 = vmatprep.subr.mxu1 %v17307_v51 }
 0x8dc   :  { %v1934_v62 = vpop.f32.mrf.mxu1 }
 0x8dd   :  { %v1938_v37 = vadd.f32 1e-05, %v1934_v62 }
 0x8de   :  { %v11603_v59 = vpop.f32.mrf.mxu1 }
 0x8df   :  { %13179 = vrsqrt.f32 %v1938_v37 }
 0x8ec   :  { %v13180_v54 = vpop.eup %13179 }
 0x8ed   :  { %v1943_v28 = vrot.slane %v13180_v54, %v13672_v6 }
 0x8ef   :  { %v1946_v43 = vmul.f32 %v1943_v28, %v14533_v22  ;;  %v1947_v0 = vmul.f32 %v1943_v28, %v14535_v33  ;;  %v1944_v20 = vmul.f32 %v1943_v28, %v14529_v4  ;;  %v1945_v40 = vmul.f32 %v1943_v28, %v14531_v45  ;;  %v17391_v22 = vld [vmem:[#allocation20_spill] sm:$0xff] }
 0x8f0   :  { %vm17392_vm11 = vcmp.lt.s32.totalorder %v17391_v22, 1  ;;  %vm17394_vm2 = vcmp.lt.s32.totalorder %v17391_v22, 7 }
 0x8f1   :  { %v1950_v25 = vmax.f32 %v1946_v43, 0.0  ;;  %v1951_v23 = vmax.f32 %v1947_v0, 0.0  ;;  %v1948_v32 = vmax.f32 %v1944_v20, 0.0  ;;  %v1949_v27 = vmax.f32 %v1945_v40, 0.0  ;;  %vm17393_vm0 = vmmov %vm17392_vm11  ;;  %v14570_v43 = vld [vmem:[#allocation8 + $0x78] sm:$0xff]  ;;  %v14579_v40 = vld [vmem:[#allocation8 + $0x70] sm:$0xff] }
 0x8f2   :  { %vm17395_vm7 = vmmov %vm17394_vm2 }
 0x8f3   :  { %v1952_v61 = vrot.slane %v1948_v32, 7  ;;  %v1953_v48 = vrot.slane %v1949_v27, 7  ;;  %v1977_v49 = vpack.c.bf16 %v1949_v27, %v1948_v32  ;;  %v1955_v42 = vrot.slane %v1951_v23, 7  ;;  %vm17396_vm15 = vmmov %vm17394_vm2 }
 0x8f4   :  { %v1964_v8 = vrot.slane %v1948_v32, 1  ;;  %v1965_v56 = vrot.slane %v1949_v27, 1  ;;  %v1966_v7 = vrot.slane %v1950_v25, 1  ;;  %v1967_v11 = vrot.slane %v1951_v23, 1  ;;  %vm17397_vm3 = vmmov %vm17394_vm2  ;;  %v14594_v32 = vld [vmem:[#allocation8 + $0x60] sm:$0xff]  ;;  %v14601_v27 = vld [vmem:[#allocation8 + $0x58] sm:$0xff] }
 0x8f5   :  { %2206 = vmatprep.mubr.bf16.mxu0 %v1977_v49  ;;  %v1958_v33 = vsel %vm17392_vm11, %v1952_v61, %v1953_v48  ;;  %v1959_v4 = vsel %vm17393_vm0, %v1955_v42, %v1952_v61  ;;  %v1980_v59 = vpack.c.bf16 %v1951_v23, %v1950_v25  ;;  %v1954_v54 = vrot.slane %v1950_v25, 7  ;;  %v14585_v23 = vld [vmem:[#allocation8 + $0x68] sm:$0xff]  ;;  %v14607_v61 = vld [vmem:[#allocation8 + $0x50] sm:$0xff]  ;;  %v14619_v49 = vld [vmem:[#allocation8 + $0x40] sm:$0xff] }
 0x8f6   :  { %v9386_v45 = vpack.c.bf16 %v1958_v33, %v1959_v4  ;;  %v1968_v15 = vsel %vm17394_vm2, %v1966_v7, %v1967_v11  ;;  %v1969_v5 = vsel %vm17395_vm7, %v1965_v56, %v1966_v7  ;;  %v1970_v30 = vsel %vm17396_vm15, %v1964_v8, %v1965_v56  ;;  %vm17398_vm2 = vmmov %vm17393_vm0  ;;  %v14637_v56 = vld [vmem:[#allocation8 + $0x28] sm:$0xff]  ;;  %v14643_v7 = vld [vmem:[#allocation8 + $0x20] sm:$0xff] }
 0x8f7   :  { %v1971_v62 = vsel %vm17397_vm3, %v1967_v11, %v1964_v8  ;;  %v9392_v37 = vpack.c.bf16 %v1969_v5, %v1970_v30  ;;  %v1956_v0 = vsel %vm17393_vm0, %v1954_v54, %v1955_v42  ;;  %v1957_v20 = vsel %vm17398_vm2, %v1953_v48, %v1954_v54  ;;  %v14613_v48 = vld [vmem:[#allocation8 + $0x48] sm:$0xff]  ;;  %v14625_v42 = vld [vmem:[#allocation8 + $0x38] sm:$0xff]  ;;  %v14631_v8 = vld [vmem:[#allocation8 + $0x30] sm:$0xff] }
 0x8f8   :  { %9387 = vmatmul.mubr.msk.bf16.vlgmr.msra.gmra.mxu0 %vm14450_vm12, %v9386_v45  ;;  %v9395_v28 = vpack.c.bf16 %v1971_v62, %v1968_v15  ;;  %v9389_v25 = vpack.c.bf16 %v1956_v0, %v1957_v20  ;;  %v14649_v11 = vld [vmem:[#allocation8 + $0x18] sm:$0xff]  ;;  %v14655_v33 = vld [vmem:[#allocation8 + $0x10] sm:$0xff]  ;;  %v14661_v4 = vld [vmem:[#allocation8 + $0x8] sm:$0xff]  ;;  %vm17161_vm15 = vcmp.lt.s32.totalorder %v17391_v22, 2 }
 0x8f9   :  { %11620 = vmatprep.mubr.msk.bf16.mxu1 %vm14439_vm14, %v9392_v37  ;;  %2214 = vmatprep.mubr.bf16.mxu0 %v1980_v59  ;;  %v14667_v45 = vld [vmem:[#allocation8] sm:$0xff]  ;;  %v12843_v15 = vld [vmem:[#allocation2 + $0x1f8] sm:$0xff]   ;;  %vm17400_vm3 = vmmov %vm17393_vm0 }
 0x8fa   :  { %11621 = vmatmul.mubr.msk.bf16.vlgmr.msra.gmra.mxu1 %vm14458_vm1, %v9395_v28  ;;  %11625 = vmatpush3.msra.mxu0 %v14570_v43  ;;  %vm17401_vm11 = vmmov %vm17393_vm0 }
 0x8fb   :  { %11626 = vmatprep.subr.mxu0 %v17307_v51  ;;  %11660 = vmatpush3.msra.mxu1 %v14570_v43 }
 0x8fc   :  { %11627 = vmatpush3.msra.mxu0 %v14579_v40  ;;  %11661 = vmatprep.subr.mxu1 %v17307_v51 }
 0x8fd   :  { %11628 = vmatprep.subr.mxu0 %v17307_v51  ;;  %11662 = vmatpush3.msra.mxu1 %v14579_v40 }
 0x8fe   :  { %11629 = vmatpush3.msra.mxu0 %v14585_v23  ;;  %11663 = vmatprep.subr.mxu1 %v17307_v51 }
 0x8ff   :  { %11630 = vmatprep.subr.mxu0 %v17307_v51  ;;  %11664 = vmatpush3.msra.mxu1 %v14585_v23 }
 0x900   :  { %9390 = vmatmul.mubr.msk.bf16.gmra.mxu0 %vm14474_vm13, %v9389_v25  ;;  %11665 = vmatprep.subr.mxu1 %v17307_v51 }
 0x901   :  { %11631 = vmatpush3.msra.mxu0 %v14594_v32  ;;  %11656 = vmatprep.mubr.msk.f32.mxu0 %vm17364_vm6, %v17307_v51 }
 0x902   :  { %11632 = vmatprep.subr.mxu0 %v17307_v51  ;;  %11666 = vmatpush3.msra.mxu1 %v14594_v32 }
 0x903   :  { %11633 = vmatpush3.msra.mxu0 %v14601_v27  ;;  %11667 = vmatprep.subr.mxu1 %v17307_v51 }
 0x904   :  { %11634 = vmatprep.subr.mxu0 %v17307_v51  ;;  %11668 = vmatpush3.msra.mxu1 %v14601_v27 }
 0x905   :  { %11635 = vmatpush3.msra.mxu0 %v14607_v61  ;;  %11669 = vmatprep.subr.mxu1 %v17307_v51 }
 0x906   :  { %11636 = vmatprep.subr.mxu0 %v17307_v51  ;;  %11670 = vmatpush3.msra.mxu1 %v14607_v61 }
 0x907   :  { %11637 = vmatpush3.msra.mxu0 %v14613_v48  ;;  %11671 = vmatprep.subr.mxu1 %v17307_v51 }
 0x908   :  { %11638 = vmatprep.subr.mxu0 %v17307_v51  ;;  %11672 = vmatpush3.msra.mxu1 %v14613_v48 }
 0x909   :  { %11639 = vmatpush3.msra.mxu0 %v14619_v49  ;;  %11673 = vmatprep.subr.mxu1 %v17307_v51 }
 0x90a   :  { %11640 = vmatprep.subr.mxu0 %v17307_v51  ;;  %11674 = vmatpush3.msra.mxu1 %v14619_v49 }
 0x90b   :  { %11641 = vmatpush3.msra.mxu0 %v14625_v42  ;;  %11675 = vmatprep.subr.mxu1 %v17307_v51 }
 0x90c   :  { %11642 = vmatprep.subr.mxu0 %v17307_v51  ;;  %11676 = vmatpush3.msra.mxu1 %v14625_v42 }
 0x90d   :  { %11643 = vmatpush3.msra.mxu0 %v14631_v8  ;;  %11677 = vmatprep.subr.mxu1 %v17307_v51 }
 0x90e   :  { %11644 = vmatprep.subr.mxu0 %v17307_v51  ;;  %11678 = vmatpush3.msra.mxu1 %v14631_v8 }
 0x90f   :  { %11645 = vmatpush3.msra.mxu0 %v14637_v56  ;;  %11679 = vmatprep.subr.mxu1 %v17307_v51 }
 0x910   :  { %11646 = vmatprep.subr.mxu0 %v17307_v51  ;;  %11680 = vmatpush3.msra.mxu1 %v14637_v56 }
 0x911   :  { %11647 = vmatpush3.msra.mxu0 %v14643_v7  ;;  %11681 = vmatprep.subr.mxu1 %v17307_v51 }
 0x912   :  { %11648 = vmatprep.subr.mxu0 %v17307_v51  ;;  %11682 = vmatpush3.msra.mxu1 %v14643_v7 }
 0x913   :  { %11649 = vmatpush3.msra.mxu0 %v14649_v11  ;;  %11683 = vmatprep.subr.mxu1 %v17307_v51 }
 0x914   :  { %11650 = vmatprep.subr.mxu0 %v17307_v51  ;;  %11684 = vmatpush3.msra.mxu1 %v14649_v11 }
 0x915   :  { %11651 = vmatpush3.msra.mxu0 %v14655_v33  ;;  %11685 = vmatprep.subr.mxu1 %v17307_v51 }
 0x916   :  { %11652 = vmatprep.subr.mxu0 %v17307_v51  ;;  %11686 = vmatpush3.msra.mxu1 %v14655_v33 }
 0x917   :  { %11653 = vmatpush3.msra.mxu0 %v14661_v4  ;;  %11687 = vmatprep.subr.mxu1 %v17307_v51 }
 0x918   :  { %11654 = vmatprep.subr.mxu0 %v17307_v51  ;;  %11688 = vmatpush3.msra.mxu1 %v14661_v4 }
 0x919   :  { %11655 = vmatpush3.msra.mxu0 %v14667_v45  ;;  %11689 = vmatprep.subr.mxu1 %v17307_v51 }
 0x91a   :  { %11690 = vmatpush3.msra.mxu1 %v14667_v45  ;;  %11691 = vmatprep.mubr.msk.f32.mxu1 %vm17364_vm6, %v17307_v51 }
 0x91b   :  { %10238 = vmatprep.subr.bf16.mxu0 %v12843_v15 }
 0x9b8   :  { %v10182_v5 = vpop.f32.mrf.mxu0 }
 0x9ba   :  { %v11622_v30 = vpop.f32.mrf.mxu1  ;;  %v10183_v62 = vpop.f32.mrf.mxu0 }
 0x9bb   :  { %v10184_v34 = vadd.f32 %v10183_v62, %v10182_v5 }
 0x9bc   :  { %v2257_v37 = vpop.f32.mrf.mxu1  ;;  %v10185_v59 = vpop.f32.mrf.mxu0 }
 0x9bd   :  { %v14676_v10 = vadd.f32 %v10184_v34, %v2257_v37  ;;  %v12844_v37 = vld [vmem:[#allocation2 + $0x1b8] sm:$0xff]  }
 0x9be   :  { %v11623_v54 = vpop.f32.mrf.mxu1  ;;  %v10186_v28 = vpop.f32.mrf.mxu0 }
 0x9bf   :  { %v10187_v0 = vadd.f32 %v10186_v28, %v10185_v59 }
 0x9c0   :  { %v2260_v20 = vpop.f32.mrf.mxu1  ;;  %v10188_v25 = vpop.f32.mrf.mxu0 }
 0x9c1   :  { %v14674_v31 = vadd.f32 %v10187_v0, %v2260_v20 }
 0x9c2   :  { %v10189_v52 = vpop.f32.mrf.mxu0 }
 0x9c3   :  { %v10190_v26 = vadd.f32 %v10189_v52, %v10188_v25  ;;  %v2272_v53 = vadd.f32 %v14674_v31, %v14676_v10  ;;  %v12846_v25 = vld [vmem:[#allocation2 + $0x1b0] sm:$0xff]  }
 0x9c4   :  { %v10191_v36 = vpop.f32.mrf.mxu0 }
 0x9c5   :  { %v14678_v18 = vadd.f32 %v11622_v30, %v10190_v26  ;;  %v12845_v30 = vld [vmem:[#allocation2 + $0x1f0] sm:$0xff]  }
 0x9c6   :  { %v10192_v15 = vpop.f32.mrf.mxu0 }
 0x9c7   :  { %v10193_v57 = vadd.f32 %v10192_v15, %v10191_v36  ;;  %v2273_v60 = vadd.f32 %v2272_v53, %v14678_v18  ;;  %v12847_v36 = vld [vmem:[#allocation2 + $0x1e8] sm:$0xff]   ;;  %v12852_v15 = vld [vmem:[#allocation2 + $0x198] sm:$0xff]  }
 0x9c8   :  { %v12848_v53 = vld [vmem:[#allocation2 + $0x1a8] sm:$0xff]  }
 0x9c9   :  { %v14683_v59 = vadd.f32 %v11623_v54, %v10193_v57  ;;  %v12849_v57 = vld [vmem:[#allocation2 + $0x1e0] sm:$0xff]   ;;  %v12851_v54 = vld [vmem:[#allocation2 + $0x1d8] sm:$0xff]  }
 0x9cb   :  { %v2274_v5 = vadd.f32 %v2273_v60, %v14683_v59  ;;  %v12850_v60 = vld [vmem:[#allocation2 + $0x1a0] sm:$0xff]  }
 0x9cd   :  { %v2275_v62 = vrot.slane %v2274_v5, 4 }
 0x9cf   :  { %v2276_v28 = vadd.f32 %v2275_v62, %v2274_v5  ;;  %v12853_v5 = vld [vmem:[#allocation2 + $0x1d0] sm:$0xff]   ;;  %v12859_v62 = vld [vmem:[#allocation2 + $0x278] sm:$0xff]  }
 0x9d0   :  { %10266 = vmatprep.subr.bf16.mxu1 %v12859_v62 }
 0x9d1   :  { %v2277_v0 = vrot.slane %v2276_v28, 2 }
 0x9d3   :  { %v2278_v52 = vadd.f32 %v2277_v0, %v2276_v28  ;;  %v12854_v28 = vld [vmem:[#allocation2 + $0x190] sm:$0xff]   ;;  %v12855_v0 = vld [vmem:[#allocation2 + $0x1c8] sm:$0xff]  }
 0x9d5   :  { %v2279_v20 = vrot.slane %v2278_v52, 1 }
 0x9d7   :  { %v2280_v34 = vadd.f32 %v2279_v20, %v2278_v52  ;;  %v12856_v52 = vld [vmem:[#allocation2 + $0x188] sm:$0xff]   ;;  %v12857_v20 = vld [vmem:[#allocation2 + $0x1c0] sm:$0xff]  }
 0x9d9   :  { %v2281_v26 = vmul.f32 0.03125, %v2280_v34  ;;  %v12858_v34 = vld [vmem:[#allocation2 + $0x180] sm:$0xff]  }
 0x9db   :  { %11657 = vmatmul.mubr.f32.vlgmr.msra.gmra.mxu0 %v2281_v26  ;;  %v14690_v26 = vmax.f32 %v14408_v19, 0.0 }
 0x9dc   :  { %10239 = vmatpush3.bf16.msra.mxu0 %v12844_v37  ;;  %v14687_v37 = vmax.f32 %v14406_v63, 0.0 }
 0x9dd   :  { %10240 = vmatprep.subr.bf16.mxu0 %v12845_v30  ;;  %v14693_v30 = vmax.f32 %v14412_v2, 0.0 }
 0x9e0   :  { %10241 = vmatpush3.bf16.msra.mxu0 %v12846_v25  ;;  %v2491_v25 = vrot.slane %v14687_v37, 7 }
 0x9e1   :  { %10242 = vmatprep.subr.bf16.mxu0 %v12847_v36  ;;  %v2492_v36 = vrot.slane %v14690_v26, 7 }
 0x9e3   :  { %v2497_v62 = vsel %vm17400_vm3, %v2491_v25, %v2492_v36 }
 0x9e4   :  { %10243 = vmatpush3.bf16.msra.mxu0 %v12848_v53  ;;  %v2494_v53 = vrot.slane %v14693_v30, 7 }
 0x9e5   :  { %10244 = vmatprep.subr.bf16.mxu0 %v12849_v57  ;;  %v2462_v57 = vrot.slane %v14687_v37, 6 }
 0x9e8   :  { %10245 = vmatpush3.bf16.msra.mxu0 %v12850_v60  ;;  %v2463_v60 = vrot.slane %v14690_v26, 6 }
 0x9e9   :  { %10246 = vmatprep.subr.bf16.mxu0 %v12851_v54  ;;  %v2465_v54 = vrot.slane %v14693_v30, 6 }
 0x9ea   :  { %v2469_v17 = vsel %vm17161_vm15, %v2462_v57, %v2463_v60 }
 0x9eb   :  { %v2470_v3 = vsel %vm17161_vm15, %v2465_v54, %v2462_v57  ;;  %v12873_v57 = vld [vmem:[#allocation2 + $0x298] sm:$0xff]  }
 0x9ec   :  { %10247 = vmatpush3.bf16.msra.mxu0 %v12852_v15  ;;  %v17399_v15 = vld [vmem:[#allocation22_spill] sm:$0xff] }
 0x9ed   :  { %10248 = vmatprep.subr.bf16.mxu0 %v12853_v5  ;;  %v2471_v5 = vadd.s32 4294967294, %v17399_v15 }
 0x9ef   :  { %vm2475_vm7 = vcmp.ge.s32.totalorder %v2471_v5, 0  ;;  %vm2479_vm2 = vcmp.lt.s32.totalorder %v2471_v5, 16  ;;  %v14727_v5 = vmax.f32 %v14410_v12, 0.0 }
 0x9f0   :  { %10249 = vmatpush3.bf16.msra.mxu0 %v12854_v28  ;;  %v2498_v28 = vsel %vm17401_vm11, %v2494_v53, %v2491_v25  ;;  %vm2483_vm11 = vmand %vm2475_vm7, %vm2479_vm2  ;;  %vm2478_vm2 = vcmp.ge.s32.totalorder %v2474_v44, 0  ;;  %v13151_v25 = vld [vmem:[#allocation2 + $0xb08] sm:$0xff]  }
 0x9f1   :  { %10250 = vmatprep.subr.bf16.mxu0 %v12855_v0  ;;  %v17402_v0 = vld [vmem:[#allocation23_spill] sm:$0xff] }
 0x9f4   :  { %10251 = vmatpush3.bf16.msra.mxu0 %v12856_v52  ;;  %v2472_v52 = vadd.s32 4294967294, %v17402_v0 }
 0x9f5   :  { %10252 = vmatprep.subr.bf16.mxu0 %v12857_v20  ;;  %v14708_v20 = vpack.c.bf16 %v2497_v62, %v2498_v28  ;;  %v12864_v62 = vld [vmem:[#allocation2 + $0x2b0] sm:$0xff]  }
 0x9f6   :  { %vm2476_vm0 = vcmp.ge.s32.totalorder %v2472_v52, 0  ;;  %vm2480_vm3 = vcmp.lt.s32.totalorder %v2472_v52, 16  ;;  %v12876_v28 = vld [vmem:[#allocation2 + $0x290] sm:$0xff]   ;;  %v2493_v52 = vrot.slane %v14727_v5, 7 }
 0x9f7   :  { %17403 = vst [vmem:[#allocation44_spill] sm:$0xff] %v14708_v20  ;;  %9439 = vmatprep.mubr.msk.bf16.mxu0 %vm14450_vm12, %v14708_v20  ;;  %vm2484_vm8 = vmand %vm2476_vm0, %vm2480_vm3  ;;  %v2464_v20 = vrot.slane %v14727_v5, 6 }
 0x9f8   :  { %10253 = vmatpush3.bf16.msra.mxu0 %v12858_v34  ;;  %v14714_v34 = vpack.c.bf16 %v2469_v17, %v2470_v3  ;;  %vm14719_vm5 = vmpackc.low %vm2484_vm8, %vm2483_vm11  ;;  %v12867_v3 = vld [vmem:[#allocation2 + $0x2a8] sm:$0xff]   ;;  %v12870_v17 = vld [vmem:[#allocation2 + $0x2a0] sm:$0xff]   ;;  %vm17409_vm8 = vcmp.lt.s32.totalorder %v17391_v22, 1  ;;  %vm2482_vm11 = vcmp.lt.s32.totalorder %v2474_v44, 16 }
 0x9f9   :  { %11694 = vmatprep.subr.bf16.mxu0 %v12861_v38  ;;  %vm17410_vm7 = vmmov %vm17409_vm8  ;;  %v2467_v1 = vsel %vm17161_vm15, %v2464_v20, %v2465_v54  ;;  %v2468_v47 = vsel %vm17161_vm15, %v2463_v60, %v2464_v20  ;;  %v2505_v60 = vrot.slane %v14727_v5, 1  ;;  %v17413_v54 = vmov 0  ;;  %v12882_v44 = vld [vmem:[#allocation2 + $0x280] sm:$0xff]  }
 0x9fa   :  { %17404 = vst [vmem:[#allocation46_spill] sm:$0xff] %v14714_v34  ;;  %v14764_v20 = vpack.c.bf16 %v14690_v26, %v14687_v37 }
 0x9fb   :  { %9442 = vmatmul.mubr.msk.bf16.vlgmr.msra.gmra.mxu0 %vm14719_vm5, %v14714_v34  ;;  %v17407_v34 = vld [vmem:[#allocation21_spill] sm:$0xff] }
 0x9fc   :  { %11695 = vmatpush3.bf16.msra.mxu0 %v12861_v38  ;;  %v2473_v38 = vadd.s32 4294967294, %v17407_v34  ;;  %17417 = vst [vmem:[#allocation58_spill] sm:$0xff] %v14764_v20 }
 0x9fd   :  { %11696 = vmatprep.subr.bf16.mxu0 %v12864_v62 }
 0x9fe   :  { %vm2477_vm0 = vcmp.ge.s32.totalorder %v2473_v38, 0  ;;  %vm2481_vm3 = vcmp.lt.s32.totalorder %v2473_v38, 16  ;;  %v2516_v38 = vrot.slane %v14690_v26, 2 }
 0xa00   :  { %11697 = vmatpush3.bf16.msra.mxu0 %v12864_v62  ;;  %v2495_v62 = vsel %vm17409_vm8, %v2493_v52, %v2494_v53  ;;  %vm2485_vm8 = vmand %vm2477_vm0, %vm2481_vm3  ;;  %v2504_v53 = vrot.slane %v14690_v26, 1  ;;  %vm17415_vm0 = vcmp.lt.s32.totalorder %v17391_v22, 7  ;;  %vm17168_vm3 = vcmp.lt.s32.totalorder %v17391_v22, 6 }
 0xa01   :  { %11698 = vmatprep.subr.bf16.mxu0 %v12867_v3 }
 0xa04   :  { %11699 = vmatpush3.bf16.msra.mxu0 %v12867_v3  ;;  %v2496_v3 = vsel %vm17410_vm7, %v2492_v36, %v2493_v52  ;;  %vm2486_vm7 = vmand %vm2478_vm2, %vm2482_vm11  ;;  %v2503_v36 = vrot.slane %v14687_v37, 1 }
 0xa05   :  { %11700 = vmatprep.subr.bf16.mxu0 %v12870_v17  ;;  %vm14751_vm15 = vmpackc.low %vm2486_vm7, %vm2485_vm8 }
 0xa06   :  { %v17414_v54 = vsel %vm14751_vm15, 4294967295, %v17413_v54  ;;  %vm17416_vm2 = vmmov %vm17415_vm0 }
 0xa08   :  { %11701 = vmatpush3.bf16.msra.mxu0 %v12870_v17  ;;  %v14737_v17 = vpack.c.bf16 %v2495_v62, %v2496_v3  ;;  %v2517_v62 = vrot.slane %v14727_v5, 2  ;;  %v2518_v3 = vrot.slane %v14693_v30, 2 }
 0xa09   :  { %11702 = vmatprep.subr.bf16.mxu0 %v12873_v57 }
 0xa0a   :  { %17411 = vst [vmem:[#allocation20_spill] sm:$0xff] %v14737_v17  ;;  %9445 = vmatprep.mubr.msk.bf16.mxu0 %vm14474_vm13, %v14737_v17  ;;  %v2526_v17 = vadd.s32 2, %v17407_v34  ;;  %v2521_v26 = vsel %vm17168_vm3, %v2516_v38, %v2517_v62  ;;  %v2527_v34 = vadd.s32 2, %v17408_v46 }
 0xa0c   :  { %11703 = vmatpush3.bf16.msra.mxu0 %v12873_v57  ;;  %v14743_v57 = vpack.c.bf16 %v2467_v1, %v2468_v47  ;;  %v2508_v1 = vsel %vm17415_vm0, %v2504_v53, %v2505_v60  ;;  %v2509_v47 = vsel %vm17416_vm2, %v2503_v36, %v2504_v53  ;;  %v2525_v53 = vadd.s32 2, %v17402_v0  ;;  %v12862_v0 = vld [vmem:[#allocation2 + $0x270] sm:$0xff]  }
 0xa0d   :  { %11704 = vmatprep.subr.bf16.mxu0 %v12876_v28  ;;  %v14767_v52 = vpack.c.bf16 %v2508_v1, %v2509_v47  ;;  %vm2530_vm10 = vcmp.ge.s32.totalorder %v2526_v17, 0  ;;  %vm2534_vm9 = vcmp.lt.s32.totalorder %v2526_v17, 16 }
 0xa0e   :  { %17412 = vst [vmem:[#allocation57_spill] sm:$0xff] %v14743_v57  ;;  %9448 = vmatmul.mubr.msk.bf16.gmra.mxu0 %vm14751_vm15, %v14743_v57  ;;  %v2524_v57 = vadd.s32 2, %v17399_v15  ;;  %vm2529_vm8 = vcmp.ge.s32.totalorder %v2525_v53, 0  ;;  %vm2533_vm0 = vcmp.lt.s32.totalorder %v2525_v53, 16  ;;  %vm2531_vm15 = vcmp.ge.s32.totalorder %v2527_v34, 0  ;;  %v12863_v15 = vld [vmem:[#allocation2 + $0x230] sm:$0xff]  }
 0xa0f   :  { %17418 = vst [vmem:[#allocation59_spill] sm:$0xff] %v14767_v52  ;;  %vm2537_vm4 = vmand %vm2529_vm8, %vm2533_vm0 }
 0xa10   :  { %11705 = vmatpush3.bf16.msra.mxu0 %v12876_v28  ;;  %v2515_v28 = vrot.slane %v14687_v37, 2  ;;  %v2520_v37 = vsel %vm17168_vm3, %v2517_v62, %v2518_v3  ;;  %vm2528_vm11 = vcmp.ge.s32.totalorder %v2524_v57, 0  ;;  %vm2532_vm7 = vcmp.lt.s32.totalorder %v2524_v57, 16  ;;  %vm2538_vm8 = vmand %vm2530_vm10, %vm2534_vm9 }
 0xa11   :  { %11706 = vmatprep.subr.bf16.mxu0 %v12879_v24  ;;  %vm2536_vm2 = vmand %vm2528_vm11, %vm2532_vm7  ;;  %v2506_v62 = vrot.slane %v14693_v30, 1  ;;  %vm2535_vm11 = vcmp.lt.s32.totalorder %v2527_v34, 16  ;;  %vm17424_vm7 = vcmp.lt.s32.totalorder %v17391_v22, 7  ;;  %v17427_v34 = vmov 0 }
 0xa12   :  { %v2522_v1 = vsel %vm17168_vm3, %v2515_v28, %v2516_v38  ;;  %v14790_v38 = vpack.c.bf16 %v14693_v30, %v14727_v5  ;;  %vm17425_vm0 = vmmov %vm17424_vm7  ;;  %vm17429_vm9 = vcmp.lt.s32.totalorder %v17391_v22, 1 }
 0xa13   :  { %v14784_v47 = vpack.c.bf16 %v2521_v26, %v2522_v1  ;;  %v2507_v17 = vsel %vm17424_vm7, %v2505_v60, %v2506_v62  ;;  %v2510_v30 = vsel %vm17425_vm0, %v2506_v62, %v2503_v36  ;;  %vm17430_vm10 = vmmov %vm17429_vm9 }
 0xa14   :  { %11707 = vmatpush3.bf16.msra.mxu0 %v12879_v24  ;;  %v2523_v24 = vsel %vm17168_vm3, %v2518_v3, %v2515_v28  ;;  %17420 = vst [vmem:[#allocation61_spill] sm:$0xff] %v14790_v38  ;;  %vm14792_vm3 = vmpackc.low %vm2537_vm4, %vm2536_vm2  ;;  %v14806_v5 = vpack.c.bf16 %v2510_v30, %v2507_v17  ;;  %v13175_v28 = vld [vmem:[#allocation2 + $0xb88] sm:$0xff]  }
 0xa15   :  { %11708 = vmatprep.subr.bf16.mxu0 %v12882_v44  ;;  %17419 = vst [vmem:[#allocation60_spill] sm:$0xff] %v14784_v47  ;;  %v14796_v57 = vpack.c.bf16 %v2523_v24, %v2520_v37  ;;  %11710 = vmatprep.mubr.msk.bf16.mxu0 %vm14792_vm3, %v14784_v47  ;;  %vm2539_vm4 = vmand %vm2531_vm15, %vm2535_vm11  ;;  %v12860_v47 = vld [vmem:[#allocation2 + $0x238] sm:$0xff]  }
 0xa16   :  { %17426 = vst [vmem:[#allocation63_spill] sm:$0xff] %v14806_v5  ;;  %vm14808_vm2 = vmpackc.low %vm2539_vm4, %vm2538_vm8  ;;  %vm17433_vm8 = vcmp.lt.s32.totalorder %v17391_v22, 2 }
 0xa17   :  { %17423 = vst [vmem:[#allocation62_spill] sm:$0xff] %v14796_v57  ;;  %v17428_v34 = vsel %vm14808_vm2, 4294967295, %v17427_v34  ;;  %vm17431_vm15 = vmmov %vm17425_vm0 }
 0xa18   :  { %11709 = vmatpush3.bf16.msra.mxu0 %v12882_v44  ;;  %vm17432_vm11 = vmmov %vm17425_vm0 }
 0xa19   :  { %11749 = vmatprep.subr.mxu0 %v17307_v51  ;;  %vm17434_vm7 = vmmov %vm17433_vm8 }
 0xa1a   :  { %vm17435_vm0 = vmmov %vm17429_vm9 }
 0xa1b   :  { %11711 = vmatmul.mubr.msk.bf16.vlgmr.msra.gmra.mxu0 %vm14808_vm2, %v14796_v57  ;;  %vm17436_vm4 = vmmov %vm17435_vm0 }
 0xa1c   :  { %11750 = vmatpush3.msra.mxu0 %v14570_v43  ;;  %11781 = vmatprep.mubr.msk.f32.mxu0 %vm17364_vm6, %v17307_v51 }
 0xa1d   :  { %11751 = vmatprep.subr.mxu0 %v17307_v51 }
 0xa1e   :  { %11752 = vmatpush3.msra.mxu0 %v14579_v40 }
 0xa1f   :  { %11753 = vmatprep.subr.mxu0 %v17307_v51 }
 0xa20   :  { %11754 = vmatpush3.msra.mxu0 %v14585_v23 }
 0xa21   :  { %11755 = vmatprep.subr.mxu0 %v17307_v51 }
 0xa22   :  { %11756 = vmatpush3.msra.mxu0 %v14594_v32 }
 0xa23   :  { %11757 = vmatprep.subr.mxu0 %v17307_v51 }
 0xa24   :  { %11758 = vmatpush3.msra.mxu0 %v14601_v27 }
 0xa25   :  { %11759 = vmatprep.subr.mxu0 %v17307_v51 }
 0xa26   :  { %11760 = vmatpush3.msra.mxu0 %v14607_v61 }
 0xa27   :  { %11761 = vmatprep.subr.mxu0 %v17307_v51 }
 0xa28   :  { %11762 = vmatpush3.msra.mxu0 %v14613_v48 }
 0xa29   :  { %11763 = vmatprep.subr.mxu0 %v17307_v51 }
 0xa2a   :  { %11764 = vmatpush3.msra.mxu0 %v14619_v49 }
 0xa2b   :  { %11765 = vmatprep.subr.mxu0 %v17307_v51 }
 0xa2c   :  { %11766 = vmatpush3.msra.mxu0 %v14625_v42 }
 0xa2d   :  { %11767 = vmatprep.subr.mxu0 %v17307_v51 }
 0xa2e   :  { %11768 = vmatpush3.msra.mxu0 %v14631_v8 }
 0xa2f   :  { %11769 = vmatprep.subr.mxu0 %v17307_v51 }
 0xa30   :  { %11770 = vmatpush3.msra.mxu0 %v14637_v56 }
 0xa31   :  { %11771 = vmatprep.subr.mxu0 %v17307_v51 }
 0xa32   :  { %11772 = vmatpush3.msra.mxu0 %v14643_v7 }
 0xa33   :  { %11773 = vmatprep.subr.mxu0 %v17307_v51 }
 0xa34   :  { %11774 = vmatpush3.msra.mxu0 %v14649_v11 }
 0xa35   :  { %11775 = vmatprep.subr.mxu0 %v17307_v51 }
 0xa36   :  { %11776 = vmatpush3.msra.mxu0 %v14655_v33 }
 0xa37   :  { %11777 = vmatprep.subr.mxu0 %v17307_v51 }
 0xa38   :  { %11778 = vmatpush3.msra.mxu0 %v14661_v4 }
 0xa39   :  { %11779 = vmatprep.subr.mxu0 %v17307_v51 }
 0xa3a   :  { %11780 = vmatpush3.msra.mxu0 %v14667_v45 }
 0xa9b   :  { %v2348_v36 = vpop.f32.mrf.mxu0 }
 0xa9c   :  { %v2355_v60 = vrot.slane %v2348_v36, %v13672_v6 }
 0xa9d   :  { %v11658_v44 = vpop.f32.mrf.mxu0 }
 0xa9e   :  { %v14850_v3 = vsub.f32 %v14676_v10, %v2355_v60  ;;  %v14853_v53 = vsub.f32 %v14674_v31, %v2355_v60  ;;  %v14856_v37 = vsub.f32 %v14678_v18, %v2355_v60  ;;  %v14859_v26 = vsub.f32 %v14683_v59, %v2355_v60 }
 0xaa0   :  { %v2360_v1 = vmul.f32 %v14850_v3, %v14850_v3  ;;  %v2361_v24 = vmul.f32 %v14853_v53, %v14853_v53  ;;  %v2362_v62 = vmul.f32 %v14856_v37, %v14856_v37  ;;  %v2363_v31 = vmul.f32 %v14859_v26, %v14859_v26 }
 0xaa2   :  { %v2364_v10 = vadd.f32 %v2361_v24, %v2360_v1  ;;  %v12865_v1 = vld [vmem:[#allocation2 + $0x268] sm:$0xff]  }
 0xaa3   :  { %v12866_v24 = vld [vmem:[#allocation2 + $0x228] sm:$0xff]  }
 0xaa4   :  { %v2365_v17 = vadd.f32 %v2364_v10, %v2362_v62  ;;  %v12868_v62 = vld [vmem:[#allocation2 + $0x260] sm:$0xff]  }
 0xaa5   :  { %v12869_v10 = vld [vmem:[#allocation2 + $0x220] sm:$0xff]  }
 0xaa6   :  { %v2366_v30 = vadd.f32 %v2365_v17, %v2363_v31  ;;  %v12871_v31 = vld [vmem:[#allocation2 + $0x258] sm:$0xff]   ;;  %v12877_v17 = vld [vmem:[#allocation2 + $0x248] sm:$0xff]  }
 0xaa8   :  { %v2367_v18 = vrot.slane %v2366_v30, 4 }
 0xaaa   :  { %v2368_v36 = vadd.f32 %v2367_v18, %v2366_v30  ;;  %v12878_v30 = vld [vmem:[#allocation2 + $0x208] sm:$0xff]  }
 0xaac   :  { %v2369_v44 = vrot.slane %v2368_v36, 2 }
 0xaae   :  { %v2370_v59 = vadd.f32 %v2369_v44, %v2368_v36 }
 0xab0   :  { %v2371_v60 = vrot.slane %v2370_v59, 1 }
 0xab2   :  { %v2372_v57 = vadd.f32 %v2371_v60, %v2370_v59 }
 0xab4   :  { %v2373_v46 = vmul.f32 0.03125, %v2372_v57  ;;  %v12872_v57 = vld [vmem:[#allocation2 + $0x218] sm:$0xff]  }
 0xab6   :  { %11692 = vmatmul.mubr.f32.vlgmr.msra.gmra.mxu1 %v2373_v46  ;;  %v12874_v46 = vld [vmem:[#allocation2 + $0x250] sm:$0xff]  }
 0xab7   :  { %10267 = vmatpush3.bf16.msra.mxu1 %v12860_v47  ;;  %9451 = vmatprep.mubr.msk.bf16.mxu1 %vm14439_vm14, %v14767_v52  ;;  %v12875_v47 = vld [vmem:[#allocation2 + $0x210] sm:$0xff]  }
 0xab8   :  { %10268 = vmatprep.subr.bf16.mxu1 %v12862_v0  ;;  %v12880_v0 = vld [vmem:[#allocation2 + $0x240] sm:$0xff]  }
 0xabb   :  { %10269 = vmatpush3.bf16.msra.mxu1 %v12863_v15  ;;  %v12881_v15 = vld [vmem:[#allocation2 + $0x200] sm:$0xff]  }
 0xabc   :  { %10270 = vmatprep.subr.bf16.mxu1 %v12865_v1 }
 0xabf   :  { %10271 = vmatpush3.bf16.msra.mxu1 %v12866_v24 }
 0xac0   :  { %10272 = vmatprep.subr.bf16.mxu1 %v12868_v62 }
 0xac3   :  { %10273 = vmatpush3.bf16.msra.mxu1 %v12869_v10 }
 0xac4   :  { %10274 = vmatprep.subr.bf16.mxu1 %v12871_v31 }
 0xac7   :  { %10275 = vmatpush3.bf16.msra.mxu1 %v12872_v57 }
 0xac8   :  { %10276 = vmatprep.subr.bf16.mxu1 %v12874_v46 }
 0xacb   :  { %10277 = vmatpush3.bf16.msra.mxu1 %v12875_v47 }
 0xacc   :  { %10278 = vmatprep.subr.bf16.mxu1 %v12877_v17 }
 0xacf   :  { %10279 = vmatpush3.bf16.msra.mxu1 %v12878_v30 }
 0xad0   :  { %10280 = vmatprep.subr.bf16.mxu1 %v12880_v0 }
 0xad3   :  { %10281 = vmatpush3.bf16.msra.mxu1 %v12881_v15 }
 0xad4   :  { %11714 = vmatprep.subr.mxu1 %v17307_v51 }
 0xad6   :  { %2956 = vmatmul.mubr.bf16.vlgmr.msra.gmra.mxu1 %v14764_v20 }
 0xad7   :  { %9454 = vmatprep.mubr.msk.bf16.mxu1 %vm14458_vm1, %v14806_v5  ;;  %11715 = vmatpush3.msra.mxu1 %v14570_v43 }
 0xad8   :  { %11716 = vmatprep.subr.mxu1 %v17307_v51 }
 0xad9   :  { %11717 = vmatpush3.msra.mxu1 %v14579_v40 }
 0xada   :  { %11718 = vmatprep.subr.mxu1 %v17307_v51 }
 0xadb   :  { %11719 = vmatpush3.msra.mxu1 %v14585_v23  ;;  %v10254_v23 = vpop.f32.mrf.mxu0 }
 0xadc   :  { %11720 = vmatprep.subr.mxu1 %v17307_v51 }
 0xadd   :  { %11721 = vmatpush3.msra.mxu1 %v14594_v32  ;;  %v10255_v32 = vpop.f32.mrf.mxu0 }
 0xade   :  { %2964 = vmatmul.mubr.bf16.gmra.mxu1 %v14790_v38  ;;  %11722 = vmatprep.subr.mxu1 %v17307_v51  ;;  %v10256_v1 = vadd.f32 %v10255_v32, %v10254_v23 }
 0xadf   :  { %11723 = vmatpush3.msra.mxu1 %v14601_v27  ;;  %11746 = vmatprep.mubr.msk.f32.mxu1 %vm17364_vm6, %v17307_v51  ;;  %v10257_v27 = vpop.f32.mrf.mxu0 }
 0xae0   :  { %11724 = vmatprep.subr.mxu1 %v17307_v51 }
 0xae1   :  { %11725 = vmatpush3.msra.mxu1 %v14607_v61  ;;  %v10258_v61 = vpop.f32.mrf.mxu0 }
 0xae2   :  { %11726 = vmatprep.subr.mxu1 %v17307_v51  ;;  %v10259_v36 = vadd.f32 %v10258_v61, %v10257_v27 }
 0xae3   :  { %11727 = vmatpush3.msra.mxu1 %v14613_v48  ;;  %v10260_v48 = vpop.f32.mrf.mxu0 }
 0xae4   :  { %11728 = vmatprep.subr.mxu1 %v17307_v51 }
 0xae5   :  { %11729 = vmatpush3.msra.mxu1 %v14619_v49  ;;  %v10261_v49 = vpop.f32.mrf.mxu0 }
 0xae6   :  { %11730 = vmatprep.subr.mxu1 %v17307_v51  ;;  %v10262_v10 = vadd.f32 %v10261_v49, %v10260_v48 }
 0xae7   :  { %11731 = vmatpush3.msra.mxu1 %v14625_v42  ;;  %v10263_v42 = vpop.f32.mrf.mxu0 }
 0xae8   :  { %11732 = vmatprep.subr.mxu1 %v17307_v51 }
 0xae9   :  { %11733 = vmatpush3.msra.mxu1 %v14631_v8  ;;  %v10264_v8 = vpop.f32.mrf.mxu0 }
 0xaea   :  { %11734 = vmatprep.subr.mxu1 %v17307_v51  ;;  %v10265_v15 = vadd.f32 %v10264_v8, %v10263_v42 }
 0xaeb   :  { %11735 = vmatpush3.msra.mxu1 %v14637_v56 }
 0xaec   :  { %11736 = vmatprep.subr.mxu1 %v17307_v51 }
 0xaed   :  { %11737 = vmatpush3.msra.mxu1 %v14643_v7  ;;  %v11712_v7 = vpop.f32.mrf.mxu0 }
 0xaee   :  { %11738 = vmatprep.subr.mxu1 %v17307_v51 }
 0xaef   :  { %11739 = vmatpush3.msra.mxu1 %v14649_v11 }
 0xaf0   :  { %11740 = vmatprep.subr.mxu1 %v17307_v51 }
 0xaf1   :  { %11741 = vmatpush3.msra.mxu1 %v14655_v33 }
 0xaf2   :  { %11742 = vmatprep.subr.mxu1 %v17307_v51 }
 0xaf3   :  { %11743 = vmatpush3.msra.mxu1 %v14661_v4  ;;  %v3006_v4 = vpop.f32.mrf.mxu0 }
 0xaf4   :  { %11744 = vmatprep.subr.mxu1 %v17307_v51 }
 0xaf5   :  { %11745 = vmatpush3.msra.mxu1 %v14667_v45  ;;  %v11713_v59 = vpop.f32.mrf.mxu0 }
 0xaf7   :  { %v3009_v46 = vpop.f32.mrf.mxu0 }
 0xb76   :  { %v14911_v43 = vpop.f32.mrf.mxu1 }
 0xb78   :  { %v11693_v40 = vpop.f32.mrf.mxu1 }
 0xb96   :  { %v10282_v56 = vpop.f32.mrf.mxu1 }
 0xb98   :  { %v10283_v11 = vpop.f32.mrf.mxu1 }
 0xb99   :  { %v10284_v44 = vadd.f32 %v10283_v11, %v10282_v56 }
 0xb9a   :  { %v10285_v33 = vpop.f32.mrf.mxu1 }
 0xb9b   :  { %v2958_v31 = vadd.f32 %v10284_v44, %v10256_v1  ;;  %v12885_v1 = vld [vmem:[#allocation2 + $0x3b8] sm:$0xff]  }
 0xb9c   :  { %v10286_v18 = vpop.f32.mrf.mxu1  ;;  %10366 = vmatprep.subr.bf16.mxu0 %v12885_v1  ;;  %v12898_v1 = vld [vmem:[#allocation2 + $0x360] sm:$0xff]  }
 0xb9d   :  { %v10287_v45 = vadd.f32 %v10286_v18, %v10285_v33  ;;  %v3007_v40 = vadd.f32 %v3006_v4, %v2958_v31 }
 0xb9e   :  { %v10288_v60 = vpop.f32.mrf.mxu1 }
 0xb9f   :  { %v2961_v24 = vadd.f32 %v10287_v45, %v10259_v36  ;;  %v12883_v45 = vld [vmem:[#allocation2 + $0x338] sm:$0xff]  }
 0xba0   :  { %v10289_v62 = vpop.f32.mrf.mxu1  ;;  %10338 = vmatprep.subr.bf16.mxu1 %v12883_v45  ;;  %v12896_v45 = vld [vmem:[#allocation2 + $0x2e0] sm:$0xff]  }
 0xba1   :  { %v10290_v57 = vadd.f32 %v10289_v62, %v10288_v60  ;;  %v3010_v17 = vadd.f32 %v3009_v46, %v2961_v24  ;;  %v12884_v60 = vld [vmem:[#allocation2 + $0x2f8] sm:$0xff]  }
 0xba2   :  { %v10291_v47 = vpop.f32.mrf.mxu1 }
 0xba3   :  { %v2966_v30 = vadd.f32 %v10290_v57, %v10262_v10  ;;  %v3021_v27 = vadd.f32 %v3010_v17, %v3007_v40 }
 0xba4   :  { %v10292_v0 = vpop.f32.mrf.mxu1 }
 0xba5   :  { %v3015_v38 = vadd.f32 %v11712_v7, %v2966_v30  ;;  %v10293_v5 = vadd.f32 %v10292_v0, %v10291_v47 }
 0xba7   :  { %v2969_v61 = vadd.f32 %v10293_v5, %v10265_v15  ;;  %v3022_v56 = vadd.f32 %v3021_v27, %v3015_v38 }
 0xba9   :  { %v3018_v11 = vadd.f32 %v11713_v59, %v2969_v61  ;;  %v12886_v61 = vld [vmem:[#allocation2 + $0x378] sm:$0xff]  }
 0xbab   :  { %v3023_v33 = vadd.f32 %v3022_v56, %v3018_v11 }
 0xbad   :  { %v3024_v23 = vrot.slane %v3023_v33, 4 }
 0xbaf   :  { %v3025_v32 = vadd.f32 %v3024_v23, %v3023_v33  ;;  %v12888_v33 = vld [vmem:[#allocation2 + $0x2f0] sm:$0xff]  }
 0xbb0   :  { %v12889_v23 = vld [vmem:[#allocation2 + $0x3b0] sm:$0xff]  }
 0xbb1   :  { %v3026_v18 = vrot.slane %v3025_v32, 2 }
 0xbb3   :  { %v3027_v48 = vadd.f32 %v3026_v18, %v3025_v32  ;;  %v12890_v32 = vld [vmem:[#allocation2 + $0x370] sm:$0xff]   ;;  %v12891_v18 = vld [vmem:[#allocation2 + $0x328] sm:$0xff]  }
 0xbb5   :  { %v3028_v49 = vrot.slane %v3027_v48, 1 }
 0xbb7   :  { %v3029_v36 = vadd.f32 %v3028_v49, %v3027_v48  ;;  %v12892_v48 = vld [vmem:[#allocation2 + $0x2e8] sm:$0xff]  }
 0xbb8   :  { %v12893_v49 = vld [vmem:[#allocation2 + $0x3a8] sm:$0xff]  }
 0xbb9   :  { %v3030_v44 = vmul.f32 0.03125, %v3029_v36  ;;  %v12894_v36 = vld [vmem:[#allocation2 + $0x368] sm:$0xff]  }
 0xbbb   :  { %11747 = vmatmul.mubr.f32.vlgmr.msra.gmra.mxu1 %v3030_v44  ;;  %v12895_v44 = vld [vmem:[#allocation2 + $0x320] sm:$0xff]  }
 0xbbc   :  { %10339 = vmatpush3.bf16.msra.mxu1 %v12884_v60  ;;  %v12897_v60 = vld [vmem:[#allocation2 + $0x3a0] sm:$0xff]  }
 0xc7b   :  { %v3097_v42 = vpop.f32.mrf.mxu1 }
 0xc7c   :  { %v3104_v5 = vrot.slane %v3097_v42, %v13672_v6  ;;  %v12899_v42 = vld [vmem:[#allocation2 + $0x318] sm:$0xff]  }
 0xc7d   :  { %v11748_v8 = vpop.f32.mrf.mxu1 }
 0xc7e   :  { %v14914_v7 = vsub.f32 %v3007_v40, %v3104_v5  ;;  %v14916_v4 = vsub.f32 %v3010_v17, %v3104_v5  ;;  %v14918_v59 = vsub.f32 %v3015_v38, %v3104_v5  ;;  %v14920_v24 = vsub.f32 %v3018_v11, %v3104_v5  ;;  %v12887_v11 = vld [vmem:[#allocation2 + $0x330] sm:$0xff]   ;;  %v12900_v5 = vld [vmem:[#allocation2 + $0x2d8] sm:$0xff]  }
 0xc7f   :  { %10340 = vmatprep.subr.bf16.mxu1 %v12887_v11  ;;  %v12901_v8 = vld [vmem:[#allocation2 + $0x398] sm:$0xff]  }
 0xc80   :  { %v3109_v62 = vmul.f32 %v14914_v7, %v14914_v7  ;;  %v3110_v10 = vmul.f32 %v14916_v4, %v14916_v4  ;;  %v3111_v31 = vmul.f32 %v14918_v59, %v14918_v59  ;;  %v3112_v46 = vmul.f32 %v14920_v24, %v14920_v24  ;;  %10341 = vmatpush3.bf16.msra.mxu1 %v12888_v33 }
 0xc81   :  { %10342 = vmatprep.subr.bf16.mxu1 %v12891_v18 }
 0xc82   :  { %v3113_v57 = vadd.f32 %v3110_v10, %v3109_v62  ;;  %v12902_v62 = vld [vmem:[#allocation2 + $0x358] sm:$0xff]   ;;  %v12903_v10 = vld [vmem:[#allocation2 + $0x310] sm:$0xff]  }
 0xc84   :  { %v3114_v47 = vadd.f32 %v3113_v57, %v3111_v31  ;;  %10343 = vmatpush3.bf16.msra.mxu1 %v12892_v48  ;;  %v12904_v31 = vld [vmem:[#allocation2 + $0x2d0] sm:$0xff]  }
 0xc85   :  { %10344 = vmatprep.subr.bf16.mxu1 %v12895_v44  ;;  %v12905_v57 = vld [vmem:[#allocation2 + $0x390] sm:$0xff]  }
 0xc86   :  { %v3115_v17 = vadd.f32 %v3114_v47, %v3112_v46  ;;  %v12906_v46 = vld [vmem:[#allocation2 + $0x350] sm:$0xff]   ;;  %v12907_v47 = vld [vmem:[#allocation2 + $0x308] sm:$0xff]  }
 0xc88   :  { %v3116_v30 = vrot.slane %v3115_v17, 4  ;;  %10345 = vmatpush3.bf16.msra.mxu1 %v12896_v45 }
 0xc89   :  { %10346 = vmatprep.subr.bf16.mxu1 %v12899_v42 }
 0xc8a   :  { %v3117_v38 = vadd.f32 %v3116_v30, %v3115_v17  ;;  %v12908_v17 = vld [vmem:[#allocation2 + $0x2c8] sm:$0xff]  }
 0xc8b   :  { %v12909_v30 = vld [vmem:[#allocation2 + $0x388] sm:$0xff]  }
 0xc8c   :  { %v3118_v0 = vrot.slane %v3117_v38, 2  ;;  %10347 = vmatpush3.bf16.msra.mxu1 %v12900_v5 }
 0xc8d   :  { %10348 = vmatprep.subr.bf16.mxu1 %v12903_v10 }
 0xc8e   :  { %v3119_v15 = vadd.f32 %v3118_v0, %v3117_v38  ;;  %v12910_v38 = vld [vmem:[#allocation2 + $0x348] sm:$0xff]   ;;  %v12911_v0 = vld [vmem:[#allocation2 + $0x300] sm:$0xff]  }
 0xc90   :  { %v3120_v40 = vrot.slane %v3119_v15, 1  ;;  %10349 = vmatpush3.bf16.msra.mxu1 %v12904_v31 }
 0xc91   :  { %10350 = vmatprep.subr.bf16.mxu1 %v12907_v47 }
 0xc92   :  { %v3121_v27 = vadd.f32 %v3120_v40, %v3119_v15  ;;  %v12912_v15 = vld [vmem:[#allocation2 + $0x2c0] sm:$0xff]  }
 0xc93   :  { %v12913_v40 = vld [vmem:[#allocation2 + $0x380] sm:$0xff]  }
 0xc94   :  { %v3122_v56 = vmul.f32 0.03125, %v3121_v27  ;;  %10351 = vmatpush3.bf16.msra.mxu1 %v12908_v17  ;;  %v12914_v27 = vld [vmem:[#allocation2 + $0x340] sm:$0xff]  }
 0xc95   :  { %10352 = vmatprep.subr.bf16.mxu1 %v12911_v0 }
 0xc96   :  { %11782 = vmatmul.mubr.f32.vlgmr.msra.gmra.mxu0 %v3122_v56 }
 0xc97   :  { %10367 = vmatpush3.bf16.msra.mxu0 %v12886_v61  ;;  %v12915_v61 = vld [vmem:[#allocation2 + $0x3f8] sm:$0xff]  }
 0xc98   :  { %10368 = vmatprep.subr.bf16.mxu0 %v12889_v23  ;;  %10353 = vmatpush3.bf16.msra.mxu1 %v12912_v15 }
 0xc99   :  { %11784 = vmatprep.subr.bf16.mxu1 %v12915_v61 }
 0xc9b   :  { %10369 = vmatpush3.bf16.msra.mxu0 %v12890_v32 }
 0xc9c   :  { %10370 = vmatprep.subr.bf16.mxu0 %v12893_v49 }
 0xc9f   :  { %10371 = vmatpush3.bf16.msra.mxu0 %v12894_v36 }
 0xca0   :  { %10372 = vmatprep.subr.bf16.mxu0 %v12897_v60 }
 0xca3   :  { %10373 = vmatpush3.bf16.msra.mxu0 %v12898_v1 }
 0xca4   :  { %10374 = vmatprep.subr.bf16.mxu0 %v12901_v8 }
 0xca7   :  { %10375 = vmatpush3.bf16.msra.mxu0 %v12902_v62 }
 0xca8   :  { %10376 = vmatprep.subr.bf16.mxu0 %v12905_v57 }
 0xcab   :  { %10377 = vmatpush3.bf16.msra.mxu0 %v12906_v46 }
 0xcac   :  { %10378 = vmatprep.subr.bf16.mxu0 %v12909_v30 }
 0xcaf   :  { %10379 = vmatpush3.bf16.msra.mxu0 %v12910_v38 }
 0xcb0   :  { %10380 = vmatprep.subr.bf16.mxu0 %v12913_v40 }
 0xcb3   :  { %10381 = vmatpush3.bf16.msra.mxu0 %v12914_v27 }
 0xcb4   :  { %11804 = vmatprep.subr.mxu0 %v17307_v51 }
 0xd56   :  { %v3189_v56 = vpop.f32.mrf.mxu0 }
 0xd57   :  { %v3193_v11 = vadd.f32 1e-05, %v3189_v56 }
 0xd58   :  { %v11783_v33 = vpop.f32.mrf.mxu0 }
 0xd59   :  { %13181 = vrsqrt.f32 %v3193_v11 }
 0xd66   :  { %v13182_v23 = vpop.eup %13181 }
 0xd67   :  { %v3198_v32 = vrot.slane %v13182_v23, %v13672_v6 }
 0xd69   :  { %v3199_v18 = vmul.f32 %v3198_v32, %v14914_v7  ;;  %v3200_v48 = vmul.f32 %v3198_v32, %v14916_v4  ;;  %v3201_v49 = vmul.f32 %v3198_v32, %v14918_v59  ;;  %v3202_v36 = vmul.f32 %v3198_v32, %v14920_v24 }
 0xd6b   :  { %v14936_v44 = vmax.f32 %v3199_v18, 0.0  ;;  %v3204_v45 = vmax.f32 %v3200_v48, 0.0  ;;  %v14938_v60 = vmax.f32 %v3201_v49, 0.0  ;;  %v14940_v1 = vmax.f32 %v3202_v36, 0.0  ;;  %v12916_v48 = vld [vmem:[#allocation2 + $0x3f0] sm:$0xff]  }
 0xd6d   :  { %v3219_v42 = vrot.slane %v14936_v44, 7  ;;  %v3220_v5 = vrot.slane %v3204_v45, 7  ;;  %v3222_v8 = vrot.slane %v14940_v1, 7  ;;  %v3231_v7 = vrot.slane %v14936_v44, 1 }
 0xd6e   :  { %v3232_v62 = vrot.slane %v3204_v45, 1  ;;  %v3233_v4 = vrot.slane %v14938_v60, 1  ;;  %v3207_v59 = vrot.slane %v14936_v44, 6  ;;  %v3208_v24 = vrot.slane %v3204_v45, 6 }
 0xd6f   :  { %v3225_v10 = vsel %vm17429_vm9, %v3219_v42, %v3220_v5  ;;  %v3226_v31 = vsel %vm17430_vm10, %v3222_v8, %v3219_v42  ;;  %v3210_v57 = vrot.slane %v14940_v1, 6  ;;  %v3221_v15 = vrot.slane %v14938_v60, 7  ;;  %vm17437_vm9 = vmmov %vm17432_vm11 }
 0xd70   :  { %v9502_v46 = vpack.c.bf16 %v3225_v10, %v3226_v31  ;;  %v3236_v47 = vsel %vm17431_vm15, %v3232_v62, %v3233_v4  ;;  %v3237_v17 = vsel %vm17432_vm11, %v3231_v7, %v3232_v62  ;;  %v3213_v30 = vsel %vm17433_vm8, %v3207_v59, %v3208_v24  ;;  %vm17438_vm10 = vmmov %vm17437_vm9  ;;  %v15000_v10 = vld [vmem:[#allocation8 + $0x70] sm:$0xff] }
 0xd71   :  { %v9514_v38 = vpack.c.bf16 %v3236_v47, %v3237_v17  ;;  %v3214_v0 = vsel %vm17434_vm7, %v3210_v57, %v3207_v59  ;;  %v3234_v40 = vrot.slane %v14940_v1, 1  ;;  %v3257_v56 = vpack.c.bf16 %v3204_v45, %v14936_v44  ;;  %vm17439_vm15 = vmmov %vm17434_vm7  ;;  %v12919_v17 = vld [vmem:[#allocation2 + $0x3d8] sm:$0xff]  }
 0xd72   :  { %9503 = vmatprep.mubr.msk.bf16.mxu1 %vm14450_vm12, %v9502_v46  ;;  %v9505_v27 = vpack.c.bf16 %v3213_v30, %v3214_v0  ;;  %v3209_v11 = vrot.slane %v14938_v60, 6  ;;  %v3223_v33 = vsel %vm17435_vm0, %v3221_v15, %v3222_v8  ;;  %v3224_v23 = vsel %vm17436_vm4, %v3220_v5, %v3221_v15  ;;  %v14980_v5 = vld [vmem:[#allocation8 + $0x78] sm:$0xff]  ;;  %vm17440_vm11 = vmmov %vm17434_vm7  ;;  %v15006_v46 = vld [vmem:[#allocation8 + $0x68] sm:$0xff] }
 0xd73   :  { %9515 = vmatprep.mubr.msk.bf16.mxu0 %vm14439_vm14, %v9514_v38  ;;  %v3235_v32 = vsel %vm17437_vm9, %v3233_v4, %v3234_v40  ;;  %v3238_v18 = vsel %vm17438_vm10, %v3234_v40, %v3231_v7  ;;  %v9508_v49 = vpack.c.bf16 %v3223_v33, %v3224_v23  ;;  %v3243_v42 = vrot.slane %v14936_v44, 2  ;;  %v12917_v7 = vld [vmem:[#allocation2 + $0x3e8] sm:$0xff]   ;;  %v15014_v30 = vld [vmem:[#allocation8 + $0x60] sm:$0xff]  ;;  %v13227_v38 = vld [vmem:[#allocation8 + $0x58] sm:$0xff] }
 0xd74   :  { %9506 = vmatmul.mubr.msk.bf16.vlgmr.msra.gmra.mxu1 %vm14719_vm5, %v9505_v27  ;;  %3667 = vmatmul.mubr.bf16.vlgmr.msra.gmra.mxu0 %v3257_v56  ;;  %v9517_v36 = vpack.c.bf16 %v3238_v18, %v3235_v32  ;;  %v3244_v62 = vrot.slane %v3204_v45, 2  ;;  %v3245_v8 = vrot.slane %v14938_v60, 2  ;;  %v3211_v4 = vsel %vm17439_vm15, %v3209_v11, %v3210_v57  ;;  %v12918_v57 = vld [vmem:[#allocation2 + $0x3e0] sm:$0xff]   ;;  %v12920_v0 = vld [vmem:[#allocation2 + $0x3d0] sm:$0xff]   ;;  %v13229_v40 = vld [vmem:[#allocation8 + $0x48] sm:$0xff] }
 0xd75   :  { %11785 = vmatpush3.bf16.msra.mxu1 %v12915_v61  ;;  %11805 = vmatpush3.msra.mxu0 %v14980_v5  ;;  %v3212_v61 = vsel %vm17440_vm11, %v3208_v24, %v3209_v11  ;;  %vm17441_vm8 = vcmp.lt.s32.totalorder %v17391_v22, 6  ;;  %v3262_v31 = vpack.c.bf16 %v14940_v1, %v14938_v60  ;;  %vm17443_vm0 = vnez %v17414_v54  ;;  %v13228_v15 = vld [vmem:[#allocation8 + $0x50] sm:$0xff]  ;;  %v12921_v27 = vld [vmem:[#allocation2 + $0x3c8] sm:$0xff]   ;;  %v13230_v56 = vld [vmem:[#allocation8 + $0x40] sm:$0xff] }
 0xd76   :  { %9509 = vmatprep.mubr.msk.bf16.mxu1 %vm14474_vm13, %v9508_v49  ;;  %9518 = vmatprep.mubr.msk.bf16.mxu0 %vm14458_vm1, %v9517_v36  ;;  %v3248_v45 = vsel %vm17441_vm8, %v3244_v62, %v3245_v8  ;;  %vm17442_vm7 = vmmov %vm17441_vm8  ;;  %v9511_v24 = vpack.c.bf16 %v3211_v4, %v3212_v61  ;;  %v13231_v11 = vld [vmem:[#allocation8 + $0x38] sm:$0xff]  ;;  %v12922_v33 = vld [vmem:[#allocation2 + $0x3c0] sm:$0xff]   ;;  %v3246_v32 = vrot.slane %v14940_v1, 2  ;;  %vm17466_vm1 = vnez %v17279_v14 }
 0xd77   :  { %11786 = vmatprep.subr.bf16.mxu1 %v12916_v48  ;;  %11806 = vmatprep.subr.mxu0 %v17307_v51  ;;  %v3249_v59 = vsel %vm17442_vm7, %v3243_v42, %v3244_v62  ;;  %v13232_v23 = vld [vmem:[#allocation8 + $0x30] sm:$0xff]  ;;  %v13233_v18 = vld [vmem:[#allocation8 + $0x28] sm:$0xff]  ;;  %vm17444_vm4 = vmmov %vm17442_vm7  ;;  %vm17469_vm13 = vnez %v17281_v16 }
 0xd78   :  { %11807 = vmatpush3.msra.mxu0 %v15000_v10  ;;  %v9520_v47 = vpack.c.bf16 %v3248_v45, %v3249_v59  ;;  %v3247_v49 = vsel %vm17444_vm4, %v3245_v8, %v3246_v32  ;;  %vm17445_vm9 = vmmov %vm17444_vm4  ;;  %v13235_v36 = vld [vmem:[#allocation8 + $0x18] sm:$0xff]  ;;  %v13237_v44 = vld [vmem:[#allocation8 + $0x8] sm:$0xff] }
 0xd79   :  { %11787 = vmatpush3.bf16.msra.mxu1 %v12916_v48  ;;  %11808 = vmatprep.subr.mxu0 %v17307_v51  ;;  %v13234_v48 = vld [vmem:[#allocation8 + $0x20] sm:$0xff]  ;;  %v3250_v1 = vsel %vm17445_vm9, %v3246_v32, %v3243_v42  ;;  %vm17449_vm10 = vmmov %vm17440_vm11 }
 0xd7a   :  { %11788 = vmatprep.subr.bf16.mxu1 %v12917_v7  ;;  %11809 = vmatpush3.msra.mxu0 %v15006_v46  ;;  %v9523_v62 = vpack.c.bf16 %v3250_v1, %v3247_v49  ;;  %v13238_v60 = vld [vmem:[#allocation8] sm:$0xff]  ;;  %vm17450_vm15 = vmmov %vm17449_vm10 }
 0xd7b   :  { %11810 = vmatprep.subr.mxu0 %v17307_v51  ;;  %vm17452_vm11 = vmmov %vm17449_vm10 }
 0xd7c   :  { %9512 = vmatmul.mubr.msk.bf16.gmra.mxu1 %vm17443_vm0, %v9511_v24  ;;  %3675 = vmatmul.mubr.bf16.gmra.mxu0 %v3262_v31  ;;  %vm17453_vm8 = vmmov %vm17449_vm10 }
 0xd7d   :  { %11789 = vmatpush3.bf16.msra.mxu1 %v12917_v7  ;;  %11800 = vmatprep.mubr.msk.bf16.mxu1 %vm14792_vm3, %v9520_v47  ;;  %v13236_v7 = vld [vmem:[#allocation8 + $0x10] sm:$0xff]  ;;  %vm17454_vm7 = vmmov %vm17444_vm4 }
 0xd7e   :  { %11790 = vmatprep.subr.bf16.mxu1 %v12918_v57  ;;  %11811 = vmatpush3.msra.mxu0 %v15014_v30  ;;  %vm17455_vm9 = vmmov %vm17444_vm4 }
 0xd7f   :  { %11812 = vmatprep.subr.mxu0 %v17307_v51  ;;  %11836 = vmatprep.mubr.msk.f32.mxu0 %vm17364_vm6, %v17307_v51 }
 0xd80   :  { %11813 = vmatpush3.msra.mxu0 %v13227_v38 }
 0xd81   :  { %11791 = vmatpush3.bf16.msra.mxu1 %v12918_v57  ;;  %11814 = vmatprep.subr.mxu0 %v17307_v51 }
 0xd82   :  { %11792 = vmatprep.subr.bf16.mxu1 %v12919_v17  ;;  %11815 = vmatpush3.msra.mxu0 %v13228_v15 }
 0xd83   :  { %11816 = vmatprep.subr.mxu0 %v17307_v51 }
 0xd84   :  { %11817 = vmatpush3.msra.mxu0 %v13229_v40 }
 0xd85   :  { %11793 = vmatpush3.bf16.msra.mxu1 %v12919_v17  ;;  %11818 = vmatprep.subr.mxu0 %v17307_v51 }
 0xd86   :  { %11794 = vmatprep.subr.bf16.mxu1 %v12920_v0  ;;  %11819 = vmatpush3.msra.mxu0 %v13230_v56 }
 0xd87   :  { %11820 = vmatprep.subr.mxu0 %v17307_v51 }
 0xd88   :  { %11821 = vmatpush3.msra.mxu0 %v13231_v11 }
 0xd89   :  { %11795 = vmatpush3.bf16.msra.mxu1 %v12920_v0  ;;  %11822 = vmatprep.subr.mxu0 %v17307_v51 }
 0xd8a   :  { %11796 = vmatprep.subr.bf16.mxu1 %v12921_v27  ;;  %11823 = vmatpush3.msra.mxu0 %v13232_v23 }
 0xd8b   :  { %11824 = vmatprep.subr.mxu0 %v17307_v51 }
 0xd8c   :  { %11825 = vmatpush3.msra.mxu0 %v13233_v18 }
 0xd8d   :  { %11797 = vmatpush3.bf16.msra.mxu1 %v12921_v27  ;;  %11826 = vmatprep.subr.mxu0 %v17307_v51 }
 0xd8e   :  { %11798 = vmatprep.subr.bf16.mxu1 %v12922_v33  ;;  %11827 = vmatpush3.msra.mxu0 %v13234_v48 }
 0xd8f   :  { %11828 = vmatprep.subr.mxu0 %v17307_v51 }
 0xd90   :  { %11829 = vmatpush3.msra.mxu0 %v13235_v36 }
 0xd91   :  { %11799 = vmatpush3.bf16.msra.mxu1 %v12922_v33  ;;  %11830 = vmatprep.subr.mxu0 %v17307_v51 }
 0xd92   :  { %11831 = vmatpush3.msra.mxu0 %v13236_v7  ;;  %11839 = vmatprep.subr.mxu1 %v17307_v51 }
 0xd93   :  { %11832 = vmatprep.subr.mxu0 %v17307_v51 }
 0xd94   :  { %11801 = vmatmul.mubr.msk.bf16.vlgmr.msra.gmra.mxu1 %vm14808_vm2, %v9523_v62  ;;  %11833 = vmatpush3.msra.mxu0 %v13237_v44 }
 0xd95   :  { %11834 = vmatprep.subr.mxu0 %v17307_v51  ;;  %11840 = vmatpush3.msra.mxu1 %v14980_v5 }
 0xd96   :  { %11835 = vmatpush3.msra.mxu0 %v13238_v60  ;;  %11841 = vmatprep.subr.mxu1 %v17307_v51 }
 0xd97   :  { %11842 = vmatpush3.msra.mxu1 %v15000_v10  ;;  %11871 = vmatprep.mubr.msk.f32.mxu1 %vm17364_vm6, %v17307_v51 }
 0xd98   :  { %11843 = vmatprep.subr.mxu1 %v17307_v51 }
 0xd99   :  { %11844 = vmatpush3.msra.mxu1 %v15006_v46 }
 0xd9a   :  { %11845 = vmatprep.subr.mxu1 %v17307_v51 }
 0xd9b   :  { %11846 = vmatpush3.msra.mxu1 %v15014_v30 }
 0xd9c   :  { %11847 = vmatprep.subr.mxu1 %v17307_v51 }
 0xd9d   :  { %11848 = vmatpush3.msra.mxu1 %v13227_v38 }
 0xd9e   :  { %11849 = vmatprep.subr.mxu1 %v17307_v51 }
 0xd9f   :  { %11850 = vmatpush3.msra.mxu1 %v13228_v15 }
 0xda0   :  { %11851 = vmatprep.subr.mxu1 %v17307_v51 }
 0xda1   :  { %11852 = vmatpush3.msra.mxu1 %v13229_v40 }
 0xda2   :  { %11853 = vmatprep.subr.mxu1 %v17307_v51 }
 0xda3   :  { %11854 = vmatpush3.msra.mxu1 %v13230_v56 }
 0xda4   :  { %11855 = vmatprep.subr.mxu1 %v17307_v51 }
 0xda5   :  { %11856 = vmatpush3.msra.mxu1 %v13231_v11 }
 0xda6   :  { %11857 = vmatprep.subr.mxu1 %v17307_v51 }
 0xda7   :  { %11858 = vmatpush3.msra.mxu1 %v13232_v23 }
 0xda8   :  { %11859 = vmatprep.subr.mxu1 %v17307_v51 }
 0xda9   :  { %11860 = vmatpush3.msra.mxu1 %v13233_v18 }
 0xdaa   :  { %11861 = vmatprep.subr.mxu1 %v17307_v51 }
 0xdab   :  { %11862 = vmatpush3.msra.mxu1 %v13234_v48 }
 0xdac   :  { %11863 = vmatprep.subr.mxu1 %v17307_v51 }
 0xdad   :  { %11864 = vmatpush3.msra.mxu1 %v13235_v36 }
 0xdae   :  { %11865 = vmatprep.subr.mxu1 %v17307_v51 }
 0xdaf   :  { %11866 = vmatpush3.msra.mxu1 %v13236_v7 }
 0xdb0   :  { %11867 = vmatprep.subr.mxu1 %v17307_v51 }
 0xdb1   :  { %11868 = vmatpush3.msra.mxu1 %v13237_v44 }
 0xdb2   :  { %11869 = vmatprep.subr.mxu1 %v17307_v51 }
 0xdb3   :  { %11870 = vmatpush3.msra.mxu1 %v13238_v60 }
 0xe34   :  { %v10354_v42 = vpop.f32.mrf.mxu1  ;;  %v10382_v8 = vpop.f32.mrf.mxu0 }
 0xe36   :  { %v10355_v5 = vpop.f32.mrf.mxu1  ;;  %v10383_v4 = vpop.f32.mrf.mxu0 }
 0xe37   :  { %v10356_v0 = vadd.f32 %v10355_v5, %v10354_v42  ;;  %v10384_v15 = vadd.f32 %v10383_v4, %v10382_v8 }
 0xe38   :  { %v10357_v61 = vpop.f32.mrf.mxu1  ;;  %v10385_v45 = vpop.f32.mrf.mxu0 }
 0xe39   :  { %v3669_v49 = vadd.f32 %v10384_v15, %v10356_v0  ;;  %v12926_v0 = vld [vmem:[#allocation2 + $0x430] sm:$0xff]   ;;  %v12927_v15 = vld [vmem:[#allocation2 + $0x468] sm:$0xff]  }
 0xe3a   :  { %v10358_v59 = vpop.f32.mrf.mxu1  ;;  %v10386_v10 = vpop.f32.mrf.mxu0 }
 0xe3b   :  { %v10359_v40 = vadd.f32 %v10358_v59, %v10357_v61  ;;  %v10387_v27 = vadd.f32 %v10386_v10, %v10385_v45 }
 0xe3c   :  { %v10360_v24 = vpop.f32.mrf.mxu1  ;;  %v10388_v31 = vpop.f32.mrf.mxu0 }
 0xe3d   :  { %v3672_v1 = vadd.f32 %v10387_v27, %v10359_v40  ;;  %v12928_v40 = vld [vmem:[#allocation2 + $0x428] sm:$0xff]   ;;  %v12929_v27 = vld [vmem:[#allocation2 + $0x460] sm:$0xff]  }
 0xe3e   :  { %v10361_v57 = vpop.f32.mrf.mxu1  ;;  %v10389_v46 = vpop.f32.mrf.mxu0 }
 0xe3f   :  { %v10362_v33 = vadd.f32 %v10361_v57, %v10360_v24  ;;  %v10390_v23 = vadd.f32 %v10389_v46, %v10388_v31 }
 0xe40   :  { %v10363_v47 = vpop.f32.mrf.mxu1  ;;  %v10391_v17 = vpop.f32.mrf.mxu0 }
 0xe41   :  { %v3677_v62 = vadd.f32 %v10390_v23, %v10362_v33  ;;  %v12934_v33 = vld [vmem:[#allocation2 + $0x418] sm:$0xff]   ;;  %v12935_v23 = vld [vmem:[#allocation2 + $0x450] sm:$0xff]  }
 0xe42   :  { %v10364_v30 = vpop.f32.mrf.mxu1  ;;  %v10392_v56 = vpop.f32.mrf.mxu0 }
 0xe43   :  { %v10365_v18 = vadd.f32 %v10364_v30, %v10363_v47  ;;  %v10393_v48 = vadd.f32 %v10392_v56, %v10391_v17  ;;  %v12923_v47 = vld [vmem:[#allocation2 + $0x478] sm:$0xff]   ;;  %v12925_v30 = vld [vmem:[#allocation2 + $0x470] sm:$0xff]   ;;  %v12931_v56 = vld [vmem:[#allocation2 + $0x420] sm:$0xff]  }
 0xe44   :  { %v12924_v17 = vld [vmem:[#allocation2 + $0x438] sm:$0xff]   ;;  %10438 = vmatprep.subr.bf16.mxu0 %v12923_v47  ;;  %v17451_v47 = vld [vmem:[#allocation26_spill] sm:$0xff] }
 0xe45   :  { %v3680_v42 = vadd.f32 %v10393_v48, %v10365_v18  ;;  %v12938_v18 = vld [vmem:[#allocation2 + $0x448] sm:$0xff]  }
 0xe46   :  { %v12940_v48 = vld [vmem:[#allocation2 + $0x408] sm:$0xff]  }
 0xe54   :  { %v11802_v38 = vpop.f32.mrf.mxu1 }
 0xe55   :  { %v15068_v60 = vadd.f32 %v11802_v38, %v3677_v62  ;;  %v15076_v38 = vld [vmem:[#allocation2 + $0x4b8] sm:$0xff]  }
 0xe56   :  { %v3717_v11 = vpop.f32.mrf.mxu1  ;;  %11874 = vmatprep.subr.bf16.mxu1 %v15076_v38 }
 0xe57   :  { %v15064_v7 = vadd.f32 %v3717_v11, %v3669_v49  ;;  %v12932_v11 = vld [vmem:[#allocation2 + $0x458] sm:$0xff]   ;;  %v12941_v49 = vld [vmem:[#allocation2 + $0x440] sm:$0xff]  }
 0xe58   :  { %v11803_v32 = vpop.f32.mrf.mxu1 }
 0xe59   :  { %v15072_v5 = vadd.f32 %v11803_v32, %v3680_v42  ;;  %v12937_v32 = vld [vmem:[#allocation2 + $0x410] sm:$0xff]   ;;  %v17447_v42 = vld [vmem:[#allocation25_spill] sm:$0xff] }
 0xe5a   :  { %v3720_v36 = vpop.f32.mrf.mxu1 }
 0xe5b   :  { %v15066_v44 = vadd.f32 %v3720_v36, %v3672_v1  ;;  %v12943_v1 = vld [vmem:[#allocation2 + $0x400] sm:$0xff]  }
 0xe5c   :  { %v17446_v36 = vld [vmem:[#allocation28_spill] sm:$0xff] }
 0xe5d   :  { %v3732_v8 = vadd.f32 %v15066_v44, %v15064_v7  ;;  %v3923_v62 = vmax.f32 %v17446_v36, 0.0 }
 0xe5f   :  { %v3733_v4 = vadd.f32 %v3732_v8, %v15068_v60  ;;  %v3924_v8 = vmax.f32 %v17447_v42, 0.0 }
 0xe61   :  { %v3734_v61 = vadd.f32 %v3733_v4, %v15072_v5  ;;  %v17448_v4 = vld [vmem:[#allocation27_spill] sm:$0xff] }
 0xe63   :  { %v3735_v45 = vrot.slane %v3734_v61, 4 }
 0xe65   :  { %v3736_v59 = vadd.f32 %v3735_v45, %v3734_v61  ;;  %v3926_v61 = vmax.f32 %v17448_v4, 0.0  ;;  %v3927_v45 = vrot.slane %v3923_v62, 6 }
 0xe67   :  { %v3737_v10 = vrot.slane %v3736_v59, 2 }
 0xe69   :  { %v3738_v24 = vadd.f32 %v3737_v10, %v3736_v59  ;;  %v3928_v59 = vrot.slane %v3924_v8, 6  ;;  %v3952_v10 = vpack.c.bf16 %v3924_v8, %v3923_v62 }
 0xe6b   :  { %v3739_v31 = vrot.slane %v3738_v24, 1 }
 0xe6d   :  { %v3740_v57 = vadd.f32 %v3739_v31, %v3738_v24  ;;  %v3930_v24 = vrot.slane %v3926_v61, 6  ;;  %v3933_v31 = vsel %vm17449_vm10, %v3927_v45, %v3928_v59  ;;  %vm17456_vm10 = vmmov %vm17444_vm4 }
 0xe6f   :  { %v3741_v46 = vmul.f32 0.03125, %v3740_v57  ;;  %v3934_v57 = vsel %vm17450_vm15, %v3930_v24, %v3927_v45  ;;  %vm17457_vm15 = vcmp.lt.s32.totalorder %v17391_v22, 1 }
 0xe71   :  { %11837 = vmatmul.mubr.f32.vlgmr.msra.gmra.mxu0 %v3741_v46  ;;  %v9554_v46 = vpack.c.bf16 %v3933_v31, %v3934_v57 }
 0xe72   :  { %10439 = vmatpush3.bf16.msra.mxu0 %v12924_v17  ;;  %4181 = vmatprep.mubr.bf16.mxu0 %v3952_v10  ;;  %v3925_v17 = vmax.f32 %v17451_v47, 0.0 }
 0xe73   :  { %10440 = vmatprep.subr.bf16.mxu0 %v12925_v30 }
 0xe74   :  { %v3955_v30 = vpack.c.bf16 %v3926_v61, %v3925_v17 }
 0xe76   :  { %10441 = vmatpush3.bf16.msra.mxu0 %v12926_v0  ;;  %v3929_v0 = vrot.slane %v3925_v17, 6 }
 0xe77   :  { %10442 = vmatprep.subr.bf16.mxu0 %v12927_v15 }
 0xe78   :  { %v3931_v15 = vsel %vm17452_vm11, %v3929_v0, %v3930_v24  ;;  %vm17458_vm11 = vmmov %vm17457_vm15 }
 0xe7a   :  { %10443 = vmatpush3.bf16.msra.mxu0 %v12928_v40  ;;  %v3932_v40 = vsel %vm17453_vm8, %v3928_v59, %v3929_v0  ;;  %vm17459_vm8 = vnez %v17382_v35 }
 0xe7b   :  { %10444 = vmatprep.subr.bf16.mxu0 %v12929_v27  ;;  %v3939_v27 = vrot.slane %v3923_v62, 2 }
 0xe7e   :  { %10445 = vmatpush3.bf16.msra.mxu0 %v12931_v56  ;;  %v3940_v56 = vrot.slane %v3924_v8, 2 }
 0xe7f   :  { %10446 = vmatprep.subr.bf16.mxu0 %v12932_v11  ;;  %v9557_v11 = vpack.c.bf16 %v3931_v15, %v3932_v40 }
 0xe82   :  { %10447 = vmatpush3.bf16.msra.mxu0 %v12934_v33  ;;  %v3941_v33 = vrot.slane %v3925_v17, 2 }
 0xe83   :  { %10448 = vmatprep.subr.bf16.mxu0 %v12935_v23  ;;  %v3942_v23 = vrot.slane %v3926_v61, 2 }
 0xe86   :  { %10449 = vmatpush3.bf16.msra.mxu0 %v12937_v32  ;;  %v3945_v32 = vsel %vm17454_vm7, %v3939_v27, %v3940_v56  ;;  %vm17460_vm7 = vnez %v17270_v41 }
 0xe87   :  { %10450 = vmatprep.subr.bf16.mxu0 %v12938_v18  ;;  %v3944_v18 = vsel %vm17444_vm4, %v3940_v56, %v3941_v33  ;;  %vm17461_vm4 = vcmp.lt.s32.totalorder %v17391_v22, 7 }
 0xe8a   :  { %10451 = vmatpush3.bf16.msra.mxu0 %v12940_v48  ;;  %v3943_v48 = vsel %vm17455_vm9, %v3941_v33, %v3942_v23  ;;  %v12933_v33 = vld [vmem:[#allocation2 + $0x4b0] sm:$0xff]   ;;  %vm17462_vm9 = vnez %v17268_v13 }
 0xe8b   :  { %10452 = vmatprep.subr.bf16.mxu0 %v12941_v49  ;;  %v3946_v49 = vsel %vm17456_vm10, %v3942_v23, %v3939_v27  ;;  %v12936_v23 = vld [vmem:[#allocation2 + $0x4a8] sm:$0xff]   ;;  %vm17463_vm10 = vmmov %vm17461_vm4 }
 0xe8c   :  { %v9563_v62 = vpack.c.bf16 %v3946_v49, %v3943_v48  ;;  %v12944_v48 = vld [vmem:[#allocation2 + $0x490] sm:$0xff]   ;;  %v12945_v49 = vld [vmem:[#allocation2 + $0x488] sm:$0xff]   ;;  %vm17467_vm14 = vmmov %vm17463_vm10 }
 0xe8e   :  { %10453 = vmatpush3.bf16.msra.mxu0 %v12943_v1  ;;  %v9560_v1 = vpack.c.bf16 %v3944_v18, %v3945_v32  ;;  %v12939_v32 = vld [vmem:[#allocation2 + $0x4a0] sm:$0xff]   ;;  %v12942_v18 = vld [vmem:[#allocation2 + $0x498] sm:$0xff]  }
 0xe8f   :  { %11894 = vmatprep.subr.mxu0 %v17307_v51 }
 0xe91   :  { %9555 = vmatmul.mubr.msk.bf16.vlgmr.msra.gmra.mxu0 %vm14719_vm5, %v9554_v46 }
 0xe92   :  { %4189 = vmatprep.mubr.bf16.mxu0 %v3955_v30 }
 0xe99   :  { %9558 = vmatmul.mubr.msk.bf16.gmra.mxu0 %vm17443_vm0, %v9557_v11 }
 0xe9a   :  { %11926 = vmatprep.mubr.msk.f32.mxu0 %vm17364_vm6, %v17307_v51 }
 0xf31   :  { %v3808_v8 = vpop.f32.mrf.mxu0 }
 0xf32   :  { %v3815_v61 = vrot.slane %v3808_v8, %v13672_v6  ;;  %v5181_v8 = vrot.slane %v14410_v12, 7 }
 0xf33   :  { %v11838_v45 = vpop.f32.mrf.mxu0 }
 0xf34   :  { %v15108_v59 = vsub.f32 %v15064_v7, %v3815_v61  ;;  %v15111_v10 = vsub.f32 %v15066_v44, %v3815_v61  ;;  %v15114_v24 = vsub.f32 %v15068_v60, %v3815_v61  ;;  %v15117_v31 = vsub.f32 %v15072_v5, %v3815_v61 }
 0xf35   :  { %v5179_v61 = vrot.slane %v14406_v63, 7  ;;  %v5182_v45 = vrot.slane %v14412_v2, 7 }
 0xf36   :  { %v3820_v57 = vmul.f32 %v15108_v59, %v15108_v59  ;;  %v3821_v46 = vmul.f32 %v15111_v10, %v15111_v10  ;;  %v3822_v17 = vmul.f32 %v15114_v24, %v15114_v24  ;;  %v3823_v44 = vmul.f32 %v15117_v31, %v15117_v31 }
 0xf38   :  { %v3824_v7 = vadd.f32 %v3821_v46, %v3820_v57  ;;  %v5197_v46 = vrot.slane %v14410_v12, 1 }
 0xf3a   :  { %v3825_v30 = vadd.f32 %v3824_v7, %v3822_v17  ;;  %v5198_v17 = vrot.slane %v14412_v2, 1 }
 0xf3c   :  { %v3826_v0 = vadd.f32 %v3825_v30, %v3823_v44  ;;  %v5195_v30 = vrot.slane %v14406_v63, 1 }
 0xf3e   :  { %v3827_v60 = vrot.slane %v3826_v0, 4 }
 0xf40   :  { %v3828_v15 = vadd.f32 %v3827_v60, %v3826_v0  ;;  %v5196_v0 = vrot.slane %v14408_v19, 1 }
 0xf42   :  { %v3829_v40 = vrot.slane %v3828_v15, 2 }
 0xf44   :  { %v3830_v5 = vadd.f32 %v3829_v40, %v3828_v15  ;;  %v5199_v15 = vsel %vm17461_vm4, %v5197_v46, %v5198_v17  ;;  %vm17465_vm4 = vnez %v17272_v50 }
 0xf46   :  { %v3831_v27 = vrot.slane %v3830_v5, 1 }
 0xf48   :  { %v3832_v56 = vadd.f32 %v3831_v27, %v3830_v5  ;;  %v5205_v5 = vsel %vm17462_vm9, %v5199_v15, -1e+30  ;;  %v5201_v27 = vsel %vm17463_vm10, %v5195_v30, %v5196_v0  ;;  %v15266_v15 = vld [vmem:[#allocation8 + $0x20] sm:$0xff] }
 0xf4a   :  { %v3833_v11 = vmul.f32 0.03125, %v3832_v56 }
 0xf4c   :  { %11872 = vmatmul.mubr.f32.vlgmr.msra.gmra.mxu1 %v3833_v11 }
 0xf4d   :  { %11875 = vmatpush3.bf16.msra.mxu1 %v15076_v38  ;;  %11890 = vmatprep.mubr.msk.bf16.mxu1 %vm14792_vm3, %v9560_v1  ;;  %v12946_v38 = vld [vmem:[#allocation2 + $0x480] sm:$0xff]   ;;  %v5180_v1 = vrot.slane %v14408_v19, 7 }
 0xf4e   :  { %11876 = vmatprep.subr.bf16.mxu1 %v12933_v33 }
 0xf4f   :  { %v5184_v57 = vsel %vm17457_vm15, %v5180_v1, %v5181_v8  ;;  %vm17464_vm15 = vnez %v17274_v55 }
 0xf50   :  { %v5189_v7 = vsel %vm17459_vm8, %v5184_v57, -1e+30  ;;  %v5203_v11 = vsel %vm17464_vm15, %v5201_v27, -1e+30  ;;  %v15282_v27 = vld [vmem:[#allocation8 + $0x8] sm:$0xff] }
 0xf51   :  { %11877 = vmatpush3.bf16.msra.mxu1 %v12933_v33  ;;  %v5193_v60 = vmax.f32 %v14410_v12, %v5189_v7  ;;  %v5185_v33 = vsel %vm17458_vm11, %v5179_v61, %v5180_v1  ;;  %v15184_v1 = vld [vmem:[#allocation8 + $0x78] sm:$0xff]  ;;  %v15238_v7 = vld [vmem:[#allocation8 + $0x48] sm:$0xff] }
 0xf52   :  { %11878 = vmatprep.subr.bf16.mxu1 %v12936_v23  ;;  %11895 = vmatpush3.msra.mxu0 %v15184_v1 }
 0xf53   :  { %v15159_v56 = vmax.f32 %v5193_v60, %v5205_v5  ;;  %11896 = vmatprep.subr.mxu0 %v17307_v51  ;;  %v15262_v60 = vld [vmem:[#allocation8 + $0x28] sm:$0xff]  ;;  %v15276_v5 = vld [vmem:[#allocation8 + $0x10] sm:$0xff] }
 0xf55   :  { %11879 = vmatpush3.bf16.msra.mxu1 %v12936_v23  ;;  %v5188_v23 = vsel %vm17465_vm4, %v5185_v33, -1e+30  ;;  %5215 = vrot.lane.b32.xlu1 %v15159_v56, %s13421_s18  ;;  %v2444_v33 = vadd.f32 1e-05, %v14911_v43 }
 0xf56   :  { %11880 = vmatprep.subr.bf16.mxu1 %v12939_v32 }
 0xf57   :  { %13183 = vrsqrt.f32 %v2444_v33 }
 0xf59   :  { %11881 = vmatpush3.bf16.msra.mxu1 %v12939_v32  ;;  %v5200_v32 = vsel %vm17463_vm10, %v5196_v0, %v5197_v46  ;;  %vm17468_vm10 = vnez %v17383_v58  ;;  %v15217_v46 = vld [vmem:[#allocation8 + $0x60] sm:$0xff]  ;;  %v15256_v0 = vld [vmem:[#allocation8 + $0x30] sm:$0xff] }
 0xf5a   :  { %11882 = vmatprep.subr.bf16.mxu1 %v12942_v18 }
 0xf5d   :  { %11883 = vmatpush3.bf16.msra.mxu1 %v12942_v18  ;;  %v5204_v18 = vsel %vm17466_vm1, %v5200_v32, -1e+30 }
 0xf5e   :  { %11884 = vmatprep.subr.bf16.mxu1 %v12944_v48 }
 0xf61   :  { %11885 = vmatpush3.bf16.msra.mxu1 %v12944_v48 }
 0xf62   :  { %11886 = vmatprep.subr.bf16.mxu1 %v12945_v49 }
 0xf65   :  { %11887 = vmatpush3.bf16.msra.mxu1 %v12945_v49  ;;  %v5183_v49 = vsel %vm17458_vm11, %v5181_v8, %v5182_v45 }
 0xf66   :  { %11888 = vmatprep.subr.bf16.mxu1 %v12946_v38 }
 0xf69   :  { %11889 = vmatpush3.bf16.msra.mxu1 %v12946_v38  ;;  %v5202_v38 = vsel %vm17467_vm14, %v5198_v17, %v5195_v30  ;;  %v15227_v17 = vld [vmem:[#allocation8 + $0x58] sm:$0xff]  ;;  %vm17470_vm14 = vmmov %vm17458_vm11 }
 0xf6a   :  { %11929 = vmatprep.subr.mxu1 %v17307_v51  ;;  %v5206_v57 = vsel %vm17469_vm13, %v5202_v38, -1e+30  ;;  %v15250_v30 = vld [vmem:[#allocation8 + $0x38] sm:$0xff]  ;;  %vm17472_vm12 = vmmov %vm17470_vm14 }
 0xf6c   :  { %11891 = vmatmul.mubr.msk.bf16.vlgmr.msra.gmra.mxu1 %vm14808_vm2, %v9563_v62  ;;  %v5186_v62 = vsel %vm17458_vm11, %v5182_v45, %v5179_v61  ;;  %v5190_v61 = vsel %vm17468_vm10, %v5183_v49, -1e+30  ;;  %v10454_v49 = vpop.f32.mrf.mxu0  ;;  %vm17471_vm11 = vcmp.lt.s32.totalorder %v17391_v22, 7 }
 0xf6d   :  { %11961 = vmatprep.mubr.msk.f32.mxu1 %vm17364_vm6, %v17307_v51  ;;  %v5187_v44 = vsel %vm17460_vm7, %v5186_v62, -1e+30  ;;  %11930 = vmatpush3.msra.mxu1 %v15184_v1  ;;  %v5194_v8 = vmax.f32 %v14412_v2, %v5190_v61  ;;  %v15215_v2 = vld [vmem:[#allocation8 + $0x68] sm:$0xff]  ;;  %v15232_v62 = vld [vmem:[#allocation8 + $0x50] sm:$0xff]  ;;  %vm17473_vm2 = vmmov %vm17471_vm11 }
 0xf6e   :  { %v5191_v40 = vmax.f32 %v14406_v63, %v5187_v44  ;;  %v5192_v63 = vmax.f32 %v14408_v19, %v5188_v23  ;;  %v15186_v19 = vld [vmem:[#allocation8 + $0x70] sm:$0xff]  ;;  %11931 = vmatprep.subr.mxu1 %v17307_v51  ;;  %v15244_v44 = vld [vmem:[#allocation8 + $0x40] sm:$0xff]  ;;  %v10455_v61 = vpop.f32.mrf.mxu0 }
 0xf6f   :  { %11897 = vmatpush3.msra.mxu0 %v15186_v19  ;;  %v15201_v45 = vmax.f32 %v5194_v8, %v5206_v57  ;;  %11932 = vmatpush3.msra.mxu1 %v15186_v19 }
 0xf70   :  { %v15165_v12 = vmax.f32 %v5191_v40, %v5203_v11  ;;  %v15178_v48 = vmax.f32 %v5192_v63, %v5204_v18  ;;  %11898 = vmatprep.subr.mxu0 %v17307_v51  ;;  %11933 = vmatprep.subr.mxu1 %v17307_v51  ;;  %v15270_v40 = vld [vmem:[#allocation8 + $0x18] sm:$0xff]  ;;  %v15288_v11 = vld [vmem:[#allocation8] sm:$0xff]  ;;  %v13184_v18 = vpop.eup %13183  ;;  %v15303_v43 = vpop.f32.mrf.mxu0 }
 0xf71   :  { %11899 = vmatpush3.msra.mxu0 %v15215_v2  ;;  %11934 = vmatpush3.msra.mxu1 %v15215_v2  ;;  %v2449_v38 = vrot.slane %v13184_v18, %v13672_v6 }
 0xf72   :  { %5211 = vrot.lane.b32.xlu0 %v15165_v12, %s13421_s18  ;;  %5227 = vrot.lane.b32.xlu1 %v15165_v12, %s13426_s1 }
 0xf73   :  { %11900 = vmatprep.subr.mxu0 %v17307_v51  ;;  %11935 = vmatprep.subr.mxu1 %v17307_v51  ;;  %v2450_v57 = vmul.f32 %v2449_v38, %v14850_v3  ;;  %v2451_v8 = vmul.f32 %v2449_v38, %v14853_v53  ;;  %v2452_v20 = vmul.f32 %v2449_v38, %v14856_v37 }
 0xf74   :  { %11901 = vmatpush3.msra.mxu0 %v15217_v46  ;;  %11936 = vmatpush3.msra.mxu1 %v15217_v46  ;;  %v2453_v52 = vmul.f32 %v2449_v38, %v14859_v26  ;;  %v10458_v38 = vpop.f32.mrf.mxu0 }
 0xf75   :  { %11902 = vmatprep.subr.mxu0 %v17307_v51  ;;  %11937 = vmatprep.subr.mxu1 %v17307_v51 }
 0xf76   :  { %5213 = vrot.lane.b32.xlu0 %v15178_v48, %s13421_s18  ;;  %5217 = vrot.lane.b32.xlu1 %v15201_v45, %s13421_s18  ;;  %v2457_v18 = vadd.f32 %v2453_v52, %v17448_v4 }
 0xf77   :  { %11903 = vmatpush3.msra.mxu0 %v15227_v17  ;;  %11938 = vmatpush3.msra.mxu1 %v15227_v17 }
 0xf78   :  { %11904 = vmatprep.subr.mxu0 %v17307_v51  ;;  %11939 = vmatprep.subr.mxu1 %v17307_v51 }
 0xf79   :  { %11905 = vmatpush3.msra.mxu0 %v15232_v62  ;;  %11940 = vmatpush3.msra.mxu1 %v15232_v62 }
 0xf7a   :  { %5229 = vrot.lane.b32.xlu0 %v15178_v48, %s13426_s1  ;;  %5233 = vrot.lane.b32.xlu1 %v15201_v45, %s13426_s1 }
 0xf7b   :  { %11906 = vmatprep.subr.mxu0 %v17307_v51  ;;  %11941 = vmatprep.subr.mxu1 %v17307_v51 }
 0xf7c   :  { %11907 = vmatpush3.msra.mxu0 %v15238_v7  ;;  %11942 = vmatpush3.msra.mxu1 %v15238_v7 }
 0xf7d   :  { %11908 = vmatprep.subr.mxu0 %v17307_v51  ;;  %11943 = vmatprep.subr.mxu1 %v17307_v51 }
 0xf7e   :  { %5231 = vrot.lane.b32.xlu0 %v15159_v56, %s13426_s1  ;;  %11909 = vmatpush3.msra.mxu0 %v15244_v44 }
 0xf7f   :  { %11944 = vmatpush3.msra.mxu1 %v15244_v44  ;;  %11910 = vmatprep.subr.mxu0 %v17307_v51 }
 0xf80   :  { %11945 = vmatprep.subr.mxu1 %v17307_v51  ;;  %11911 = vmatpush3.msra.mxu0 %v15250_v30 }
 0xf81   :  { %11946 = vmatpush3.msra.mxu1 %v15250_v30  ;;  %11912 = vmatprep.subr.mxu0 %v17307_v51 }
 0xf82   :  { %11947 = vmatprep.subr.mxu1 %v17307_v51  ;;  %11913 = vmatpush3.msra.mxu0 %v15256_v0 }
 0xf83   :  { %11948 = vmatpush3.msra.mxu1 %v15256_v0  ;;  %11914 = vmatprep.subr.mxu0 %v17307_v51 }
 0xf84   :  { %11949 = vmatprep.subr.mxu1 %v17307_v51  ;;  %11915 = vmatpush3.msra.mxu0 %v15262_v60 }
 0xf85   :  { %11950 = vmatpush3.msra.mxu1 %v15262_v60  ;;  %11916 = vmatprep.subr.mxu0 %v17307_v51 }
 0xf86   :  { %11951 = vmatprep.subr.mxu1 %v17307_v51  ;;  %11917 = vmatpush3.msra.mxu0 %v15266_v15 }
 0xf87   :  { %11952 = vmatpush3.msra.mxu1 %v15266_v15  ;;  %11918 = vmatprep.subr.mxu0 %v17307_v51 }
 0xf88   :  { %11953 = vmatprep.subr.mxu1 %v17307_v51  ;;  %11919 = vmatpush3.msra.mxu0 %v15270_v40 }
 0xf89   :  { %11954 = vmatpush3.msra.mxu1 %v15270_v40  ;;  %11920 = vmatprep.subr.mxu0 %v17307_v51 }
 0xf8a   :  { %11955 = vmatprep.subr.mxu1 %v17307_v51  ;;  %11921 = vmatpush3.msra.mxu0 %v15276_v5 }
 0xf8b   :  { %11956 = vmatpush3.msra.mxu1 %v15276_v5  ;;  %11922 = vmatprep.subr.mxu0 %v17307_v51 }
 0xf8c   :  { %11957 = vmatprep.subr.mxu1 %v17307_v51  ;;  %11923 = vmatpush3.msra.mxu0 %v15282_v27 }
 0xf8d   :  { %11958 = vmatpush3.msra.mxu1 %v15282_v27  ;;  %11924 = vmatprep.subr.mxu0 %v17307_v51 }
 0xf8e   :  { %11959 = vmatprep.subr.mxu1 %v17307_v51  ;;  %11925 = vmatpush3.msra.mxu0 %v15288_v11 }
 0xf8f   :  { %11960 = vmatpush3.msra.mxu1 %v15288_v11 }
0x100c   :  { %v3900_v23 = vpop.f32.mrf.mxu1 }
0x100d   :  { %v3904_v63 = vadd.f32 1e-05, %v3900_v23  ;;  %v2454_v23 = vadd.f32 %v2450_v57, %v17446_v36 }
0x100e   :  { %v11873_v32 = vpop.f32.mrf.mxu1 }
0x100f   :  { %13185 = vrsqrt.f32 %v3904_v63  ;;  %v2455_v63 = vadd.f32 %v2451_v8, %v17447_v42  ;;  %v2456_v32 = vadd.f32 %v2452_v20, %v17451_v47  ;;  %v12954_v42 = vld [vmem:[#allocation2 + $0x4e0] sm:$0xff]  }
0x101c   :  { %v13186_v9 = vpop.eup %13185 }
0x101d   :  { %v3909_v33 = vrot.slane %v13186_v9, %v13672_v6 }
0x101f   :  { %v3910_v3 = vmul.f32 %v3909_v33, %v15108_v59  ;;  %v3911_v53 = vmul.f32 %v3909_v33, %v15111_v10  ;;  %v3912_v37 = vmul.f32 %v3909_v33, %v15114_v24  ;;  %v3913_v26 = vmul.f32 %v3909_v33, %v15117_v31  ;;  %v10460_v24 = vpop.f32.mrf.mxu0 }
0x1021   :  { %v3914_v21 = vadd.f32 %v3910_v3, %v2454_v23  ;;  %v3915_v39 = vadd.f32 %v3911_v53, %v2455_v63  ;;  %v3916_v9 = vadd.f32 %v3912_v37, %v2456_v32  ;;  %v3917_v29 = vadd.f32 %v3913_v26, %v2457_v18  ;;  %v10461_v41 = vpop.f32.mrf.mxu0 }
0x1023   :  { %9525 = vst [vmem:[%s17050_s8 + $0x20] sm:$0xff] %v3914_v21  ;;  %9526 = vst [vmem:[%s17050_s8 + $0x28] sm:$0xff] %v3915_v39  ;;  %v5429_v20 = vrot.slane %v3914_v21, 7  ;;  %v5432_v52 = vrot.slane %v3917_v29, 7  ;;  %v5445_v59 = vrot.slane %v3914_v21, 1  ;;  %v5446_v10 = vrot.slane %v3915_v39, 1 }
0x1024   :  { %9527 = vst [vmem:[%s17050_s8 + $0x30] sm:$0xff] %v3916_v9  ;;  %9528 = vst [vmem:[%s17050_s8 + $0x38] sm:$0xff] %v3917_v29  ;;  %v5430_v31 = vrot.slane %v3915_v39, 7  ;;  %v5447_v57 = vrot.slane %v3916_v9, 1  ;;  %v5431_v8 = vrot.slane %v3916_v9, 7  ;;  %v5448_v63 = vrot.slane %v3917_v29, 1 }
0x1025   :  { %v5436_v33 = vsel %vm17470_vm14, %v5432_v52, %v5429_v20  ;;  %v5451_v23 = vsel %vm17471_vm11, %v5445_v59, %v5446_v10  ;;  %v15336_v53 = vmax.f32 %v3914_v21, 0.0  ;;  %vm17474_vm14 = vmmov %vm17472_vm12  ;;  %v15360_v14 = vmax.f32 %v3915_v39, 0.0 }
0x1026   :  { %v5437_v32 = vsel %vm17460_vm7, %v5436_v33, 0.0  ;;  %v5435_v18 = vsel %vm17472_vm12, %v5429_v20, %v5430_v31  ;;  %v5450_v3 = vsel %vm17473_vm2, %v5446_v10, %v5447_v57  ;;  %v5453_v26 = vsel %vm17464_vm15, %v5451_v23, 0.0 }
0x1027   :  { %v5441_v37 = vadd.f32 %v5437_v32, %v3914_v21  ;;  %v5438_v4 = vsel %vm17465_vm4, %v5435_v18, 0.0  ;;  %v5434_v47 = vsel %vm17474_vm14, %v5430_v31, %v5431_v8  ;;  %v5454_v20 = vsel %vm17466_vm1, %v5450_v3, 0.0  ;;  %vm17477_vm1 = vmmov %vm17473_vm2  ;;  %v12952_v3 = vld [vmem:[#allocation2 + $0x4e8] sm:$0xff]  }
0x1028   :  { %v5442_v33 = vadd.f32 %v5438_v4, %v3915_v39  ;;  %v5439_v10 = vsel %vm17459_vm8, %v5434_v47, 0.0  ;;  %v5433_v21 = vsel %vm17472_vm12, %v5431_v8, %v5432_v52  ;;  %v5449_v50 = vsel %vm17473_vm2, %v5447_v57, %v5448_v63  ;;  %v10463_v47 = vpop.f32.mrf.mxu0 }
0x1029   :  { %v15350_v32 = vadd.f32 %v5453_v26, %v5441_v37  ;;  %v5443_v55 = vadd.f32 %v5439_v10, %v3916_v9  ;;  %v5440_v31 = vsel %vm17468_vm10, %v5433_v21, 0.0  ;;  %v10456_v4 = vadd.f32 %v10455_v61, %v10454_v49 }
0x102a   :  { %v15356_v23 = vadd.f32 %v5454_v20, %v5442_v33  ;;  %v8054_v35 = vrot.slane %v15336_v53, 6  ;;  %v5455_v57 = vsel %vm17462_vm9, %v5449_v50, 0.0  ;;  %v5444_v58 = vadd.f32 %v5440_v31, %v3917_v29  ;;  %v10464_v21 = vpop.f32.mrf.mxu0  ;;  %v12950_v31 = vld [vmem:[#allocation2 + $0x4f0] sm:$0xff]  }
0x102b   :  { %5461 = vrot.lane.b32.xlu0 %v15350_v32, %s13421_s18  ;;  %v15367_v8 = vmax.f32 %v3917_v29, 0.0  ;;  %v15369_v18 = vmax.f32 %v3916_v9, 0.0  ;;  %v15371_v49 = vadd.f32 %v5455_v57, %v5443_v55  ;;  %v5452_v39 = vsel %vm17477_vm1, %v5448_v63, %v5445_v59 }
0x102c   :  { %5463 = vrot.lane.b32.xlu1 %v15356_v23, %s13421_s18  ;;  %v11892_v52 = vpop.f32.mrf.mxu1  ;;  %v8055_v61 = vrot.slane %v15360_v14, 6  ;;  %v8066_v9 = vrot.slane %v15336_v53, 2  ;;  %v10459_v33 = vadd.f32 %v10458_v38, %v15303_v43  ;;  %vm17478_vm8 = vcmp.lt.s32.totalorder %v17391_v22, 2 }
0x102d   :  { %17475 = vst [vmem:[#allocation64_spill] sm:$0xff] %v15367_v8  ;;  %17476 = vst [vmem:[#allocation65_spill] sm:$0xff] %v15369_v18  ;;  %v8057_v26 = vrot.slane %v15367_v8, 6  ;;  %v8056_v29 = vrot.slane %v15369_v18, 6  ;;  %v8067_v63 = vrot.slane %v15360_v14, 2  ;;  %v8068_v20 = vrot.slane %v15369_v18, 2 }
0x102e   :  { %v4232_v37 = vpop.f32.mrf.mxu1  ;;  %v15388_v59 = vsel %vm17478_vm8, %v8054_v35, %v8055_v61  ;;  %v10462_v10 = vadd.f32 %v10461_v41, %v10460_v24  ;;  %vm17479_vm7 = vmmov %vm17478_vm8  ;;  %v5456_v24 = vsel %vm17469_vm13, %v5452_v39, 0.0  ;;  %vm17485_vm4 = vcmp.lt.s32.totalorder %v17391_v22, 6  ;;  %v12951_v41 = vld [vmem:[#allocation2 + $0x528] sm:$0xff]   ;;  %v17510_v18 = vld [vmem:[#allocation24_spill] sm:$0xff] }
0x102f   :  { %5465 = vrot.lane.b32.xlu0 %v15371_v49, %s13421_s18  ;;  %v15396_v43 = vsel %vm17479_vm7, %v8057_v26, %v8054_v35  ;;  %vm17481_vm9 = vmmov %vm17479_vm7  ;;  %v15414_v35 = vsel %vm17485_vm4, %v8067_v63, %v8068_v20  ;;  %v8069_v16 = vrot.slane %v15367_v8, 2  ;;  %v10465_v39 = vadd.f32 %v10464_v21, %v10463_v47 }
0x1030   :  { %5477 = vrot.lane.b32.xlu1 %v15350_v32, %s13426_s1  ;;  %v11893_v55 = vpop.f32.mrf.mxu1  ;;  %17480 = vst [vmem:[#allocation66_spill] sm:$0xff] %v15396_v43  ;;  %v15400_v38 = vsel %vm17481_vm9, %v8056_v29, %v8057_v26  ;;  %vm17483_vm15 = vmmov %vm17479_vm7  ;;  %v15416_v26 = vadd.f32 %v5456_v24, %v5444_v58  ;;  %vm17212_vm2 = vcmp.lt.s32.totalorder %v17391_v22, 4 }
0x1031   :  { %17482 = vst [vmem:[#allocation67_spill] sm:$0xff] %v15400_v38  ;;  %v15404_v50 = vsel %vm17483_vm15, %v8055_v61, %v8056_v29  ;;  %17486 = vst [vmem:[#allocation69_spill] sm:$0xff] %v15414_v35  ;;  %v15423_v29 = vadd.f32 %v10456_v4, %v4232_v37  ;;  %v15441_v4 = vadd.f32 %v11892_v52, %v10462_v10 }
0x1032   :  { %17484 = vst [vmem:[#allocation68_spill] sm:$0xff] %v15404_v50  ;;  %v4235_v57 = vpop.f32.mrf.mxu1  ;;  %vm17487_vm10 = vmmov %vm17485_vm4 }
0x1033   :  { %v15420_v61 = vsel %vm17487_vm10, %v8066_v9, %v8067_v63  ;;  %v15425_v13 = vadd.f32 %v10459_v33, %v4235_v57  ;;  %5479 = vrot.lane.b32.xlu0 %v15356_v23, %s13426_s1  ;;  %vm17489_vm13 = vmmov %vm17485_vm4  ;;  %v15447_v63 = vadd.f32 %v11893_v55, %v10465_v39  ;;  %v12948_v55 = vld [vmem:[#allocation2 + $0x4f8] sm:$0xff]  }
0x1034   :  { %17488 = vst [vmem:[#allocation70_spill] sm:$0xff] %v15420_v61  ;;  %5467 = vrot.lane.b32.xlu1 %v15416_v26, %s13421_s18  ;;  %v15435_v58 = vsel %vm17489_vm13, %v8068_v20, %v8069_v16  ;;  %vm17491_vm11 = vmmov %vm17485_vm4  ;;  %v12947_v20 = vld [vmem:[#allocation2 + $0x538] sm:$0xff]   ;;  %v17506_v61 = vld [vmem:[#allocation41_spill] sm:$0xff] }
0x1035   :  { %17490 = vst [vmem:[#allocation71_spill] sm:$0xff] %v15435_v58  ;;  %v15439_v47 = vsel %vm17491_vm11, %v8069_v16, %v8066_v9  ;;  %v4247_v37 = vadd.f32 %v15425_v13, %v15423_v29  ;;  %10510 = vmatprep.subr.bf16.mxu0 %v12947_v20  ;;  %v12963_v20 = vld [vmem:[#allocation2 + $0x5b8] sm:$0xff]   ;;  %vm17496_vm14 = vmmov %vm17479_vm7  ;;  %v4476_v35 = vrot.slane %v17506_v61, 6 }
0x1036   :  { %17492 = vst [vmem:[#allocation72_spill] sm:$0xff] %v15439_v47  ;;  %10538 = vmatprep.subr.bf16.mxu1 %v12963_v20  ;;  %vm17497_vm12 = vmmov %vm17479_vm7 }
0x1037   :  { %v4248_v21 = vadd.f32 %v4247_v37, %v15441_v4  ;;  %5481 = vrot.lane.b32.xlu0 %v15371_v49, %s13426_s1  ;;  %v12949_v37 = vld [vmem:[#allocation2 + $0x530] sm:$0xff]   ;;  %vm17507_vm13 = vmmov %vm17497_vm12 }
0x1038   :  { %5483 = vrot.lane.b32.xlu1 %v15416_v26, %s13426_s1  ;;  %vm17508_vm11 = vmmov %vm17497_vm12 }
0x1039   :  { %v4249_v9 = vadd.f32 %v4248_v21, %v15447_v63  ;;  %v12953_v21 = vld [vmem:[#allocation2 + $0x520] sm:$0xff]  }
0x103b   :  { %v4250_v52 = vrot.slane %v4249_v9, 4 }
0x103d   :  { %v4251_v10 = vadd.f32 %v4250_v52, %v4249_v9  ;;  %v12955_v9 = vld [vmem:[#allocation2 + $0x518] sm:$0xff]  }
0x103e   :  { %v12956_v52 = vld [vmem:[#allocation2 + $0x4d8] sm:$0xff]  }
0x103f   :  { %v4252_v24 = vrot.slane %v4251_v10, 2 }
0x1041   :  { %v4253_v57 = vadd.f32 %v4252_v24, %v4251_v10  ;;  %v12957_v10 = vld [vmem:[#allocation2 + $0x510] sm:$0xff]   ;;  %v12959_v24 = vld [vmem:[#allocation2 + $0x508] sm:$0xff]  }
0x1043   :  { %v4254_v16 = vrot.slane %v4253_v57, 1 }
0x1045   :  { %v4255_v33 = vadd.f32 %v4254_v16, %v4253_v57  ;;  %v12961_v57 = vld [vmem:[#allocation2 + $0x500] sm:$0xff]  }
0x1047   :  { %v4256_v39 = vmul.f32 0.03125, %v4255_v33  ;;  %v12958_v33 = vld [vmem:[#allocation2 + $0x4d0] sm:$0xff]  }
0x1049   :  { %11927 = vmatmul.mubr.f32.vlgmr.msra.gmra.mxu0 %v4256_v39  ;;  %v17495_v39 = vld [vmem:[#allocation42_spill] sm:$0xff] }
0x104a   :  { %10511 = vmatpush3.bf16.msra.mxu0 %v12948_v55  ;;  %v17494_v55 = vld [vmem:[#allocation40_spill] sm:$0xff]  ;;  %v4448_v20 = vrot.slane %v17495_v39, 4 }
0x104b   :  { %10512 = vmatprep.subr.bf16.mxu0 %v12949_v37  ;;  %v4477_v37 = vrot.slane %v17495_v39, 6 }
0x104d   :  { %v4478_v50 = vsel %vm17507_vm13, %v4476_v35, %v4477_v37 }
0x104e   :  { %10513 = vmatpush3.bf16.msra.mxu0 %v12950_v31  ;;  %v12960_v31 = vld [vmem:[#allocation2 + $0x4c8] sm:$0xff]  }
0x104f   :  { %10514 = vmatprep.subr.bf16.mxu0 %v12951_v41  ;;  %v17493_v41 = vld [vmem:[#allocation39_spill] sm:$0xff] }
0x1050   :  { %v4474_v16 = vrot.slane %v17493_v41, 6 }
0x1052   :  { %10515 = vmatpush3.bf16.msra.mxu0 %v12952_v3  ;;  %v12962_v3 = vld [vmem:[#allocation2 + $0x4c0] sm:$0xff]  }
0x1053   :  { %10516 = vmatprep.subr.bf16.mxu0 %v12953_v21  ;;  %v12965_v21 = vld [vmem:[#allocation2 + $0x5f8] sm:$0xff]  }
0x1056   :  { %10517 = vmatpush3.bf16.msra.mxu0 %v12954_v42  ;;  %v4475_v42 = vrot.slane %v17494_v55, 6 }
0x1057   :  { %10518 = vmatprep.subr.bf16.mxu0 %v12955_v9  ;;  %v4445_v9 = vrot.slane %v17493_v41, 4 }
0x1059   :  { %v15473_v58 = vsel %vm17212_vm2, %v4448_v20, %v4445_v9 }
0x105a   :  { %10519 = vmatpush3.bf16.msra.mxu0 %v12956_v52  ;;  %v4446_v52 = vrot.slane %v17494_v55, 4 }
0x105b   :  { %10520 = vmatprep.subr.bf16.mxu0 %v12957_v10  ;;  %v4480_v10 = vsel %vm17496_vm14, %v4474_v16, %v4475_v42 }
0x105c   :  { %v15469_v36 = vsel %vm17212_vm2, %v4445_v9, %v4446_v52  ;;  %v12968_v9 = vld [vmem:[#allocation2 + $0x5f0] sm:$0xff]  }
0x105e   :  { %10521 = vmatpush3.bf16.msra.mxu0 %v12958_v33  ;;  %v4481_v33 = vsel %vm17497_vm12, %v4477_v37, %v4474_v16  ;;  %v17500_v16 = vmov 0 }
0x105f   :  { %10522 = vmatprep.subr.bf16.mxu0 %v12959_v24  ;;  %v9606_v24 = vpack.c.bf16 %v4480_v10, %v4481_v33  ;;  %v9609_v10 = vpack.c.bf16 %v15469_v36, %v15473_v58  ;;  %v17503_v33 = vmov 0 }
0x1061   :  { %9607 = vmatprep.mubr.msk.bf16.mxu0 %vm14719_vm5, %v9606_v24  ;;  %v12971_v24 = vld [vmem:[#allocation2 + $0x5e8] sm:$0xff]  }
0x1062   :  { %10523 = vmatpush3.bf16.msra.mxu0 %v12960_v31  ;;  %v17498_v31 = vld [vmem:[#allocation22_spill] sm:$0xff] }
0x1063   :  { %10524 = vmatprep.subr.bf16.mxu0 %v12961_v57  ;;  %v4454_v57 = vadd.s32 4294967292, %v17498_v31 }
0x1065   :  { %vm4458_vm1 = vcmp.ge.s32.totalorder %v4454_v57, 0  ;;  %vm4462_vm8 = vcmp.lt.s32.totalorder %v4454_v57, 16  ;;  %v12977_v57 = vld [vmem:[#allocation2 + $0x5d8] sm:$0xff]  }
0x1066   :  { %10525 = vmatpush3.bf16.msra.mxu0 %v12962_v3  ;;  %v17499_v3 = vld [vmem:[#allocation23_spill] sm:$0xff]  ;;  %vm15478_vm9 = vmand %vm4458_vm1, %vm4462_vm8 }
0x1067   :  { %11964 = vmatprep.subr.bf16.mxu0 %v12965_v21  ;;  %v4455_v47 = vadd.s32 4294967292, %v17499_v3  ;;  %v17501_v16 = vsel %vm15478_vm9, 4294967295, %v17500_v16 }
0x1068   :  { %17502 = vst [vmem:[#allocation39_spill] sm:$0xff] %v17501_v16  ;;  %v4479_v16 = vsel %vm17508_vm11, %v4475_v42, %v4476_v35  ;;  %v12983_v42 = vld [vmem:[#allocation2 + $0x5c8] sm:$0xff]  }
0x1069   :  { %vm4459_vm7 = vcmp.ge.s32.totalorder %v4455_v47, 0  ;;  %vm4463_vm15 = vcmp.lt.s32.totalorder %v4455_v47, 16  ;;  %v12974_v47 = vld [vmem:[#allocation2 + $0x5e0] sm:$0xff]  }
0x106a   :  { %vm15484_vm4 = vmand %vm4459_vm7, %vm4463_vm15 }
0x106b   :  { %v17504_v33 = vsel %vm15484_vm4, 4294967295, %v17503_v33  ;;  %vm17211_vm10 = vmpackc.low %vm15484_vm4, %vm15478_vm9 }
0x106c   :  { %17505 = vst [vmem:[#allocation40_spill] sm:$0xff] %v17504_v33  ;;  %9610 = vmatmul.mubr.msk.bf16.vlgmr.msra.gmra.mxu0 %vm17211_vm10, %v9609_v10  ;;  %v12980_v10 = vld [vmem:[#allocation2 + $0x5d0] sm:$0xff]   ;;  %v4447_v33 = vrot.slane %v17506_v61, 4 }
0x106d   :  { %11965 = vmatpush3.bf16.msra.mxu0 %v12965_v21  ;;  %v9612_v21 = vpack.c.bf16 %v4478_v50, %v4479_v16  ;;  %v17511_v50 = vmov 0  ;;  %v17514_v16 = vmov 0 }
0x106e   :  { %11966 = vmatprep.subr.bf16.mxu0 %v12968_v9  ;;  %v4451_v37 = vsel %vm17212_vm2, %v4446_v52, %v4447_v33  ;;  %v4499_v52 = vadd.s32 4, %v17499_v3  ;;  %v17520_v3 = vmov 0 }
0x106f   :  { %9613 = vmatprep.mubr.msk.bf16.mxu0 %vm17443_vm0, %v9612_v21  ;;  %v4501_v21 = vadd.s32 4, %v17510_v18 }
0x1071   :  { %11967 = vmatpush3.bf16.msra.mxu0 %v12968_v9  ;;  %v17509_v9 = vld [vmem:[#allocation21_spill] sm:$0xff] }
0x1072   :  { %11968 = vmatprep.subr.bf16.mxu0 %v12971_v24  ;;  %v4456_v38 = vadd.s32 4294967292, %v17509_v9 }
0x1074   :  { %vm4460_vm14 = vcmp.ge.s32.totalorder %v4456_v38, 0  ;;  %vm4464_vm1 = vcmp.lt.s32.totalorder %v4456_v38, 16  ;;  %v4498_v38 = vadd.s32 4, %v17498_v31  ;;  %v17517_v31 = vmov 0 }
0x1075   :  { %11969 = vmatpush3.bf16.msra.mxu0 %v12971_v24  ;;  %v4457_v24 = vadd.s32 4294967292, %v17510_v18  ;;  %vm15511_vm7 = vmand %vm4460_vm14, %vm4464_vm1  ;;  %vm4503_vm14 = vcmp.ge.s32.totalorder %v4499_v52, 0  ;;  %vm4507_vm1 = vcmp.lt.s32.totalorder %v4499_v52, 16 }
0x1076   :  { %11970 = vmatprep.subr.bf16.mxu0 %v12974_v47  ;;  %v17512_v50 = vsel %vm15511_vm7, 4294967295, %v17511_v50  ;;  %vm4502_vm11 = vcmp.ge.s32.totalorder %v4498_v38, 0 }
0x1077   :  { %vm4461_vm12 = vcmp.ge.s32.totalorder %v4457_v24, 0  ;;  %vm4465_vm8 = vcmp.lt.s32.totalorder %v4457_v24, 16  ;;  %17513 = vst [vmem:[#allocation42_spill] sm:$0xff] %v17512_v50 }
0x1078   :  { %vm15515_vm15 = vmand %vm4461_vm12, %vm4465_vm8  ;;  %vm4506_vm12 = vcmp.lt.s32.totalorder %v4498_v38, 16 }
0x1079   :  { %11971 = vmatpush3.bf16.msra.mxu0 %v12974_v47  ;;  %v4450_v47 = vsel %vm17212_vm2, %v4447_v33, %v4448_v20  ;;  %v17515_v16 = vsel %vm15515_vm15, 4294967295, %v17514_v16  ;;  %vm17213_vm13 = vmpackc.low %vm15515_vm15, %vm15511_vm7  ;;  %v12986_v20 = vld [vmem:[#allocation2 + $0x5c0] sm:$0xff]   ;;  %v9624_v33 = vpack.c.bf16 %v4451_v37, %v15469_v36  ;;  %vm4505_vm7 = vcmp.ge.s32.totalorder %v4501_v21, 0 }
0x107a   :  { %11972 = vmatprep.subr.bf16.mxu0 %v12977_v57  ;;  %v9615_v35 = vpack.c.bf16 %v4450_v47, %v4451_v37  ;;  %17516 = vst [vmem:[#allocation22_spill] sm:$0xff] %v17515_v16  ;;  %vm15533_vm8 = vmand %vm4502_vm11, %vm4506_vm12  ;;  %vm4509_vm15 = vcmp.lt.s32.totalorder %v4501_v21, 16  ;;  %v17523_v36 = vmov 0  ;;  %v9627_v18 = vpack.c.bf16 %v15473_v58, %v4450_v47 }
0x107b   :  { %v17518_v31 = vsel %vm15533_vm8, 4294967295, %v17517_v31 }
0x107c   :  { %9616 = vmatmul.mubr.msk.bf16.gmra.mxu0 %vm17213_vm13, %v9615_v35  ;;  %17519 = vst [vmem:[#allocation23_spill] sm:$0xff] %v17518_v31  ;;  %vm15537_vm13 = vmand %vm4503_vm14, %vm4507_vm1  ;;  %vm17534_vm1 = vnez %v17428_v34  ;;  %v15765_v31 = vld [vmem:[#allocation8 + $0x38] sm:$0xff] }
0x107d   :  { %11973 = vmatpush3.bf16.msra.mxu0 %v12977_v57  ;;  %v4500_v57 = vadd.s32 4, %v17509_v9  ;;  %v17521_v3 = vsel %vm15537_vm13, 4294967295, %v17520_v3  ;;  %vm17220_vm9 = vmpackc.low %vm15537_vm13, %vm15533_vm8 }
0x107e   :  { %11974 = vmatprep.subr.bf16.mxu0 %v12980_v10  ;;  %17522 = vst [vmem:[#allocation41_spill] sm:$0xff] %v17521_v3  ;;  %11980 = vmatprep.mubr.msk.bf16.mxu0 %vm17220_vm9, %v9624_v33  ;;  %vm15555_vm14 = vmand %vm4505_vm7, %vm4509_vm15 }
0x107f   :  { %vm4504_vm10 = vcmp.ge.s32.totalorder %v4500_v57, 0  ;;  %vm4508_vm2 = vcmp.lt.s32.totalorder %v4500_v57, 16 }
0x1080   :  { %vm15550_vm11 = vmand %vm4504_vm10, %vm4508_vm2  ;;  %vm17529_vm2 = vcmp.lt.s32.totalorder %v17391_v22, 6 }
0x1081   :  { %11975 = vmatpush3.bf16.msra.mxu0 %v12980_v10  ;;  %v17524_v36 = vsel %vm15550_vm11, 4294967295, %v17523_v36  ;;  %v17526_v10 = vmov 0  ;;  %vm17219_vm12 = vmpackc.low %vm15555_vm14, %vm15550_vm11 }
0x1082   :  { %11976 = vmatprep.subr.bf16.mxu0 %v12983_v42  ;;  %17525 = vst [vmem:[#allocation21_spill] sm:$0xff] %v17524_v36  ;;  %v17527_v10 = vsel %vm15555_vm14, 4294967295, %v17526_v10  ;;  %vm17530_vm10 = vmmov %vm17529_vm2 }
0x1083   :  { %17528 = vst [vmem:[#allocation24_spill] sm:$0xff] %v17527_v10  ;;  %vm17531_vm7 = vmmov %vm17529_vm2 }
0x1084   :  { %vm17532_vm15 = vmmov %vm17529_vm2 }
0x1085   :  { %11977 = vmatpush3.bf16.msra.mxu0 %v12983_v42 }
0x1086   :  { %11978 = vmatprep.subr.bf16.mxu0 %v12986_v20 }
0x1089   :  { %11979 = vmatpush3.bf16.msra.mxu0 %v12986_v20 }
0x108a   :  { %12019 = vmatprep.subr.mxu0 %v17307_v51 }
0x108c   :  { %11981 = vmatmul.mubr.msk.bf16.vlgmr.msra.gmra.mxu0 %vm17219_vm12, %v9627_v18 }
0x108d   :  { %12020 = vmatpush3.msra.mxu0 %v15184_v1  ;;  %12051 = vmatprep.mubr.msk.f32.mxu0 %vm17364_vm6, %v17307_v51 }
0x108e   :  { %12021 = vmatprep.subr.mxu0 %v17307_v51 }
0x108f   :  { %12022 = vmatpush3.msra.mxu0 %v15186_v19 }
0x1090   :  { %12023 = vmatprep.subr.mxu0 %v17307_v51 }
0x1091   :  { %12024 = vmatpush3.msra.mxu0 %v15215_v2 }
0x1092   :  { %12025 = vmatprep.subr.mxu0 %v17307_v51 }
0x1093   :  { %12026 = vmatpush3.msra.mxu0 %v15217_v46 }
0x1094   :  { %12027 = vmatprep.subr.mxu0 %v17307_v51 }
0x1095   :  { %12028 = vmatpush3.msra.mxu0 %v15227_v17 }
0x1096   :  { %12029 = vmatprep.subr.mxu0 %v17307_v51 }
0x1097   :  { %12030 = vmatpush3.msra.mxu0 %v15232_v62 }
0x1098   :  { %12031 = vmatprep.subr.mxu0 %v17307_v51 }
0x1099   :  { %12032 = vmatpush3.msra.mxu0 %v15238_v7 }
0x109a   :  { %12033 = vmatprep.subr.mxu0 %v17307_v51 }
0x109b   :  { %12034 = vmatpush3.msra.mxu0 %v15244_v44 }
0x109c   :  { %12035 = vmatprep.subr.mxu0 %v17307_v51 }
0x109d   :  { %12036 = vmatpush3.msra.mxu0 %v15250_v30 }
0x109e   :  { %12037 = vmatprep.subr.mxu0 %v17307_v51 }
0x109f   :  { %12038 = vmatpush3.msra.mxu0 %v15256_v0 }
0x10a0   :  { %12039 = vmatprep.subr.mxu0 %v17307_v51 }
0x10a1   :  { %12040 = vmatpush3.msra.mxu0 %v15262_v60 }
0x10a2   :  { %12041 = vmatprep.subr.mxu0 %v17307_v51 }
0x10a3   :  { %12042 = vmatpush3.msra.mxu0 %v15266_v15 }
0x10a4   :  { %12043 = vmatprep.subr.mxu0 %v17307_v51 }
0x10a5   :  { %12044 = vmatpush3.msra.mxu0 %v15270_v40 }
0x10a6   :  { %12045 = vmatprep.subr.mxu0 %v17307_v51 }
0x10a7   :  { %12046 = vmatpush3.msra.mxu0 %v15276_v5 }
0x10a8   :  { %12047 = vmatprep.subr.mxu0 %v17307_v51 }
0x10a9   :  { %12048 = vmatpush3.msra.mxu0 %v15282_v27 }
0x10aa   :  { %12049 = vmatprep.subr.mxu0 %v17307_v51 }
0x10ab   :  { %12050 = vmatpush3.msra.mxu0 %v15288_v11 }
0x10ac   :  { %12089 = vmatprep.subr.mxu0 %v17307_v51 }
0x1109   :  { %v4339_v58 = vpop.f32.mrf.mxu0 }
0x110a   :  { %v4346_v9 = vrot.slane %v4339_v58, %v13672_v6  ;;  %v4487_v58 = vrot.slane %v17494_v55, 2  ;;  %v12970_v55 = vld [vmem:[#allocation2 + $0x568] sm:$0xff]  }
0x110b   :  { %v11928_v24 = vpop.f32.mrf.mxu0 }
0x110c   :  { %v15605_v47 = vsub.f32 %v15423_v29, %v4346_v9  ;;  %v15608_v37 = vsub.f32 %v15425_v13, %v4346_v9  ;;  %v15611_v35 = vsub.f32 %v15441_v4, %v4346_v9  ;;  %v15614_v42 = vsub.f32 %v15447_v63, %v4346_v9 }
0x110d   :  { %v4486_v63 = vrot.slane %v17493_v41, 2  ;;  %v4488_v9 = vrot.slane %v17506_v61, 2  ;;  %v12967_v41 = vld [vmem:[#allocation2 + $0x570] sm:$0xff]   ;;  %v12969_v61 = vld [vmem:[#allocation2 + $0x5a8] sm:$0xff]  }
0x110e   :  { %v4351_v38 = vmul.f32 %v15605_v47, %v15605_v47  ;;  %v4352_v52 = vmul.f32 %v15608_v37, %v15608_v37  ;;  %v4353_v20 = vmul.f32 %v15611_v35, %v15611_v35  ;;  %v4354_v13 = vmul.f32 %v15614_v42, %v15614_v42 }
0x110f   :  { %v4491_v10 = vsel %vm17529_vm2, %v4487_v58, %v4488_v9 }
0x1110   :  { %v4355_v29 = vadd.f32 %v4352_v52, %v4351_v38  ;;  %v4492_v38 = vsel %vm17530_vm10, %v4486_v63, %v4487_v58  ;;  %v12981_v58 = vld [vmem:[#allocation2 + $0x588] sm:$0xff]  }
0x1112   :  { %v4356_v33 = vadd.f32 %v4355_v29, %v4353_v20  ;;  %v12964_v20 = vld [vmem:[#allocation2 + $0x578] sm:$0xff]   ;;  %v9618_v29 = vpack.c.bf16 %v4491_v10, %v4492_v38  ;;  %v12984_v38 = vld [vmem:[#allocation2 + $0x580] sm:$0xff]  }
0x1113   :  { %v12976_v10 = vld [vmem:[#allocation2 + $0x558] sm:$0xff]  }
0x1114   :  { %v4357_v57 = vadd.f32 %v4356_v33, %v4354_v13  ;;  %v12966_v33 = vld [vmem:[#allocation2 + $0x5b0] sm:$0xff]  }
0x1116   :  { %v4358_v4 = vrot.slane %v4357_v57, 4 }
0x1118   :  { %v4359_v21 = vadd.f32 %v4358_v4, %v4357_v57  ;;  %v12972_v57 = vld [vmem:[#allocation2 + $0x5a0] sm:$0xff]  }
0x1119   :  { %v12973_v4 = vld [vmem:[#allocation2 + $0x560] sm:$0xff]  }
0x111a   :  { %v4360_v18 = vrot.slane %v4359_v21, 2 }
0x111c   :  { %v4361_v24 = vadd.f32 %v4360_v18, %v4359_v21  ;;  %v12978_v21 = vld [vmem:[#allocation2 + $0x590] sm:$0xff]  }
0x111d   :  { %v12979_v18 = vld [vmem:[#allocation2 + $0x550] sm:$0xff]  }
0x111e   :  { %v4362_v36 = vrot.slane %v4361_v24, 1 }
0x1120   :  { %v4363_v52 = vadd.f32 %v4362_v36, %v4361_v24  ;;  %v12975_v36 = vld [vmem:[#allocation2 + $0x598] sm:$0xff]   ;;  %v12982_v24 = vld [vmem:[#allocation2 + $0x548] sm:$0xff]  }
0x1122   :  { %v4364_v13 = vmul.f32 0.03125, %v4363_v52  ;;  %v4489_v52 = vrot.slane %v17495_v39, 2  ;;  %v17535_v39 = vld [vmem:[#allocation45_spill] sm:$0xff] }
0x1124   :  { %11962 = vmatmul.mubr.f32.vlgmr.msra.gmra.mxu1 %v4364_v13  ;;  %v4493_v13 = vsel %vm17532_vm15, %v4489_v52, %v4486_v63 }
0x1125   :  { %10539 = vmatpush3.bf16.msra.mxu1 %v12964_v20  ;;  %9619 = vmatprep.mubr.msk.bf16.mxu1 %vm14792_vm3, %v9618_v29  ;;  %v12985_v20 = vld [vmem:[#allocation2 + $0x540] sm:$0xff]   ;;  %v4490_v29 = vsel %vm17531_vm7, %v4488_v9, %v4489_v52 }
0x1126   :  { %10540 = vmatprep.subr.bf16.mxu1 %v12966_v33  ;;  %v9621_v33 = vpack.c.bf16 %v4493_v13, %v4490_v29 }
0x1129   :  { %10541 = vmatpush3.bf16.msra.mxu1 %v12967_v41  ;;  %v17533_v41 = vld [vmem:[#allocation43_spill] sm:$0xff] }
0x112a   :  { %10542 = vmatprep.subr.bf16.mxu1 %v12969_v61 }
0x112d   :  { %10543 = vmatpush3.bf16.msra.mxu1 %v12970_v55 }
0x112e   :  { %10544 = vmatprep.subr.bf16.mxu1 %v12972_v57 }
0x1131   :  { %10545 = vmatpush3.bf16.msra.mxu1 %v12973_v4  ;;  %v5212_v4 = vpop.permute.xlu0 %5211 }
0x1132   :  { %10546 = vmatprep.subr.bf16.mxu1 %v12975_v36 }
0x1135   :  { %10547 = vmatpush3.bf16.msra.mxu1 %v12976_v10 }
0x1136   :  { %10548 = vmatprep.subr.bf16.mxu1 %v12978_v21 }
0x1139   :  { %10549 = vmatpush3.bf16.msra.mxu1 %v12979_v18 }
0x113a   :  { %10550 = vmatprep.subr.bf16.mxu1 %v12981_v58 }
0x113d   :  { %10551 = vmatpush3.bf16.msra.mxu1 %v12982_v24 }
0x113e   :  { %10552 = vmatprep.subr.bf16.mxu1 %v12984_v38 }
0x1141   :  { %10553 = vmatpush3.bf16.msra.mxu1 %v12985_v20  ;;  %v5216_v20 = vpop.permute.xlu1 %5215 }
0x1142   :  { %11984 = vmatprep.subr.mxu1 %v17307_v51 }
0x1144   :  { %4928 = vmatmul.mubr.bf16.vlgmr.msra.gmra.mxu1 %v17533_v41 }
0x1145   :  { %9622 = vmatprep.mubr.msk.bf16.mxu1 %vm17534_vm1, %v9621_v33  ;;  %11985 = vmatpush3.msra.mxu1 %v15184_v1 }
0x1146   :  { %11986 = vmatprep.subr.mxu1 %v17307_v51 }
0x1147   :  { %11987 = vmatpush3.msra.mxu1 %v15186_v19 }
0x1148   :  { %11988 = vmatprep.subr.mxu1 %v17307_v51 }
0x1149   :  { %11989 = vmatpush3.msra.mxu1 %v15215_v2  ;;  %v10526_v2 = vpop.f32.mrf.mxu0 }
0x114a   :  { %11990 = vmatprep.subr.mxu1 %v17307_v51 }
0x114b   :  { %11991 = vmatpush3.msra.mxu1 %v15217_v46  ;;  %v10527_v46 = vpop.f32.mrf.mxu0 }
0x114c   :  { %4936 = vmatmul.mubr.bf16.gmra.mxu1 %v17535_v39  ;;  %11992 = vmatprep.subr.mxu1 %v17307_v51  ;;  %v10528_v36 = vadd.f32 %v10527_v46, %v10526_v2 }
0x114d   :  { %11993 = vmatpush3.msra.mxu1 %v15227_v17  ;;  %12016 = vmatprep.mubr.msk.f32.mxu1 %vm17364_vm6, %v17307_v51  ;;  %v10529_v17 = vpop.f32.mrf.mxu0 }
0x114e   :  { %11994 = vmatprep.subr.mxu1 %v17307_v51 }
0x114f   :  { %11995 = vmatpush3.msra.mxu1 %v15232_v62  ;;  %v10530_v62 = vpop.f32.mrf.mxu0 }
0x1150   :  { %11996 = vmatprep.subr.mxu1 %v17307_v51 }
0x1151   :  { %11997 = vmatpush3.msra.mxu1 %v15238_v7  ;;  %v10532_v7 = vpop.f32.mrf.mxu0 }
0x1152   :  { %11998 = vmatprep.subr.mxu1 %v17307_v51 }
0x1153   :  { %11999 = vmatpush3.msra.mxu1 %v15244_v44  ;;  %v10533_v44 = vpop.f32.mrf.mxu0 }
0x1154   :  { %12000 = vmatprep.subr.mxu1 %v17307_v51  ;;  %v10534_v18 = vadd.f32 %v10533_v44, %v10532_v7  ;;  %v5228_v7 = vpop.permute.xlu1 %5227 }
0x1155   :  { %12001 = vmatpush3.msra.mxu1 %v15250_v30  ;;  %v10535_v30 = vpop.f32.mrf.mxu0 }
0x1156   :  { %12002 = vmatprep.subr.mxu1 %v17307_v51 }
0x1157   :  { %12003 = vmatpush3.msra.mxu1 %v15256_v0  ;;  %v10536_v0 = vpop.f32.mrf.mxu0 }
0x1158   :  { %12004 = vmatprep.subr.mxu1 %v17307_v51 }
0x1159   :  { %12005 = vmatpush3.msra.mxu1 %v15262_v60 }
0x115a   :  { %12006 = vmatprep.subr.mxu1 %v17307_v51 }
0x115b   :  { %12007 = vmatpush3.msra.mxu1 %v15266_v15  ;;  %v11982_v15 = vpop.f32.mrf.mxu0 }
0x115c   :  { %12008 = vmatprep.subr.mxu1 %v17307_v51 }
0x115d   :  { %12009 = vmatpush3.msra.mxu1 %v15270_v40 }
0x115e   :  { %12010 = vmatprep.subr.mxu1 %v17307_v51 }
0x115f   :  { %12011 = vmatpush3.msra.mxu1 %v15276_v5 }
0x1160   :  { %12012 = vmatprep.subr.mxu1 %v17307_v51 }
0x1161   :  { %12013 = vmatpush3.msra.mxu1 %v15282_v27  ;;  %v4978_v27 = vpop.f32.mrf.mxu0 }
0x1162   :  { %12014 = vmatprep.subr.mxu1 %v17307_v51 }
0x1163   :  { %12015 = vmatpush3.msra.mxu1 %v15288_v11  ;;  %v10531_v11 = vadd.f32 %v10530_v62, %v10529_v17  ;;  %v11983_v55 = vpop.f32.mrf.mxu0  ;;  %v10537_v17 = vadd.f32 %v10536_v0, %v10535_v30 }
0x1164   :  { %12054 = vmatprep.subr.mxu1 %v17307_v51 }
0x1165   :  { %v4981_v38 = vpop.f32.mrf.mxu0 }
0x11e4   :  { %v15677_v1 = vpop.f32.mrf.mxu1 }
0x11e6   :  { %v11963_v19 = vpop.f32.mrf.mxu1 }
0x11e7   :  { %v5214_v19 = vpop.permute.xlu0 %5213 }
0x11eb   :  { %v5230_v0 = vpop.permute.xlu0 %5229 }
0x1204   :  { %v10554_v60 = vpop.f32.mrf.mxu1 }
0x1206   :  { %v10555_v40 = vpop.f32.mrf.mxu1 }
0x1207   :  { %v10556_v9 = vadd.f32 %v10555_v40, %v10554_v60 }
0x1208   :  { %v10557_v5 = vpop.f32.mrf.mxu1 }
0x1209   :  { %v4930_v58 = vadd.f32 %v10556_v9, %v10528_v36  ;;  %v17538_v9 = vld [vmem:[#allocation31_spill] sm:$0xff]  ;;  %v17540_v36 = vld [vmem:[#allocation32_spill] sm:$0xff] }
0x120a   :  { %v10558_v63 = vpop.f32.mrf.mxu1  ;;  %vm17539_vm10 = vnez %v17538_v9  ;;  %vm17541_vm7 = vnez %v17540_v36  ;;  %v15774_v36 = vld [vmem:[#allocation8 + $0x30] sm:$0xff] }
0x120b   :  { %v10559_v61 = vadd.f32 %v10558_v63, %v10557_v5  ;;  %v15681_v62 = vadd.f32 %v4978_v27, %v4930_v58  ;;  %v17536_v63 = vld [vmem:[#allocation33_spill] sm:$0xff]  ;;  %v5220_v30 = vsel %vm17539_vm10, %v5214_v19, -1e+30  ;;  %v5218_v58 = vpop.permute.xlu1 %5217 }
0x120c   :  { %v10560_v57 = vpop.f32.mrf.mxu1  ;;  %vm17537_vm2 = vnez %v17536_v63 }
0x120d   :  { %v4933_v10 = vadd.f32 %v10559_v61, %v10531_v11  ;;  %v5219_v11 = vsel %vm17537_vm2, %v5212_v4, -1e+30  ;;  %v5224_v61 = vmax.f32 %v15178_v48, %v5220_v30 }
0x120e   :  { %v10561_v21 = vpop.f32.mrf.mxu1  ;;  %v5223_v27 = vmax.f32 %v15165_v12, %v5219_v11  ;;  %v5232_v12 = vpop.permute.xlu0 %5231  ;;  %v17550_v11 = vld [vmem:[#allocation37_spill] sm:$0xff] }
0x120f   :  { %v10562_v24 = vadd.f32 %v10561_v21, %v10560_v57  ;;  %v15679_v29 = vadd.f32 %v4981_v38, %v4933_v10  ;;  %v5221_v10 = vsel %vm17541_vm7, %v5216_v20, -1e+30  ;;  %v17542_v21 = vld [vmem:[#allocation34_spill] sm:$0xff]  ;;  %vm17551_vm14 = vnez %v17550_v11 }
0x1210   :  { %v10563_v52 = vpop.f32.mrf.mxu1  ;;  %vm17543_vm15 = vnez %v17542_v21  ;;  %v5225_v38 = vmax.f32 %v15159_v56, %v5221_v10  ;;  %v17548_v20 = vld [vmem:[#allocation38_spill] sm:$0xff]  ;;  %v15722_v10 = vld [vmem:[#allocation8 + $0x78] sm:$0xff] }
0x1211   :  { %v4938_v13 = vadd.f32 %v10562_v24, %v10534_v18  ;;  %v4993_v2 = vadd.f32 %v15679_v29, %v15681_v62  ;;  %v17544_v18 = vld [vmem:[#allocation35_spill] sm:$0xff]  ;;  %vm17549_vm11 = vnez %v17548_v20 }
0x1212   :  { %v10564_v33 = vpop.f32.mrf.mxu1  ;;  %vm17545_vm12 = vnez %v17544_v18 }
0x1213   :  { %v15683_v60 = vadd.f32 %v11982_v15, %v4938_v13  ;;  %v10565_v40 = vadd.f32 %v10564_v33, %v10563_v52  ;;  %v5236_v4 = vsel %vm17545_vm12, %v5230_v0, -1e+30  ;;  %v17546_v33 = vld [vmem:[#allocation36_spill] sm:$0xff] }
0x1214   :  { %v15706_v13 = vmax.f32 %v5224_v61, %v5236_v4  ;;  %vm17547_vm9 = vnez %v17546_v33  ;;  %v5462_v61 = vpop.permute.xlu0 %5461 }
0x1215   :  { %v4941_v46 = vadd.f32 %v10565_v40, %v10537_v17  ;;  %v4994_v44 = vadd.f32 %v4993_v2, %v15683_v60  ;;  %v5222_v19 = vsel %vm17547_vm9, %v5218_v58, -1e+30  ;;  %v5237_v17 = vsel %vm17549_vm11, %v5232_v12, -1e+30  ;;  %v15737_v12 = vld [vmem:[#allocation8 + $0x60] sm:$0xff] }
0x1216   :  { %v5226_v2 = vmax.f32 %v15201_v45, %v5222_v19  ;;  %v15715_v56 = vmax.f32 %v5225_v38, %v5237_v17 }
0x1217   :  { %v15688_v5 = vadd.f32 %v11983_v55, %v4941_v46  ;;  %v5235_v55 = vsel %vm17543_vm15, %v5228_v7, -1e+30  ;;  %v5234_v7 = vpop.permute.xlu1 %5233 }
0x1218   :  { %v15704_v52 = vmax.f32 %v5223_v27, %v5235_v55  ;;  %v5238_v30 = vsel %vm17551_vm14, %v5234_v7, -1e+30  ;;  %v15729_v55 = vld [vmem:[#allocation8 + $0x70] sm:$0xff]  ;;  %v5466_v58 = vpop.permute.xlu0 %5465 }
0x1219   :  { %v4995_v15 = vadd.f32 %v4994_v44, %v15688_v5 }
0x121a   :  { %v5243_v46 = vadd.f32 %v15706_v13, %v15704_v52 }
0x121b   :  { %v4996_v57 = vrot.slane %v4995_v15, 4  ;;  %v5464_v4 = vpop.permute.xlu1 %5463 }
0x121c   :  { %v5244_v27 = vadd.f32 %v5243_v46, %v15715_v56  ;;  %v15749_v46 = vld [vmem:[#allocation8 + $0x48] sm:$0xff] }
0x121d   :  { %v4997_v24 = vadd.f32 %v4996_v57, %v4995_v15  ;;  %v15719_v15 = vmax.f32 %v5226_v2, %v5238_v30  ;;  %v15745_v2 = vld [vmem:[#allocation8 + $0x50] sm:$0xff]  ;;  %v15755_v30 = vld [vmem:[#allocation8 + $0x40] sm:$0xff] }
0x121f   :  { %v4998_v48 = vrot.slane %v4997_v24, 2  ;;  %v5245_v45 = vadd.f32 %v5244_v27, %v15719_v15  ;;  %v5478_v17 = vpop.permute.xlu1 %5477 }
0x1220   :  { %v5485_v3 = vsel %vm17543_vm15, %v5478_v17, 0.0 }
0x1221   :  { %v4999_v40 = vadd.f32 %v4998_v48, %v4997_v24  ;;  %v15733_v24 = vld [vmem:[#allocation8 + $0x68] sm:$0xff]  ;;  %v5246_v38 = vrot.slane %v5245_v45, 4  ;;  %v15741_v48 = vld [vmem:[#allocation8 + $0x58] sm:$0xff] }
0x1223   :  { %v5000_v44 = vrot.slane %v4999_v40, 1  ;;  %v5247_v19 = vadd.f32 %v5246_v38, %v5245_v45  ;;  %v5471_v45 = vsel %vm17541_vm7, %v5466_v58, 0.0  ;;  %vm17576_vm7 = vcmp.lt.s32.totalorder %v17391_v22, 4 }
0x1224   :  { %vm17578_vm15 = vmmov %vm17576_vm7 }
0x1225   :  { %v5001_v0 = vadd.f32 %v5000_v44, %v4999_v40  ;;  %v5480_v40 = vpop.permute.xlu0 %5479  ;;  %v5248_v7 = vrot.slane %v5247_v19, 2  ;;  %v5470_v44 = vsel %vm17539_vm10, %v5464_v4, 0.0  ;;  %vm17583_vm8 = vmmov %vm17576_vm7 }
0x1226   :  { %v5486_v38 = vsel %vm17545_vm12, %v5480_v40, 0.0  ;;  %v5474_v4 = vadd.f32 %v5470_v44, %v15356_v23  ;;  %v15780_v23 = vld [vmem:[#allocation8 + $0x28] sm:$0xff]  ;;  %v15795_v44 = vld [vmem:[#allocation8 + $0x18] sm:$0xff] }
0x1227   :  { %v5002_v57 = vmul.f32 0.03125, %v5001_v0  ;;  %v5468_v0 = vpop.permute.xlu1 %5467  ;;  %v5249_v9 = vadd.f32 %v5248_v7, %v5247_v19  ;;  %v15786_v7 = vld [vmem:[#allocation8 + $0x20] sm:$0xff] }
0x1228   :  { %v5490_v58 = vadd.f32 %v5486_v38, %v5474_v4  ;;  %v5472_v40 = vsel %vm17547_vm9, %v5468_v0, 0.0  ;;  %v17554_v0 = vld [vmem:[#allocation49_spill] sm:$0xff]  ;;  %v15806_v4 = vld [vmem:[#allocation8 + $0x10] sm:$0xff] }
0x1229   :  { %12017 = vmatmul.mubr.f32.vlgmr.msra.gmra.mxu1 %v5002_v57  ;;  %v5482_v27 = vpop.permute.xlu0 %5481  ;;  %v5469_v57 = vsel %vm17537_vm2, %v5462_v61, 0.0  ;;  %v5475_v61 = vadd.f32 %v5471_v45, %v15371_v49  ;;  %v5250_v20 = vrot.slane %v5249_v9, 1  ;;  %v5476_v33 = vadd.f32 %v5472_v40, %v15416_v26 }
0x122a   :  { %12055 = vmatpush3.msra.mxu1 %v15722_v10  ;;  %12086 = vmatprep.mubr.msk.f32.mxu1 %vm17364_vm6, %v17307_v51  ;;  %v5487_v63 = vsel %vm17549_vm11, %v5482_v27, 0.0  ;;  %v5473_v18 = vadd.f32 %v5469_v57, %v15350_v32  ;;  %v17552_v32 = vld [vmem:[#allocation47_spill] sm:$0xff]  ;;  %v17553_v27 = vld [vmem:[#allocation48_spill] sm:$0xff]  ;;  %vm17572_vm2 = vcmp.lt.s32.totalorder %v17391_v22, 2 }
0x122b   :  { %12056 = vmatprep.subr.mxu1 %v17307_v51  ;;  %v5491_v19 = vadd.f32 %v5487_v63, %v5475_v61  ;;  %v5484_v17 = vpop.permute.xlu1 %5483  ;;  %v15790_v49 = vmul.f32 %v17552_v32, %v5490_v58  ;;  %v5251_v38 = vadd.f32 %v5250_v20, %v5249_v9  ;;  %v15817_v9 = vld [vmem:[#allocation8] sm:$0xff]  ;;  %v17555_v58 = vld [vmem:[#allocation50_spill] sm:$0xff]  ;;  %vm17574_vm10 = vmmov %vm17572_vm2 }
0x122c   :  { %12057 = vmatpush3.msra.mxu1 %v15729_v55  ;;  %v5489_v21 = vadd.f32 %v5485_v3, %v5473_v18  ;;  %v5488_v3 = vsel %vm17551_vm14, %v5484_v17, 0.0  ;;  %v15812_v18 = vld [vmem:[#allocation8 + $0x8] sm:$0xff] }
0x122d   :  { %12058 = vmatprep.subr.mxu1 %v17307_v51  ;;  %v15803_v45 = vmul.f32 %v17554_v0, %v5491_v19  ;;  %v5492_v63 = vadd.f32 %v5488_v3, %v5476_v33  ;;  %v5252_v61 = vmul.f32 0.03125, %v5251_v38  ;;  %v12987_v0 = vld [vmem:[#allocation2 + $0x678] sm:$0xff]  }
0x122e   :  { %12059 = vmatpush3.msra.mxu1 %v15733_v24  ;;  %v15799_v57 = vmul.f32 %v17553_v27, %v5489_v21  ;;  %v12988_v38 = vld [vmem:[#allocation2 + $0x638] sm:$0xff]  }
0x122f   :  { %12060 = vmatprep.subr.mxu1 %v17307_v51  ;;  %v15821_v21 = vmul.f32 %v17555_v58, %v5492_v63  ;;  %v12990_v63 = vld [vmem:[#allocation2 + $0x630] sm:$0xff]   ;;  %v12993_v58 = vld [vmem:[#allocation2 + $0x660] sm:$0xff]  }
0x1230   :  { %12061 = vmatpush3.msra.mxu1 %v15737_v12  ;;  %v5497_v11 = vadd.f32 %v15790_v49, %v15799_v57 }
0x1231   :  { %12062 = vmatprep.subr.mxu1 %v17307_v51 }
0x1232   :  { %12063 = vmatpush3.msra.mxu1 %v15741_v48  ;;  %v5498_v26 = vadd.f32 %v5497_v11, %v15803_v45  ;;  %v12989_v11 = vld [vmem:[#allocation2 + $0x670] sm:$0xff]  }
0x1233   :  { %12064 = vmatprep.subr.mxu1 %v17307_v51 }
0x1234   :  { %12065 = vmatpush3.msra.mxu1 %v15745_v2  ;;  %v5499_v19 = vadd.f32 %v5498_v26, %v15821_v21  ;;  %v12991_v26 = vld [vmem:[#allocation2 + $0x668] sm:$0xff]  }
0x1235   :  { %12066 = vmatprep.subr.mxu1 %v17307_v51 }
0x1236   :  { %12067 = vmatpush3.msra.mxu1 %v15749_v46  ;;  %v5500_v17 = vrot.slane %v5499_v19, 4 }
0x1237   :  { %12068 = vmatprep.subr.mxu1 %v17307_v51 }
0x1238   :  { %12069 = vmatpush3.msra.mxu1 %v15755_v30  ;;  %v5501_v20 = vadd.f32 %v5500_v17, %v5499_v19  ;;  %v12995_v19 = vld [vmem:[#allocation2 + $0x620] sm:$0xff]   ;;  %v12996_v17 = vld [vmem:[#allocation2 + $0x658] sm:$0xff]  }
0x1239   :  { %12070 = vmatprep.subr.mxu1 %v17307_v51 }
0x123a   :  { %12071 = vmatpush3.msra.mxu1 %v15765_v31  ;;  %v5502_v40 = vrot.slane %v5501_v20, 2 }
0x123b   :  { %12072 = vmatprep.subr.mxu1 %v17307_v51 }
0x123c   :  { %12073 = vmatpush3.msra.mxu1 %v15774_v36  ;;  %v5503_v32 = vadd.f32 %v5502_v40, %v5501_v20  ;;  %v12998_v20 = vld [vmem:[#allocation2 + $0x618] sm:$0xff]   ;;  %v13001_v40 = vld [vmem:[#allocation2 + $0x610] sm:$0xff]  }
0x123d   :  { %12074 = vmatprep.subr.mxu1 %v17307_v51 }
0x123e   :  { %12075 = vmatpush3.msra.mxu1 %v15780_v23  ;;  %v5504_v3 = vrot.slane %v5503_v32, 1 }
0x123f   :  { %12076 = vmatprep.subr.mxu1 %v17307_v51 }
0x1240   :  { %12077 = vmatpush3.msra.mxu1 %v15786_v7  ;;  %v5505_v27 = vadd.f32 %v5504_v3, %v5503_v32  ;;  %v13002_v32 = vld [vmem:[#allocation2 + $0x648] sm:$0xff]  }
0x1241   :  { %12078 = vmatprep.subr.mxu1 %v17307_v51  ;;  %v13004_v3 = vld [vmem:[#allocation2 + $0x608] sm:$0xff]  }
0x1242   :  { %12079 = vmatpush3.msra.mxu1 %v15795_v44  ;;  %v5506_v33 = vmul.f32 0.03125, %v5505_v27  ;;  %v13005_v27 = vld [vmem:[#allocation2 + $0x640] sm:$0xff]  }
0x1243   :  { %12080 = vmatprep.subr.mxu1 %v17307_v51 }
0x1244   :  { %12081 = vmatpush3.msra.mxu1 %v15806_v4 }
0x1245   :  { %12082 = vmatprep.subr.mxu1 %v17307_v51 }
0x1246   :  { %12083 = vmatpush3.msra.mxu1 %v15812_v18 }
0x1247   :  { %12084 = vmatprep.subr.mxu1 %v17307_v51 }
0x1248   :  { %12085 = vmatpush3.msra.mxu1 %v15817_v9 }
0x1249   :  { %12087 = vmatmul.mubr.f32.vlgmr.msra.gmra.mxu1 %v5252_v61  ;;  %12124 = vmatprep.subr.mxu1 %v17307_v51  ;;  %v12992_v61 = vld [vmem:[#allocation2 + $0x628] sm:$0xff]  }
0x124a   :  { %12125 = vmatpush3.msra.mxu1 %v15722_v10  ;;  %12156 = vmatprep.mubr.msk.f32.mxu1 %vm17364_vm6, %v17307_v51 }
0x124b   :  { %12126 = vmatprep.subr.mxu1 %v17307_v51 }
0x124c   :  { %12127 = vmatpush3.msra.mxu1 %v15729_v55 }
0x124d   :  { %12128 = vmatprep.subr.mxu1 %v17307_v51 }
0x124e   :  { %12129 = vmatpush3.msra.mxu1 %v15733_v24 }
0x124f   :  { %12130 = vmatprep.subr.mxu1 %v17307_v51 }
0x1250   :  { %12131 = vmatpush3.msra.mxu1 %v15737_v12 }
0x1251   :  { %12132 = vmatprep.subr.mxu1 %v17307_v51 }
0x1252   :  { %12133 = vmatpush3.msra.mxu1 %v15741_v48 }
0x1253   :  { %12134 = vmatprep.subr.mxu1 %v17307_v51 }
0x1254   :  { %12135 = vmatpush3.msra.mxu1 %v15745_v2 }
0x1255   :  { %12136 = vmatprep.subr.mxu1 %v17307_v51 }
0x1256   :  { %12137 = vmatpush3.msra.mxu1 %v15749_v46 }
0x1257   :  { %12138 = vmatprep.subr.mxu1 %v17307_v51 }
0x1258   :  { %12139 = vmatpush3.msra.mxu1 %v15755_v30 }
0x1259   :  { %12140 = vmatprep.subr.mxu1 %v17307_v51 }
0x125a   :  { %12141 = vmatpush3.msra.mxu1 %v15765_v31 }
0x125b   :  { %12142 = vmatprep.subr.mxu1 %v17307_v51 }
0x125c   :  { %12143 = vmatpush3.msra.mxu1 %v15774_v36 }
0x125d   :  { %12144 = vmatprep.subr.mxu1 %v17307_v51 }
0x125e   :  { %12145 = vmatpush3.msra.mxu1 %v15780_v23 }
0x125f   :  { %12146 = vmatprep.subr.mxu1 %v17307_v51 }
0x1260   :  { %12147 = vmatpush3.msra.mxu1 %v15786_v7 }
0x1261   :  { %12148 = vmatprep.subr.mxu1 %v17307_v51 }
0x1262   :  { %12149 = vmatpush3.msra.mxu1 %v15795_v44 }
0x1263   :  { %12150 = vmatprep.subr.mxu1 %v17307_v51 }
0x1264   :  { %12151 = vmatpush3.msra.mxu1 %v15806_v4 }
0x1265   :  { %12152 = vmatprep.subr.mxu1 %v17307_v51 }
0x1266   :  { %12153 = vmatpush3.msra.mxu1 %v15812_v18 }
0x1267   :  { %12154 = vmatprep.subr.mxu1 %v17307_v51 }
0x1268   :  { %12155 = vmatpush3.msra.mxu1 %v15817_v9 }
0x1269   :  { %12157 = vmatmul.mubr.f32.vlgmr.msra.gmra.mxu1 %v5506_v33  ;;  %10678 = vmatprep.subr.bf16.mxu1 %v12987_v0  ;;  %v13007_v33 = vld [vmem:[#allocation2 + $0x600] sm:$0xff]   ;;  %v17556_v0 = vld [vmem:[#allocation55_spill] sm:$0xff] }
0x126a   :  { %5912 = vmatprep.mubr.bf16.mxu1 %v17533_v41  ;;  %10679 = vmatpush3.bf16.msra.mxu1 %v12988_v38  ;;  %v12999_v41 = vld [vmem:[#allocation2 + $0x650] sm:$0xff]   ;;  %v17557_v38 = vld [vmem:[#allocation53_spill] sm:$0xff] }
0x126b   :  { %10680 = vmatprep.subr.bf16.mxu1 %v12989_v11  ;;  %vm17558_vm9 = vnez %v17557_v38  ;;  %v17559_v11 = vld [vmem:[#allocation30_spill] sm:$0xff] }
0x126e   :  { %10681 = vmatpush3.bf16.msra.mxu1 %v12990_v63  ;;  %v17560_v63 = vld [vmem:[#allocation29_spill] sm:$0xff] }
0x126f   :  { %10682 = vmatprep.subr.bf16.mxu1 %v12991_v26  ;;  %vm17561_vm11 = vnez %v17560_v63 }
0x1272   :  { %10683 = vmatpush3.bf16.msra.mxu1 %v12992_v61 }
0x1273   :  { %10684 = vmatprep.subr.bf16.mxu1 %v12993_v58 }
0x1276   :  { %10685 = vmatpush3.bf16.msra.mxu1 %v12995_v19 }
0x1277   :  { %10686 = vmatprep.subr.bf16.mxu1 %v12996_v17 }
0x127a   :  { %10687 = vmatpush3.bf16.msra.mxu1 %v12998_v20 }
0x127b   :  { %10688 = vmatprep.subr.bf16.mxu1 %v12999_v41 }
0x127e   :  { %10689 = vmatpush3.bf16.msra.mxu1 %v13001_v40 }
0x127f   :  { %10690 = vmatprep.subr.bf16.mxu1 %v13002_v32 }
0x1282   :  { %10691 = vmatpush3.bf16.msra.mxu1 %v13004_v3 }
0x1283   :  { %10692 = vmatprep.subr.bf16.mxu1 %v13005_v27 }
0x1286   :  { %10693 = vmatpush3.bf16.msra.mxu1 %v13007_v33 }
0x1287   :  { %12214 = vmatprep.subr.mxu1 %v17307_v51 }
0x1289   :  { %9659 = vmatmul.mubr.msk.bf16.vlgmr.msra.gmra.mxu1 %vm17558_vm9, %v17556_v0 }
0x128a   :  { %5920 = vmatprep.mubr.bf16.mxu1 %v17535_v39 }
0x1291   :  { %9662 = vmatmul.mubr.msk.bf16.gmra.mxu1 %vm17561_vm11, %v17559_v11 }
0x1292   :  { %12246 = vmatprep.mubr.msk.f32.mxu1 %vm17364_vm6, %v17307_v51 }
0x12e9   :  { %v5069_v26 = vpop.f32.mrf.mxu1 }
0x12ea   :  { %v5076_v61 = vrot.slane %v5069_v26, %v13672_v6 }
0x12eb   :  { %v12018_v58 = vpop.f32.mrf.mxu1 }
0x12ec   :  { %v15871_v19 = vsub.f32 %v15681_v62, %v5076_v61  ;;  %v15874_v17 = vsub.f32 %v15679_v29, %v5076_v61  ;;  %v15877_v20 = vsub.f32 %v15683_v60, %v5076_v61  ;;  %v15880_v39 = vsub.f32 %v15688_v5, %v5076_v61 }
0x12ee   :  { %v5081_v41 = vmul.f32 %v15871_v19, %v15871_v19  ;;  %v5082_v40 = vmul.f32 %v15874_v17, %v15874_v17  ;;  %v5083_v32 = vmul.f32 %v15877_v20, %v15877_v20  ;;  %v5084_v29 = vmul.f32 %v15880_v39, %v15880_v39 }
0x12f0   :  { %v5085_v62 = vadd.f32 %v5082_v40, %v5081_v41 }
0x12f2   :  { %v5086_v3 = vadd.f32 %v5085_v62, %v5083_v32 }
0x12f4   :  { %v5087_v27 = vadd.f32 %v5086_v3, %v5084_v29 }
0x12f6   :  { %v5088_v60 = vrot.slane %v5087_v27, 4 }
0x12f8   :  { %v5089_v33 = vadd.f32 %v5088_v60, %v5087_v27 }
0x12fa   :  { %v5090_v0 = vrot.slane %v5089_v33, 2 }
0x12fc   :  { %v5091_v5 = vadd.f32 %v5090_v0, %v5089_v33 }
0x12fe   :  { %v5092_v11 = vrot.slane %v5091_v5, 1 }
0x1300   :  { %v5093_v26 = vadd.f32 %v5092_v11, %v5091_v5 }
0x1302   :  { %v5094_v61 = vmul.f32 0.03125, %v5093_v26 }
0x1304   :  { %12052 = vmatmul.mubr.f32.vlgmr.msra.gmra.mxu0 %v5094_v61 }
0x1305   :  { %12090 = vmatpush3.msra.mxu0 %v15722_v10  ;;  %12121 = vmatprep.mubr.msk.f32.mxu0 %vm17364_vm6, %v17307_v51 }
0x1306   :  { %12091 = vmatprep.subr.mxu0 %v17307_v51 }
0x1307   :  { %12092 = vmatpush3.msra.mxu0 %v15729_v55 }
0x1308   :  { %12093 = vmatprep.subr.mxu0 %v17307_v51 }
0x1309   :  { %v5319_v58 = vpop.f32.mrf.mxu1  ;;  %12094 = vmatpush3.msra.mxu0 %v15733_v24 }
0x130a   :  { %v5326_v41 = vrot.slane %v5319_v58, %v13672_v6  ;;  %12095 = vmatprep.subr.mxu0 %v17307_v51 }
0x130b   :  { %v12088_v40 = vpop.f32.mrf.mxu1  ;;  %12096 = vmatpush3.msra.mxu0 %v15737_v12 }
0x130c   :  { %v15901_v32 = vsub.f32 %v15704_v52, %v5326_v41  ;;  %v15904_v62 = vsub.f32 %v15706_v13, %v5326_v41  ;;  %v15907_v29 = vsub.f32 %v15715_v56, %v5326_v41  ;;  %12097 = vmatprep.subr.mxu0 %v17307_v51  ;;  %v15912_v3 = vsub.f32 %v15719_v15, %v5326_v41 }
0x130d   :  { %12098 = vmatpush3.msra.mxu0 %v15741_v48 }
0x130e   :  { %v5331_v27 = vmul.f32 %v15901_v32, %v15901_v32  ;;  %v5332_v52 = vmul.f32 %v15904_v62, %v15904_v62  ;;  %12099 = vmatprep.subr.mxu0 %v17307_v51  ;;  %v5333_v13 = vmul.f32 %v15907_v29, %v15907_v29  ;;  %v5334_v15 = vmul.f32 %v15912_v3, %v15912_v3 }
0x130f   :  { %12100 = vmatpush3.msra.mxu0 %v15745_v2 }
0x1310   :  { %v5335_v56 = vadd.f32 %v5332_v52, %v5331_v27  ;;  %12101 = vmatprep.subr.mxu0 %v17307_v51 }
0x1311   :  { %12102 = vmatpush3.msra.mxu0 %v15749_v46 }
0x1312   :  { %v5336_v60 = vadd.f32 %v5335_v56, %v5333_v13  ;;  %12103 = vmatprep.subr.mxu0 %v17307_v51 }
0x1313   :  { %12104 = vmatpush3.msra.mxu0 %v15755_v30 }
0x1314   :  { %v5337_v33 = vadd.f32 %v5336_v60, %v5334_v15  ;;  %12105 = vmatprep.subr.mxu0 %v17307_v51  ;;  %v12994_v60 = vld [vmem:[#allocation2 + $0x6b8] sm:$0xff]  }
0x1315   :  { %12106 = vmatpush3.msra.mxu0 %v15765_v31 }
0x1316   :  { %12107 = vmatprep.subr.mxu0 %v17307_v51  ;;  %v5338_v0 = vrot.slane %v5337_v33, 4 }
0x1317   :  { %12108 = vmatpush3.msra.mxu0 %v15774_v36 }
0x1318   :  { %12109 = vmatprep.subr.mxu0 %v17307_v51  ;;  %v5339_v5 = vadd.f32 %v5338_v0, %v5337_v33  ;;  %v17563_v33 = vld [vmem:[#allocation52_spill] sm:$0xff] }
0x1319   :  { %12110 = vmatpush3.msra.mxu0 %v15780_v23  ;;  %vm17564_vm14 = vnez %v17563_v33  ;;  %v13003_v0 = vld [vmem:[#allocation2 + $0x6a0] sm:$0xff]  }
0x131a   :  { %12111 = vmatprep.subr.mxu0 %v17307_v51  ;;  %v5340_v11 = vrot.slane %v5339_v5, 2 }
0x131b   :  { %12112 = vmatpush3.msra.mxu0 %v15786_v7 }
0x131c   :  { %12113 = vmatprep.subr.mxu0 %v17307_v51  ;;  %v5341_v26 = vadd.f32 %v5340_v11, %v5339_v5  ;;  %v13008_v5 = vld [vmem:[#allocation2 + $0x690] sm:$0xff]   ;;  %v13010_v11 = vld [vmem:[#allocation2 + $0x680] sm:$0xff]  }
0x131d   :  { %12114 = vmatpush3.msra.mxu0 %v15795_v44 }
0x131e   :  { %12115 = vmatprep.subr.mxu0 %v17307_v51  ;;  %v5342_v61 = vrot.slane %v5341_v26, 1 }
0x131f   :  { %12116 = vmatpush3.msra.mxu0 %v15806_v4 }
0x1320   :  { %12117 = vmatprep.subr.mxu0 %v17307_v51  ;;  %v5343_v58 = vadd.f32 %v5342_v61, %v5341_v26  ;;  %v17565_v26 = vld [vmem:[#allocation56_spill] sm:$0xff]  ;;  %v17566_v61 = vld [vmem:[#allocation54_spill] sm:$0xff] }
0x1321   :  { %12118 = vmatpush3.msra.mxu0 %v15812_v18  ;;  %vm17567_vm12 = vnez %v17566_v61 }
0x1322   :  { %12119 = vmatprep.subr.mxu0 %v17307_v51  ;;  %v5344_v41 = vmul.f32 0.03125, %v5343_v58  ;;  %v16008_v58 = vld [vmem:[#allocation8 + $0x78] sm:$0xff] }
0x1323   :  { %12120 = vmatpush3.msra.mxu0 %v15817_v9  ;;  %12215 = vmatpush3.msra.mxu1 %v16008_v58 }
0x1324   :  { %12122 = vmatmul.mubr.f32.vlgmr.msra.gmra.mxu0 %v5344_v41  ;;  %12159 = vmatprep.subr.mxu0 %v17307_v51  ;;  %v16014_v41 = vld [vmem:[#allocation8 + $0x70] sm:$0xff] }
0x1325   :  { %12160 = vmatpush3.msra.mxu0 %v15722_v10  ;;  %12191 = vmatprep.mubr.msk.f32.mxu0 %vm17364_vm6, %v17307_v51 }
0x1326   :  { %12161 = vmatprep.subr.mxu0 %v17307_v51  ;;  %12216 = vmatprep.subr.mxu1 %v17307_v51 }
0x1327   :  { %12162 = vmatpush3.msra.mxu0 %v15729_v55  ;;  %12217 = vmatpush3.msra.mxu1 %v16014_v41 }
0x1328   :  { %12163 = vmatprep.subr.mxu0 %v17307_v51  ;;  %12218 = vmatprep.subr.mxu1 %v17307_v51 }
0x1329   :  { %v5573_v40 = vpop.f32.mrf.mxu1  ;;  %12164 = vmatpush3.msra.mxu0 %v15733_v24 }
0x132a   :  { %v5580_v27 = vrot.slane %v5573_v40, %v13672_v6  ;;  %12165 = vmatprep.subr.mxu0 %v17307_v51  ;;  %v16019_v40 = vld [vmem:[#allocation8 + $0x68] sm:$0xff] }
0x132b   :  { %v12158_v52 = vpop.f32.mrf.mxu1  ;;  %12166 = vmatpush3.msra.mxu0 %v15737_v12  ;;  %12219 = vmatpush3.msra.mxu1 %v16019_v40 }
0x132c   :  { %v15956_v10 = vsub.f32 %v15799_v57, %v5580_v27  ;;  %v15959_v13 = vsub.f32 %v15790_v49, %v5580_v27  ;;  %v15962_v55 = vsub.f32 %v15803_v45, %v5580_v27  ;;  %12167 = vmatprep.subr.mxu0 %v17307_v51  ;;  %v15967_v24 = vsub.f32 %v15821_v21, %v5580_v27  ;;  %v16025_v27 = vld [vmem:[#allocation8 + $0x60] sm:$0xff]  ;;  %v16032_v52 = vld [vmem:[#allocation8 + $0x58] sm:$0xff] }
0x132d   :  { %12168 = vmatpush3.msra.mxu0 %v15741_v48  ;;  %12220 = vmatprep.subr.mxu1 %v17307_v51 }
0x132e   :  { %v5585_v56 = vmul.f32 %v15956_v10, %v15956_v10  ;;  %v5586_v12 = vmul.f32 %v15959_v13, %v15959_v13  ;;  %12169 = vmatprep.subr.mxu0 %v17307_v51  ;;  %v5587_v49 = vmul.f32 %v15962_v55, %v15962_v55  ;;  %v5588_v48 = vmul.f32 %v15967_v24, %v15967_v24 }
0x132f   :  { %12170 = vmatpush3.msra.mxu0 %v15745_v2  ;;  %12221 = vmatpush3.msra.mxu1 %v16025_v27 }
0x1330   :  { %v5589_v57 = vadd.f32 %v5586_v12, %v5585_v56  ;;  %12171 = vmatprep.subr.mxu0 %v17307_v51  ;;  %12222 = vmatprep.subr.mxu1 %v17307_v51  ;;  %v16037_v56 = vld [vmem:[#allocation8 + $0x50] sm:$0xff]  ;;  %v16043_v12 = vld [vmem:[#allocation8 + $0x48] sm:$0xff] }
0x1331   :  { %12172 = vmatpush3.msra.mxu0 %v15749_v46  ;;  %12223 = vmatpush3.msra.mxu1 %v16032_v52 }
0x1332   :  { %v5590_v45 = vadd.f32 %v5589_v57, %v5587_v49  ;;  %12173 = vmatprep.subr.mxu0 %v17307_v51  ;;  %12224 = vmatprep.subr.mxu1 %v17307_v51  ;;  %v16049_v49 = vld [vmem:[#allocation8 + $0x40] sm:$0xff]  ;;  %v16055_v57 = vld [vmem:[#allocation8 + $0x38] sm:$0xff] }
0x1333   :  { %12174 = vmatpush3.msra.mxu0 %v15755_v30  ;;  %12225 = vmatpush3.msra.mxu1 %v16037_v56 }
0x1334   :  { %v5591_v21 = vadd.f32 %v5590_v45, %v5588_v48  ;;  %12175 = vmatprep.subr.mxu0 %v17307_v51  ;;  %12226 = vmatprep.subr.mxu1 %v17307_v51  ;;  %v16061_v48 = vld [vmem:[#allocation8 + $0x30] sm:$0xff]  ;;  %v16067_v45 = vld [vmem:[#allocation8 + $0x28] sm:$0xff] }
0x1335   :  { %12176 = vmatpush3.msra.mxu0 %v15765_v31  ;;  %12227 = vmatpush3.msra.mxu1 %v16043_v12 }
0x1336   :  { %12177 = vmatprep.subr.mxu0 %v17307_v51  ;;  %v5592_v2 = vrot.slane %v5591_v21, 4  ;;  %12228 = vmatprep.subr.mxu1 %v17307_v51 }
0x1337   :  { %12178 = vmatpush3.msra.mxu0 %v15774_v36  ;;  %12229 = vmatpush3.msra.mxu1 %v16049_v49 }
0x1338   :  { %12179 = vmatprep.subr.mxu0 %v17307_v51  ;;  %v5593_v46 = vadd.f32 %v5592_v2, %v5591_v21  ;;  %12230 = vmatprep.subr.mxu1 %v17307_v51  ;;  %v16073_v21 = vld [vmem:[#allocation8 + $0x20] sm:$0xff]  ;;  %v16077_v2 = vld [vmem:[#allocation8 + $0x18] sm:$0xff] }
0x1339   :  { %12180 = vmatpush3.msra.mxu0 %v15780_v23  ;;  %12231 = vmatpush3.msra.mxu1 %v16055_v57 }
0x133a   :  { %12181 = vmatprep.subr.mxu0 %v17307_v51  ;;  %v5594_v15 = vrot.slane %v5593_v46, 2  ;;  %12232 = vmatprep.subr.mxu1 %v17307_v51 }
0x133b   :  { %12182 = vmatpush3.msra.mxu0 %v15786_v7  ;;  %v12997_v7 = vld [vmem:[#allocation2 + $0x6b0] sm:$0xff]   ;;  %12233 = vmatpush3.msra.mxu1 %v16061_v48 }
0x133c   :  { %12183 = vmatprep.subr.mxu0 %v17307_v51  ;;  %v5595_v30 = vadd.f32 %v5594_v15, %v5593_v46  ;;  %12234 = vmatprep.subr.mxu1 %v17307_v51  ;;  %v16081_v46 = vld [vmem:[#allocation8 + $0x10] sm:$0xff]  ;;  %v16087_v15 = vld [vmem:[#allocation8 + $0x8] sm:$0xff] }
0x133d   :  { %12184 = vmatpush3.msra.mxu0 %v15795_v44  ;;  %v17562_v44 = vld [vmem:[#allocation51_spill] sm:$0xff]  ;;  %12235 = vmatpush3.msra.mxu1 %v16067_v45 }
0x133e   :  { %12185 = vmatprep.subr.mxu0 %v17307_v51  ;;  %v5596_v31 = vrot.slane %v5595_v30, 1  ;;  %12236 = vmatprep.subr.mxu1 %v17307_v51 }
0x133f   :  { %12186 = vmatpush3.msra.mxu0 %v15806_v4  ;;  %v13000_v4 = vld [vmem:[#allocation2 + $0x6a8] sm:$0xff]   ;;  %12237 = vmatpush3.msra.mxu1 %v16073_v21 }
0x1340   :  { %12187 = vmatprep.subr.mxu0 %v17307_v51  ;;  %v5597_v36 = vadd.f32 %v5596_v31, %v5595_v30  ;;  %12238 = vmatprep.subr.mxu1 %v17307_v51  ;;  %v16093_v30 = vld [vmem:[#allocation8] sm:$0xff] }
0x1341   :  { %12188 = vmatpush3.msra.mxu0 %v15812_v18  ;;  %v13006_v18 = vld [vmem:[#allocation2 + $0x698] sm:$0xff]   ;;  %12239 = vmatpush3.msra.mxu1 %v16077_v2 }
0x1342   :  { %12189 = vmatprep.subr.mxu0 %v17307_v51  ;;  %v5598_v23 = vmul.f32 0.03125, %v5597_v36  ;;  %12240 = vmatprep.subr.mxu1 %v17307_v51 }
0x1343   :  { %12190 = vmatpush3.msra.mxu0 %v15817_v9  ;;  %v13009_v9 = vld [vmem:[#allocation2 + $0x688] sm:$0xff]   ;;  %12241 = vmatpush3.msra.mxu1 %v16081_v46 }
0x1344   :  { %12192 = vmatmul.mubr.f32.vlgmr.msra.gmra.mxu0 %v5598_v23  ;;  %12194 = vmatprep.subr.bf16.mxu0 %v12994_v60 }
0x1345   :  { %12195 = vmatpush3.bf16.msra.mxu0 %v12994_v60  ;;  %12210 = vmatprep.mubr.msk.bf16.mxu0 %vm17564_vm14, %v17562_v44  ;;  %v4435_v44 = vadd.f32 1e-05, %v15677_v1 }
0x1346   :  { %12196 = vmatprep.subr.bf16.mxu0 %v12997_v7  ;;  %12242 = vmatprep.subr.mxu1 %v17307_v51 }
0x1347   :  { %12243 = vmatpush3.msra.mxu1 %v16087_v15 }
0x1348   :  { %12244 = vmatprep.subr.mxu1 %v17307_v51 }
0x1349   :  { %12197 = vmatpush3.bf16.msra.mxu0 %v12997_v7  ;;  %12245 = vmatpush3.msra.mxu1 %v16093_v30  ;;  %v16104_v16 = vpop.f32.mrf.mxu1 }
0x134a   :  { %12198 = vmatprep.subr.bf16.mxu0 %v13000_v4 }
0x134d   :  { %12199 = vmatpush3.bf16.msra.mxu0 %v13000_v4 }
0x134e   :  { %12200 = vmatprep.subr.bf16.mxu0 %v13003_v0 }
0x1351   :  { %12201 = vmatpush3.bf16.msra.mxu0 %v13003_v0 }
0x1352   :  { %12202 = vmatprep.subr.bf16.mxu0 %v13006_v18 }
0x1355   :  { %12203 = vmatpush3.bf16.msra.mxu0 %v13006_v18 }
0x1356   :  { %12204 = vmatprep.subr.bf16.mxu0 %v13008_v5 }
0x1359   :  { %12205 = vmatpush3.bf16.msra.mxu0 %v13008_v5 }
0x135a   :  { %12206 = vmatprep.subr.bf16.mxu0 %v13009_v9 }
0x135d   :  { %12207 = vmatpush3.bf16.msra.mxu0 %v13009_v9 }
0x135e   :  { %12208 = vmatprep.subr.bf16.mxu0 %v13010_v11 }
0x1361   :  { %12209 = vmatpush3.bf16.msra.mxu0 %v13010_v11 }
0x1362   :  { %12249 = vmatprep.subr.mxu0 %v17307_v51 }
0x1364   :  { %12211 = vmatmul.mubr.msk.bf16.vlgmr.msra.gmra.mxu0 %vm17567_vm12, %v17565_v26 }
0x1365   :  { %12281 = vmatprep.mubr.msk.f32.mxu0 %vm17364_vm6, %v17307_v51  ;;  %12250 = vmatpush3.msra.mxu0 %v16008_v58 }
0x1366   :  { %12251 = vmatprep.subr.mxu0 %v17307_v51 }
0x1367   :  { %12252 = vmatpush3.msra.mxu0 %v16014_v41 }
0x1368   :  { %12253 = vmatprep.subr.mxu0 %v17307_v51 }
0x1369   :  { %12254 = vmatpush3.msra.mxu0 %v16019_v40 }
0x136a   :  { %12255 = vmatprep.subr.mxu0 %v17307_v51 }
0x136b   :  { %12256 = vmatpush3.msra.mxu0 %v16025_v27 }
0x136c   :  { %12257 = vmatprep.subr.mxu0 %v17307_v51 }
0x136d   :  { %12258 = vmatpush3.msra.mxu0 %v16032_v52 }
0x136e   :  { %12259 = vmatprep.subr.mxu0 %v17307_v51 }
0x136f   :  { %12260 = vmatpush3.msra.mxu0 %v16037_v56 }
0x1370   :  { %12261 = vmatprep.subr.mxu0 %v17307_v51 }
0x1371   :  { %12262 = vmatpush3.msra.mxu0 %v16043_v12 }
0x1372   :  { %12263 = vmatprep.subr.mxu0 %v17307_v51 }
0x1373   :  { %12264 = vmatpush3.msra.mxu0 %v16049_v49 }
0x1374   :  { %12265 = vmatprep.subr.mxu0 %v17307_v51 }
0x1375   :  { %12266 = vmatpush3.msra.mxu0 %v16055_v57 }
0x1376   :  { %12267 = vmatprep.subr.mxu0 %v17307_v51 }
0x1377   :  { %12268 = vmatpush3.msra.mxu0 %v16061_v48 }
0x1378   :  { %12269 = vmatprep.subr.mxu0 %v17307_v51 }
0x1379   :  { %12270 = vmatpush3.msra.mxu0 %v16067_v45 }
0x137a   :  { %12271 = vmatprep.subr.mxu0 %v17307_v51 }
0x137b   :  { %12272 = vmatpush3.msra.mxu0 %v16073_v21 }
0x137c   :  { %12273 = vmatprep.subr.mxu0 %v17307_v51 }
0x137d   :  { %12274 = vmatpush3.msra.mxu0 %v16077_v2 }
0x137e   :  { %12275 = vmatprep.subr.mxu0 %v17307_v51 }
0x137f   :  { %12276 = vmatpush3.msra.mxu0 %v16081_v46 }
0x1380   :  { %12277 = vmatprep.subr.mxu0 %v17307_v51 }
0x1381   :  { %12278 = vmatpush3.msra.mxu0 %v16087_v15 }
0x1382   :  { %12279 = vmatprep.subr.mxu0 %v17307_v51 }
0x1383   :  { %12280 = vmatpush3.msra.mxu0 %v16093_v30 }
0x13c4   :  { %v5161_v31 = vpop.f32.mrf.mxu0 }
0x13c5   :  { %v5165_v7 = vadd.f32 1e-05, %v5161_v31 }
0x13c6   :  { %v12053_v36 = vpop.f32.mrf.mxu0 }
0x13c7   :  { %13187 = vrsqrt.f32 %v5165_v7 }
0x13c8   :  { %13189 = vrsqrt.f32 %v4435_v44  ;;  %v16112_v44 = vpop.f32.mrf.mxu1 }
0x13d4   :  { %v13188_v9 = vpop.eup %13187 }
0x13d5   :  { %v13190_v11 = vpop.eup %13189  ;;  %v5170_v50 = vrot.slane %v13188_v9, %v13672_v6 }
0x13d6   :  { %v4440_v36 = vrot.slane %v13190_v11, %v13672_v6 }
0x13d7   :  { %v5171_v1 = vmul.f32 %v5170_v50, %v15871_v19  ;;  %v5174_v7 = vmul.f32 %v5170_v50, %v15880_v39 }
0x13e4   :  { %v5411_v60 = vpop.f32.mrf.mxu0 }
0x13e5   :  { %v5415_v4 = vadd.f32 1e-05, %v5411_v60  ;;  %v5172_v60 = vmul.f32 %v5170_v50, %v15874_v17 }
0x13e6   :  { %v12123_v23 = vpop.f32.mrf.mxu0 }
0x13e7   :  { %13191 = vrsqrt.f32 %v5415_v4  ;;  %v5173_v23 = vmul.f32 %v5170_v50, %v15877_v20  ;;  %v4441_v4 = vmul.f32 %v4440_v36, %v15605_v47  ;;  %v16122_v47 = vpop.f32.mrf.mxu1 }
0x13e9   :  { %v5175_v50 = vadd.f32 %v5171_v1, %v4441_v4 }
0x13f4   :  { %v13192_v26 = vpop.eup %13191 }
0x13f5   :  { %v5420_v31 = vrot.slane %v13192_v26, %v13672_v6 }
0x13f7   :  { %v5421_v9 = vmul.f32 %v5420_v31, %v15901_v32  ;;  %v5422_v19 = vmul.f32 %v5420_v31, %v15904_v62  ;;  %v5423_v17 = vmul.f32 %v5420_v31, %v15907_v29  ;;  %v5424_v20 = vmul.f32 %v5420_v31, %v15912_v3  ;;  %v10698_v31 = vpop.f32.mrf.mxu1 }
0x1404   :  { %v5665_v0 = vpop.f32.mrf.mxu0 }
0x1405   :  { %v5669_v18 = vadd.f32 1e-05, %v5665_v0  ;;  %v4442_v0 = vmul.f32 %v4440_v36, %v15608_v37 }
0x1406   :  { %v12193_v5 = vpop.f32.mrf.mxu0 }
0x1407   :  { %13193 = vrsqrt.f32 %v5669_v18  ;;  %v4443_v18 = vmul.f32 %v4440_v36, %v15611_v35  ;;  %v4444_v5 = vmul.f32 %v4440_v36, %v15614_v42  ;;  %v5176_v39 = vadd.f32 %v5172_v60, %v4442_v0 }
0x1408   :  { %v5425_v35 = vadd.f32 %v5421_v9, %v5175_v50 }
0x1409   :  { %v5177_v26 = vadd.f32 %v5173_v23, %v4443_v18  ;;  %v5178_v8 = vadd.f32 %v5174_v7, %v4444_v5  ;;  %v5426_v43 = vadd.f32 %v5422_v19, %v5176_v39 }
0x140b   :  { %v5427_v42 = vadd.f32 %v5423_v17, %v5177_v26  ;;  %v5428_v36 = vadd.f32 %v5424_v20, %v5178_v8 }
0x1414   :  { %v13194_v11 = vpop.eup %13193 }
0x1415   :  { %v5674_v37 = vrot.slane %v13194_v11, %v13672_v6 }
0x1417   :  { %v5675_v32 = vmul.f32 %v5674_v37, %v15956_v10  ;;  %v5676_v62 = vmul.f32 %v5674_v37, %v15959_v13  ;;  %v5677_v29 = vmul.f32 %v5674_v37, %v15962_v55  ;;  %v5678_v3 = vmul.f32 %v5674_v37, %v15967_v24  ;;  %v10700_v55 = vpop.f32.mrf.mxu1 }
0x1418   :  { %v10699_v37 = vadd.f32 %v10698_v31, %v16122_v47  ;;  %v13013_v47 = vld [vmem:[#allocation2 + $0x778] sm:$0xff]  }
0x1419   :  { %v5679_v1 = vadd.f32 %v5675_v32, %v5425_v35  ;;  %v5680_v60 = vadd.f32 %v5676_v62, %v5426_v43  ;;  %v5681_v23 = vadd.f32 %v5677_v29, %v5427_v42  ;;  %v5682_v7 = vadd.f32 %v5678_v3, %v5428_v36  ;;  %v10701_v26 = vpop.f32.mrf.mxu1  ;;  %12284 = vmatprep.subr.bf16.mxu0 %v13013_v47 }
0x141b   :  { %9629 = vst [vmem:[%s17050_s8 + $0x40] sm:$0xff] %v5679_v1  ;;  %9630 = vst [vmem:[%s17050_s8 + $0x48] sm:$0xff] %v5680_v60  ;;  %v16141_v8 = vmax.f32 %v5679_v1, 0.0  ;;  %v16143_v43 = vmax.f32 %v5680_v60, 0.0  ;;  %v16145_v10 = vmax.f32 %v5681_v23, 0.0  ;;  %v16147_v13 = vmax.f32 %v5682_v7, 0.0 }
0x141c   :  { %9631 = vst [vmem:[%s17050_s8 + $0x50] sm:$0xff] %v5681_v23  ;;  %9632 = vst [vmem:[%s17050_s8 + $0x58] sm:$0xff] %v5682_v7 }
0x141d   :  { %17568 = vst [vmem:[#allocation43_spill] sm:$0xff] %v16141_v8  ;;  %17569 = vst [vmem:[#allocation45_spill] sm:$0xff] %v16143_v43  ;;  %v8576_v24 = vrot.slane %v16141_v8, 6  ;;  %v8577_v4 = vrot.slane %v16143_v43, 6  ;;  %v8579_v0 = vrot.slane %v16147_v13, 6  ;;  %v8564_v18 = vrot.slane %v16141_v8, 4 }
0x141e   :  { %17570 = vst [vmem:[#allocation33_spill] sm:$0xff] %v16145_v10  ;;  %17571 = vst [vmem:[#allocation31_spill] sm:$0xff] %v16147_v13  ;;  %v8565_v5 = vrot.slane %v16143_v43, 4  ;;  %v8567_v9 = vrot.slane %v16147_v13, 4  ;;  %v8578_v19 = vrot.slane %v16145_v10, 6  ;;  %v8566_v17 = vrot.slane %v16145_v10, 4 }
0x141f   :  { %v16159_v20 = vsel %vm17572_vm2, %v8576_v24, %v8577_v4  ;;  %v16163_v11 = vsel %vm17574_vm10, %v8579_v0, %v8576_v24  ;;  %v8588_v50 = vrot.slane %v16141_v8, 2  ;;  %v8589_v39 = vrot.slane %v16143_v43, 2  ;;  %vm17581_vm10 = vmmov %vm17572_vm2 }
0x1420   :  { %17573 = vst [vmem:[#allocation32_spill] sm:$0xff] %v16159_v20  ;;  %17575 = vst [vmem:[#allocation34_spill] sm:$0xff] %v16163_v11  ;;  %v16171_v35 = vsel %vm17576_vm7, %v8564_v18, %v8565_v5  ;;  %v16175_v42 = vsel %vm17578_vm15, %v8567_v9, %v8564_v18  ;;  %v16179_v36 = vsel %vm17572_vm2, %v8578_v19, %v8579_v0  ;;  %v8590_v24 = vrot.slane %v16145_v10, 2 }
0x1421   :  { %17577 = vst [vmem:[#allocation35_spill] sm:$0xff] %v16171_v35  ;;  %17579 = vst [vmem:[#allocation36_spill] sm:$0xff] %v16175_v42  ;;  %v16185_v62 = vsel %vm17581_vm10, %v8577_v4, %v8578_v19  ;;  %v16189_v29 = vsel %vm17583_vm8, %v8566_v17, %v8567_v9  ;;  %v16193_v3 = vsel %vm17576_vm7, %v8565_v5, %v8566_v17  ;;  %vm17586_vm8 = vcmp.lt.s32.totalorder %v17391_v22, 6  ;;  %v10703_v5 = vpop.f32.mrf.mxu1 }
0x1422   :  { %17580 = vst [vmem:[#allocation38_spill] sm:$0xff] %v16179_v36  ;;  %17582 = vst [vmem:[#allocation37_spill] sm:$0xff] %v16185_v62  ;;  %v16206_v4 = vsel %vm17586_vm8, %v8588_v50, %v8589_v39  ;;  %v8591_v18 = vrot.slane %v16147_v13, 2  ;;  %vm17594_vm7 = vcmp.lt.s32.totalorder %v17391_v22, 1 }
0x1423   :  { %17584 = vst [vmem:[#allocation47_spill] sm:$0xff] %v16189_v29  ;;  %17585 = vst [vmem:[#allocation48_spill] sm:$0xff] %v16193_v3  ;;  %v10704_v19 = vpop.f32.mrf.mxu1 }
0x1424   :  { %17587 = vst [vmem:[#allocation49_spill] sm:$0xff] %v16206_v4  ;;  %v12212_v9 = vpop.f32.mrf.mxu0  ;;  %vm17588_vm15 = vmmov %vm17586_vm8  ;;  %v10705_v13 = vadd.f32 %v10704_v19, %v10703_v5  ;;  %v13014_v19 = vld [vmem:[#allocation2 + $0x730] sm:$0xff]  }
0x1425   :  { %v16215_v17 = vsel %vm17588_vm15, %v8589_v39, %v8590_v24  ;;  %vm17590_vm2 = vmmov %vm17586_vm8  ;;  %v10696_v39 = vadd.f32 %v16112_v44, %v16104_v16  ;;  %v13011_v16 = vld [vmem:[#allocation2 + $0x738] sm:$0xff]   ;;  %vm17596_vm15 = vcmp.lt.s32.totalorder %v17391_v22, 7 }
0x1426   :  { %17589 = vst [vmem:[#allocation50_spill] sm:$0xff] %v16215_v17  ;;  %v16219_v23 = vsel %vm17590_vm2, %v8590_v24, %v8591_v18  ;;  %vm17592_vm10 = vmmov %vm17590_vm2  ;;  %v5963_v0 = vpop.f32.mrf.mxu0  ;;  %v10702_v24 = vadd.f32 %v10701_v26, %v10700_v55  ;;  %v13012_v44 = vld [vmem:[#allocation2 + $0x6f8] sm:$0xff]   ;;  %10750 = vmatprep.subr.bf16.mxu1 %v13011_v16  ;;  %v13020_v16 = vld [vmem:[#allocation2 + $0x720] sm:$0xff]  }
0x1427   :  { %17591 = vst [vmem:[#allocation55_spill] sm:$0xff] %v16219_v23  ;;  %v16223_v7 = vsel %vm17592_vm10, %v8591_v18, %v8588_v50  ;;  %v5964_v8 = vadd.f32 %v10696_v39, %v5963_v0  ;;  %v13016_v39 = vld [vmem:[#allocation2 + $0x770] sm:$0xff]   ;;  %vm17595_vm8 = vmmov %vm17594_vm7 }
0x1428   :  { %17593 = vst [vmem:[#allocation53_spill] sm:$0xff] %v16223_v7  ;;  %v12213_v32 = vpop.f32.mrf.mxu0  ;;  %v5972_v18 = vadd.f32 %v12212_v9, %v10702_v24  ;;  %v13017_v24 = vld [vmem:[#allocation2 + $0x728] sm:$0xff]   ;;  %vm17597_vm2 = vmmov %vm17596_vm15 }
0x1429   :  { %v5975_v3 = vadd.f32 %v12213_v32, %v10705_v13  ;;  %vm17598_vm10 = vmmov %vm17597_vm2 }
0x142a   :  { %v5966_v10 = vpop.f32.mrf.mxu0  ;;  %vm17599_vm13 = vmmov %vm17597_vm2 }
0x142b   :  { %v5967_v50 = vadd.f32 %v10699_v37, %v5966_v10 }
0x142d   :  { %v5978_v43 = vadd.f32 %v5967_v50, %v5964_v8 }
0x142f   :  { %v5979_v29 = vadd.f32 %v5978_v43, %v5972_v18 }
0x1431   :  { %v5980_v60 = vadd.f32 %v5979_v29, %v5975_v3 }
0x1433   :  { %v5981_v4 = vrot.slane %v5980_v60, 4 }
0x1435   :  { %v5982_v17 = vadd.f32 %v5981_v4, %v5980_v60 }
0x1437   :  { %v5983_v1 = vrot.slane %v5982_v17, 2 }
0x1439   :  { %v5984_v23 = vadd.f32 %v5983_v1, %v5982_v17  ;;  %v13015_v17 = vld [vmem:[#allocation2 + $0x6f0] sm:$0xff]  }
0x143b   :  { %v5985_v7 = vrot.slane %v5984_v23, 1 }
0x143d   :  { %v5986_v62 = vadd.f32 %v5985_v7, %v5984_v23 }
0x143f   :  { %v5987_v36 = vmul.f32 0.03125, %v5986_v62 }
0x1441   :  { %12247 = vmatmul.mubr.f32.vlgmr.msra.gmra.mxu1 %v5987_v36 }
0x1442   :  { %10751 = vmatpush3.bf16.msra.mxu1 %v13012_v44  ;;  %v13021_v44 = vld [vmem:[#allocation2 + $0x6e0] sm:$0xff]  }
0x1443   :  { %10752 = vmatprep.subr.bf16.mxu1 %v13014_v19 }
0x1446   :  { %10753 = vmatpush3.bf16.msra.mxu1 %v13015_v17 }
0x1447   :  { %10754 = vmatprep.subr.bf16.mxu1 %v13017_v24 }
0x1501   :  { %v6070_v31 = vpop.f32.mrf.mxu1 }
0x1502   :  { %v6077_v10 = vrot.slane %v6070_v31, %v13672_v6  ;;  %v13022_v31 = vld [vmem:[#allocation2 + $0x760] sm:$0xff]  }
0x1503   :  { %v12248_v13 = vpop.f32.mrf.mxu1 }
0x1504   :  { %v16233_v43 = vsub.f32 %v5964_v8, %v6077_v10  ;;  %v16235_v55 = vsub.f32 %v5967_v50, %v6077_v10  ;;  %v16237_v26 = vsub.f32 %v5972_v18, %v6077_v10  ;;  %v16239_v37 = vsub.f32 %v5975_v3, %v6077_v10  ;;  %v13018_v50 = vld [vmem:[#allocation2 + $0x6e8] sm:$0xff]   ;;  %v13024_v10 = vld [vmem:[#allocation2 + $0x6d8] sm:$0xff]  }
0x1505   :  { %v13019_v18 = vld [vmem:[#allocation2 + $0x768] sm:$0xff]   ;;  %10755 = vmatpush3.bf16.msra.mxu1 %v13018_v50  ;;  %v13025_v13 = vld [vmem:[#allocation2 + $0x758] sm:$0xff]  }
0x1506   :  { %v6082_v36 = vmul.f32 %v16233_v43, %v16233_v43  ;;  %v6083_v32 = vmul.f32 %v16235_v55, %v16235_v55  ;;  %v6084_v62 = vmul.f32 %v16237_v26, %v16237_v26  ;;  %v6085_v8 = vmul.f32 %v16239_v37, %v16239_v37  ;;  %10756 = vmatprep.subr.bf16.mxu1 %v13020_v16 }
0x1508   :  { %v6086_v29 = vadd.f32 %v6083_v32, %v6082_v36  ;;  %v13026_v36 = vld [vmem:[#allocation2 + $0x710] sm:$0xff]  }
0x1509   :  { %10757 = vmatpush3.bf16.msra.mxu1 %v13021_v44  ;;  %v13027_v32 = vld [vmem:[#allocation2 + $0x6d0] sm:$0xff]  }
0x150a   :  { %v6087_v1 = vadd.f32 %v6086_v29, %v6084_v62  ;;  %v13028_v62 = vld [vmem:[#allocation2 + $0x750] sm:$0xff]   ;;  %v13029_v29 = vld [vmem:[#allocation2 + $0x708] sm:$0xff]  }
0x150c   :  { %v6088_v60 = vadd.f32 %v6087_v1, %v6085_v8  ;;  %v13030_v8 = vld [vmem:[#allocation2 + $0x6c8] sm:$0xff]  }
0x150d   :  { %v13031_v1 = vld [vmem:[#allocation2 + $0x748] sm:$0xff]  }
0x150e   :  { %v6089_v23 = vrot.slane %v6088_v60, 4 }
0x1510   :  { %v6090_v7 = vadd.f32 %v6089_v23, %v6088_v60  ;;  %v13032_v60 = vld [vmem:[#allocation2 + $0x700] sm:$0xff]  }
0x1511   :  { %v13033_v23 = vld [vmem:[#allocation2 + $0x6c0] sm:$0xff]  }
0x1512   :  { %v6091_v4 = vrot.slane %v6090_v7, 2 }
0x1514   :  { %v6092_v3 = vadd.f32 %v6091_v4, %v6090_v7  ;;  %v13034_v7 = vld [vmem:[#allocation2 + $0x740] sm:$0xff]  }
0x1516   :  { %v6093_v0 = vrot.slane %v6092_v3, 1 }
0x1518   :  { %v6094_v5 = vadd.f32 %v6093_v0, %v6092_v3 }
0x151a   :  { %v6095_v9 = vmul.f32 0.03125, %v6094_v5 }
0x151c   :  { %12282 = vmatmul.mubr.f32.vlgmr.msra.gmra.mxu0 %v6095_v9 }
0x151d   :  { %12285 = vmatpush3.bf16.msra.mxu0 %v13013_v47  ;;  %v13023_v47 = vld [vmem:[#allocation2 + $0x718] sm:$0xff]  }
0x151e   :  { %12286 = vmatprep.subr.bf16.mxu0 %v13016_v39  ;;  %10758 = vmatprep.subr.bf16.mxu1 %v13023_v47 }
0x151f   :  { %10759 = vmatpush3.bf16.msra.mxu1 %v13024_v10 }
0x1520   :  { %10760 = vmatprep.subr.bf16.mxu1 %v13026_v36 }
0x1521   :  { %12287 = vmatpush3.bf16.msra.mxu0 %v13016_v39 }
0x1522   :  { %12288 = vmatprep.subr.bf16.mxu0 %v13019_v18 }
0x1523   :  { %10761 = vmatpush3.bf16.msra.mxu1 %v13027_v32 }
0x1524   :  { %10762 = vmatprep.subr.bf16.mxu1 %v13029_v29 }
0x1525   :  { %12289 = vmatpush3.bf16.msra.mxu0 %v13019_v18 }
0x1526   :  { %12290 = vmatprep.subr.bf16.mxu0 %v13022_v31 }
0x1527   :  { %10763 = vmatpush3.bf16.msra.mxu1 %v13030_v8 }
0x1528   :  { %10764 = vmatprep.subr.bf16.mxu1 %v13032_v60 }
0x1529   :  { %12291 = vmatpush3.bf16.msra.mxu0 %v13022_v31 }
0x152a   :  { %12292 = vmatprep.subr.bf16.mxu0 %v13025_v13 }
0x152b   :  { %10765 = vmatpush3.bf16.msra.mxu1 %v13033_v23 }
0x152c   :  { %12304 = vmatprep.subr.mxu1 %v17307_v51 }
0x152d   :  { %12293 = vmatpush3.bf16.msra.mxu0 %v13025_v13 }
0x152e   :  { %12294 = vmatprep.subr.bf16.mxu0 %v13028_v62 }
0x1531   :  { %12295 = vmatpush3.bf16.msra.mxu0 %v13028_v62 }
0x1532   :  { %12296 = vmatprep.subr.bf16.mxu0 %v13031_v1 }
0x1535   :  { %12297 = vmatpush3.bf16.msra.mxu0 %v13031_v1 }
0x1536   :  { %12298 = vmatprep.subr.bf16.mxu0 %v13034_v7 }
0x1539   :  { %12299 = vmatpush3.bf16.msra.mxu0 %v13034_v7 }
0x153a   :  { %12339 = vmatprep.subr.mxu0 %v17307_v51 }
0x15dc   :  { %v6162_v4 = vpop.f32.mrf.mxu0 }
0x15dd   :  { %v6166_v3 = vadd.f32 1e-05, %v6162_v4 }
0x15de   :  { %v12283_v0 = vpop.f32.mrf.mxu0 }
0x15df   :  { %13195 = vrsqrt.f32 %v6166_v3 }
0x15ec   :  { %v13196_v5 = vpop.eup %13195 }
0x15ed   :  { %v6171_v9 = vrot.slane %v13196_v5, %v13672_v6 }
0x15ef   :  { %v6174_v19 = vmul.f32 %v6171_v9, %v16237_v26  ;;  %v6175_v17 = vmul.f32 %v6171_v9, %v16239_v37  ;;  %v6172_v39 = vmul.f32 %v6171_v9, %v16233_v43  ;;  %v6173_v24 = vmul.f32 %v6171_v9, %v16235_v55 }
0x15f1   :  { %v6178_v50 = vmax.f32 %v6174_v19, 0.0  ;;  %v6179_v18 = vmax.f32 %v6175_v17, 0.0  ;;  %v6176_v16 = vmax.f32 %v6172_v39, 0.0  ;;  %v6177_v44 = vmax.f32 %v6173_v24, 0.0  ;;  %v13035_v19 = vld [vmem:[#allocation2 + $0x7f8] sm:$0xff]  }
0x15f3   :  { %v6180_v31 = vrot.slane %v6176_v16, 7  ;;  %v6181_v47 = vrot.slane %v6177_v44, 7  ;;  %v6205_v10 = vpack.c.bf16 %v6177_v44, %v6176_v16  ;;  %v6183_v13 = vrot.slane %v6179_v18, 7 }
0x15f4   :  { %v6192_v36 = vrot.slane %v6176_v16, 1  ;;  %v6193_v32 = vrot.slane %v6177_v44, 1  ;;  %v6194_v62 = vrot.slane %v6178_v50, 1  ;;  %v6195_v29 = vrot.slane %v6179_v18, 1 }
0x15f5   :  { %6434 = vmatprep.mubr.bf16.mxu1 %v6205_v10  ;;  %v6186_v26 = vsel %vm17594_vm7, %v6180_v31, %v6181_v47  ;;  %v6187_v43 = vsel %vm17595_vm8, %v6183_v13, %v6180_v31  ;;  %v6208_v7 = vpack.c.bf16 %v6179_v18, %v6178_v50  ;;  %v6182_v4 = vrot.slane %v6178_v50, 7  ;;  %vm17616_vm8 = vmmov %vm17594_vm7 }
0x15f6   :  { %v9694_v55 = vpack.c.bf16 %v6186_v26, %v6187_v43  ;;  %v6196_v37 = vsel %vm17596_vm15, %v6194_v62, %v6195_v29  ;;  %v6197_v8 = vsel %vm17597_vm2, %v6193_v32, %v6194_v62  ;;  %v6198_v1 = vsel %vm17598_vm10, %v6192_v36, %v6193_v32  ;;  %vm17617_vm15 = vmmov %vm17594_vm7 }
0x15f7   :  { %v6199_v60 = vsel %vm17599_vm13, %v6195_v29, %v6192_v36  ;;  %v9700_v23 = vpack.c.bf16 %v6197_v8, %v6198_v1  ;;  %v6184_v0 = vsel %vm17594_vm7, %v6182_v4, %v6183_v13  ;;  %vm17600_vm13 = vmmov %vm17594_vm7  ;;  %vm17619_vm7 = vcmp.lt.s32.totalorder %v17391_v22, 2 }
0x15f8   :  { %9695 = vmatmul.mubr.msk.bf16.vlgmr.msra.gmra.mxu1 %vm17558_vm9, %v9694_v55  ;;  %v9703_v3 = vpack.c.bf16 %v6199_v60, %v6196_v37  ;;  %v6185_v5 = vsel %vm17600_vm13, %v6181_v47, %v6182_v4  ;;  %vm17618_vm10 = vmmov %vm17597_vm2 }
0x15f9   :  { %12300 = vmatprep.mubr.msk.bf16.mxu0 %vm17564_vm14, %v9700_v23  ;;  %6442 = vmatprep.mubr.bf16.mxu1 %v6208_v7  ;;  %v9697_v9 = vpack.c.bf16 %v6184_v0, %v6185_v5  ;;  %vm17620_vm13 = vmmov %vm17619_vm7 }
0x15fa   :  { %12301 = vmatmul.mubr.msk.bf16.vlgmr.msra.gmra.mxu0 %vm17567_vm12, %v9703_v3  ;;  %12305 = vmatpush3.msra.mxu1 %v16008_v58 }
0x15fb   :  { %12306 = vmatprep.subr.mxu1 %v17307_v51  ;;  %12340 = vmatpush3.msra.mxu0 %v16008_v58 }
0x15fc   :  { %12307 = vmatpush3.msra.mxu1 %v16014_v41  ;;  %12341 = vmatprep.subr.mxu0 %v17307_v51 }
0x15fd   :  { %12308 = vmatprep.subr.mxu1 %v17307_v51  ;;  %12342 = vmatpush3.msra.mxu0 %v16014_v41 }
0x15fe   :  { %12309 = vmatpush3.msra.mxu1 %v16019_v40  ;;  %12343 = vmatprep.subr.mxu0 %v17307_v51 }
0x15ff   :  { %12310 = vmatprep.subr.mxu1 %v17307_v51  ;;  %12344 = vmatpush3.msra.mxu0 %v16019_v40 }
0x1600   :  { %9698 = vmatmul.mubr.msk.bf16.gmra.mxu1 %vm17561_vm11, %v9697_v9  ;;  %12345 = vmatprep.subr.mxu0 %v17307_v51 }
0x1601   :  { %12311 = vmatpush3.msra.mxu1 %v16025_v27  ;;  %12336 = vmatprep.mubr.msk.f32.mxu1 %vm17364_vm6, %v17307_v51 }
0x1602   :  { %12312 = vmatprep.subr.mxu1 %v17307_v51  ;;  %12346 = vmatpush3.msra.mxu0 %v16025_v27 }
0x1603   :  { %12313 = vmatpush3.msra.mxu1 %v16032_v52  ;;  %12347 = vmatprep.subr.mxu0 %v17307_v51 }
0x1604   :  { %12314 = vmatprep.subr.mxu1 %v17307_v51  ;;  %12348 = vmatpush3.msra.mxu0 %v16032_v52 }
0x1605   :  { %12315 = vmatpush3.msra.mxu1 %v16037_v56  ;;  %12349 = vmatprep.subr.mxu0 %v17307_v51 }
0x1606   :  { %12316 = vmatprep.subr.mxu1 %v17307_v51  ;;  %12350 = vmatpush3.msra.mxu0 %v16037_v56 }
0x1607   :  { %12317 = vmatpush3.msra.mxu1 %v16043_v12  ;;  %12351 = vmatprep.subr.mxu0 %v17307_v51 }
0x1608   :  { %12318 = vmatprep.subr.mxu1 %v17307_v51  ;;  %12352 = vmatpush3.msra.mxu0 %v16043_v12 }
0x1609   :  { %12319 = vmatpush3.msra.mxu1 %v16049_v49  ;;  %12353 = vmatprep.subr.mxu0 %v17307_v51 }
0x160a   :  { %12320 = vmatprep.subr.mxu1 %v17307_v51  ;;  %12354 = vmatpush3.msra.mxu0 %v16049_v49 }
0x160b   :  { %12321 = vmatpush3.msra.mxu1 %v16055_v57  ;;  %12355 = vmatprep.subr.mxu0 %v17307_v51 }
0x160c   :  { %12322 = vmatprep.subr.mxu1 %v17307_v51  ;;  %12356 = vmatpush3.msra.mxu0 %v16055_v57 }
0x160d   :  { %12323 = vmatpush3.msra.mxu1 %v16061_v48  ;;  %12357 = vmatprep.subr.mxu0 %v17307_v51 }
0x160e   :  { %12324 = vmatprep.subr.mxu1 %v17307_v51  ;;  %12358 = vmatpush3.msra.mxu0 %v16061_v48 }
0x160f   :  { %12325 = vmatpush3.msra.mxu1 %v16067_v45  ;;  %12359 = vmatprep.subr.mxu0 %v17307_v51 }
0x1610   :  { %12326 = vmatprep.subr.mxu1 %v17307_v51  ;;  %12360 = vmatpush3.msra.mxu0 %v16067_v45 }
0x1611   :  { %12327 = vmatpush3.msra.mxu1 %v16073_v21  ;;  %12361 = vmatprep.subr.mxu0 %v17307_v51 }
0x1612   :  { %12328 = vmatprep.subr.mxu1 %v17307_v51  ;;  %12362 = vmatpush3.msra.mxu0 %v16073_v21 }
0x1613   :  { %12329 = vmatpush3.msra.mxu1 %v16077_v2  ;;  %12363 = vmatprep.subr.mxu0 %v17307_v51 }
0x1614   :  { %12330 = vmatprep.subr.mxu1 %v17307_v51  ;;  %12364 = vmatpush3.msra.mxu0 %v16077_v2 }
0x1615   :  { %12331 = vmatpush3.msra.mxu1 %v16081_v46  ;;  %12365 = vmatprep.subr.mxu0 %v17307_v51 }
0x1616   :  { %12332 = vmatprep.subr.mxu1 %v17307_v51  ;;  %12366 = vmatpush3.msra.mxu0 %v16081_v46 }
0x1617   :  { %12333 = vmatpush3.msra.mxu1 %v16087_v15  ;;  %12367 = vmatprep.subr.mxu0 %v17307_v51 }
0x1618   :  { %12334 = vmatprep.subr.mxu1 %v17307_v51  ;;  %12368 = vmatpush3.msra.mxu0 %v16087_v15 }
0x1619   :  { %12335 = vmatpush3.msra.mxu1 %v16093_v30  ;;  %12369 = vmatprep.subr.mxu0 %v17307_v51 }
0x161a   :  { %12370 = vmatpush3.msra.mxu0 %v16093_v30  ;;  %12371 = vmatprep.mubr.msk.f32.mxu0 %vm17364_vm6, %v17307_v51 }
0x161b   :  { %10822 = vmatprep.subr.bf16.mxu1 %v13035_v19  ;;  %v13036_v19 = vld [vmem:[#allocation2 + $0x7b8] sm:$0xff]  }
0x16b8   :  { %v10766_v17 = vpop.f32.mrf.mxu1 }
0x16ba   :  { %v12302_v39 = vpop.f32.mrf.mxu0  ;;  %v10767_v24 = vpop.f32.mrf.mxu1 }
0x16bb   :  { %v10768_v13 = vadd.f32 %v10767_v24, %v10766_v17  ;;  %v13037_v24 = vld [vmem:[#allocation2 + $0x7f0] sm:$0xff]  }
0x16bc   :  { %v6485_v50 = vpop.f32.mrf.mxu0  ;;  %v10769_v18 = vpop.f32.mrf.mxu1 }
0x16bd   :  { %v16348_v26 = vadd.f32 %v10768_v13, %v6485_v50  ;;  %v13038_v50 = vld [vmem:[#allocation2 + $0x7b0] sm:$0xff]  }
0x16be   :  { %v12303_v16 = vpop.f32.mrf.mxu0  ;;  %v10770_v44 = vpop.f32.mrf.mxu1  ;;  %v13045_v13 = vld [vmem:[#allocation2 + $0x7d0] sm:$0xff]  }
0x16bf   :  { %v10771_v31 = vadd.f32 %v10770_v44, %v10769_v18  ;;  %v13039_v18 = vld [vmem:[#allocation2 + $0x7e8] sm:$0xff]   ;;  %v13041_v44 = vld [vmem:[#allocation2 + $0x7e0] sm:$0xff]  }
0x16c0   :  { %v6488_v47 = vpop.f32.mrf.mxu0  ;;  %v10772_v10 = vpop.f32.mrf.mxu1 }
0x16c1   :  { %v16346_v32 = vadd.f32 %v10771_v31, %v6488_v47  ;;  %v13042_v31 = vld [vmem:[#allocation2 + $0x7a0] sm:$0xff]   ;;  %v13043_v47 = vld [vmem:[#allocation2 + $0x7d8] sm:$0xff]  }
0x16c2   :  { %v10773_v36 = vpop.f32.mrf.mxu1 }
0x16c3   :  { %v10774_v62 = vadd.f32 %v10773_v36, %v10772_v10  ;;  %v6500_v37 = vadd.f32 %v16346_v32, %v16348_v26  ;;  %v13044_v10 = vld [vmem:[#allocation2 + $0x798] sm:$0xff]  }
0x16c4   :  { %v10775_v29 = vpop.f32.mrf.mxu1  ;;  %v13051_v36 = vld [vmem:[#allocation2 + $0x878] sm:$0xff]  }
0x16c5   :  { %v16350_v43 = vadd.f32 %v12302_v39, %v10774_v62  ;;  %v17601_v39 = vld [vmem:[#allocation44_spill] sm:$0xff]  ;;  %10850 = vmatprep.subr.bf16.mxu0 %v13051_v36  ;;  %v13046_v62 = vld [vmem:[#allocation2 + $0x790] sm:$0xff]  }
0x16c6   :  { %v10776_v55 = vpop.f32.mrf.mxu1  ;;  %v13060_v36 = vld [vmem:[#allocation2 + $0x860] sm:$0xff]  }
0x16c7   :  { %v10777_v8 = vadd.f32 %v10776_v55, %v10775_v29  ;;  %v6501_v1 = vadd.f32 %v6500_v37, %v16350_v43  ;;  %v13047_v29 = vld [vmem:[#allocation2 + $0x7c8] sm:$0xff]   ;;  %v13049_v37 = vld [vmem:[#allocation2 + $0x7c0] sm:$0xff]  }
0x16c8   :  { %v13048_v55 = vld [vmem:[#allocation2 + $0x788] sm:$0xff]  }
0x16c9   :  { %v16355_v60 = vadd.f32 %v12303_v16, %v10777_v8  ;;  %v13040_v16 = vld [vmem:[#allocation2 + $0x7a8] sm:$0xff]   ;;  %v13050_v8 = vld [vmem:[#allocation2 + $0x780] sm:$0xff]  }
0x16cb   :  { %v6502_v23 = vadd.f32 %v6501_v1, %v16355_v60  ;;  %v13053_v1 = vld [vmem:[#allocation2 + $0x8b8] sm:$0xff]  }
0x16cd   :  { %v6503_v7 = vrot.slane %v6502_v23, 4 }
0x16cf   :  { %v6504_v4 = vadd.f32 %v6503_v7, %v6502_v23  ;;  %v17602_v23 = vld [vmem:[#allocation46_spill] sm:$0xff] }
0x16d0   :  { %v13056_v7 = vld [vmem:[#allocation2 + $0x8b0] sm:$0xff]  }
0x16d1   :  { %v6505_v3 = vrot.slane %v6504_v4, 2 }
0x16d3   :  { %v6506_v0 = vadd.f32 %v6505_v3, %v6504_v4  ;;  %v17603_v4 = vld [vmem:[#allocation20_spill] sm:$0xff]  ;;  %v13059_v3 = vld [vmem:[#allocation2 + $0x8a8] sm:$0xff]  }
0x16d5   :  { %v6507_v5 = vrot.slane %v6506_v0, 1 }
0x16d7   :  { %v6508_v9 = vadd.f32 %v6507_v5, %v6506_v0  ;;  %v17604_v0 = vld [vmem:[#allocation57_spill] sm:$0xff]  ;;  %v13062_v5 = vld [vmem:[#allocation2 + $0x8a0] sm:$0xff]  }
0x16d9   :  { %v6509_v17 = vmul.f32 0.03125, %v6508_v9  ;;  %v17605_v9 = vld [vmem:[#allocation60_spill] sm:$0xff] }
0x16db   :  { %12337 = vmatmul.mubr.f32.vlgmr.msra.gmra.mxu1 %v6509_v17  ;;  %v13068_v17 = vld [vmem:[#allocation2 + $0x890] sm:$0xff]  }
0x16dc   :  { %10823 = vmatpush3.bf16.msra.mxu1 %v13036_v19  ;;  %9747 = vmatprep.mubr.msk.bf16.mxu1 %vm17558_vm9, %v17601_v39  ;;  %v13065_v19 = vld [vmem:[#allocation2 + $0x898] sm:$0xff]   ;;  %v13071_v39 = vld [vmem:[#allocation2 + $0x888] sm:$0xff]  }
0x16dd   :  { %10824 = vmatprep.subr.bf16.mxu1 %v13037_v24  ;;  %v13074_v24 = vld [vmem:[#allocation2 + $0x880] sm:$0xff]  }
0x16e0   :  { %10825 = vmatpush3.bf16.msra.mxu1 %v13038_v50  ;;  %v17606_v50 = vld [vmem:[#allocation62_spill] sm:$0xff] }
0x16e1   :  { %10826 = vmatprep.subr.bf16.mxu1 %v13039_v18  ;;  %v13052_v18 = vld [vmem:[#allocation2 + $0x838] sm:$0xff]  }
0x16e4   :  { %10827 = vmatpush3.bf16.msra.mxu1 %v13040_v16 }
0x16e5   :  { %10828 = vmatprep.subr.bf16.mxu1 %v13041_v44  ;;  %v13054_v44 = vld [vmem:[#allocation2 + $0x870] sm:$0xff]  }
0x16e8   :  { %10829 = vmatpush3.bf16.msra.mxu1 %v13042_v31  ;;  %v13055_v31 = vld [vmem:[#allocation2 + $0x830] sm:$0xff]  }
0x16e9   :  { %10830 = vmatprep.subr.bf16.mxu1 %v13043_v47  ;;  %v17611_v47 = vld [vmem:[#allocation59_spill] sm:$0xff] }
0x16ec   :  { %10831 = vmatpush3.bf16.msra.mxu1 %v13044_v10  ;;  %v13057_v10 = vld [vmem:[#allocation2 + $0x868] sm:$0xff]  }
0x16ed   :  { %10832 = vmatprep.subr.bf16.mxu1 %v13045_v13  ;;  %v13058_v13 = vld [vmem:[#allocation2 + $0x828] sm:$0xff]  }
0x16f0   :  { %10833 = vmatpush3.bf16.msra.mxu1 %v13046_v62  ;;  %v13061_v62 = vld [vmem:[#allocation2 + $0x820] sm:$0xff]  }
0x16f1   :  { %10834 = vmatprep.subr.bf16.mxu1 %v13047_v29  ;;  %v13063_v29 = vld [vmem:[#allocation2 + $0x858] sm:$0xff]  }
0x16f4   :  { %10835 = vmatpush3.bf16.msra.mxu1 %v13048_v55  ;;  %v13064_v55 = vld [vmem:[#allocation2 + $0x818] sm:$0xff]  }
0x16f5   :  { %10836 = vmatprep.subr.bf16.mxu1 %v13049_v37  ;;  %v13066_v37 = vld [vmem:[#allocation2 + $0x850] sm:$0xff]  }
0x16f8   :  { %10837 = vmatpush3.bf16.msra.mxu1 %v13050_v8  ;;  %v13067_v8 = vld [vmem:[#allocation2 + $0x810] sm:$0xff]  }
0x16f9   :  { %12374 = vmatprep.subr.bf16.mxu1 %v13053_v1 }
0x16fb   :  { %9750 = vmatmul.mubr.msk.bf16.vlgmr.msra.gmra.mxu1 %vm14719_vm5, %v17602_v23  ;;  %v13070_v23 = vld [vmem:[#allocation2 + $0x808] sm:$0xff]  }
0x16fc   :  { %12375 = vmatpush3.bf16.msra.mxu1 %v13053_v1  ;;  %9753 = vmatprep.mubr.msk.bf16.mxu1 %vm17561_vm11, %v17603_v4  ;;  %v13069_v1 = vld [vmem:[#allocation2 + $0x848] sm:$0xff]   ;;  %v13073_v4 = vld [vmem:[#allocation2 + $0x800] sm:$0xff]  }
0x16fd   :  { %12376 = vmatprep.subr.bf16.mxu1 %v13056_v7 }
0x1700   :  { %12377 = vmatpush3.bf16.msra.mxu1 %v13056_v7  ;;  %v13072_v7 = vld [vmem:[#allocation2 + $0x840] sm:$0xff]  }
0x1701   :  { %12378 = vmatprep.subr.bf16.mxu1 %v13059_v3 }
0x1703   :  { %9756 = vmatmul.mubr.msk.bf16.gmra.mxu1 %vm17443_vm0, %v17604_v0  ;;  %v17613_v0 = vld [vmem:[#allocation63_spill] sm:$0xff] }
0x1704   :  { %12379 = vmatpush3.bf16.msra.mxu1 %v13059_v3  ;;  %12390 = vmatprep.mubr.msk.bf16.mxu1 %vm14792_vm3, %v17605_v9  ;;  %v17612_v3 = vld [vmem:[#allocation58_spill] sm:$0xff] }
0x1705   :  { %12380 = vmatprep.subr.bf16.mxu1 %v13062_v5  ;;  %v16443_v9 = vld [vmem:[#allocation8 + $0x70] sm:$0xff] }
0x1708   :  { %12381 = vmatpush3.bf16.msra.mxu1 %v13062_v5  ;;  %v16439_v5 = vld [vmem:[#allocation8 + $0x78] sm:$0xff] }
0x1709   :  { %12382 = vmatprep.subr.bf16.mxu1 %v13065_v19 }
0x170c   :  { %12383 = vmatpush3.bf16.msra.mxu1 %v13065_v19  ;;  %v16447_v19 = vld [vmem:[#allocation8 + $0x68] sm:$0xff] }
0x170d   :  { %12384 = vmatprep.subr.bf16.mxu1 %v13068_v17 }
0x1710   :  { %12385 = vmatpush3.bf16.msra.mxu1 %v13068_v17  ;;  %v16451_v17 = vld [vmem:[#allocation8 + $0x60] sm:$0xff] }
0x1711   :  { %12386 = vmatprep.subr.bf16.mxu1 %v13071_v39 }
0x1714   :  { %12387 = vmatpush3.bf16.msra.mxu1 %v13071_v39  ;;  %v17614_v39 = vld [vmem:[#allocation61_spill] sm:$0xff] }
0x1715   :  { %12388 = vmatprep.subr.bf16.mxu1 %v13074_v24 }
0x1718   :  { %12389 = vmatpush3.bf16.msra.mxu1 %v13074_v24  ;;  %v16456_v24 = vld [vmem:[#allocation8 + $0x58] sm:$0xff] }
0x1719   :  { %12429 = vmatprep.subr.mxu1 %v17307_v51 }
0x171b   :  { %12391 = vmatmul.mubr.msk.bf16.vlgmr.msra.gmra.mxu1 %vm17534_vm1, %v17606_v50  ;;  %v16462_v50 = vld [vmem:[#allocation8 + $0x50] sm:$0xff] }
0x171c   :  { %12430 = vmatpush3.msra.mxu1 %v16008_v58  ;;  %12461 = vmatprep.mubr.msk.f32.mxu1 %vm17364_vm6, %v17307_v51 }
0x171d   :  { %12431 = vmatprep.subr.mxu1 %v17307_v51 }
0x171e   :  { %12432 = vmatpush3.msra.mxu1 %v16014_v41 }
0x171f   :  { %12433 = vmatprep.subr.mxu1 %v17307_v51 }
0x1720   :  { %12434 = vmatpush3.msra.mxu1 %v16019_v40 }
0x1721   :  { %12435 = vmatprep.subr.mxu1 %v17307_v51 }
0x1722   :  { %12436 = vmatpush3.msra.mxu1 %v16025_v27 }
0x1723   :  { %12437 = vmatprep.subr.mxu1 %v17307_v51 }
0x1724   :  { %12438 = vmatpush3.msra.mxu1 %v16032_v52 }
0x1725   :  { %12439 = vmatprep.subr.mxu1 %v17307_v51 }
0x1726   :  { %12440 = vmatpush3.msra.mxu1 %v16037_v56 }
0x1727   :  { %12441 = vmatprep.subr.mxu1 %v17307_v51 }
0x1728   :  { %12442 = vmatpush3.msra.mxu1 %v16043_v12 }
0x1729   :  { %12443 = vmatprep.subr.mxu1 %v17307_v51 }
0x172a   :  { %12444 = vmatpush3.msra.mxu1 %v16049_v49 }
0x172b   :  { %12445 = vmatprep.subr.mxu1 %v17307_v51 }
0x172c   :  { %12446 = vmatpush3.msra.mxu1 %v16055_v57 }
0x172d   :  { %12447 = vmatprep.subr.mxu1 %v17307_v51 }
0x172e   :  { %12448 = vmatpush3.msra.mxu1 %v16061_v48 }
0x172f   :  { %12449 = vmatprep.subr.mxu1 %v17307_v51 }
0x1730   :  { %12450 = vmatpush3.msra.mxu1 %v16067_v45 }
0x1731   :  { %12451 = vmatprep.subr.mxu1 %v17307_v51 }
0x1732   :  { %12452 = vmatpush3.msra.mxu1 %v16073_v21 }
0x1733   :  { %12453 = vmatprep.subr.mxu1 %v17307_v51 }
0x1734   :  { %12454 = vmatpush3.msra.mxu1 %v16077_v2 }
0x1735   :  { %12455 = vmatprep.subr.mxu1 %v17307_v51 }
0x1736   :  { %12456 = vmatpush3.msra.mxu1 %v16081_v46 }
0x1737   :  { %12457 = vmatprep.subr.mxu1 %v17307_v51 }
0x1738   :  { %12458 = vmatpush3.msra.mxu1 %v16087_v15 }
0x1739   :  { %12459 = vmatprep.subr.mxu1 %v17307_v51 }
0x173a   :  { %12460 = vmatpush3.msra.mxu1 %v16093_v30 }
0x179b   :  { %v6576_v58 = vpop.f32.mrf.mxu1 }
0x179c   :  { %v6583_v41 = vrot.slane %v6576_v58, %v13672_v6  ;;  %v16466_v58 = vld [vmem:[#allocation8 + $0x48] sm:$0xff] }
0x179d   :  { %v12338_v40 = vpop.f32.mrf.mxu1 }
0x179e   :  { %v16412_v27 = vsub.f32 %v16348_v26, %v6583_v41  ;;  %v16415_v52 = vsub.f32 %v16346_v32, %v6583_v41  ;;  %v16418_v56 = vsub.f32 %v16350_v43, %v6583_v41  ;;  %v16421_v12 = vsub.f32 %v16355_v60, %v6583_v41  ;;  %v16470_v41 = vld [vmem:[#allocation8 + $0x40] sm:$0xff]  ;;  %v16474_v40 = vld [vmem:[#allocation8 + $0x38] sm:$0xff] }
0x17a0   :  { %17607 = vst [vmem:[#allocation30_spill] sm:$0xff] %v16412_v27  ;;  %17608 = vst [vmem:[#allocation29_spill] sm:$0xff] %v16415_v52  ;;  %v6588_v49 = vmul.f32 %v16412_v27, %v16412_v27  ;;  %v6589_v57 = vmul.f32 %v16415_v52, %v16415_v52  ;;  %v6590_v48 = vmul.f32 %v16418_v56, %v16418_v56 }
0x17a1   :  { %17609 = vst [vmem:[#allocation51_spill] sm:$0xff] %v16418_v56  ;;  %17610 = vst [vmem:[#allocation52_spill] sm:$0xff] %v16421_v12  ;;  %v6591_v21 = vmul.f32 %v16421_v12, %v16421_v12 }
0x17a2   :  { %v6592_v45 = vadd.f32 %v6589_v57, %v6588_v49  ;;  %v16478_v49 = vld [vmem:[#allocation8 + $0x30] sm:$0xff]  ;;  %v16482_v57 = vld [vmem:[#allocation8 + $0x28] sm:$0xff] }
0x17a4   :  { %v6593_v2 = vadd.f32 %v6592_v45, %v6590_v48  ;;  %v16486_v48 = vld [vmem:[#allocation8 + $0x20] sm:$0xff]  ;;  %v16490_v45 = vld [vmem:[#allocation8 + $0x18] sm:$0xff] }
0x17a6   :  { %v6594_v46 = vadd.f32 %v6593_v2, %v6591_v21  ;;  %v16494_v21 = vld [vmem:[#allocation8 + $0x10] sm:$0xff]  ;;  %v16498_v2 = vld [vmem:[#allocation8 + $0x8] sm:$0xff] }
0x17a8   :  { %v6595_v15 = vrot.slane %v6594_v46, 4 }
0x17aa   :  { %v6596_v30 = vadd.f32 %v6595_v15, %v6594_v46  ;;  %v16502_v46 = vld [vmem:[#allocation8] sm:$0xff] }
0x17ac   :  { %v6597_v32 = vrot.slane %v6596_v30, 2 }
0x17ae   :  { %v6598_v26 = vadd.f32 %v6597_v32, %v6596_v30 }
0x17b0   :  { %v6599_v43 = vrot.slane %v6598_v26, 1 }
0x17b2   :  { %v6600_v60 = vadd.f32 %v6599_v43, %v6598_v26 }
0x17b4   :  { %v6601_v16 = vmul.f32 0.03125, %v6600_v60 }
0x17b6   :  { %12372 = vmatmul.mubr.f32.vlgmr.msra.gmra.mxu0 %v6601_v16 }
0x17b7   :  { %10851 = vmatpush3.bf16.msra.mxu0 %v13052_v18  ;;  %9759 = vmatprep.mubr.msk.bf16.mxu0 %vm17564_vm14, %v17611_v47 }
0x17b8   :  { %10852 = vmatprep.subr.bf16.mxu0 %v13054_v44 }
0x17bb   :  { %10853 = vmatpush3.bf16.msra.mxu0 %v13055_v31  ;;  %v10838_v32 = vpop.f32.mrf.mxu1 }
0x17bc   :  { %10854 = vmatprep.subr.bf16.mxu0 %v13057_v10 }
0x17bd   :  { %v10839_v26 = vpop.f32.mrf.mxu1 }
0x17bf   :  { %10855 = vmatpush3.bf16.msra.mxu0 %v13058_v13  ;;  %v10841_v43 = vpop.f32.mrf.mxu1 }
0x17c0   :  { %10856 = vmatprep.subr.bf16.mxu0 %v13060_v36 }
0x17c1   :  { %v10842_v60 = vpop.f32.mrf.mxu1 }
0x17c3   :  { %10857 = vmatpush3.bf16.msra.mxu0 %v13061_v62  ;;  %v10844_v18 = vpop.f32.mrf.mxu1 }
0x17c4   :  { %10858 = vmatprep.subr.bf16.mxu0 %v13063_v29 }
0x17c5   :  { %v10845_v16 = vpop.f32.mrf.mxu1 }
0x17c7   :  { %10859 = vmatpush3.bf16.msra.mxu0 %v13064_v55  ;;  %v10847_v44 = vpop.f32.mrf.mxu1  ;;  %v10843_v55 = vadd.f32 %v10842_v60, %v10841_v43 }
0x17c8   :  { %10860 = vmatprep.subr.bf16.mxu0 %v13066_v37 }
0x17c9   :  { %v10848_v31 = vpop.f32.mrf.mxu1 }
0x17ca   :  { %v10849_v56 = vadd.f32 %v10848_v31, %v10847_v44 }
0x17cb   :  { %10861 = vmatpush3.bf16.msra.mxu0 %v13067_v8 }
0x17cc   :  { %10862 = vmatprep.subr.bf16.mxu0 %v13069_v1 }
0x17cf   :  { %10863 = vmatpush3.bf16.msra.mxu0 %v13070_v23 }
0x17d0   :  { %10864 = vmatprep.subr.bf16.mxu0 %v13072_v7  ;;  %v10840_v7 = vadd.f32 %v10839_v26, %v10838_v32 }
0x17d3   :  { %10865 = vmatpush3.bf16.msra.mxu0 %v13073_v4 }
0x17d4   :  { %12394 = vmatprep.subr.mxu0 %v17307_v51 }
0x17d6   :  { %7088 = vmatmul.mubr.bf16.vlgmr.msra.gmra.mxu0 %v17612_v3 }
0x17d7   :  { %9762 = vmatprep.mubr.msk.bf16.mxu0 %vm17567_vm12, %v17613_v0  ;;  %12395 = vmatpush3.msra.mxu0 %v16439_v5  ;;  %v10846_v0 = vadd.f32 %v10845_v16, %v10844_v18 }
0x17d8   :  { %12396 = vmatprep.subr.mxu0 %v17307_v51 }
0x17d9   :  { %12397 = vmatpush3.msra.mxu0 %v16443_v9 }
0x17da   :  { %12398 = vmatprep.subr.mxu0 %v17307_v51 }
0x17db   :  { %12399 = vmatpush3.msra.mxu0 %v16447_v19  ;;  %v12392_v10 = vpop.f32.mrf.mxu1 }
0x17dc   :  { %12400 = vmatprep.subr.mxu0 %v17307_v51 }
0x17dd   :  { %12401 = vmatpush3.msra.mxu0 %v16451_v17  ;;  %v7138_v62 = vpop.f32.mrf.mxu1 }
0x17de   :  { %7096 = vmatmul.mubr.bf16.gmra.mxu0 %v17614_v39  ;;  %12402 = vmatprep.subr.mxu0 %v17307_v51 }
0x17df   :  { %12403 = vmatpush3.msra.mxu0 %v16456_v24  ;;  %12426 = vmatprep.mubr.msk.f32.mxu0 %vm17364_vm6, %v17307_v51  ;;  %v12393_v1 = vpop.f32.mrf.mxu1 }
0x17e0   :  { %12404 = vmatprep.subr.mxu0 %v17307_v51 }
0x17e1   :  { %12405 = vmatpush3.msra.mxu0 %v16462_v50  ;;  %v7141_v42 = vpop.f32.mrf.mxu1 }
0x17e2   :  { %12406 = vmatprep.subr.mxu0 %v17307_v51 }
0x17e3   :  { %12407 = vmatpush3.msra.mxu0 %v16466_v58 }
0x17e4   :  { %12408 = vmatprep.subr.mxu0 %v17307_v51 }
0x17e5   :  { %12409 = vmatpush3.msra.mxu0 %v16470_v41 }
0x17e6   :  { %12410 = vmatprep.subr.mxu0 %v17307_v51 }
0x17e7   :  { %12411 = vmatpush3.msra.mxu0 %v16474_v40 }
0x17e8   :  { %12412 = vmatprep.subr.mxu0 %v17307_v51 }
0x17e9   :  { %12413 = vmatpush3.msra.mxu0 %v16478_v49 }
0x17ea   :  { %12414 = vmatprep.subr.mxu0 %v17307_v51 }
0x17eb   :  { %12415 = vmatpush3.msra.mxu0 %v16482_v57 }
0x17ec   :  { %12416 = vmatprep.subr.mxu0 %v17307_v51 }
0x17ed   :  { %12417 = vmatpush3.msra.mxu0 %v16486_v48 }
0x17ee   :  { %12418 = vmatprep.subr.mxu0 %v17307_v51 }
0x17ef   :  { %12419 = vmatpush3.msra.mxu0 %v16490_v45 }
0x17f0   :  { %12420 = vmatprep.subr.mxu0 %v17307_v51 }
0x17f1   :  { %12421 = vmatpush3.msra.mxu0 %v16494_v21 }
0x17f2   :  { %12422 = vmatprep.subr.mxu0 %v17307_v51 }
0x17f3   :  { %12423 = vmatpush3.msra.mxu0 %v16498_v2 }
0x17f4   :  { %12424 = vmatprep.subr.mxu0 %v17307_v51 }
0x17f5   :  { %12425 = vmatpush3.msra.mxu0 %v16502_v46 }
0x1876   :  { %v16505_v15 = vpop.f32.mrf.mxu0 }
0x1877   :  { %17615 = vst [vmem:[#allocation56_spill] sm:$0xff] %v16505_v15 }
0x1878   :  { %v12373_v30 = vpop.f32.mrf.mxu0 }
0x1896   :  { %v10866_v47 = vpop.f32.mrf.mxu0 }
0x1898   :  { %v10867_v13 = vpop.f32.mrf.mxu0 }
0x1899   :  { %v10868_v37 = vadd.f32 %v10867_v13, %v10866_v47 }
0x189a   :  { %v10869_v36 = vpop.f32.mrf.mxu0 }
0x189b   :  { %v7090_v39 = vadd.f32 %v10868_v37, %v10840_v7 }
0x189c   :  { %v10870_v29 = vpop.f32.mrf.mxu0 }
0x189d   :  { %v10871_v8 = vadd.f32 %v10870_v29, %v10869_v36  ;;  %v7139_v52 = vadd.f32 %v7138_v62, %v7090_v39 }
0x189e   :  { %v10872_v23 = vpop.f32.mrf.mxu0 }
0x189f   :  { %v7093_v4 = vadd.f32 %v10871_v8, %v10843_v55  ;;  %v13076_v8 = vld [vmem:[#allocation2 + $0x8f8] sm:$0xff]  }
0x18a0   :  { %v10873_v3 = vpop.f32.mrf.mxu0 }
0x18a1   :  { %v10874_v30 = vadd.f32 %v10873_v3, %v10872_v23  ;;  %v7142_v11 = vadd.f32 %v7141_v42, %v7093_v4  ;;  %v13075_v42 = vld [vmem:[#allocation2 + $0x938] sm:$0xff]  }
0x18a2   :  { %v10875_v35 = vpop.f32.mrf.mxu0  ;;  %v13077_v23 = vld [vmem:[#allocation2 + $0x9b8] sm:$0xff]   ;;  %10922 = vmatprep.subr.bf16.mxu0 %v13075_v42  ;;  %v13088_v42 = vld [vmem:[#allocation2 + $0x8e0] sm:$0xff]  }
0x18a3   :  { %v7098_v20 = vadd.f32 %v10874_v30, %v10846_v0  ;;  %v7153_v43 = vadd.f32 %v7142_v11, %v7139_v52  ;;  %10950 = vmatprep.subr.bf16.mxu1 %v13077_v23  ;;  %v13090_v23 = vld [vmem:[#allocation2 + $0x960] sm:$0xff]  }
0x18a4   :  { %v10876_v12 = vpop.f32.mrf.mxu0 }
0x18a5   :  { %v7147_v27 = vadd.f32 %v12392_v10, %v7098_v20  ;;  %v10877_v15 = vadd.f32 %v10876_v12, %v10875_v35 }
0x18a7   :  { %v7101_v60 = vadd.f32 %v10877_v15, %v10849_v56  ;;  %v7154_v47 = vadd.f32 %v7153_v43, %v7147_v27 }
0x18a9   :  { %v7150_v13 = vadd.f32 %v12393_v1, %v7101_v60  ;;  %v13078_v60 = vld [vmem:[#allocation2 + $0x978] sm:$0xff]  }
0x18ab   :  { %v7155_v36 = vadd.f32 %v7154_v47, %v7150_v13 }
0x18ad   :  { %v7156_v32 = vrot.slane %v7155_v36, 4 }
0x18af   :  { %v7157_v26 = vadd.f32 %v7156_v32, %v7155_v36  ;;  %v13080_v36 = vld [vmem:[#allocation2 + $0x8f0] sm:$0xff]  }
0x18b0   :  { %v13081_v32 = vld [vmem:[#allocation2 + $0x9b0] sm:$0xff]  }
0x18b1   :  { %v7158_v29 = vrot.slane %v7157_v26, 2 }
0x18b3   :  { %v7159_v18 = vadd.f32 %v7158_v29, %v7157_v26  ;;  %v13082_v26 = vld [vmem:[#allocation2 + $0x970] sm:$0xff]   ;;  %v13083_v29 = vld [vmem:[#allocation2 + $0x928] sm:$0xff]  }
0x18b5   :  { %v7160_v16 = vrot.slane %v7159_v18, 1 }
0x18b7   :  { %v7161_v55 = vadd.f32 %v7160_v16, %v7159_v18  ;;  %v13084_v18 = vld [vmem:[#allocation2 + $0x8e8] sm:$0xff]  }
0x18b8   :  { %v13085_v16 = vld [vmem:[#allocation2 + $0x9a8] sm:$0xff]  }
0x18b9   :  { %v7162_v37 = vmul.f32 0.03125, %v7161_v55  ;;  %v13086_v55 = vld [vmem:[#allocation2 + $0x968] sm:$0xff]  }
0x18bb   :  { %12427 = vmatmul.mubr.f32.vlgmr.msra.gmra.mxu0 %v7162_v37  ;;  %v13087_v37 = vld [vmem:[#allocation2 + $0x920] sm:$0xff]  }
0x18bc   :  { %10923 = vmatpush3.bf16.msra.mxu0 %v13076_v8  ;;  %v13089_v8 = vld [vmem:[#allocation2 + $0x9a0] sm:$0xff]  }
0x197b   :  { %v7229_v20 = vpop.f32.mrf.mxu0 }
0x197c   :  { %v7236_v35 = vrot.slane %v7229_v20, %v13672_v6  ;;  %v13091_v20 = vld [vmem:[#allocation2 + $0x918] sm:$0xff]  }
0x197d   :  { %v12428_v56 = vpop.f32.mrf.mxu0 }
0x197e   :  { %v16508_v12 = vsub.f32 %v7139_v52, %v7236_v35  ;;  %v16510_v15 = vsub.f32 %v7142_v11, %v7236_v35  ;;  %v16512_v44 = vsub.f32 %v7147_v27, %v7236_v35  ;;  %v16514_v31 = vsub.f32 %v7150_v13, %v7236_v35  ;;  %v13079_v13 = vld [vmem:[#allocation2 + $0x930] sm:$0xff]   ;;  %v13092_v35 = vld [vmem:[#allocation2 + $0x8d8] sm:$0xff]  }
0x197f   :  { %10924 = vmatprep.subr.bf16.mxu0 %v13079_v13  ;;  %v13093_v56 = vld [vmem:[#allocation2 + $0x998] sm:$0xff]  }
0x1980   :  { %v7241_v10 = vmul.f32 %v16508_v12, %v16508_v12  ;;  %v7242_v62 = vmul.f32 %v16510_v15, %v16510_v15  ;;  %v7243_v1 = vmul.f32 %v16512_v44, %v16512_v44  ;;  %v7244_v52 = vmul.f32 %v16514_v31, %v16514_v31  ;;  %10925 = vmatpush3.bf16.msra.mxu0 %v13080_v36 }
0x1981   :  { %10926 = vmatprep.subr.bf16.mxu0 %v13083_v29 }
0x1982   :  { %v7245_v7 = vadd.f32 %v7242_v62, %v7241_v10  ;;  %v13094_v10 = vld [vmem:[#allocation2 + $0x958] sm:$0xff]   ;;  %v13095_v62 = vld [vmem:[#allocation2 + $0x910] sm:$0xff]  }
0x1984   :  { %v7246_v4 = vadd.f32 %v7245_v7, %v7243_v1  ;;  %10927 = vmatpush3.bf16.msra.mxu0 %v13084_v18  ;;  %v13096_v1 = vld [vmem:[#allocation2 + $0x8d0] sm:$0xff]  }
0x1985   :  { %10928 = vmatprep.subr.bf16.mxu0 %v13087_v37  ;;  %v13097_v7 = vld [vmem:[#allocation2 + $0x990] sm:$0xff]  }
0x1986   :  { %v7247_v11 = vadd.f32 %v7246_v4, %v7244_v52  ;;  %v13098_v52 = vld [vmem:[#allocation2 + $0x950] sm:$0xff]   ;;  %v13099_v4 = vld [vmem:[#allocation2 + $0x908] sm:$0xff]  }
0x1988   :  { %v7248_v3 = vrot.slane %v7247_v11, 4  ;;  %10929 = vmatpush3.bf16.msra.mxu0 %v13088_v42 }
0x1989   :  { %10930 = vmatprep.subr.bf16.mxu0 %v13091_v20 }
0x198a   :  { %v7249_v27 = vadd.f32 %v7248_v3, %v7247_v11  ;;  %v13100_v11 = vld [vmem:[#allocation2 + $0x8c8] sm:$0xff]  }
0x198b   :  { %v13101_v3 = vld [vmem:[#allocation2 + $0x988] sm:$0xff]  }
0x198c   :  { %v7250_v0 = vrot.slane %v7249_v27, 2  ;;  %10931 = vmatpush3.bf16.msra.mxu0 %v13092_v35 }
0x198d   :  { %10932 = vmatprep.subr.bf16.mxu0 %v13095_v62 }
0x198e   :  { %v7251_v39 = vadd.f32 %v7250_v0, %v7249_v27  ;;  %v13102_v27 = vld [vmem:[#allocation2 + $0x948] sm:$0xff]   ;;  %v13103_v0 = vld [vmem:[#allocation2 + $0x900] sm:$0xff]  }
0x1990   :  { %v7252_v30 = vrot.slane %v7251_v39, 1  ;;  %10933 = vmatpush3.bf16.msra.mxu0 %v13096_v1 }
0x1991   :  { %10934 = vmatprep.subr.bf16.mxu0 %v13099_v4 }
0x1992   :  { %v7253_v43 = vadd.f32 %v7252_v30, %v7251_v39  ;;  %v13105_v39 = vld [vmem:[#allocation2 + $0x980] sm:$0xff]  }
0x1993   :  { %v13104_v30 = vld [vmem:[#allocation2 + $0x8c0] sm:$0xff]  }
0x1994   :  { %v7254_v47 = vmul.f32 0.03125, %v7253_v43  ;;  %10935 = vmatpush3.bf16.msra.mxu0 %v13100_v11  ;;  %v13106_v43 = vld [vmem:[#allocation2 + $0x940] sm:$0xff]  }
0x1995   :  { %10936 = vmatprep.subr.bf16.mxu0 %v13103_v0 }
0x1996   :  { %12462 = vmatmul.mubr.f32.vlgmr.msra.gmra.mxu1 %v7254_v47 }
0x1997   :  { %10951 = vmatpush3.bf16.msra.mxu1 %v13078_v60  ;;  %v13107_v60 = vld [vmem:[#allocation2 + $0x9f8] sm:$0xff]  }
0x1998   :  { %10952 = vmatprep.subr.bf16.mxu1 %v13081_v32  ;;  %10937 = vmatpush3.bf16.msra.mxu0 %v13104_v30 }
0x1999   :  { %12464 = vmatprep.subr.bf16.mxu0 %v13107_v60 }
0x199b   :  { %10953 = vmatpush3.bf16.msra.mxu1 %v13082_v26 }
0x199c   :  { %10954 = vmatprep.subr.bf16.mxu1 %v13085_v16 }
0x199f   :  { %10955 = vmatpush3.bf16.msra.mxu1 %v13086_v55 }
0x19a0   :  { %10956 = vmatprep.subr.bf16.mxu1 %v13089_v8 }
0x19a3   :  { %10957 = vmatpush3.bf16.msra.mxu1 %v13090_v23 }
0x19a4   :  { %10958 = vmatprep.subr.bf16.mxu1 %v13093_v56 }
0x19a7   :  { %10959 = vmatpush3.bf16.msra.mxu1 %v13094_v10 }
0x19a8   :  { %10960 = vmatprep.subr.bf16.mxu1 %v13097_v7 }
0x19ab   :  { %10961 = vmatpush3.bf16.msra.mxu1 %v13098_v52 }
0x19ac   :  { %10962 = vmatprep.subr.bf16.mxu1 %v13101_v3 }
0x19af   :  { %10963 = vmatpush3.bf16.msra.mxu1 %v13102_v27 }
0x19b0   :  { %10964 = vmatprep.subr.bf16.mxu1 %v13105_v39 }
0x19b3   :  { %10965 = vmatpush3.bf16.msra.mxu1 %v13106_v43 }
0x19b4   :  { %12484 = vmatprep.subr.mxu1 %v17307_v51 }
0x1a56   :  { %v7321_v47 = vpop.f32.mrf.mxu1 }
0x1a57   :  { %v7325_v13 = vadd.f32 1e-05, %v7321_v47 }
0x1a58   :  { %v12463_v36 = vpop.f32.mrf.mxu1 }
0x1a59   :  { %13197 = vrsqrt.f32 %v7325_v13 }
0x1a66   :  { %v13198_v32 = vpop.eup %13197 }
0x1a67   :  { %v7330_v26 = vrot.slane %v13198_v32, %v13672_v6 }
0x1a69   :  { %v7331_v29 = vmul.f32 %v7330_v26, %v16508_v12  ;;  %v7332_v18 = vmul.f32 %v7330_v26, %v16510_v15  ;;  %v7333_v16 = vmul.f32 %v7330_v26, %v16512_v44  ;;  %v7334_v55 = vmul.f32 %v7330_v26, %v16514_v31 }
0x1a6b   :  { %v16530_v37 = vmax.f32 %v7331_v29, 0.0  ;;  %v7336_v42 = vmax.f32 %v7332_v18, 0.0  ;;  %v16532_v8 = vmax.f32 %v7333_v16, 0.0  ;;  %v16534_v23 = vmax.f32 %v7334_v55, 0.0  ;;  %v13108_v29 = vld [vmem:[#allocation2 + $0x9f0] sm:$0xff]  }
0x1a6d   :  { %v7351_v20 = vrot.slane %v16530_v37, 7  ;;  %v7352_v35 = vrot.slane %v7336_v42, 7  ;;  %v7354_v56 = vrot.slane %v16534_v23, 7  ;;  %v7363_v12 = vrot.slane %v16530_v37, 1 }
0x1a6e   :  { %v7364_v10 = vrot.slane %v7336_v42, 1  ;;  %v7365_v15 = vrot.slane %v16532_v8, 1  ;;  %v7339_v44 = vrot.slane %v16530_v37, 6  ;;  %v7340_v31 = vrot.slane %v7336_v42, 6 }
0x1a6f   :  { %v7357_v62 = vsel %vm17616_vm8, %v7351_v20, %v7352_v35  ;;  %v7358_v1 = vsel %vm17617_vm15, %v7354_v56, %v7351_v20  ;;  %v7342_v7 = vrot.slane %v16534_v23, 6  ;;  %v7353_v39 = vrot.slane %v16532_v8, 7  ;;  %vm17621_vm15 = vmmov %vm17616_vm8 }
0x1a70   :  { %v9810_v52 = vpack.c.bf16 %v7357_v62, %v7358_v1  ;;  %v7368_v4 = vsel %vm17597_vm2, %v7364_v10, %v7365_v15  ;;  %v7369_v11 = vsel %vm17618_vm10, %v7363_v12, %v7364_v10  ;;  %v7345_v3 = vsel %vm17619_vm7, %v7339_v44, %v7340_v31  ;;  %vm17622_vm10 = vmmov %vm17597_vm2 }
0x1a71   :  { %v9822_v27 = vpack.c.bf16 %v7368_v4, %v7369_v11  ;;  %v7346_v0 = vsel %vm17620_vm13, %v7342_v7, %v7339_v44  ;;  %v7366_v30 = vrot.slane %v16534_v23, 1  ;;  %v7389_v47 = vpack.c.bf16 %v7336_v42, %v16530_v37  ;;  %v13113_v44 = vld [vmem:[#allocation2 + $0x9c8] sm:$0xff]  }
0x1a72   :  { %9811 = vmatprep.mubr.msk.bf16.mxu0 %vm17558_vm9, %v9810_v52  ;;  %v9813_v43 = vpack.c.bf16 %v7345_v3, %v7346_v0  ;;  %v7341_v13 = vrot.slane %v16532_v8, 6  ;;  %v7355_v36 = vsel %vm17616_vm8, %v7353_v39, %v7354_v56  ;;  %v7356_v32 = vsel %vm17621_vm15, %v7352_v35, %v7353_v39  ;;  %v13109_v35 = vld [vmem:[#allocation2 + $0x9e8] sm:$0xff]   ;;  %vm17623_vm9 = vmmov %vm17619_vm7 }
0x1a73   :  { %9823 = vmatprep.mubr.msk.bf16.mxu1 %vm17564_vm14, %v9822_v27  ;;  %v7367_v26 = vsel %vm17597_vm2, %v7365_v15, %v7366_v30  ;;  %v7370_v38 = vsel %vm17622_vm10, %v7366_v30, %v7363_v12  ;;  %v9816_v18 = vpack.c.bf16 %v7355_v36, %v7356_v32  ;;  %v7375_v16 = vrot.slane %v16530_v37, 2  ;;  %vm17624_vm14 = vmmov %vm17619_vm7  ;;  %v13110_v12 = vld [vmem:[#allocation2 + $0x9e0] sm:$0xff]   ;;  %v13111_v15 = vld [vmem:[#allocation2 + $0x9d8] sm:$0xff]  }
0x1a74   :  { %9814 = vmatmul.mubr.msk.bf16.vlgmr.msra.gmra.mxu0 %vm14719_vm5, %v9813_v43  ;;  %7799 = vmatmul.mubr.bf16.vlgmr.msra.gmra.mxu1 %v7389_v47  ;;  %v9825_v33 = vpack.c.bf16 %v7370_v38, %v7367_v26  ;;  %v7376_v55 = vrot.slane %v7336_v42, 2  ;;  %v7377_v20 = vrot.slane %v16532_v8, 2  ;;  %v7343_v56 = vsel %vm17623_vm9, %v7341_v13, %v7342_v7 }
0x1a75   :  { %12465 = vmatpush3.bf16.msra.mxu0 %v13107_v60  ;;  %12485 = vmatpush3.msra.mxu1 %v16439_v5  ;;  %v7344_v37 = vsel %vm17624_vm14, %v7340_v31, %v7341_v13  ;;  %vm17625_vm7 = vcmp.lt.s32.totalorder %v17391_v22, 6  ;;  %v7394_v42 = vpack.c.bf16 %v16534_v23, %v16532_v8  ;;  %v13112_v8 = vld [vmem:[#allocation2 + $0x9d0] sm:$0xff]   ;;  %v13114_v31 = vld [vmem:[#allocation2 + $0x9c0] sm:$0xff]   ;;  %v7378_v62 = vrot.slane %v16534_v23, 2  ;;  %v13115_v22 = vld [vmem:[#allocation2 + $0xa78] sm:$0xff]  }
0x1a76   :  { %9817 = vmatprep.mubr.msk.bf16.mxu0 %vm17561_vm11, %v9816_v18  ;;  %9826 = vmatprep.mubr.msk.bf16.mxu1 %vm17567_vm12, %v9825_v33  ;;  %v7380_v60 = vsel %vm17625_vm7, %v7376_v55, %v7377_v20  ;;  %vm17626_vm13 = vmmov %vm17625_vm7  ;;  %v9819_v61 = vpack.c.bf16 %v7343_v56, %v7344_v37 }
0x1a77   :  { %12466 = vmatprep.subr.bf16.mxu0 %v13108_v29  ;;  %12486 = vmatprep.subr.mxu1 %v17307_v51  ;;  %v7381_v63 = vsel %vm17626_vm13, %v7375_v16, %v7376_v55  ;;  %vm17627_vm11 = vmmov %vm17625_vm7 }
0x1a78   :  { %12487 = vmatpush3.msra.mxu1 %v16443_v9  ;;  %v9828_v10 = vpack.c.bf16 %v7380_v60, %v7381_v63  ;;  %v7379_v1 = vsel %vm17627_vm11, %v7377_v20, %v7378_v62  ;;  %vm17628_vm12 = vmmov %vm17625_vm7 }
0x1a79   :  { %12467 = vmatpush3.bf16.msra.mxu0 %v13108_v29  ;;  %12488 = vmatprep.subr.mxu1 %v17307_v51  ;;  %v7382_v7 = vsel %vm17628_vm12, %v7378_v62, %v7375_v16 }
0x1a7a   :  { %12468 = vmatprep.subr.bf16.mxu0 %v13109_v35  ;;  %12489 = vmatpush3.msra.mxu1 %v16447_v19  ;;  %v9831_v23 = vpack.c.bf16 %v7382_v7, %v7379_v1 }
0x1a7b   :  { %12490 = vmatprep.subr.mxu1 %v17307_v51 }
0x1a7c   :  { %9820 = vmatmul.mubr.msk.bf16.gmra.mxu0 %vm17443_vm0, %v9819_v61  ;;  %7807 = vmatmul.mubr.bf16.gmra.mxu1 %v7394_v42 }
0x1a7d   :  { %12469 = vmatpush3.bf16.msra.mxu0 %v13109_v35  ;;  %12480 = vmatprep.mubr.msk.bf16.mxu0 %vm14792_vm3, %v9828_v10 }
0x1a7e   :  { %12470 = vmatprep.subr.bf16.mxu0 %v13110_v12  ;;  %12491 = vmatpush3.msra.mxu1 %v16451_v17 }
0x1a7f   :  { %12492 = vmatprep.subr.mxu1 %v17307_v51  ;;  %12516 = vmatprep.mubr.msk.f32.mxu1 %vm17364_vm6, %v17307_v51 }
0x1a80   :  { %12493 = vmatpush3.msra.mxu1 %v16456_v24 }
0x1a81   :  { %12471 = vmatpush3.bf16.msra.mxu0 %v13110_v12  ;;  %12494 = vmatprep.subr.mxu1 %v17307_v51 }
0x1a82   :  { %12472 = vmatprep.subr.bf16.mxu0 %v13111_v15  ;;  %12495 = vmatpush3.msra.mxu1 %v16462_v50 }
0x1a83   :  { %12496 = vmatprep.subr.mxu1 %v17307_v51 }
0x1a84   :  { %12497 = vmatpush3.msra.mxu1 %v16466_v58 }
0x1a85   :  { %12473 = vmatpush3.bf16.msra.mxu0 %v13111_v15  ;;  %12498 = vmatprep.subr.mxu1 %v17307_v51 }
0x1a86   :  { %12474 = vmatprep.subr.bf16.mxu0 %v13112_v8  ;;  %12499 = vmatpush3.msra.mxu1 %v16470_v41 }
0x1a87   :  { %12500 = vmatprep.subr.mxu1 %v17307_v51 }
0x1a88   :  { %12501 = vmatpush3.msra.mxu1 %v16474_v40 }
0x1a89   :  { %12475 = vmatpush3.bf16.msra.mxu0 %v13112_v8  ;;  %12502 = vmatprep.subr.mxu1 %v17307_v51 }
0x1a8a   :  { %12476 = vmatprep.subr.bf16.mxu0 %v13113_v44  ;;  %12503 = vmatpush3.msra.mxu1 %v16478_v49 }
0x1a8b   :  { %12504 = vmatprep.subr.mxu1 %v17307_v51 }
0x1a8c   :  { %12505 = vmatpush3.msra.mxu1 %v16482_v57 }
0x1a8d   :  { %12477 = vmatpush3.bf16.msra.mxu0 %v13113_v44  ;;  %12506 = vmatprep.subr.mxu1 %v17307_v51 }
0x1a8e   :  { %12478 = vmatprep.subr.bf16.mxu0 %v13114_v31  ;;  %12507 = vmatpush3.msra.mxu1 %v16486_v48 }
0x1a8f   :  { %12508 = vmatprep.subr.mxu1 %v17307_v51 }
0x1a90   :  { %12509 = vmatpush3.msra.mxu1 %v16490_v45 }
0x1a91   :  { %12479 = vmatpush3.bf16.msra.mxu0 %v13114_v31  ;;  %12510 = vmatprep.subr.mxu1 %v17307_v51 }
0x1a92   :  { %12511 = vmatpush3.msra.mxu1 %v16494_v21  ;;  %12519 = vmatprep.subr.mxu0 %v17307_v51 }
0x1a93   :  { %12512 = vmatprep.subr.mxu1 %v17307_v51 }
0x1a94   :  { %12481 = vmatmul.mubr.msk.bf16.vlgmr.msra.gmra.mxu0 %vm17534_vm1, %v9831_v23  ;;  %12513 = vmatpush3.msra.mxu1 %v16498_v2 }
0x1a95   :  { %12514 = vmatprep.subr.mxu1 %v17307_v51  ;;  %12520 = vmatpush3.msra.mxu0 %v16439_v5 }
0x1a96   :  { %12515 = vmatpush3.msra.mxu1 %v16502_v46  ;;  %12521 = vmatprep.subr.mxu0 %v17307_v51 }
0x1a97   :  { %12522 = vmatpush3.msra.mxu0 %v16443_v9  ;;  %12551 = vmatprep.mubr.msk.f32.mxu0 %vm17364_vm6, %v17307_v51 }
0x1a98   :  { %12523 = vmatprep.subr.mxu0 %v17307_v51  ;;  %11022 = vmatprep.subr.bf16.mxu1 %v13115_v22 }
0x1a99   :  { %12524 = vmatpush3.msra.mxu0 %v16447_v19 }
0x1a9a   :  { %12525 = vmatprep.subr.mxu0 %v17307_v51 }
0x1a9b   :  { %12526 = vmatpush3.msra.mxu0 %v16451_v17 }
0x1a9c   :  { %12527 = vmatprep.subr.mxu0 %v17307_v51 }
0x1a9d   :  { %12528 = vmatpush3.msra.mxu0 %v16456_v24 }
0x1a9e   :  { %12529 = vmatprep.subr.mxu0 %v17307_v51 }
0x1a9f   :  { %12530 = vmatpush3.msra.mxu0 %v16462_v50 }
0x1aa0   :  { %12531 = vmatprep.subr.mxu0 %v17307_v51 }
0x1aa1   :  { %12532 = vmatpush3.msra.mxu0 %v16466_v58 }
0x1aa2   :  { %12533 = vmatprep.subr.mxu0 %v17307_v51 }
0x1aa3   :  { %12534 = vmatpush3.msra.mxu0 %v16470_v41 }
0x1aa4   :  { %12535 = vmatprep.subr.mxu0 %v17307_v51 }
0x1aa5   :  { %12536 = vmatpush3.msra.mxu0 %v16474_v40 }
0x1aa6   :  { %12537 = vmatprep.subr.mxu0 %v17307_v51 }
0x1aa7   :  { %12538 = vmatpush3.msra.mxu0 %v16478_v49 }
0x1aa8   :  { %12539 = vmatprep.subr.mxu0 %v17307_v51 }
0x1aa9   :  { %12540 = vmatpush3.msra.mxu0 %v16482_v57 }
0x1aaa   :  { %12541 = vmatprep.subr.mxu0 %v17307_v51 }
0x1aab   :  { %12542 = vmatpush3.msra.mxu0 %v16486_v48 }
0x1aac   :  { %12543 = vmatprep.subr.mxu0 %v17307_v51 }
0x1aad   :  { %12544 = vmatpush3.msra.mxu0 %v16490_v45 }
0x1aae   :  { %12545 = vmatprep.subr.mxu0 %v17307_v51 }
0x1aaf   :  { %12546 = vmatpush3.msra.mxu0 %v16494_v21 }
0x1ab0   :  { %12547 = vmatprep.subr.mxu0 %v17307_v51 }
0x1ab1   :  { %12548 = vmatpush3.msra.mxu0 %v16498_v2 }
0x1ab2   :  { %12549 = vmatprep.subr.mxu0 %v17307_v51 }
0x1ab3   :  { %12550 = vmatpush3.msra.mxu0 %v16502_v46 }
0x1b34   :  { %v10938_v52 = vpop.f32.mrf.mxu0  ;;  %v10966_v4 = vpop.f32.mrf.mxu1 }
0x1b36   :  { %v10939_v11 = vpop.f32.mrf.mxu0  ;;  %v10967_v3 = vpop.f32.mrf.mxu1 }
0x1b37   :  { %v10940_v18 = vadd.f32 %v10939_v11, %v10938_v52  ;;  %v10968_v33 = vadd.f32 %v10967_v3, %v10966_v4 }
0x1b38   :  { %v10941_v27 = vpop.f32.mrf.mxu0  ;;  %v10969_v0 = vpop.f32.mrf.mxu1 }
0x1b39   :  { %v7801_v42 = vadd.f32 %v10968_v33, %v10940_v18  ;;  %v13124_v18 = vld [vmem:[#allocation2 + $0xa18] sm:$0xff]   ;;  %v13125_v33 = vld [vmem:[#allocation2 + $0xa50] sm:$0xff]  }
0x1b3a   :  { %v10942_v39 = vpop.f32.mrf.mxu0  ;;  %v10970_v30 = vpop.f32.mrf.mxu1 }
0x1b3b   :  { %v10943_v16 = vadd.f32 %v10942_v39, %v10941_v27  ;;  %v10971_v55 = vadd.f32 %v10970_v30, %v10969_v0  ;;  %v13116_v39 = vld [vmem:[#allocation2 + $0xa38] sm:$0xff]  }
0x1b3c   :  { %v10944_v43 = vpop.f32.mrf.mxu0  ;;  %v10972_v47 = vpop.f32.mrf.mxu1 }
0x1b3d   :  { %v7804_v12 = vadd.f32 %v10971_v55, %v10943_v16  ;;  %v13126_v16 = vld [vmem:[#allocation2 + $0xa10] sm:$0xff]   ;;  %v13129_v55 = vld [vmem:[#allocation2 + $0xa40] sm:$0xff]  }
0x1b3e   :  { %v10945_v13 = vpop.f32.mrf.mxu0  ;;  %v10973_v36 = vpop.f32.mrf.mxu1 }
0x1b3f   :  { %v10946_v56 = vadd.f32 %v10945_v13, %v10944_v43  ;;  %v10974_v37 = vadd.f32 %v10973_v36, %v10972_v47  ;;  %v13117_v43 = vld [vmem:[#allocation2 + $0xa70] sm:$0xff]   ;;  %v17629_v47 = vpack.c.bf16 %v15360_v14, %v15336_v53  ;;  %v13119_v36 = vld [vmem:[#allocation2 + $0xa68] sm:$0xff]  }
0x1b40   :  { %v10947_v32 = vpop.f32.mrf.mxu0  ;;  %v10975_v26 = vpop.f32.mrf.mxu1  ;;  %v13118_v13 = vld [vmem:[#allocation2 + $0xa30] sm:$0xff]   ;;  %v13127_v53 = vld [vmem:[#allocation2 + $0xa48] sm:$0xff]  }
0x1b41   :  { %v7809_v15 = vadd.f32 %v10974_v37, %v10946_v56  ;;  %v13128_v14 = vld [vmem:[#allocation2 + $0xa08] sm:$0xff]   ;;  %v17632_v37 = vld [vmem:[#allocation64_spill] sm:$0xff] }
0x1b42   :  { %v10948_v38 = vpop.f32.mrf.mxu0  ;;  %v10976_v20 = vpop.f32.mrf.mxu1 }
0x1b43   :  { %v10949_v63 = vadd.f32 %v10948_v38, %v10947_v32  ;;  %v10977_v61 = vadd.f32 %v10976_v20, %v10975_v26  ;;  %v13120_v32 = vld [vmem:[#allocation2 + $0xa28] sm:$0xff]   ;;  %v13121_v26 = vld [vmem:[#allocation2 + $0xa60] sm:$0xff]  }
0x1b44   :  { %v13122_v38 = vld [vmem:[#allocation2 + $0xa20] sm:$0xff]  }
0x1b45   :  { %v7812_v62 = vadd.f32 %v10977_v61, %v10949_v63  ;;  %v13130_v20 = vld [vmem:[#allocation2 + $0xa00] sm:$0xff]  }
0x1b46   :  { %v17636_v61 = vld [vmem:[#allocation68_spill] sm:$0xff] }
0x1b54   :  { %v12482_v29 = vpop.f32.mrf.mxu0 }
0x1b55   :  { %v16670_v31 = vadd.f32 %v12482_v29, %v7809_v15  ;;  %v13123_v29 = vld [vmem:[#allocation2 + $0xa58] sm:$0xff]  }
0x1b56   :  { %v7849_v35 = vpop.f32.mrf.mxu0 }
0x1b57   :  { %v16666_v8 = vadd.f32 %v7849_v35, %v7801_v42  ;;  %v17630_v35 = vld [vmem:[#allocation66_spill] sm:$0xff] }
0x1b58   :  { %v12483_v60 = vpop.f32.mrf.mxu0  ;;  %v17631_v56 = vpack.c.bf16 %v15388_v59, %v17630_v35  ;;  %v17635_v59 = vld [vmem:[#allocation67_spill] sm:$0xff] }
0x1b59   :  { %v16674_v7 = vadd.f32 %v12483_v60, %v7812_v62  ;;  %v17633_v60 = vld [vmem:[#allocation65_spill] sm:$0xff]  ;;  %v17637_v42 = vpack.c.bf16 %v17635_v59, %v17636_v61  ;;  %v17649_v59 = vld [vmem:[#allocation28_spill] sm:$0xff] }
0x1b5a   :  { %v7852_v10 = vpop.f32.mrf.mxu0  ;;  %v17634_v63 = vpack.c.bf16 %v17632_v37, %v17633_v60 }
0x1b5b   :  { %v16668_v44 = vadd.f32 %v7852_v10, %v7804_v12  ;;  %v13131_v12 = vld [vmem:[#allocation2 + $0xab8] sm:$0xff]  }
0x1b5c   :  { %12554 = vmatprep.subr.bf16.mxu0 %v13131_v12 }
0x1b5d   :  { %v7864_v1 = vadd.f32 %v16668_v44, %v16666_v8 }
0x1b5f   :  { %v7865_v23 = vadd.f32 %v7864_v1, %v16670_v31 }
0x1b61   :  { %v7866_v22 = vadd.f32 %v7865_v23, %v16674_v7 }
0x1b63   :  { %v7867_v52 = vrot.slane %v7866_v22, 4 }
0x1b65   :  { %v7868_v4 = vadd.f32 %v7867_v52, %v7866_v22 }
0x1b67   :  { %v7869_v11 = vrot.slane %v7868_v4, 2 }
0x1b69   :  { %v7870_v3 = vadd.f32 %v7869_v11, %v7868_v4 }
0x1b6b   :  { %v7871_v27 = vrot.slane %v7870_v3, 1 }
0x1b6d   :  { %v7872_v0 = vadd.f32 %v7871_v27, %v7870_v3 }
0x1b6f   :  { %v7873_v30 = vmul.f32 0.03125, %v7872_v0 }
0x1b71   :  { %12517 = vmatmul.mubr.f32.vlgmr.msra.gmra.mxu1 %v7873_v30 }
0x1b72   :  { %11023 = vmatpush3.bf16.msra.mxu1 %v13116_v39  ;;  %8308 = vmatprep.mubr.bf16.mxu1 %v17629_v47 }
0x1b73   :  { %11024 = vmatprep.subr.bf16.mxu1 %v13117_v43 }
0x1b76   :  { %11025 = vmatpush3.bf16.msra.mxu1 %v13118_v13 }
0x1b77   :  { %11026 = vmatprep.subr.bf16.mxu1 %v13119_v36  ;;  %v13132_v36 = vld [vmem:[#allocation2 + $0xab0] sm:$0xff]  }
0x1b7a   :  { %11027 = vmatpush3.bf16.msra.mxu1 %v13120_v32  ;;  %v17638_v32 = vld [vmem:[#allocation69_spill] sm:$0xff] }
0x1b7b   :  { %11028 = vmatprep.subr.bf16.mxu1 %v13121_v26  ;;  %v17639_v26 = vld [vmem:[#allocation70_spill] sm:$0xff] }
0x1b7e   :  { %11029 = vmatpush3.bf16.msra.mxu1 %v13122_v38  ;;  %v17640_v38 = vpack.c.bf16 %v17638_v32, %v17639_v26 }
0x1b7f   :  { %11030 = vmatprep.subr.bf16.mxu1 %v13123_v29  ;;  %v13133_v29 = vld [vmem:[#allocation2 + $0xaa8] sm:$0xff]  }
0x1b82   :  { %11031 = vmatpush3.bf16.msra.mxu1 %v13124_v18  ;;  %v13134_v18 = vld [vmem:[#allocation2 + $0xaa0] sm:$0xff]  }
0x1b83   :  { %11032 = vmatprep.subr.bf16.mxu1 %v13125_v33  ;;  %v13135_v33 = vld [vmem:[#allocation2 + $0xa98] sm:$0xff]  }
0x1b86   :  { %11033 = vmatpush3.bf16.msra.mxu1 %v13126_v16  ;;  %v13136_v16 = vld [vmem:[#allocation2 + $0xa90] sm:$0xff]  }
0x1b87   :  { %11034 = vmatprep.subr.bf16.mxu1 %v13127_v53  ;;  %v13137_v53 = vld [vmem:[#allocation2 + $0xa88] sm:$0xff]  }
0x1b8a   :  { %11035 = vmatpush3.bf16.msra.mxu1 %v13128_v14  ;;  %v13138_v14 = vld [vmem:[#allocation2 + $0xa80] sm:$0xff]  }
0x1b8b   :  { %11036 = vmatprep.subr.bf16.mxu1 %v13129_v55  ;;  %v17641_v55 = vld [vmem:[#allocation72_spill] sm:$0xff] }
0x1b8e   :  { %11037 = vmatpush3.bf16.msra.mxu1 %v13130_v20  ;;  %v17642_v20 = vld [vmem:[#allocation71_spill] sm:$0xff] }
0x1b8f   :  { %12574 = vmatprep.subr.mxu1 %v17307_v51  ;;  %v17643_v35 = vpack.c.bf16 %v17641_v55, %v17642_v20 }
0x1b91   :  { %9859 = vmatmul.mubr.msk.bf16.vlgmr.msra.gmra.mxu1 %vm14719_vm5, %v17631_v56 }
0x1b92   :  { %8316 = vmatprep.mubr.bf16.mxu1 %v17634_v63  ;;  %12575 = vmatpush3.msra.mxu1 %v16439_v5 }
0x1b93   :  { %12576 = vmatprep.subr.mxu1 %v17307_v51 }
0x1b94   :  { %12577 = vmatpush3.msra.mxu1 %v16443_v9 }
0x1b95   :  { %12578 = vmatprep.subr.mxu1 %v17307_v51 }
0x1b96   :  { %12579 = vmatpush3.msra.mxu1 %v16447_v19 }
0x1b97   :  { %12580 = vmatprep.subr.mxu1 %v17307_v51 }
0x1b98   :  { %12581 = vmatpush3.msra.mxu1 %v16451_v17 }
0x1b99   :  { %9862 = vmatmul.mubr.msk.bf16.gmra.mxu1 %vm17443_vm0, %v17637_v42  ;;  %12582 = vmatprep.subr.mxu1 %v17307_v51  ;;  %v17650_v42 = vld [vmem:[#allocation25_spill] sm:$0xff] }
0x1b9a   :  { %12583 = vmatpush3.msra.mxu1 %v16456_v24  ;;  %12606 = vmatprep.mubr.msk.f32.mxu1 %vm17364_vm6, %v17307_v51 }
0x1b9b   :  { %12584 = vmatprep.subr.mxu1 %v17307_v51 }
0x1b9c   :  { %12585 = vmatpush3.msra.mxu1 %v16462_v50 }
0x1b9d   :  { %12586 = vmatprep.subr.mxu1 %v17307_v51 }
0x1b9e   :  { %12587 = vmatpush3.msra.mxu1 %v16466_v58 }
0x1b9f   :  { %12588 = vmatprep.subr.mxu1 %v17307_v51 }
0x1ba0   :  { %12589 = vmatpush3.msra.mxu1 %v16470_v41 }
0x1ba1   :  { %12590 = vmatprep.subr.mxu1 %v17307_v51 }
0x1ba2   :  { %12591 = vmatpush3.msra.mxu1 %v16474_v40 }
0x1ba3   :  { %12592 = vmatprep.subr.mxu1 %v17307_v51 }
0x1ba4   :  { %12593 = vmatpush3.msra.mxu1 %v16478_v49 }
0x1ba5   :  { %12594 = vmatprep.subr.mxu1 %v17307_v51 }
0x1ba6   :  { %12595 = vmatpush3.msra.mxu1 %v16482_v57 }
0x1ba7   :  { %12596 = vmatprep.subr.mxu1 %v17307_v51 }
0x1ba8   :  { %12597 = vmatpush3.msra.mxu1 %v16486_v48 }
0x1ba9   :  { %12598 = vmatprep.subr.mxu1 %v17307_v51 }
0x1baa   :  { %12599 = vmatpush3.msra.mxu1 %v16490_v45 }
0x1bab   :  { %12600 = vmatprep.subr.mxu1 %v17307_v51 }
0x1bac   :  { %12601 = vmatpush3.msra.mxu1 %v16494_v21 }
0x1bad   :  { %12602 = vmatprep.subr.mxu1 %v17307_v51 }
0x1bae   :  { %12603 = vmatpush3.msra.mxu1 %v16498_v2 }
0x1baf   :  { %12604 = vmatprep.subr.mxu1 %v17307_v51 }
0x1bb0   :  { %12605 = vmatpush3.msra.mxu1 %v16502_v46 }
0x1c31   :  { %v7940_v10 = vpop.f32.mrf.mxu1 }
0x1c32   :  { %v7947_v15 = vrot.slane %v7940_v10, %v13672_v6  ;;  %v17651_v10 = vld [vmem:[#allocation26_spill] sm:$0xff] }
0x1c33   :  { %v12518_v62 = vpop.f32.mrf.mxu1 }
0x1c34   :  { %v16730_v1 = vsub.f32 %v16666_v8, %v7947_v15  ;;  %v16733_v23 = vsub.f32 %v16668_v44, %v7947_v15  ;;  %v16736_v22 = vsub.f32 %v16670_v31, %v7947_v15  ;;  %v16739_v52 = vsub.f32 %v16674_v7, %v7947_v15  ;;  %v17652_v62 = vld [vmem:[#allocation27_spill] sm:$0xff] }
0x1c36   :  { %v7952_v4 = vmul.f32 %v16730_v1, %v16730_v1  ;;  %v7953_v11 = vmul.f32 %v16733_v23, %v16733_v23  ;;  %v7954_v3 = vmul.f32 %v16736_v22, %v16736_v22  ;;  %v7955_v44 = vmul.f32 %v16739_v52, %v16739_v52 }
0x1c38   :  { %v7956_v8 = vadd.f32 %v7953_v11, %v7952_v4 }
0x1c3a   :  { %v7957_v27 = vadd.f32 %v7956_v8, %v7954_v3 }
0x1c3c   :  { %v7958_v0 = vadd.f32 %v7957_v27, %v7955_v44 }
0x1c3e   :  { %v7959_v31 = vrot.slane %v7958_v0, 4 }
0x1c40   :  { %v7960_v39 = vadd.f32 %v7959_v31, %v7958_v0 }
0x1c42   :  { %v7961_v30 = vrot.slane %v7960_v39, 2 }
0x1c44   :  { %v7962_v7 = vadd.f32 %v7961_v30, %v7960_v39 }
0x1c46   :  { %v7963_v43 = vrot.slane %v7962_v7, 1 }
0x1c48   :  { %v7964_v47 = vadd.f32 %v7963_v43, %v7962_v7 }
0x1c4a   :  { %v7965_v13 = vmul.f32 0.03125, %v7964_v47 }
0x1c4c   :  { %12552 = vmatmul.mubr.f32.vlgmr.msra.gmra.mxu0 %v7965_v13 }
0x1c4d   :  { %12555 = vmatpush3.bf16.msra.mxu0 %v13131_v12  ;;  %12570 = vmatprep.mubr.msk.bf16.mxu0 %vm14792_vm3, %v17640_v38 }
0x1c4e   :  { %12556 = vmatprep.subr.bf16.mxu0 %v13132_v36 }
0x1c51   :  { %12557 = vmatpush3.bf16.msra.mxu0 %v13132_v36 }
0x1c52   :  { %12558 = vmatprep.subr.bf16.mxu0 %v13133_v29 }
0x1c55   :  { %12559 = vmatpush3.bf16.msra.mxu0 %v13133_v29 }
0x1c56   :  { %12560 = vmatprep.subr.bf16.mxu0 %v13134_v18 }
0x1c59   :  { %12561 = vmatpush3.bf16.msra.mxu0 %v13134_v18 }
0x1c5a   :  { %12562 = vmatprep.subr.bf16.mxu0 %v13135_v33 }
0x1c5d   :  { %12563 = vmatpush3.bf16.msra.mxu0 %v13135_v33 }
0x1c5e   :  { %12564 = vmatprep.subr.bf16.mxu0 %v13136_v16 }
0x1c61   :  { %12565 = vmatpush3.bf16.msra.mxu0 %v13136_v16 }
0x1c62   :  { %12566 = vmatprep.subr.bf16.mxu0 %v13137_v53 }
0x1c65   :  { %12567 = vmatpush3.bf16.msra.mxu0 %v13137_v53 }
0x1c66   :  { %12568 = vmatprep.subr.bf16.mxu0 %v13138_v14 }
0x1c69   :  { %12569 = vmatpush3.bf16.msra.mxu0 %v13138_v14 }
0x1c6a   :  { %12609 = vmatprep.subr.mxu0 %v17307_v51 }
0x1c6c   :  { %12571 = vmatmul.mubr.msk.bf16.vlgmr.msra.gmra.mxu0 %vm17534_vm1, %v17643_v35 }
0x1c6d   :  { %12610 = vmatpush3.msra.mxu0 %v16439_v5  ;;  %12641 = vmatprep.mubr.msk.f32.mxu0 %vm17364_vm6, %v17307_v51  ;;  %v13139_v5 = vld [vmem:[#allocation2 + $0xb38] sm:$0xff]  }
0x1c6e   :  { %12611 = vmatprep.subr.mxu0 %v17307_v51  ;;  %11094 = vmatprep.subr.bf16.mxu1 %v13139_v5 }
0x1c6f   :  { %12612 = vmatpush3.msra.mxu0 %v16443_v9  ;;  %v17644_v9 = vld [vmem:[#allocation56_spill] sm:$0xff] }
0x1c70   :  { %12613 = vmatprep.subr.mxu0 %v17307_v51 }
0x1c71   :  { %12614 = vmatpush3.msra.mxu0 %v16447_v19  ;;  %v6672_v19 = vadd.f32 1e-05, %v17644_v9 }
0x1c72   :  { %12615 = vmatprep.subr.mxu0 %v17307_v51 }
0x1c73   :  { %12616 = vmatpush3.msra.mxu0 %v16451_v17  ;;  %13199 = vrsqrt.f32 %v6672_v19 }
0x1c74   :  { %12617 = vmatprep.subr.mxu0 %v17307_v51 }
0x1c75   :  { %12618 = vmatpush3.msra.mxu0 %v16456_v24 }
0x1c76   :  { %12619 = vmatprep.subr.mxu0 %v17307_v51 }
0x1c77   :  { %12620 = vmatpush3.msra.mxu0 %v16462_v50 }
0x1c78   :  { %12621 = vmatprep.subr.mxu0 %v17307_v51 }
0x1c79   :  { %12622 = vmatpush3.msra.mxu0 %v16466_v58 }
0x1c7a   :  { %12623 = vmatprep.subr.mxu0 %v17307_v51 }
0x1c7b   :  { %12624 = vmatpush3.msra.mxu0 %v16470_v41 }
0x1c7c   :  { %12625 = vmatprep.subr.mxu0 %v17307_v51 }
0x1c7d   :  { %12626 = vmatpush3.msra.mxu0 %v16474_v40  ;;  %v11038_v40 = vpop.f32.mrf.mxu1 }
0x1c7e   :  { %12627 = vmatprep.subr.mxu0 %v17307_v51 }
0x1c7f   :  { %12628 = vmatpush3.msra.mxu0 %v16478_v49  ;;  %v17645_v49 = vld [vmem:[#allocation30_spill] sm:$0xff]  ;;  %v11039_v37 = vpop.f32.mrf.mxu1 }
0x1c80   :  { %12629 = vmatprep.subr.mxu0 %v17307_v51  ;;  %v13200_v58 = vpop.eup %13199 }
0x1c81   :  { %12630 = vmatpush3.msra.mxu0 %v16482_v57  ;;  %v6677_v41 = vrot.slane %v13200_v58, %v13672_v6  ;;  %v11041_v11 = vpop.f32.mrf.mxu1 }
0x1c82   :  { %12631 = vmatprep.subr.mxu0 %v17307_v51 }
0x1c83   :  { %12632 = vmatpush3.msra.mxu0 %v16486_v48  ;;  %v6678_v57 = vmul.f32 %v6677_v41, %v17645_v49  ;;  %v17646_v48 = vld [vmem:[#allocation29_spill] sm:$0xff]  ;;  %v11042_v7 = vpop.f32.mrf.mxu1  ;;  %v17654_v49 = vld [vmem:[#allocation34_spill] sm:$0xff] }
0x1c84   :  { %12633 = vmatprep.subr.mxu0 %v17307_v51  ;;  %v11043_v26 = vadd.f32 %v11042_v7, %v11041_v11  ;;  %v13157_v7 = vld [vmem:[#allocation2 + $0xbe8] sm:$0xff]  }
0x1c85   :  { %12634 = vmatpush3.msra.mxu0 %v16490_v45  ;;  %v6679_v45 = vmul.f32 %v6677_v41, %v17646_v48  ;;  %v6682_v61 = vadd.f32 %v6678_v57, %v17649_v59  ;;  %v11044_v43 = vpop.f32.mrf.mxu1  ;;  %v13142_v48 = vld [vmem:[#allocation2 + $0xaf0] sm:$0xff]   ;;  %v13152_v59 = vld [vmem:[#allocation2 + $0xac8] sm:$0xff]  }
0x1c86   :  { %12635 = vmatprep.subr.mxu0 %v17307_v51 }
0x1c87   :  { %12636 = vmatpush3.msra.mxu0 %v16494_v21  ;;  %v17647_v21 = vld [vmem:[#allocation51_spill] sm:$0xff]  ;;  %v6683_v12 = vadd.f32 %v6679_v45, %v17650_v42  ;;  %v11045_v47 = vpop.f32.mrf.mxu1  ;;  %v13143_v45 = vld [vmem:[#allocation2 + $0xb28] sm:$0xff]   ;;  %v13154_v42 = vld [vmem:[#allocation2 + $0xac0] sm:$0xff]  }
0x1c88   :  { %12637 = vmatprep.subr.mxu0 %v17307_v51 }
0x1c89   :  { %12638 = vmatpush3.msra.mxu0 %v16498_v2  ;;  %v6680_v2 = vmul.f32 %v6677_v41, %v17647_v21  ;;  %v11047_v36 = vpop.f32.mrf.mxu1  ;;  %v13144_v21 = vld [vmem:[#allocation2 + $0xae8] sm:$0xff]  }
0x1c8a   :  { %12639 = vmatprep.subr.mxu0 %v17307_v51 }
0x1c8b   :  { %12640 = vmatpush3.msra.mxu0 %v16502_v46  ;;  %v17648_v46 = vld [vmem:[#allocation52_spill] sm:$0xff]  ;;  %v6684_v15 = vadd.f32 %v6680_v2, %v17651_v10  ;;  %v13156_v10 = vld [vmem:[#allocation2 + $0xbf0] sm:$0xff]  }
0x1c8c   :  { %v6681_v56 = vmul.f32 %v6677_v41, %v17648_v46  ;;  %v13141_v41 = vld [vmem:[#allocation2 + $0xb30] sm:$0xff]   ;;  %v13145_v2 = vld [vmem:[#allocation2 + $0xb20] sm:$0xff]  }
0x1c8d   :  { %v13146_v46 = vld [vmem:[#allocation2 + $0xae0] sm:$0xff]  }
0x1c8e   :  { %v6685_v4 = vadd.f32 %v6681_v56, %v17652_v62  ;;  %v13147_v56 = vld [vmem:[#allocation2 + $0xb18] sm:$0xff]   ;;  %v17657_v62 = vld [vmem:[#allocation36_spill] sm:$0xff] }
0x1d0c   :  { %v8032_v17 = vpop.f32.mrf.mxu0 }
0x1d0d   :  { %v8036_v24 = vadd.f32 1e-05, %v8032_v17 }
0x1d0e   :  { %v12553_v50 = vpop.f32.mrf.mxu0 }
0x1d0f   :  { %13201 = vrsqrt.f32 %v8036_v24  ;;  %v13140_v50 = vld [vmem:[#allocation2 + $0xaf8] sm:$0xff]  }
0x1d1c   :  { %v13202_v60 = vpop.eup %13201 }
0x1d1d   :  { %v8041_v63 = vrot.slane %v13202_v60, %v13672_v6  ;;  %v13149_v60 = vld [vmem:[#allocation2 + $0xb10] sm:$0xff]  }
0x1d1f   :  { %v8042_v3 = vmul.f32 %v8041_v63, %v16730_v1  ;;  %v8043_v8 = vmul.f32 %v8041_v63, %v16733_v23  ;;  %v8044_v44 = vmul.f32 %v8041_v63, %v16736_v22  ;;  %v8045_v27 = vmul.f32 %v8041_v63, %v16739_v52  ;;  %v11048_v22 = vpop.f32.mrf.mxu1  ;;  %v13150_v63 = vld [vmem:[#allocation2 + $0xad0] sm:$0xff]  }
0x1d20   :  { %v11040_v23 = vadd.f32 %v11039_v37, %v11038_v40  ;;  %v11046_v52 = vadd.f32 %v11045_v47, %v11044_v43  ;;  %v11049_v33 = vadd.f32 %v11048_v22, %v11047_v36  ;;  %v17653_v40 = vld [vmem:[#allocation32_spill] sm:$0xff]  ;;  %v13148_v37 = vld [vmem:[#allocation2 + $0xad8] sm:$0xff]  }
0x1d21   :  { %v16808_v0 = vadd.f32 %v8042_v3, %v6682_v61  ;;  %v16810_v31 = vadd.f32 %v8043_v8, %v6683_v12  ;;  %v16812_v39 = vadd.f32 %v8044_v44, %v6684_v15  ;;  %v16814_v30 = vadd.f32 %v8045_v27, %v6685_v4  ;;  %v13153_v61 = vld [vmem:[#allocation2 + $0xb00] sm:$0xff]   ;;  %v13155_v12 = vld [vmem:[#allocation2 + $0xbf8] sm:$0xff]   ;;  %v17663_v8 = vld [vmem:[#allocation38_spill] sm:$0xff] }
0x1d22   :  { %v17655_v57 = vpack.c.bf16 %v17653_v40, %v17654_v49  ;;  %v17656_v15 = vld [vmem:[#allocation35_spill] sm:$0xff]  ;;  %v17664_v44 = vld [vmem:[#allocation37_spill] sm:$0xff]  ;;  %v13158_v43 = vld [vmem:[#allocation2 + $0xbe0] sm:$0xff]  }
0x1d23   :  { %v17658_v4 = vpack.c.bf16 %v17656_v15, %v17657_v62  ;;  %v17660_v3 = vld [vmem:[#allocation39_spill] sm:$0xff]  ;;  %v17665_v27 = vpack.c.bf16 %v17663_v8, %v17664_v44  ;;  %v16909_v49 = vld [vmem:[#allocation8 + $0x30] sm:$0xff] }
0x1d24   :  { %v17666_v47 = vld [vmem:[#allocation47_spill] sm:$0xff] }
0x1d25   :  { %v13159_v22 = vld [vmem:[#allocation2 + $0xbd8] sm:$0xff]  }
0x1d26   :  { %v16905_v40 = vld [vmem:[#allocation8 + $0x38] sm:$0xff] }
0x1d27   :  { %v13164_v44 = vld [vmem:[#allocation2 + $0xb78] sm:$0xff]  }
0x1d2c   :  { %v12572_v13 = vpop.f32.mrf.mxu0 }
0x1d2d   :  { %v16820_v16 = vadd.f32 %v12572_v13, %v11046_v52  ;;  %v17667_v13 = vld [vmem:[#allocation48_spill] sm:$0xff]  ;;  %v13161_v52 = vld [vmem:[#allocation2 + $0xbc8] sm:$0xff]  }
0x1d2e   :  { %v8359_v1 = vpop.f32.mrf.mxu0  ;;  %v17668_v36 = vpack.c.bf16 %v17666_v47, %v17667_v13  ;;  %v17674_v54 = vpack.c.bf16 %v17667_v13, %v17656_v15 }
0x1d2f   :  { %v16816_v29 = vadd.f32 %v11040_v23, %v8359_v1  ;;  %v17669_v1 = vld [vmem:[#allocation22_spill] sm:$0xff]  ;;  %v17675_v23 = vld [vmem:[#allocation41_spill] sm:$0xff] }
0x1d30   :  { %v12573_v32 = vpop.f32.mrf.mxu0  ;;  %vm17670_vm15 = vnez %v17669_v1  ;;  %v13167_v1 = vld [vmem:[#allocation2 + $0xba8] sm:$0xff]  }
0x1d31   :  { %v16824_v14 = vadd.f32 %v12573_v32, %v11049_v33  ;;  %v17671_v32 = vld [vmem:[#allocation42_spill] sm:$0xff]  ;;  %v13162_v33 = vld [vmem:[#allocation2 + $0xbc0] sm:$0xff]  }
0x1d32   :  { %v8362_v38 = vpop.f32.mrf.mxu0 }
0x1d33   :  { %v16818_v18 = vadd.f32 %v11043_v26, %v8362_v38  ;;  %v17677_v26 = vld [vmem:[#allocation23_spill] sm:$0xff]  ;;  %v13160_v38 = vld [vmem:[#allocation2 + $0xbd0] sm:$0xff]  }
0x1d34   :  { %vm17678_vm10 = vnez %v17677_v26  ;;  %v13171_v26 = vld [vmem:[#allocation2 + $0xb98] sm:$0xff]  }
0x1d35   :  { %v8374_v53 = vadd.f32 %v16818_v18, %v16816_v29 }
0x1d37   :  { %v8375_v55 = vadd.f32 %v8374_v53, %v16820_v16  ;;  %v17680_v53 = vpack.c.bf16 %v17657_v62, %v17666_v47  ;;  %v17687_v47 = vld [vmem:[#allocation49_spill] sm:$0xff] }
0x1d39   :  { %v8376_v20 = vadd.f32 %v8375_v55, %v16824_v14  ;;  %v17681_v55 = vld [vmem:[#allocation24_spill] sm:$0xff] }
0x1d3a   :  { %vm17682_vm14 = vnez %v17681_v55  ;;  %v13178_v55 = vld [vmem:[#allocation2 + $0xb40] sm:$0xff]  }
0x1d3b   :  { %v8377_v35 = vrot.slane %v8376_v20, 4 }
0x1d3d   :  { %v8378_v5 = vadd.f32 %v8377_v35, %v8376_v20  ;;  %v17683_v20 = vld [vmem:[#allocation21_spill] sm:$0xff]  ;;  %v16871_v35 = vld [vmem:[#allocation8 + $0x78] sm:$0xff] }
0x1d3e   :  { %vm17684_vm7 = vnez %v17683_v20  ;;  %v17689_v20 = vld [vmem:[#allocation45_spill] sm:$0xff] }
0x1d3f   :  { %v8379_v9 = vrot.slane %v8378_v5, 2  ;;  %vm17685_vm13 = vmpackc.low %vm17682_vm14, %vm17684_vm7 }
0x1d41   :  { %v8380_v19 = vadd.f32 %v8379_v9, %v8378_v5  ;;  %v16877_v5 = vld [vmem:[#allocation8 + $0x70] sm:$0xff]  ;;  %v16881_v9 = vld [vmem:[#allocation8 + $0x68] sm:$0xff] }
0x1d43   :  { %v8381_v17 = vrot.slane %v8380_v19, 1 }
0x1d45   :  { %v8382_v24 = vadd.f32 %v8381_v17, %v8380_v19  ;;  %v16885_v19 = vld [vmem:[#allocation8 + $0x60] sm:$0xff]  ;;  %v16889_v17 = vld [vmem:[#allocation8 + $0x58] sm:$0xff] }
0x1d47   :  { %v8383_v58 = vmul.f32 0.03125, %v8382_v24  ;;  %v16893_v24 = vld [vmem:[#allocation8 + $0x50] sm:$0xff] }
0x1d49   :  { %12607 = vmatmul.mubr.f32.vlgmr.msra.gmra.mxu1 %v8383_v58  ;;  %v13163_v58 = vld [vmem:[#allocation2 + $0xbb8] sm:$0xff]  }
0x1d4a   :  { %11095 = vmatpush3.bf16.msra.mxu1 %v13140_v50  ;;  %9911 = vmatprep.mubr.msk.bf16.mxu1 %vm14719_vm5, %v17655_v57  ;;  %vm17661_vm5 = vnez %v17660_v3  ;;  %v16897_v50 = vld [vmem:[#allocation8 + $0x48] sm:$0xff] }
0x1d4b   :  { %11096 = vmatprep.subr.bf16.mxu1 %v13141_v41  ;;  %vm17662_vm8 = vmpackc.low %vm15484_vm4, %vm17661_vm5  ;;  %vm17672_vm4 = vnez %v17671_v32  ;;  %v16901_v41 = vld [vmem:[#allocation8 + $0x40] sm:$0xff]  ;;  %11122 = vmatprep.subr.bf16.mxu0 %v13163_v58  ;;  %v16913_v57 = vld [vmem:[#allocation8 + $0x28] sm:$0xff] }
0x1d4c   :  { %vm17673_vm2 = vmpackc.low %vm17670_vm15, %vm17672_vm4  ;;  %v13168_v32 = vld [vmem:[#allocation2 + $0xb68] sm:$0xff]   ;;  %v17690_v58 = vld [vmem:[#allocation43_spill] sm:$0xff] }
0x1d4e   :  { %11097 = vmatpush3.bf16.msra.mxu1 %v13142_v48  ;;  %v16917_v48 = vld [vmem:[#allocation8 + $0x20] sm:$0xff] }
0x1d4f   :  { %11098 = vmatprep.subr.bf16.mxu1 %v13143_v45  ;;  %v16921_v45 = vld [vmem:[#allocation8 + $0x18] sm:$0xff] }
0x1d52   :  { %11099 = vmatpush3.bf16.msra.mxu1 %v13144_v21  ;;  %v16925_v21 = vld [vmem:[#allocation8 + $0x10] sm:$0xff] }
0x1d53   :  { %11100 = vmatprep.subr.bf16.mxu1 %v13145_v2  ;;  %v16929_v2 = vld [vmem:[#allocation8 + $0x8] sm:$0xff] }
0x1d56   :  { %11101 = vmatpush3.bf16.msra.mxu1 %v13146_v46  ;;  %v16933_v46 = vld [vmem:[#allocation8] sm:$0xff] }
0x1d57   :  { %11102 = vmatprep.subr.bf16.mxu1 %v13147_v56 }
0x1d5a   :  { %11103 = vmatpush3.bf16.msra.mxu1 %v13148_v37 }
0x1d5b   :  { %11104 = vmatprep.subr.bf16.mxu1 %v13149_v60 }
0x1d5e   :  { %11105 = vmatpush3.bf16.msra.mxu1 %v13150_v63 }
0x1d5f   :  { %11106 = vmatprep.subr.bf16.mxu1 %v13151_v25 }
0x1d62   :  { %11107 = vmatpush3.bf16.msra.mxu1 %v13152_v59 }
0x1d63   :  { %11108 = vmatprep.subr.bf16.mxu1 %v13153_v61 }
0x1d66   :  { %11109 = vmatpush3.bf16.msra.mxu1 %v13154_v42 }
0x1d67   :  { %12644 = vmatprep.subr.bf16.mxu1 %v13155_v12 }
0x1d69   :  { %9914 = vmatmul.mubr.msk.bf16.vlgmr.msra.gmra.mxu1 %vm17662_vm8, %v17658_v4 }
0x1d6a   :  { %9917 = vmatprep.mubr.msk.bf16.mxu1 %vm17443_vm0, %v17665_v27  ;;  %12645 = vmatpush3.bf16.msra.mxu1 %v13155_v12  ;;  %vm17676_vm0 = vnez %v17675_v23  ;;  %v13170_v23 = vld [vmem:[#allocation2 + $0xb60] sm:$0xff]  }
0x1d6b   :  { %12646 = vmatprep.subr.bf16.mxu1 %v13156_v10  ;;  %vm17679_vm9 = vmpackc.low %vm17676_vm0, %vm17678_vm10 }
0x1d6e   :  { %12647 = vmatpush3.bf16.msra.mxu1 %v13156_v10 }
0x1d6f   :  { %12648 = vmatprep.subr.bf16.mxu1 %v13157_v7 }
0x1d71   :  { %9920 = vmatmul.mubr.msk.bf16.gmra.mxu1 %vm17673_vm2, %v17668_v36  ;;  %v13166_v36 = vld [vmem:[#allocation2 + $0xb70] sm:$0xff]  }
0x1d72   :  { %12649 = vmatpush3.bf16.msra.mxu1 %v13157_v7  ;;  %12660 = vmatprep.mubr.msk.bf16.mxu1 %vm17679_vm9, %v17674_v54  ;;  %v13165_v7 = vld [vmem:[#allocation2 + $0xbb0] sm:$0xff]   ;;  %v13169_v54 = vld [vmem:[#allocation2 + $0xba0] sm:$0xff]  }
0x1d73   :  { %12650 = vmatprep.subr.bf16.mxu1 %v13158_v43 }
0x1d76   :  { %12651 = vmatpush3.bf16.msra.mxu1 %v13158_v43  ;;  %v17686_v43 = vld [vmem:[#allocation50_spill] sm:$0xff] }
0x1d77   :  { %12652 = vmatprep.subr.bf16.mxu1 %v13159_v22  ;;  %v17688_v13 = vpack.c.bf16 %v17686_v43, %v17687_v47 }
0x1d7a   :  { %12653 = vmatpush3.bf16.msra.mxu1 %v13159_v22  ;;  %v13172_v22 = vld [vmem:[#allocation2 + $0xb58] sm:$0xff]  }
0x1d7b   :  { %12654 = vmatprep.subr.bf16.mxu1 %v13160_v38 }
0x1d7e   :  { %12655 = vmatpush3.bf16.msra.mxu1 %v13160_v38  ;;  %v13173_v38 = vld [vmem:[#allocation2 + $0xb90] sm:$0xff]  }
0x1d7f   :  { %12656 = vmatprep.subr.bf16.mxu1 %v13161_v52 }
0x1d82   :  { %12657 = vmatpush3.bf16.msra.mxu1 %v13161_v52  ;;  %v13174_v52 = vld [vmem:[#allocation2 + $0xb50] sm:$0xff]  }
0x1d83   :  { %12658 = vmatprep.subr.bf16.mxu1 %v13162_v33 }
0x1d86   :  { %12659 = vmatpush3.bf16.msra.mxu1 %v13162_v33  ;;  %v13176_v33 = vld [vmem:[#allocation2 + $0xb48] sm:$0xff]  }
0x1d87   :  { %12699 = vmatprep.subr.mxu1 %v17307_v51 }
0x1d89   :  { %12661 = vmatmul.mubr.msk.bf16.vlgmr.msra.gmra.mxu1 %vm17685_vm13, %v17680_v53  ;;  %v13177_v53 = vld [vmem:[#allocation2 + $0xb80] sm:$0xff]  }
0x1d8a   :  { %12700 = vmatpush3.msra.mxu1 %v16871_v35  ;;  %12731 = vmatprep.mubr.msk.f32.mxu1 %vm17364_vm6, %v17307_v51 }
0x1d8b   :  { %12701 = vmatprep.subr.mxu1 %v17307_v51 }
0x1d8c   :  { %12702 = vmatpush3.msra.mxu1 %v16877_v5 }
0x1d8d   :  { %12703 = vmatprep.subr.mxu1 %v17307_v51 }
0x1d8e   :  { %12704 = vmatpush3.msra.mxu1 %v16881_v9 }
0x1d8f   :  { %12705 = vmatprep.subr.mxu1 %v17307_v51 }
0x1d90   :  { %12706 = vmatpush3.msra.mxu1 %v16885_v19 }
0x1d91   :  { %12707 = vmatprep.subr.mxu1 %v17307_v51 }
0x1d92   :  { %12708 = vmatpush3.msra.mxu1 %v16889_v17 }
0x1d93   :  { %12709 = vmatprep.subr.mxu1 %v17307_v51 }
0x1d94   :  { %12710 = vmatpush3.msra.mxu1 %v16893_v24 }
0x1d95   :  { %12711 = vmatprep.subr.mxu1 %v17307_v51 }
0x1d96   :  { %12712 = vmatpush3.msra.mxu1 %v16897_v50 }
0x1d97   :  { %12713 = vmatprep.subr.mxu1 %v17307_v51 }
0x1d98   :  { %12714 = vmatpush3.msra.mxu1 %v16901_v41 }
0x1d99   :  { %12715 = vmatprep.subr.mxu1 %v17307_v51 }
0x1d9a   :  { %12716 = vmatpush3.msra.mxu1 %v16905_v40 }
0x1d9b   :  { %12717 = vmatprep.subr.mxu1 %v17307_v51 }
0x1d9c   :  { %12718 = vmatpush3.msra.mxu1 %v16909_v49 }
0x1d9d   :  { %12719 = vmatprep.subr.mxu1 %v17307_v51 }
0x1d9e   :  { %12720 = vmatpush3.msra.mxu1 %v16913_v57 }
0x1d9f   :  { %12721 = vmatprep.subr.mxu1 %v17307_v51 }
0x1da0   :  { %12722 = vmatpush3.msra.mxu1 %v16917_v48 }
0x1da1   :  { %12723 = vmatprep.subr.mxu1 %v17307_v51 }
0x1da2   :  { %12724 = vmatpush3.msra.mxu1 %v16921_v45 }
0x1da3   :  { %12725 = vmatprep.subr.mxu1 %v17307_v51 }
0x1da4   :  { %12726 = vmatpush3.msra.mxu1 %v16925_v21 }
0x1da5   :  { %12727 = vmatprep.subr.mxu1 %v17307_v51 }
0x1da6   :  { %12728 = vmatpush3.msra.mxu1 %v16929_v2 }
0x1da7   :  { %12729 = vmatprep.subr.mxu1 %v17307_v51 }
0x1da8   :  { %12730 = vmatpush3.msra.mxu1 %v16933_v46 }
0x1e09   :  { %v8450_v56 = vpop.f32.mrf.mxu1 }
0x1e0a   :  { %v8457_v37 = vrot.slane %v8450_v56, %v13672_v6  ;;  %v17691_v56 = vpack.c.bf16 %v17689_v20, %v17690_v58 }
0x1e0b   :  { %v12608_v60 = vpop.f32.mrf.mxu1 }
0x1e0c   :  { %v16938_v63 = vsub.f32 %v16816_v29, %v8457_v37  ;;  %v16941_v25 = vsub.f32 %v16818_v18, %v8457_v37  ;;  %v16944_v59 = vsub.f32 %v16820_v16, %v8457_v37  ;;  %v16947_v61 = vsub.f32 %v16824_v14, %v8457_v37  ;;  %v17692_v37 = vld [vmem:[#allocation53_spill] sm:$0xff]  ;;  %v17693_v60 = vld [vmem:[#allocation55_spill] sm:$0xff] }
0x1e0e   :  { %v8462_v42 = vmul.f32 %v16938_v63, %v16938_v63  ;;  %v8463_v12 = vmul.f32 %v16941_v25, %v16941_v25  ;;  %v8464_v10 = vmul.f32 %v16944_v59, %v16944_v59  ;;  %v8465_v18 = vmul.f32 %v16947_v61, %v16947_v61 }
0x1e10   :  { %v8466_v29 = vadd.f32 %v8463_v12, %v8462_v42  ;;  %v17694_v42 = vpack.c.bf16 %v17692_v37, %v17693_v60  ;;  %v17695_v12 = vld [vmem:[#allocation31_spill] sm:$0xff] }
0x1e12   :  { %v8467_v15 = vadd.f32 %v8466_v29, %v8464_v10  ;;  %v17696_v10 = vld [vmem:[#allocation33_spill] sm:$0xff] }
0x1e13   :  { %v17697_v29 = vpack.c.bf16 %v17695_v12, %v17696_v10 }
0x1e14   :  { %v8468_v62 = vadd.f32 %v8467_v15, %v8465_v18 }
0x1e16   :  { %v8469_v16 = vrot.slane %v8468_v62, 4 }
0x1e18   :  { %v8470_v4 = vadd.f32 %v8469_v16, %v8468_v62 }
0x1e1a   :  { %v8471_v11 = vrot.slane %v8470_v4, 2 }
0x1e1c   :  { %v8472_v14 = vadd.f32 %v8471_v11, %v8470_v4 }
0x1e1e   :  { %v8473_v3 = vrot.slane %v8472_v14, 1 }
0x1e20   :  { %v8474_v8 = vadd.f32 %v8473_v3, %v8472_v14 }
0x1e22   :  { %v8475_v27 = vmul.f32 0.03125, %v8474_v8 }
0x1e24   :  { %12642 = vmatmul.mubr.f32.vlgmr.msra.gmra.mxu0 %v8475_v27 }
0x1e25   :  { %11123 = vmatpush3.bf16.msra.mxu0 %v13164_v44  ;;  %9923 = vmatprep.mubr.msk.bf16.mxu0 %vm14792_vm3, %v17688_v13 }
0x1e26   :  { %11124 = vmatprep.subr.bf16.mxu0 %v13165_v7 }
0x1e29   :  { %11125 = vmatpush3.bf16.msra.mxu0 %v13166_v36 }
0x1e2a   :  { %11126 = vmatprep.subr.bf16.mxu0 %v13167_v1 }
0x1e2d   :  { %11127 = vmatpush3.bf16.msra.mxu0 %v13168_v32 }
0x1e2e   :  { %11128 = vmatprep.subr.bf16.mxu0 %v13169_v54 }
0x1e31   :  { %11129 = vmatpush3.bf16.msra.mxu0 %v13170_v23 }
0x1e32   :  { %11130 = vmatprep.subr.bf16.mxu0 %v13171_v26 }
0x1e35   :  { %11131 = vmatpush3.bf16.msra.mxu0 %v13172_v22 }
0x1e36   :  { %11132 = vmatprep.subr.bf16.mxu0 %v13173_v38 }
0x1e39   :  { %11133 = vmatpush3.bf16.msra.mxu0 %v13174_v52 }
0x1e3a   :  { %11134 = vmatprep.subr.bf16.mxu0 %v13175_v28 }
0x1e3d   :  { %11135 = vmatpush3.bf16.msra.mxu0 %v13176_v33 }
0x1e3e   :  { %11136 = vmatprep.subr.bf16.mxu0 %v13177_v53 }
0x1e41   :  { %11137 = vmatpush3.bf16.msra.mxu0 %v13178_v55 }
0x1e42   :  { %12664 = vmatprep.subr.mxu0 %v17307_v51 }
0x1e44   :  { %9016 = vmatmul.mubr.bf16.vlgmr.msra.gmra.mxu0 %v17691_v56 }
0x1e45   :  { %9926 = vmatprep.mubr.msk.bf16.mxu0 %vm17534_vm1, %v17694_v42  ;;  %12665 = vmatpush3.msra.mxu0 %v16871_v35 }
0x1e46   :  { %12666 = vmatprep.subr.mxu0 %v17307_v51 }
0x1e47   :  { %12667 = vmatpush3.msra.mxu0 %v16877_v5  ;;  %v11110_v5 = vpop.f32.mrf.mxu1 }
0x1e48   :  { %12668 = vmatprep.subr.mxu0 %v17307_v51 }
0x1e49   :  { %12669 = vmatpush3.msra.mxu0 %v16881_v9 }
0x1e4a   :  { %12670 = vmatprep.subr.mxu0 %v17307_v51 }
0x1e4b   :  { %12671 = vmatpush3.msra.mxu0 %v16885_v19  ;;  %v11111_v19 = vpop.f32.mrf.mxu1 }
0x1e4c   :  { %9024 = vmatmul.mubr.bf16.gmra.mxu0 %v17697_v29  ;;  %12672 = vmatprep.subr.mxu0 %v17307_v51  ;;  %v11112_v8 = vadd.f32 %v11111_v19, %v11110_v5 }
0x1e4d   :  { %12673 = vmatpush3.msra.mxu0 %v16889_v17  ;;  %12696 = vmatprep.mubr.msk.f32.mxu0 %vm17364_vm6, %v17307_v51  ;;  %v11113_v17 = vpop.f32.mrf.mxu1 }
0x1e4e   :  { %12674 = vmatprep.subr.mxu0 %v17307_v51 }
0x1e4f   :  { %12675 = vmatpush3.msra.mxu0 %v16893_v24  ;;  %v11114_v24 = vpop.f32.mrf.mxu1 }
0x1e50   :  { %12676 = vmatprep.subr.mxu0 %v17307_v51 }
0x1e51   :  { %12677 = vmatpush3.msra.mxu0 %v16897_v50 }
0x1e52   :  { %12678 = vmatprep.subr.mxu0 %v17307_v51 }
0x1e53   :  { %12679 = vmatpush3.msra.mxu0 %v16901_v41 }
0x1e54   :  { %12680 = vmatprep.subr.mxu0 %v17307_v51 }
0x1e55   :  { %12681 = vmatpush3.msra.mxu0 %v16905_v40  ;;  %v11116_v40 = vpop.f32.mrf.mxu1 }
0x1e56   :  { %12682 = vmatprep.subr.mxu0 %v17307_v51 }
0x1e57   :  { %12683 = vmatpush3.msra.mxu0 %v16909_v49  ;;  %v11117_v18 = vpop.f32.mrf.mxu1 }
0x1e58   :  { %12684 = vmatprep.subr.mxu0 %v17307_v51  ;;  %v11118_v27 = vadd.f32 %v11117_v18, %v11116_v40 }
0x1e59   :  { %12685 = vmatpush3.msra.mxu0 %v16913_v57 }
0x1e5a   :  { %12686 = vmatprep.subr.mxu0 %v17307_v51 }
0x1e5b   :  { %12687 = vmatpush3.msra.mxu0 %v16917_v48 }
0x1e5c   :  { %12688 = vmatprep.subr.mxu0 %v17307_v51 }
0x1e5d   :  { %12689 = vmatpush3.msra.mxu0 %v16921_v45 }
0x1e5e   :  { %12690 = vmatprep.subr.mxu0 %v17307_v51 }
0x1e5f   :  { %12691 = vmatpush3.msra.mxu0 %v16925_v21 }
0x1e60   :  { %12692 = vmatprep.subr.mxu0 %v17307_v51 }
0x1e61   :  { %12693 = vmatpush3.msra.mxu0 %v16929_v2 }
0x1e62   :  { %12694 = vmatprep.subr.mxu0 %v17307_v51 }
0x1e63   :  { %12695 = vmatpush3.msra.mxu0 %v16933_v46 }
0x1ee4   :  { %v8542_v34 = vpop.f32.mrf.mxu0 }
0x1ee5   :  { %v8546_v35 = vadd.f32 1e-05, %v8542_v34 }
0x1ee6   :  { %v12643_v9 = vpop.f32.mrf.mxu0 }
0x1ee7   :  { %13203 = vrsqrt.f32 %v8546_v35 }
0x1ef4   :  { %v13204_v50 = vpop.eup %13203 }
0x1ef5   :  { %v8551_v41 = vrot.slane %v13204_v50, %v13672_v6 }
0x1ef7   :  { %v8552_v49 = vmul.f32 %v8551_v41, %v16938_v63  ;;  %v8553_v57 = vmul.f32 %v8551_v41, %v16941_v25  ;;  %v8554_v51 = vmul.f32 %v8551_v41, %v16944_v59  ;;  %v8555_v48 = vmul.f32 %v8551_v41, %v16947_v61  ;;  %v11119_v63 = vpop.f32.mrf.mxu1 }
0x1ef9   :  { %v17013_v45 = vadd.f32 %v8552_v49, %v16808_v0  ;;  %v17016_v21 = vadd.f32 %v8553_v57, %v16810_v31  ;;  %v17019_v2 = vadd.f32 %v8554_v51, %v16812_v39  ;;  %v17022_v46 = vadd.f32 %v8555_v48, %v16814_v30  ;;  %v11120_v15 = vpop.f32.mrf.mxu1 }
0x1efa   :  { %v11115_v0 = vadd.f32 %v11114_v24, %v11113_v17  ;;  %v11121_v32 = vadd.f32 %v11120_v15, %v11119_v63 }
0x1efb   :  { %v12662_v25 = vpop.f32.mrf.mxu1 }
0x1efd   :  { %v9066_v16 = vpop.f32.mrf.mxu1 }
0x1eff   :  { %v12663_v31 = vpop.f32.mrf.mxu1 }
0x1f01   :  { %v9069_v43 = vpop.f32.mrf.mxu1 }
0x1f04   :  { %v11138_v62 = vpop.f32.mrf.mxu0 }
0x1f06   :  { %v11139_v59 = vpop.f32.mrf.mxu0 }
0x1f07   :  { %v11140_v11 = vadd.f32 %v11139_v59, %v11138_v62 }
0x1f08   :  { %v11141_v61 = vpop.f32.mrf.mxu0 }
0x1f09   :  { %v9018_v30 = vadd.f32 %v11140_v11, %v11112_v8 }
0x1f0a   :  { %v11142_v4 = vpop.f32.mrf.mxu0 }
0x1f0b   :  { %v11143_v14 = vadd.f32 %v11142_v4, %v11141_v61  ;;  %v9067_v54 = vadd.f32 %v9066_v16, %v9018_v30 }
0x1f0c   :  { %v11144_v3 = vpop.f32.mrf.mxu0 }
0x1f0d   :  { %v9021_v39 = vadd.f32 %v11143_v14, %v11115_v0 }
0x1f0e   :  { %v11145_v44 = vpop.f32.mrf.mxu0 }
0x1f0f   :  { %v11146_v7 = vadd.f32 %v11145_v44, %v11144_v3  ;;  %v9070_v13 = vadd.f32 %v9069_v43, %v9021_v39 }
0x1f10   :  { %v11147_v47 = vpop.f32.mrf.mxu0 }
0x1f11   :  { %v9026_v36 = vadd.f32 %v11146_v7, %v11118_v27  ;;  %v9081_v22 = vadd.f32 %v9070_v13, %v9067_v54 }
0x1f12   :  { %v11148_v1 = vpop.f32.mrf.mxu0 }
0x1f13   :  { %v9075_v23 = vadd.f32 %v12662_v25, %v9026_v36  ;;  %v11149_v26 = vadd.f32 %v11148_v1, %v11147_v47 }
0x1f15   :  { %v9029_v38 = vadd.f32 %v11149_v26, %v11121_v32  ;;  %v9082_v52 = vadd.f32 %v9081_v22, %v9075_v23 }
0x1f17   :  { %v9078_v28 = vadd.f32 %v12663_v31, %v9029_v38 }
0x1f19   :  { %v9083_v33 = vadd.f32 %v9082_v52, %v9078_v28 }
0x1f1b   :  { %v9084_v53 = vrot.slane %v9083_v33, 4 }
0x1f1d   :  { %v9085_v55 = vadd.f32 %v9084_v53, %v9083_v33 }
0x1f1f   :  { %v9086_v20 = vrot.slane %v9085_v55, 2 }
0x1f21   :  { %v9087_v58 = vadd.f32 %v9086_v20, %v9085_v55 }
0x1f23   :  { %v9088_v56 = vrot.slane %v9087_v58, 1 }
0x1f25   :  { %v9089_v37 = vadd.f32 %v9088_v56, %v9087_v58 }
0x1f27   :  { %v9090_v60 = vmul.f32 0.03125, %v9089_v37 }
0x1f29   :  { %12697 = vmatmul.mubr.f32.vlgmr.msra.gmra.mxu0 %v9090_v60 }
0x1fe9   :  { %v9157_v42 = vpop.f32.mrf.mxu0 }
0x1fea   :  { %v9164_v12 = vrot.slane %v9157_v42, %v13672_v6 }
0x1feb   :  { %v12698_v10 = vpop.f32.mrf.mxu0 }
0x1fec   :  { %v9165_v29 = vsub.f32 %v9067_v54, %v9164_v12  ;;  %v9166_v34 = vsub.f32 %v9070_v13, %v9164_v12  ;;  %v9167_v35 = vsub.f32 %v9075_v23, %v9164_v12  ;;  %v9168_v5 = vsub.f32 %v9078_v28, %v9164_v12 }
0x1fee   :  { %v9169_v9 = vmul.f32 %v9165_v29, %v9165_v29  ;;  %v9170_v19 = vmul.f32 %v9166_v34, %v9166_v34  ;;  %v9171_v17 = vmul.f32 %v9167_v35, %v9167_v35  ;;  %v9172_v50 = vmul.f32 %v9168_v5, %v9168_v5 }
0x1ff0   :  { %v9173_v24 = vadd.f32 %v9170_v19, %v9169_v9 }
0x1ff2   :  { %v9174_v41 = vadd.f32 %v9173_v24, %v9171_v17 }
0x1ff4   :  { %v9175_v40 = vadd.f32 %v9174_v41, %v9172_v50 }
0x1ff6   :  { %v9176_v49 = vrot.slane %v9175_v40, 4 }
0x1ff8   :  { %v9177_v57 = vadd.f32 %v9176_v49, %v9175_v40 }
0x1ffa   :  { %v9178_v51 = vrot.slane %v9177_v57, 2 }
0x1ffc   :  { %v9179_v48 = vadd.f32 %v9178_v51, %v9177_v57 }
0x1ffe   :  { %v9180_v18 = vrot.slane %v9179_v48, 1 }
0x2000   :  { %v9181_v63 = vadd.f32 %v9180_v18, %v9179_v48 }
0x2002   :  { %v9182_v15 = vmul.f32 0.03125, %v9181_v63 }
0x2004   :  { %12732 = vmatmul.mubr.f32.vlgmr.msra.gmra.mxu1 %v9182_v15 }
0x20c4   :  { %v9249_v25 = vpop.f32.mrf.mxu1 }
0x20c5   :  { %v9253_v62 = vadd.f32 1e-05, %v9249_v25 }
0x20c6   :  { %v12733_v59 = vpop.f32.mrf.mxu1 }
0x20c7   :  { %13205 = vrsqrt.f32 %v9253_v62 }
0x20d4   :  { %v13206_v16 = vpop.eup %13205 }
0x20d5   :  { %v9258_v61 = vrot.slane %v13206_v16, %v13672_v6 }
0x20d7   :  { %v9259_v4 = vmul.f32 %v9258_v61, %v9165_v29  ;;  %v9260_v0 = vmul.f32 %v9258_v61, %v9166_v34  ;;  %v9261_v11 = vmul.f32 %v9258_v61, %v9167_v35  ;;  %v9262_v14 = vmul.f32 %v9258_v61, %v9168_v5 }
0x20d9   :  { %v9263_v31 = vadd.f32 %v9259_v4, %v17013_v45  ;;  %v9264_v3 = vadd.f32 %v9260_v0, %v17016_v21  ;;  %v9265_v8 = vadd.f32 %v9261_v11, %v17019_v2  ;;  %v9266_v39 = vadd.f32 %v9262_v14, %v17022_v46 }
0x20db   :  { %9933 = vst [vmem:[%s17050_s8 + $0x60] sm:$0xff] %v9263_v31  ;;  %9934 = vst [vmem:[%s17050_s8 + $0x68] sm:$0xff] %v9264_v3 }
0x20dc   :  { %9935 = vst [vmem:[%s17050_s8 + $0x70] sm:$0xff] %v9265_v8  ;;  %9936 = vst [vmem:[%s17050_s8 + $0x78] sm:$0xff] %v9266_v39 }
0x20dd   :  { %9276 = vsyncpa [#allocation5], 1 }
0x20de   :  { %9277 = vsyncpa [#allocation7], 1 }
0x20df   :  { %9278 = vsyncpa [#allocation10], 1 }
0x20e0   :  { %9279 = vsyncmov [#allocation3] }
0x20e3   :  { %s9280_s5 = vpop.sfrf %9279 }
0x20e4   :  { %p9937_p2 = scmp.ne.s32.totalorder %s9280_s5, 0 }
0x20e6   :  { %9284 = shalt.err (%p9937_p2)  }

</bundles_post_ra>
